<compile_context>
chip_gen: v7x
topology: tpu7x:2x2x1
jax: 0.10.0
libtpu: 0.0.40
codegen_flags: <defaults>
</compile_context>

<pallas_src>
import functools

import jax
import jax.numpy as jnp
import numpy as np
from jax.experimental import pallas as pl
from jax.experimental.pallas import tpu as pltpu


# ----------------------------------------------------------------------------
# Pallas kernel: one batch element per grid step, all three conv stages fused.
# ----------------------------------------------------------------------------
def _conv_cat_kernel(x_ref, w1_ref, b1_ref, w2_ref, b2_ref, w3_ref, b3_ref,
                     o_ref, pad_ref, patch_ref, acc_ref, *, H, W, Cout):
    HW = H * W
    C = pad_ref.shape[-1]                    # lane-padded channel count (128k)

    # Zero the two W-row halo bands ONCE.  Safe because (a) the scratch
    # persists across grid iterations, (b) interior writes below only touch
    # rows [W, W+HW) and never the halo bands, and (c) the grid axis is
    # "arbitrary" (sequential), so step 0 runs first on the core that owns
    # this scratch.
    @pl.when(pl.program_id(0) == 0)
    def _():
        pad_ref[0:W, :] = jnp.zeros((W, C), jnp.float32)
        pad_ref[(H + 1) * W:(H + 2) * W, :] = jnp.zeros((W, C), jnp.float32)

    # ---- stage 1: 1x1 conv (BN scale pre-folded, bf16 MXU) + bias + ReLU ---
    y = jnp.dot(x_ref[0], w1_ref[...],
                preferred_element_type=jnp.float32)            # (HW, C)
    y = jnp.maximum(y + b1_ref[...], 0.0)
    pad_ref[W:W + HW, :] = y                                   # interior write

    # ---- 3x3 conv (padding=1): three accumulating K=3*C matmuls -----------
    def conv3x3_bias_relu(w_ref, b_ref):
        for dy in range(3):                                    # static unroll
            slot = dy % 2                                      # double buffer
            rows = pad_ref[dy * W:dy * W + HW, :]              # aligned slice
            # Recompute the column-edge masks per dy (a couple of VPU ops);
            # avoids keeping full (HW, C) masks live across both stages.
            wcol = jax.lax.broadcasted_iota(jnp.int32, (HW, C), 0) % W
            left = jnp.where(wcol >= 1,
                             pltpu.roll(rows, shift=1, axis=0), 0.0)
            patch_ref[slot, :, 0 * C:1 * C] = left.astype(jnp.bfloat16)
            patch_ref[slot, :, 1 * C:2 * C] = rows.astype(jnp.bfloat16)
            right = jnp.where(wcol <= W - 2,
                              pltpu.roll(rows, shift=HW - 1, axis=0), 0.0)
            patch_ref[slot, :, 2 * C:3 * C] = right.astype(jnp.bfloat16)
            part = jnp.dot(patch_ref[slot], w_ref[dy],
                           preferred_element_type=jnp.float32)  # (HW, C)
            if dy == 0:
                acc_ref[...] = part
            else:
                acc_ref[...] += part
        return jnp.maximum(acc_ref[...] + b_ref[...], 0.0)

    y = conv3x3_bias_relu(w2_ref, b2_ref)                      # stage 2
    pad_ref[W:W + HW, :] = y
    y = conv3x3_bias_relu(w3_ref, b3_ref)                      # stage 3

    # Write only the real Cout channels (bf16) — no zero-padded lanes in HBM.
    o_ref[0] = y[:, :Cout].astype(o_ref.dtype)


# ----------------------------------------------------------------------------
# Wrapper: NCHW in / NCHW out, PyTorch-layout parameters.
# ----------------------------------------------------------------------------
def _fold_bn(conv_bias, gamma, beta, mean, var, eps=1e-5):
    scale = gamma / jnp.sqrt(var + eps)
    bias = beta + (conv_bias - mean) * scale
    return scale.astype(jnp.float32), bias.astype(jnp.float32)


def _round_up(x, m):
    return (x + m - 1) // m * m


@jax.jit
def conv_cat_block_pallas(x_nchw, params):
    N, Cin, H, W = x_nchw.shape
    Cout = params["w1"].shape[0]
    HW = H * W
    C = max(_round_up(Cout, 128), 128)       # lane-dense padded channel count
    Cin_p = max(_round_up(Cin, 16), 16)      # packing-friendly Cin

    s1, b1 = _fold_bn(params["b1"], params["g1"], params["be1"],
                      params["m1"], params["v1"])
    s2, b2 = _fold_bn(params["b2"], params["g2"], params["be2"],
                      params["m2"], params["v2"])
    s3, b3 = _fold_bn(params["b3"], params["g3"], params["be3"],
                      params["m3"], params["v3"])

    # 1x1 weight (Cout, Cin, 1, 1) -> (Cin_p, C), BN scale folded, bf16.
    w1m = (params["w1"][:, :, 0, 0] * s1[:, None]).T           # (Cin, Cout)
    w1m = (jnp.zeros((Cin_p, C), jnp.float32)
           .at[:Cin, :Cout].set(w1m).astype(jnp.bfloat16))

    # 3x3 weights (Cout, Cout, 3, 3) -> (3, 3*C, C): for a given dy the row
    # index is dx*C + ci (matches the patch layout), BN scale folded, bf16.
    def prep3x3(w, s):
        wt = jnp.transpose(w * s[:, None, None, None], (2, 3, 1, 0))  # KH,KW,I,O
        wp = jnp.zeros((3, 3, C, C), jnp.float32).at[:, :, :Cout, :Cout].set(wt)
        return wp.reshape(3, 3 * C, C).astype(jnp.bfloat16)

    w2m = prep3x3(params["w2"], s2)
    w3m = prep3x3(params["w3"], s3)

    def prep_bias(b):
        return jnp.zeros((1, C), jnp.float32).at[0, :Cout].set(b)

    b1p, b2p, b3p = prep_bias(b1), prep_bias(b2), prep_bias(b3)

    # (N, Cin, H, W) -> (N, H*W, Cin_p) bf16 (stage-1 matmul operand).
    x_hw_c = jnp.zeros((N, HW, Cin_p), jnp.bfloat16).at[:, :, :Cin].set(
        jnp.transpose(x_nchw.reshape(N, Cin, HW), (0, 2, 1))
        .astype(jnp.bfloat16))

    # Explicit VMEM budget: scratch + double-buffered I/O + weight blocks.
    pad_b = (H + 2) * W * C * 4
    patch_b = 2 * HW * 3 * C * 2
    acc_b = HW * C * 4
    wgt_b = 2 * (Cin_p * C * 2 + 2 * 3 * 3 * C * C * 2 + 3 * C * 4)
    io_b = 2 * (HW * Cin_p * 2 + HW * Cout * 2)
    vmem_limit = min(max(int(1.5 * (pad_b + patch_b + acc_b + wgt_b + io_b)),
                         4 << 20), 64 << 20)

    kernel = functools.partial(_conv_cat_kernel, H=H, W=W, Cout=Cout)
    const2 = lambda n: (0, 0)        # noqa: E731
    const3 = lambda n: (0, 0, 0)     # noqa: E731

    out = pl.pallas_call(
        kernel,
        out_shape=jax.ShapeDtypeStruct((N, HW, Cout), jnp.bfloat16),
        grid=(N,),
        in_specs=[
            pl.BlockSpec((1, HW, Cin_p), lambda n: (n, 0, 0)),
            pl.BlockSpec((Cin_p, C), const2),
            pl.BlockSpec((1, C), const2),
            pl.BlockSpec((3, 3 * C, C), const3),
            pl.BlockSpec((1, C), const2),
            pl.BlockSpec((3, 3 * C, C), const3),
            pl.BlockSpec((1, C), const2),
        ],
        out_specs=pl.BlockSpec((1, HW, Cout), lambda n: (n, 0, 0)),
        scratch_shapes=[
            pltpu.VMEM(((H + 2) * W, C), jnp.float32),    # row-padded acts
            pltpu.VMEM((2, HW, 3 * C), jnp.bfloat16),     # im2col (dbl-buf)
            pltpu.VMEM((HW, C), jnp.float32),             # matmul accumulator
        ],
        compiler_params=pltpu.CompilerParams(
            # "arbitrary": the gated halo-zero init requires sequential grid
            # traversal over the persistent pad scratch (see kernel comment).
            dimension_semantics=("arbitrary",),
            vmem_limit_bytes=vmem_limit),
    )(x_hw_c, w1m, b1p, w2m, b2p, w3m, b3p)

    # TODO(synk): keep the surrounding model channel-last to remove these
    # boundary reshape/transpose HBM passes.
    out = jnp.transpose(out.reshape(N, H, W, Cout), (0, 3, 1, 2))
    return out.astype(jnp.float32)


# ----------------------------------------------------------------------------
# Pure-JAX reference (eval-mode BN) for correctness check.
# ----------------------------------------------------------------------------
def _ref_block(x, w, b, g, be, m, v, pad, eps=1e-5):
    y = jax.lax.conv_general_dilated(
        x, w, window_strides=(1, 1), padding=[(pad, pad), (pad, pad)],
        dimension_numbers=("NCHW", "OIHW", "NCHW"))
    y = y + b[None, :, None, None]
    y = (y - m[None, :, None, None]) / jnp.sqrt(v[None, :, None, None] + eps)
    y = y * g[None, :, None, None] + be[None, :, None, None]
    return jnp.maximum(y, 0.0)


def conv_cat_block_ref(x, p):
    y = _ref_block(x, p["w1"], p["b1"], p["g1"], p["be1"], p["m1"], p["v1"], 0)
    y = _ref_block(y, p["w2"], p["b2"], p["g2"], p["be2"], p["m2"], p["v2"], 1)
    y = _ref_block(y, p["w3"], p["b3"], p["g3"], p["be3"], p["m3"], p["v3"], 1)
    return y


# ----------------------------------------------------------------------------
def _init_params(key, cin, cout):
    ks = jax.random.split(key, 24)
    nrm = lambda k, s, sc=0.1: sc * jax.random.normal(k, s, jnp.float32)  # noqa
    p = {
        "w1": nrm(ks[0], (cout, cin, 1, 1)), "b1": nrm(ks[1], (cout,)),
        "w2": nrm(ks[2], (cout, cout, 3, 3)), "b2": nrm(ks[3], (cout,)),
        "w3": nrm(ks[4], (cout, cout, 3, 3)), "b3": nrm(ks[5], (cout,)),
    }
    for i, stage in enumerate(("1", "2", "3")):
        base = 6 + 4 * i
        p["g" + stage] = 1.0 + nrm(ks[base], (cout,))
        p["be" + stage] = nrm(ks[base + 1], (cout,))
        p["m" + stage] = nrm(ks[base + 2], (cout,))
        p["v" + stage] = 0.5 + jnp.abs(jax.random.normal(
            ks[base + 3], (cout,), jnp.float32)) * 0.5
    return p


if __name__ == "__main__":
    key = jax.random.PRNGKey(0)
    k_x, k_p = jax.random.split(key)

    N, Cin, Cout, H, W = 2, 4, 8, 16, 16
    x = jax.random.normal(k_x, (N, Cin, H, W), jnp.float32)
    params = _init_params(k_p, Cin, Cout)

    out = conv_cat_block_pallas(x, params)
    out = jax.block_until_ready(out)

    ref = jax.block_until_ready(conv_cat_block_ref(x, params))
    np.testing.assert_allclose(np.asarray(out), np.asarray(ref),
                               rtol=2e-2, atol=2e-2)
    assert out.shape == (N, Cout, H, W)

    print("KERNEL_OK")
</pallas_src>

<mosaic_0001>
module attributes {stable_mosaic.version = 11 : i64} {
  func.func @_conv_cat_kernel(%arg0: i32, %arg1: memref<1x256x16xbf16, #tpu.memory_space<vmem>>, %arg2: memref<16x128xbf16, #tpu.memory_space<vmem>>, %arg3: memref<1x128xf32, #tpu.memory_space<vmem>>, %arg4: memref<3x384x128xbf16, #tpu.memory_space<vmem>>, %arg5: memref<1x128xf32, #tpu.memory_space<vmem>>, %arg6: memref<3x384x128xbf16, #tpu.memory_space<vmem>>, %arg7: memref<1x128xf32, #tpu.memory_space<vmem>>, %arg8: memref<1x256x8xbf16, #tpu.memory_space<vmem>>, %arg9: memref<288x128xf32, #tpu.memory_space<vmem>>, %arg10: memref<2x256x384xbf16, #tpu.memory_space<vmem>>, %arg11: memref<256x128xf32, #tpu.memory_space<vmem>>) attributes {dimension_semantics = [#tpu.dimension_semantics<arbitrary>], iteration_bounds = array<i64: 2>, scalar_prefetch = 0 : i64, scratch_operands = 3 : i64, tpu.core_type = #tpu.core_type<tc>, window_params = [{transform_indices = @transform_0, window_bounds = array<i64: 1, 256, 16>}, {pipeline_mode = #tpu.pipeline_mode<synchronous>, transform_indices = @transform_1, window_bounds = array<i64: 16, 128>}, {pipeline_mode = #tpu.pipeline_mode<synchronous>, transform_indices = @transform_2, window_bounds = array<i64: 1, 128>}, {pipeline_mode = #tpu.pipeline_mode<synchronous>, transform_indices = @transform_3, window_bounds = array<i64: 3, 384, 128>}, {pipeline_mode = #tpu.pipeline_mode<synchronous>, transform_indices = @transform_4, window_bounds = array<i64: 1, 128>}, {pipeline_mode = #tpu.pipeline_mode<synchronous>, transform_indices = @transform_5, window_bounds = array<i64: 3, 384, 128>}, {pipeline_mode = #tpu.pipeline_mode<synchronous>, transform_indices = @transform_6, window_bounds = array<i64: 1, 128>}, {transform_indices = @transform_7, window_bounds = array<i64: 1, 256, 8>}]} {
    %c0_i32 = arith.constant 0 : i32
    %0 = arith.cmpi eq, %arg0, %c0_i32 : i32
    %1 = arith.extui %0 : i1 to i32
    %c0_i32_0 = arith.constant 0 : i32
    %2 = arith.cmpi ne, %1, %c0_i32_0 : i32
    scf.if %2 {
      %cst_215 = arith.constant 0.000000e+00 : f32
      %315 = vector.broadcast %cst_215 : f32 to vector<16x128xf32>
      %c0_216 = arith.constant 0 : index
      %c0_217 = arith.constant 0 : index
      %316 = vector.load %arg9[%c0_216, %c0_217] : memref<288x128xf32, #tpu.memory_space<vmem>>, vector<16x128xf32>
      tpu.vector_store %arg9[%c0_216, %c0_217], %315 {strides = array<i32>} : memref<288x128xf32, #tpu.memory_space<vmem>>, vector<16x128xf32>,
      %cst_218 = arith.constant 0.000000e+00 : f32
      %317 = vector.broadcast %cst_218 : f32 to vector<16x128xf32>
      %c272 = arith.constant 272 : index
      %c0_219 = arith.constant 0 : index
      %318 = vector.load %arg9[%c272, %c0_219] : memref<288x128xf32, #tpu.memory_space<vmem>>, vector<16x128xf32>
      tpu.vector_store %arg9[%c272, %c0_219], %317 {strides = array<i32>} : memref<288x128xf32, #tpu.memory_space<vmem>>, vector<16x128xf32>,
    } else {
    }
    %c0 = arith.constant 0 : index
    %c0_1 = arith.constant 0 : index
    %c0_2 = arith.constant 0 : index
    %3 = vector.load %arg1[%c0, %c0_1, %c0_2] : memref<1x256x16xbf16, #tpu.memory_space<vmem>>, vector<1x256x16xbf16>
    %4 = vector.shape_cast %3 : vector<1x256x16xbf16> to vector<256x16xbf16>
    %c0_3 = arith.constant 0 : index
    %c0_4 = arith.constant 0 : index
    %5 = vector.load %arg2[%c0_3, %c0_4] : memref<16x128xbf16, #tpu.memory_space<vmem>>, vector<16x128xbf16>
    %cst = arith.constant dense<0.000000e+00> : vector<256x128xf32>
    %6 = tpu.matmul %4, %5, %cst {dimension_numbers = #tpu.dot_dimension_numbers<[1], [0], [0], [1], [0, 0, 1, 1], [], []>} : vector<256x16xbf16>, vector<16x128xbf16>, vector<256x128xf32> -> vector<256x128xf32>
    %c0_5 = arith.constant 0 : index
    %c0_6 = arith.constant 0 : index
    %7 = vector.load %arg3[%c0_5, %c0_6] : memref<1x128xf32, #tpu.memory_space<vmem>>, vector<1x128xf32>
    %8 = vector.broadcast %7 : vector<1x128xf32> to vector<256x128xf32>
    %9 = arith.addf %6, %8 : vector<256x128xf32>
    %cst_7 = arith.constant 0.000000e+00 : f32
    %10 = vector.broadcast %cst_7 : f32 to vector<256x128xf32>
    %11 = arith.maximumf %9, %10 : vector<256x128xf32>
    %c16 = arith.constant 16 : index
    %c0_8 = arith.constant 0 : index
    %12 = vector.load %arg9[%c16, %c0_8] : memref<288x128xf32, #tpu.memory_space<vmem>>, vector<256x128xf32>
    tpu.vector_store %arg9[%c16, %c0_8], %11 {strides = array<i32>} : memref<288x128xf32, #tpu.memory_space<vmem>>, vector<256x128xf32>,
    %c0_9 = arith.constant 0 : index
    %c0_10 = arith.constant 0 : index
    %13 = vector.load %arg9[%c0_9, %c0_10] : memref<288x128xf32, #tpu.memory_space<vmem>>, vector<256x128xf32>
    %14 = tpu.iota {dimensions = array<i32: 0>} : vector<256x128xi32>
    %c16_i32 = arith.constant 16 : i32
    %c0_i32_11 = arith.constant 0 : i32
    %15 = arith.cmpi eq, %c16_i32, %c0_i32_11 : i32
    %c1_i32 = arith.constant 1 : i32
    %16 = arith.select %15, %c1_i32, %c16_i32 : i32
    %17 = vector.broadcast %16 : i32 to vector<256x128xi32>
    %18 = arith.remsi %14, %17 : vector<256x128xi32>
    %c0_i32_12 = arith.constant 0 : i32
    %19 = vector.broadcast %c0_i32_12 : i32 to vector<256x128xi32>
    %20 = arith.cmpi ne, %18, %19 : vector<256x128xi32>
    %c0_i32_13 = arith.constant 0 : i32
    %21 = vector.broadcast %c0_i32_13 : i32 to vector<256x128xi32>
    %22 = arith.cmpi slt, %18, %21 : vector<256x128xi32>
    %c0_i32_14 = arith.constant 0 : i32
    %23 = arith.cmpi slt, %16, %c0_i32_14 : i32
    %24 = vector.broadcast %23 : i1 to vector<256x128xi1>
    %25 = vector.broadcast %24 : vector<256x128xi1> to vector<256x128xi1>
    %26 = arith.xori %22, %25 : vector<256x128xi1>
    %27 = arith.andi %26, %20 : vector<256x128xi1>
    %28 = vector.broadcast %16 : i32 to vector<256x128xi32>
    %29 = arith.addi %18, %28 : vector<256x128xi32>
    %30 = arith.select %27, %29, %18 : vector<256x128xi1>, vector<256x128xi32>
    %c1_i32_15 = arith.constant 1 : i32
    %31 = vector.broadcast %c1_i32_15 : i32 to vector<256x128xi32>
    %32 = arith.cmpi sge, %30, %31 : vector<256x128xi32>
    %c1_i32_16 = arith.constant 1 : i32
    %33 = tpu.dynamic_rotate %13 by %c1_i32_16 dim 0 : vector<256x128xf32>, i32 -> vector<256x128xf32>
    %cst_17 = arith.constant 0.000000e+00 : f32
    %34 = vector.broadcast %cst_17 : f32 to vector<256x128xf32>
    %35 = arith.select %32, %33, %34 : vector<256x128xi1>, vector<256x128xf32>
    %36 = arith.truncf %35 : vector<256x128xf32> to vector<256x128xbf16>
    %c0_18 = arith.constant 0 : index
    %c0_19 = arith.constant 0 : index
    %c0_20 = arith.constant 0 : index
    %37 = vector.load %arg10[%c0_18, %c0_19, %c0_20] : memref<2x256x384xbf16, #tpu.memory_space<vmem>>, vector<1x256x128xbf16>
    %38 = vector.shape_cast %37 : vector<1x256x128xbf16> to vector<256x128xbf16>
    %39 = vector.shape_cast %36 : vector<256x128xbf16> to vector<1x256x128xbf16>
    tpu.vector_store %arg10[%c0_18, %c0_19, %c0_20], %39 {strides = array<i32>} : memref<2x256x384xbf16, #tpu.memory_space<vmem>>, vector<1x256x128xbf16>,
    %40 = arith.truncf %13 : vector<256x128xf32> to vector<256x128xbf16>
    %c0_21 = arith.constant 0 : index
    %c0_22 = arith.constant 0 : index
    %c128 = arith.constant 128 : index
    %41 = vector.load %arg10[%c0_21, %c0_22, %c128] : memref<2x256x384xbf16, #tpu.memory_space<vmem>>, vector<1x256x128xbf16>
    %42 = vector.shape_cast %41 : vector<1x256x128xbf16> to vector<256x128xbf16>
    %43 = vector.shape_cast %40 : vector<256x128xbf16> to vector<1x256x128xbf16>
    tpu.vector_store %arg10[%c0_21, %c0_22, %c128], %43 {strides = array<i32>} : memref<2x256x384xbf16, #tpu.memory_space<vmem>>, vector<1x256x128xbf16>,
    %c14_i32 = arith.constant 14 : i32
    %44 = vector.broadcast %c14_i32 : i32 to vector<256x128xi32>
    %45 = arith.cmpi sle, %30, %44 : vector<256x128xi32>
    %c255_i32 = arith.constant 255 : i32
    %46 = tpu.dynamic_rotate %13 by %c255_i32 dim 0 : vector<256x128xf32>, i32 -> vector<256x128xf32>
    %cst_23 = arith.constant 0.000000e+00 : f32
    %47 = vector.broadcast %cst_23 : f32 to vector<256x128xf32>
    %48 = arith.select %45, %46, %47 : vector<256x128xi1>, vector<256x128xf32>
    %49 = arith.truncf %48 : vector<256x128xf32> to vector<256x128xbf16>
    %c0_24 = arith.constant 0 : index
    %c0_25 = arith.constant 0 : index
    %c256 = arith.constant 256 : index
    %50 = vector.load %arg10[%c0_24, %c0_25, %c256] : memref<2x256x384xbf16, #tpu.memory_space<vmem>>, vector<1x256x128xbf16>
    %51 = vector.shape_cast %50 : vector<1x256x128xbf16> to vector<256x128xbf16>
    %52 = vector.shape_cast %49 : vector<256x128xbf16> to vector<1x256x128xbf16>
    tpu.vector_store %arg10[%c0_24, %c0_25, %c256], %52 {strides = array<i32>} : memref<2x256x384xbf16, #tpu.memory_space<vmem>>, vector<1x256x128xbf16>,
    %c0_26 = arith.constant 0 : index
    %c0_27 = arith.constant 0 : index
    %c0_28 = arith.constant 0 : index
    %53 = vector.load %arg10[%c0_26, %c0_27, %c0_28] : memref<2x256x384xbf16, #tpu.memory_space<vmem>>, vector<1x256x384xbf16>
    %54 = vector.shape_cast %53 : vector<1x256x384xbf16> to vector<256x384xbf16>
    %c0_29 = arith.constant 0 : index
    %c0_30 = arith.constant 0 : index
    %c0_31 = arith.constant 0 : index
    %55 = vector.load %arg4[%c0_29, %c0_30, %c0_31] : memref<3x384x128xbf16, #tpu.memory_space<vmem>>, vector<1x384x128xbf16>
    %56 = vector.shape_cast %55 : vector<1x384x128xbf16> to vector<384x128xbf16>
    %cst_32 = arith.constant dense<0.000000e+00> : vector<256x128xf32>
    %57 = tpu.matmul %54, %56, %cst_32 {dimension_numbers = #tpu.dot_dimension_numbers<[1], [0], [0], [1], [0, 0, 1, 1], [], []>} : vector<256x384xbf16>, vector<384x128xbf16>, vector<256x128xf32> -> vector<256x128xf32>
    %c0_33 = arith.constant 0 : index
    %c0_34 = arith.constant 0 : index
    %58 = vector.load %arg11[%c0_33, %c0_34] : memref<256x128xf32, #tpu.memory_space<vmem>>, vector<256x128xf32>
    tpu.vector_store %arg11[%c0_33, %c0_34], %57 {strides = array<i32>} : memref<256x128xf32, #tpu.memory_space<vmem>>, vector<256x128xf32>,
    %c16_35 = arith.constant 16 : index
    %c0_36 = arith.constant 0 : index
    %59 = vector.load %arg9[%c16_35, %c0_36] : memref<288x128xf32, #tpu.memory_space<vmem>>, vector<256x128xf32>
    %60 = tpu.iota {dimensions = array<i32: 0>} : vector<256x128xi32>
    %c16_i32_37 = arith.constant 16 : i32
    %c0_i32_38 = arith.constant 0 : i32
    %61 = arith.cmpi eq, %c16_i32_37, %c0_i32_38 : i32
    %c1_i32_39 = arith.constant 1 : i32
    %62 = arith.select %61, %c1_i32_39, %c16_i32_37 : i32
    %63 = vector.broadcast %62 : i32 to vector<256x128xi32>
    %64 = arith.remsi %60, %63 : vector<256x128xi32>
    %c0_i32_40 = arith.constant 0 : i32
    %65 = vector.broadcast %c0_i32_40 : i32 to vector<256x128xi32>
    %66 = arith.cmpi ne, %64, %65 : vector<256x128xi32>
    %c0_i32_41 = arith.constant 0 : i32
    %67 = vector.broadcast %c0_i32_41 : i32 to vector<256x128xi32>
    %68 = arith.cmpi slt, %64, %67 : vector<256x128xi32>
    %c0_i32_42 = arith.constant 0 : i32
    %69 = arith.cmpi slt, %62, %c0_i32_42 : i32
    %70 = vector.broadcast %69 : i1 to vector<256x128xi1>
    %71 = vector.broadcast %70 : vector<256x128xi1> to vector<256x128xi1>
    %72 = arith.xori %68, %71 : vector<256x128xi1>
    %73 = arith.andi %72, %66 : vector<256x128xi1>
    %74 = vector.broadcast %62 : i32 to vector<256x128xi32>
    %75 = arith.addi %64, %74 : vector<256x128xi32>
    %76 = arith.select %73, %75, %64 : vector<256x128xi1>, vector<256x128xi32>
    %c1_i32_43 = arith.constant 1 : i32
    %77 = vector.broadcast %c1_i32_43 : i32 to vector<256x128xi32>
    %78 = arith.cmpi sge, %76, %77 : vector<256x128xi32>
    %c1_i32_44 = arith.constant 1 : i32
    %79 = tpu.dynamic_rotate %59 by %c1_i32_44 dim 0 : vector<256x128xf32>, i32 -> vector<256x128xf32>
    %cst_45 = arith.constant 0.000000e+00 : f32
    %80 = vector.broadcast %cst_45 : f32 to vector<256x128xf32>
    %81 = arith.select %78, %79, %80 : vector<256x128xi1>, vector<256x128xf32>
    %82 = arith.truncf %81 : vector<256x128xf32> to vector<256x128xbf16>
    %c1 = arith.constant 1 : index
    %c0_46 = arith.constant 0 : index
    %c0_47 = arith.constant 0 : index
    %83 = vector.load %arg10[%c1, %c0_46, %c0_47] : memref<2x256x384xbf16, #tpu.memory_space<vmem>>, vector<1x256x128xbf16>
    %84 = vector.shape_cast %83 : vector<1x256x128xbf16> to vector<256x128xbf16>
    %85 = vector.shape_cast %82 : vector<256x128xbf16> to vector<1x256x128xbf16>
    tpu.vector_store %arg10[%c1, %c0_46, %c0_47], %85 {strides = array<i32>} : memref<2x256x384xbf16, #tpu.memory_space<vmem>>, vector<1x256x128xbf16>,
    %86 = arith.truncf %59 : vector<256x128xf32> to vector<256x128xbf16>
    %c1_48 = arith.constant 1 : index
    %c0_49 = arith.constant 0 : index
    %c128_50 = arith.constant 128 : index
    %87 = vector.load %arg10[%c1_48, %c0_49, %c128_50] : memref<2x256x384xbf16, #tpu.memory_space<vmem>>, vector<1x256x128xbf16>
    %88 = vector.shape_cast %87 : vector<1x256x128xbf16> to vector<256x128xbf16>
    %89 = vector.shape_cast %86 : vector<256x128xbf16> to vector<1x256x128xbf16>
    tpu.vector_store %arg10[%c1_48, %c0_49, %c128_50], %89 {strides = array<i32>} : memref<2x256x384xbf16, #tpu.memory_space<vmem>>, vector<1x256x128xbf16>,
    %c14_i32_51 = arith.constant 14 : i32
    %90 = vector.broadcast %c14_i32_51 : i32 to vector<256x128xi32>
    %91 = arith.cmpi sle, %76, %90 : vector<256x128xi32>
    %c255_i32_52 = arith.constant 255 : i32
    %92 = tpu.dynamic_rotate %59 by %c255_i32_52 dim 0 : vector<256x128xf32>, i32 -> vector<256x128xf32>
    %cst_53 = arith.constant 0.000000e+00 : f32
    %93 = vector.broadcast %cst_53 : f32 to vector<256x128xf32>
    %94 = arith.select %91, %92, %93 : vector<256x128xi1>, vector<256x128xf32>
    %95 = arith.truncf %94 : vector<256x128xf32> to vector<256x128xbf16>
    %c1_54 = arith.constant 1 : index
    %c0_55 = arith.constant 0 : index
    %c256_56 = arith.constant 256 : index
    %96 = vector.load %arg10[%c1_54, %c0_55, %c256_56] : memref<2x256x384xbf16, #tpu.memory_space<vmem>>, vector<1x256x128xbf16>
    %97 = vector.shape_cast %96 : vector<1x256x128xbf16> to vector<256x128xbf16>
    %98 = vector.shape_cast %95 : vector<256x128xbf16> to vector<1x256x128xbf16>
    tpu.vector_store %arg10[%c1_54, %c0_55, %c256_56], %98 {strides = array<i32>} : memref<2x256x384xbf16, #tpu.memory_space<vmem>>, vector<1x256x128xbf16>,
    %c1_57 = arith.constant 1 : index
    %c0_58 = arith.constant 0 : index
    %c0_59 = arith.constant 0 : index
    %99 = vector.load %arg10[%c1_57, %c0_58, %c0_59] : memref<2x256x384xbf16, #tpu.memory_space<vmem>>, vector<1x256x384xbf16>
    %100 = vector.shape_cast %99 : vector<1x256x384xbf16> to vector<256x384xbf16>
    %c1_60 = arith.constant 1 : index
    %c0_61 = arith.constant 0 : index
    %c0_62 = arith.constant 0 : index
    %101 = vector.load %arg4[%c1_60, %c0_61, %c0_62] : memref<3x384x128xbf16, #tpu.memory_space<vmem>>, vector<1x384x128xbf16>
    %102 = vector.shape_cast %101 : vector<1x384x128xbf16> to vector<384x128xbf16>
    %cst_63 = arith.constant dense<0.000000e+00> : vector<256x128xf32>
    %103 = tpu.matmul %100, %102, %cst_63 {dimension_numbers = #tpu.dot_dimension_numbers<[1], [0], [0], [1], [0, 0, 1, 1], [], []>} : vector<256x384xbf16>, vector<384x128xbf16>, vector<256x128xf32> -> vector<256x128xf32>
    %c0_64 = arith.constant 0 : index
    %c0_65 = arith.constant 0 : index
    %104 = vector.load %arg11[%c0_64, %c0_65] : memref<256x128xf32, #tpu.memory_space<vmem>>, vector<256x128xf32>
    %105 = arith.addf %104, %103 : vector<256x128xf32>
    %c0_66 = arith.constant 0 : index
    %c0_67 = arith.constant 0 : index
    %106 = vector.load %arg11[%c0_66, %c0_67] : memref<256x128xf32, #tpu.memory_space<vmem>>, vector<256x128xf32>
    tpu.vector_store %arg11[%c0_66, %c0_67], %105 {strides = array<i32>} : memref<256x128xf32, #tpu.memory_space<vmem>>, vector<256x128xf32>,
    %c32 = arith.constant 32 : index
    %c0_68 = arith.constant 0 : index
    %107 = vector.load %arg9[%c32, %c0_68] : memref<288x128xf32, #tpu.memory_space<vmem>>, vector<256x128xf32>
    %108 = tpu.iota {dimensions = array<i32: 0>} : vector<256x128xi32>
    %c16_i32_69 = arith.constant 16 : i32
    %c0_i32_70 = arith.constant 0 : i32
    %109 = arith.cmpi eq, %c16_i32_69, %c0_i32_70 : i32
    %c1_i32_71 = arith.constant 1 : i32
    %110 = arith.select %109, %c1_i32_71, %c16_i32_69 : i32
    %111 = vector.broadcast %110 : i32 to vector<256x128xi32>
    %112 = arith.remsi %108, %111 : vector<256x128xi32>
    %c0_i32_72 = arith.constant 0 : i32
    %113 = vector.broadcast %c0_i32_72 : i32 to vector<256x128xi32>
    %114 = arith.cmpi ne, %112, %113 : vector<256x128xi32>
    %c0_i32_73 = arith.constant 0 : i32
    %115 = vector.broadcast %c0_i32_73 : i32 to vector<256x128xi32>
    %116 = arith.cmpi slt, %112, %115 : vector<256x128xi32>
    %c0_i32_74 = arith.constant 0 : i32
    %117 = arith.cmpi slt, %110, %c0_i32_74 : i32
    %118 = vector.broadcast %117 : i1 to vector<256x128xi1>
    %119 = vector.broadcast %118 : vector<256x128xi1> to vector<256x128xi1>
    %120 = arith.xori %116, %119 : vector<256x128xi1>
    %121 = arith.andi %120, %114 : vector<256x128xi1>
    %122 = vector.broadcast %110 : i32 to vector<256x128xi32>
    %123 = arith.addi %112, %122 : vector<256x128xi32>
    %124 = arith.select %121, %123, %112 : vector<256x128xi1>, vector<256x128xi32>
    %c1_i32_75 = arith.constant 1 : i32
    %125 = vector.broadcast %c1_i32_75 : i32 to vector<256x128xi32>
    %126 = arith.cmpi sge, %124, %125 : vector<256x128xi32>
    %c1_i32_76 = arith.constant 1 : i32
    %127 = tpu.dynamic_rotate %107 by %c1_i32_76 dim 0 : vector<256x128xf32>, i32 -> vector<256x128xf32>
    %cst_77 = arith.constant 0.000000e+00 : f32
    %128 = vector.broadcast %cst_77 : f32 to vector<256x128xf32>
    %129 = arith.select %126, %127, %128 : vector<256x128xi1>, vector<256x128xf32>
    %130 = arith.truncf %129 : vector<256x128xf32> to vector<256x128xbf16>
    %c0_78 = arith.constant 0 : index
    %c0_79 = arith.constant 0 : index
    %c0_80 = arith.constant 0 : index
    %131 = vector.load %arg10[%c0_78, %c0_79, %c0_80] : memref<2x256x384xbf16, #tpu.memory_space<vmem>>, vector<1x256x128xbf16>
    %132 = vector.shape_cast %131 : vector<1x256x128xbf16> to vector<256x128xbf16>
    %133 = vector.shape_cast %130 : vector<256x128xbf16> to vector<1x256x128xbf16>
    tpu.vector_store %arg10[%c0_78, %c0_79, %c0_80], %133 {strides = array<i32>} : memref<2x256x384xbf16, #tpu.memory_space<vmem>>, vector<1x256x128xbf16>,
    %134 = arith.truncf %107 : vector<256x128xf32> to vector<256x128xbf16>
    %c0_81 = arith.constant 0 : index
    %c0_82 = arith.constant 0 : index
    %c128_83 = arith.constant 128 : index
    %135 = vector.load %arg10[%c0_81, %c0_82, %c128_83] : memref<2x256x384xbf16, #tpu.memory_space<vmem>>, vector<1x256x128xbf16>
    %136 = vector.shape_cast %135 : vector<1x256x128xbf16> to vector<256x128xbf16>
    %137 = vector.shape_cast %134 : vector<256x128xbf16> to vector<1x256x128xbf16>
    tpu.vector_store %arg10[%c0_81, %c0_82, %c128_83], %137 {strides = array<i32>} : memref<2x256x384xbf16, #tpu.memory_space<vmem>>, vector<1x256x128xbf16>,
    %c14_i32_84 = arith.constant 14 : i32
    %138 = vector.broadcast %c14_i32_84 : i32 to vector<256x128xi32>
    %139 = arith.cmpi sle, %124, %138 : vector<256x128xi32>
    %c255_i32_85 = arith.constant 255 : i32
    %140 = tpu.dynamic_rotate %107 by %c255_i32_85 dim 0 : vector<256x128xf32>, i32 -> vector<256x128xf32>
    %cst_86 = arith.constant 0.000000e+00 : f32
    %141 = vector.broadcast %cst_86 : f32 to vector<256x128xf32>
    %142 = arith.select %139, %140, %141 : vector<256x128xi1>, vector<256x128xf32>
    %143 = arith.truncf %142 : vector<256x128xf32> to vector<256x128xbf16>
    %c0_87 = arith.constant 0 : index
    %c0_88 = arith.constant 0 : index
    %c256_89 = arith.constant 256 : index
    %144 = vector.load %arg10[%c0_87, %c0_88, %c256_89] : memref<2x256x384xbf16, #tpu.memory_space<vmem>>, vector<1x256x128xbf16>
    %145 = vector.shape_cast %144 : vector<1x256x128xbf16> to vector<256x128xbf16>
    %146 = vector.shape_cast %143 : vector<256x128xbf16> to vector<1x256x128xbf16>
    tpu.vector_store %arg10[%c0_87, %c0_88, %c256_89], %146 {strides = array<i32>} : memref<2x256x384xbf16, #tpu.memory_space<vmem>>, vector<1x256x128xbf16>,
    %c0_90 = arith.constant 0 : index
    %c0_91 = arith.constant 0 : index
    %c0_92 = arith.constant 0 : index
    %147 = vector.load %arg10[%c0_90, %c0_91, %c0_92] : memref<2x256x384xbf16, #tpu.memory_space<vmem>>, vector<1x256x384xbf16>
    %148 = vector.shape_cast %147 : vector<1x256x384xbf16> to vector<256x384xbf16>
    %c2 = arith.constant 2 : index
    %c0_93 = arith.constant 0 : index
    %c0_94 = arith.constant 0 : index
    %149 = vector.load %arg4[%c2, %c0_93, %c0_94] : memref<3x384x128xbf16, #tpu.memory_space<vmem>>, vector<1x384x128xbf16>
    %150 = vector.shape_cast %149 : vector<1x384x128xbf16> to vector<384x128xbf16>
    %cst_95 = arith.constant dense<0.000000e+00> : vector<256x128xf32>
    %151 = tpu.matmul %148, %150, %cst_95 {dimension_numbers = #tpu.dot_dimension_numbers<[1], [0], [0], [1], [0, 0, 1, 1], [], []>} : vector<256x384xbf16>, vector<384x128xbf16>, vector<256x128xf32> -> vector<256x128xf32>
    %c0_96 = arith.constant 0 : index
    %c0_97 = arith.constant 0 : index
    %152 = vector.load %arg11[%c0_96, %c0_97] : memref<256x128xf32, #tpu.memory_space<vmem>>, vector<256x128xf32>
    %153 = arith.addf %152, %151 : vector<256x128xf32>
    %c0_98 = arith.constant 0 : index
    %c0_99 = arith.constant 0 : index
    %154 = vector.load %arg11[%c0_98, %c0_99] : memref<256x128xf32, #tpu.memory_space<vmem>>, vector<256x128xf32>
    tpu.vector_store %arg11[%c0_98, %c0_99], %153 {strides = array<i32>} : memref<256x128xf32, #tpu.memory_space<vmem>>, vector<256x128xf32>,
    %c0_100 = arith.constant 0 : index
    %c0_101 = arith.constant 0 : index
    %155 = vector.load %arg11[%c0_100, %c0_101] : memref<256x128xf32, #tpu.memory_space<vmem>>, vector<256x128xf32>
    %c0_102 = arith.constant 0 : index
    %c0_103 = arith.constant 0 : index
    %156 = vector.load %arg5[%c0_102, %c0_103] : memref<1x128xf32, #tpu.memory_space<vmem>>, vector<1x128xf32>
    %157 = vector.broadcast %156 : vector<1x128xf32> to vector<256x128xf32>
    %158 = arith.addf %155, %157 : vector<256x128xf32>
    %cst_104 = arith.constant 0.000000e+00 : f32
    %159 = vector.broadcast %cst_104 : f32 to vector<256x128xf32>
    %160 = arith.maximumf %158, %159 : vector<256x128xf32>
    %c16_105 = arith.constant 16 : index
    %c0_106 = arith.constant 0 : index
    %161 = vector.load %arg9[%c16_105, %c0_106] : memref<288x128xf32, #tpu.memory_space<vmem>>, vector<256x128xf32>
    tpu.vector_store %arg9[%c16_105, %c0_106], %160 {strides = array<i32>} : memref<288x128xf32, #tpu.memory_space<vmem>>, vector<256x128xf32>,
    %c0_107 = arith.constant 0 : index
    %c0_108 = arith.constant 0 : index
    %162 = vector.load %arg9[%c0_107, %c0_108] : memref<288x128xf32, #tpu.memory_space<vmem>>, vector<256x128xf32>
    %163 = tpu.iota {dimensions = array<i32: 0>} : vector<256x128xi32>
    %c16_i32_109 = arith.constant 16 : i32
    %c0_i32_110 = arith.constant 0 : i32
    %164 = arith.cmpi eq, %c16_i32_109, %c0_i32_110 : i32
    %c1_i32_111 = arith.constant 1 : i32
    %165 = arith.select %164, %c1_i32_111, %c16_i32_109 : i32
    %166 = vector.broadcast %165 : i32 to vector<256x128xi32>
    %167 = arith.remsi %163, %166 : vector<256x128xi32>
    %c0_i32_112 = arith.constant 0 : i32
    %168 = vector.broadcast %c0_i32_112 : i32 to vector<256x128xi32>
    %169 = arith.cmpi ne, %167, %168 : vector<256x128xi32>
    %c0_i32_113 = arith.constant 0 : i32
    %170 = vector.broadcast %c0_i32_113 : i32 to vector<256x128xi32>
    %171 = arith.cmpi slt, %167, %170 : vector<256x128xi32>
    %c0_i32_114 = arith.constant 0 : i32
    %172 = arith.cmpi slt, %165, %c0_i32_114 : i32
    %173 = vector.broadcast %172 : i1 to vector<256x128xi1>
    %174 = vector.broadcast %173 : vector<256x128xi1> to vector<256x128xi1>
    %175 = arith.xori %171, %174 : vector<256x128xi1>
    %176 = arith.andi %175, %169 : vector<256x128xi1>
    %177 = vector.broadcast %165 : i32 to vector<256x128xi32>
    %178 = arith.addi %167, %177 : vector<256x128xi32>
    %179 = arith.select %176, %178, %167 : vector<256x128xi1>, vector<256x128xi32>
    %c1_i32_115 = arith.constant 1 : i32
    %180 = vector.broadcast %c1_i32_115 : i32 to vector<256x128xi32>
    %181 = arith.cmpi sge, %179, %180 : vector<256x128xi32>
    %c1_i32_116 = arith.constant 1 : i32
    %182 = tpu.dynamic_rotate %162 by %c1_i32_116 dim 0 : vector<256x128xf32>, i32 -> vector<256x128xf32>
    %cst_117 = arith.constant 0.000000e+00 : f32
    %183 = vector.broadcast %cst_117 : f32 to vector<256x128xf32>
    %184 = arith.select %181, %182, %183 : vector<256x128xi1>, vector<256x128xf32>
    %185 = arith.truncf %184 : vector<256x128xf32> to vector<256x128xbf16>
    %c0_118 = arith.constant 0 : index
    %c0_119 = arith.constant 0 : index
    %c0_120 = arith.constant 0 : index
    %186 = vector.load %arg10[%c0_118, %c0_119, %c0_120] : memref<2x256x384xbf16, #tpu.memory_space<vmem>>, vector<1x256x128xbf16>
    %187 = vector.shape_cast %186 : vector<1x256x128xbf16> to vector<256x128xbf16>
    %188 = vector.shape_cast %185 : vector<256x128xbf16> to vector<1x256x128xbf16>
    tpu.vector_store %arg10[%c0_118, %c0_119, %c0_120], %188 {strides = array<i32>} : memref<2x256x384xbf16, #tpu.memory_space<vmem>>, vector<1x256x128xbf16>,
    %189 = arith.truncf %162 : vector<256x128xf32> to vector<256x128xbf16>
    %c0_121 = arith.constant 0 : index
    %c0_122 = arith.constant 0 : index
    %c128_123 = arith.constant 128 : index
    %190 = vector.load %arg10[%c0_121, %c0_122, %c128_123] : memref<2x256x384xbf16, #tpu.memory_space<vmem>>, vector<1x256x128xbf16>
    %191 = vector.shape_cast %190 : vector<1x256x128xbf16> to vector<256x128xbf16>
    %192 = vector.shape_cast %189 : vector<256x128xbf16> to vector<1x256x128xbf16>
    tpu.vector_store %arg10[%c0_121, %c0_122, %c128_123], %192 {strides = array<i32>} : memref<2x256x384xbf16, #tpu.memory_space<vmem>>, vector<1x256x128xbf16>,
    %c14_i32_124 = arith.constant 14 : i32
    %193 = vector.broadcast %c14_i32_124 : i32 to vector<256x128xi32>
    %194 = arith.cmpi sle, %179, %193 : vector<256x128xi32>
    %c255_i32_125 = arith.constant 255 : i32
    %195 = tpu.dynamic_rotate %162 by %c255_i32_125 dim 0 : vector<256x128xf32>, i32 -> vector<256x128xf32>
    %cst_126 = arith.constant 0.000000e+00 : f32
    %196 = vector.broadcast %cst_126 : f32 to vector<256x128xf32>
    %197 = arith.select %194, %195, %196 : vector<256x128xi1>, vector<256x128xf32>
    %198 = arith.truncf %197 : vector<256x128xf32> to vector<256x128xbf16>
    %c0_127 = arith.constant 0 : index
    %c0_128 = arith.constant 0 : index
    %c256_129 = arith.constant 256 : index
    %199 = vector.load %arg10[%c0_127, %c0_128, %c256_129] : memref<2x256x384xbf16, #tpu.memory_space<vmem>>, vector<1x256x128xbf16>
    %200 = vector.shape_cast %199 : vector<1x256x128xbf16> to vector<256x128xbf16>
    %201 = vector.shape_cast %198 : vector<256x128xbf16> to vector<1x256x128xbf16>
    tpu.vector_store %arg10[%c0_127, %c0_128, %c256_129], %201 {strides = array<i32>} : memref<2x256x384xbf16, #tpu.memory_space<vmem>>, vector<1x256x128xbf16>,
    %c0_130 = arith.constant 0 : index
    %c0_131 = arith.constant 0 : index
    %c0_132 = arith.constant 0 : index
    %202 = vector.load %arg10[%c0_130, %c0_131, %c0_132] : memref<2x256x384xbf16, #tpu.memory_space<vmem>>, vector<1x256x384xbf16>
    %203 = vector.shape_cast %202 : vector<1x256x384xbf16> to vector<256x384xbf16>
    %c0_133 = arith.constant 0 : index
    %c0_134 = arith.constant 0 : index
    %c0_135 = arith.constant 0 : index
    %204 = vector.load %arg6[%c0_133, %c0_134, %c0_135] : memref<3x384x128xbf16, #tpu.memory_space<vmem>>, vector<1x384x128xbf16>
    %205 = vector.shape_cast %204 : vector<1x384x128xbf16> to vector<384x128xbf16>
    %cst_136 = arith.constant dense<0.000000e+00> : vector<256x128xf32>
    %206 = tpu.matmul %203, %205, %cst_136 {dimension_numbers = #tpu.dot_dimension_numbers<[1], [0], [0], [1], [0, 0, 1, 1], [], []>} : vector<256x384xbf16>, vector<384x128xbf16>, vector<256x128xf32> -> vector<256x128xf32>
    %c0_137 = arith.constant 0 : index
    %c0_138 = arith.constant 0 : index
    %207 = vector.load %arg11[%c0_137, %c0_138] : memref<256x128xf32, #tpu.memory_space<vmem>>, vector<256x128xf32>
    tpu.vector_store %arg11[%c0_137, %c0_138], %206 {strides = array<i32>} : memref<256x128xf32, #tpu.memory_space<vmem>>, vector<256x128xf32>,
    %c16_139 = arith.constant 16 : index
    %c0_140 = arith.constant 0 : index
    %208 = vector.load %arg9[%c16_139, %c0_140] : memref<288x128xf32, #tpu.memory_space<vmem>>, vector<256x128xf32>
    %209 = tpu.iota {dimensions = array<i32: 0>} : vector<256x128xi32>
    %c16_i32_141 = arith.constant 16 : i32
    %c0_i32_142 = arith.constant 0 : i32
    %210 = arith.cmpi eq, %c16_i32_141, %c0_i32_142 : i32
    %c1_i32_143 = arith.constant 1 : i32
    %211 = arith.select %210, %c1_i32_143, %c16_i32_141 : i32
    %212 = vector.broadcast %211 : i32 to vector<256x128xi32>
    %213 = arith.remsi %209, %212 : vector<256x128xi32>
    %c0_i32_144 = arith.constant 0 : i32
    %214 = vector.broadcast %c0_i32_144 : i32 to vector<256x128xi32>
    %215 = arith.cmpi ne, %213, %214 : vector<256x128xi32>
    %c0_i32_145 = arith.constant 0 : i32
    %216 = vector.broadcast %c0_i32_145 : i32 to vector<256x128xi32>
    %217 = arith.cmpi slt, %213, %216 : vector<256x128xi32>
    %c0_i32_146 = arith.constant 0 : i32
    %218 = arith.cmpi slt, %211, %c0_i32_146 : i32
    %219 = vector.broadcast %218 : i1 to vector<256x128xi1>
    %220 = vector.broadcast %219 : vector<256x128xi1> to vector<256x128xi1>
    %221 = arith.xori %217, %220 : vector<256x128xi1>
    %222 = arith.andi %221, %215 : vector<256x128xi1>
    %223 = vector.broadcast %211 : i32 to vector<256x128xi32>
    %224 = arith.addi %213, %223 : vector<256x128xi32>
    %225 = arith.select %222, %224, %213 : vector<256x128xi1>, vector<256x128xi32>
    %c1_i32_147 = arith.constant 1 : i32
    %226 = vector.broadcast %c1_i32_147 : i32 to vector<256x128xi32>
    %227 = arith.cmpi sge, %225, %226 : vector<256x128xi32>
    %c1_i32_148 = arith.constant 1 : i32
    %228 = tpu.dynamic_rotate %208 by %c1_i32_148 dim 0 : vector<256x128xf32>, i32 -> vector<256x128xf32>
    %cst_149 = arith.constant 0.000000e+00 : f32
    %229 = vector.broadcast %cst_149 : f32 to vector<256x128xf32>
    %230 = arith.select %227, %228, %229 : vector<256x128xi1>, vector<256x128xf32>
    %231 = arith.truncf %230 : vector<256x128xf32> to vector<256x128xbf16>
    %c1_150 = arith.constant 1 : index
    %c0_151 = arith.constant 0 : index
    %c0_152 = arith.constant 0 : index
    %232 = vector.load %arg10[%c1_150, %c0_151, %c0_152] : memref<2x256x384xbf16, #tpu.memory_space<vmem>>, vector<1x256x128xbf16>
    %233 = vector.shape_cast %232 : vector<1x256x128xbf16> to vector<256x128xbf16>
    %234 = vector.shape_cast %231 : vector<256x128xbf16> to vector<1x256x128xbf16>
    tpu.vector_store %arg10[%c1_150, %c0_151, %c0_152], %234 {strides = array<i32>} : memref<2x256x384xbf16, #tpu.memory_space<vmem>>, vector<1x256x128xbf16>,
    %235 = arith.truncf %208 : vector<256x128xf32> to vector<256x128xbf16>
    %c1_153 = arith.constant 1 : index
    %c0_154 = arith.constant 0 : index
    %c128_155 = arith.constant 128 : index
    %236 = vector.load %arg10[%c1_153, %c0_154, %c128_155] : memref<2x256x384xbf16, #tpu.memory_space<vmem>>, vector<1x256x128xbf16>
    %237 = vector.shape_cast %236 : vector<1x256x128xbf16> to vector<256x128xbf16>
    %238 = vector.shape_cast %235 : vector<256x128xbf16> to vector<1x256x128xbf16>
    tpu.vector_store %arg10[%c1_153, %c0_154, %c128_155], %238 {strides = array<i32>} : memref<2x256x384xbf16, #tpu.memory_space<vmem>>, vector<1x256x128xbf16>,
    %c14_i32_156 = arith.constant 14 : i32
    %239 = vector.broadcast %c14_i32_156 : i32 to vector<256x128xi32>
    %240 = arith.cmpi sle, %225, %239 : vector<256x128xi32>
    %c255_i32_157 = arith.constant 255 : i32
    %241 = tpu.dynamic_rotate %208 by %c255_i32_157 dim 0 : vector<256x128xf32>, i32 -> vector<256x128xf32>
    %cst_158 = arith.constant 0.000000e+00 : f32
    %242 = vector.broadcast %cst_158 : f32 to vector<256x128xf32>
    %243 = arith.select %240, %241, %242 : vector<256x128xi1>, vector<256x128xf32>
    %244 = arith.truncf %243 : vector<256x128xf32> to vector<256x128xbf16>
    %c1_159 = arith.constant 1 : index
    %c0_160 = arith.constant 0 : index
    %c256_161 = arith.constant 256 : index
    %245 = vector.load %arg10[%c1_159, %c0_160, %c256_161] : memref<2x256x384xbf16, #tpu.memory_space<vmem>>, vector<1x256x128xbf16>
    %246 = vector.shape_cast %245 : vector<1x256x128xbf16> to vector<256x128xbf16>
    %247 = vector.shape_cast %244 : vector<256x128xbf16> to vector<1x256x128xbf16>
    tpu.vector_store %arg10[%c1_159, %c0_160, %c256_161], %247 {strides = array<i32>} : memref<2x256x384xbf16, #tpu.memory_space<vmem>>, vector<1x256x128xbf16>,
    %c1_162 = arith.constant 1 : index
    %c0_163 = arith.constant 0 : index
    %c0_164 = arith.constant 0 : index
    %248 = vector.load %arg10[%c1_162, %c0_163, %c0_164] : memref<2x256x384xbf16, #tpu.memory_space<vmem>>, vector<1x256x384xbf16>
    %249 = vector.shape_cast %248 : vector<1x256x384xbf16> to vector<256x384xbf16>
    %c1_165 = arith.constant 1 : index
    %c0_166 = arith.constant 0 : index
    %c0_167 = arith.constant 0 : index
    %250 = vector.load %arg6[%c1_165, %c0_166, %c0_167] : memref<3x384x128xbf16, #tpu.memory_space<vmem>>, vector<1x384x128xbf16>
    %251 = vector.shape_cast %250 : vector<1x384x128xbf16> to vector<384x128xbf16>
    %cst_168 = arith.constant dense<0.000000e+00> : vector<256x128xf32>
    %252 = tpu.matmul %249, %251, %cst_168 {dimension_numbers = #tpu.dot_dimension_numbers<[1], [0], [0], [1], [0, 0, 1, 1], [], []>} : vector<256x384xbf16>, vector<384x128xbf16>, vector<256x128xf32> -> vector<256x128xf32>
    %c0_169 = arith.constant 0 : index
    %c0_170 = arith.constant 0 : index
    %253 = vector.load %arg11[%c0_169, %c0_170] : memref<256x128xf32, #tpu.memory_space<vmem>>, vector<256x128xf32>
    %254 = arith.addf %253, %252 : vector<256x128xf32>
    %c0_171 = arith.constant 0 : index
    %c0_172 = arith.constant 0 : index
    %255 = vector.load %arg11[%c0_171, %c0_172] : memref<256x128xf32, #tpu.memory_space<vmem>>, vector<256x128xf32>
    tpu.vector_store %arg11[%c0_171, %c0_172], %254 {strides = array<i32>} : memref<256x128xf32, #tpu.memory_space<vmem>>, vector<256x128xf32>,
    %c32_173 = arith.constant 32 : index
    %c0_174 = arith.constant 0 : index
    %256 = vector.load %arg9[%c32_173, %c0_174] : memref<288x128xf32, #tpu.memory_space<vmem>>, vector<256x128xf32>
    %257 = tpu.iota {dimensions = array<i32: 0>} : vector<256x128xi32>
    %c16_i32_175 = arith.constant 16 : i32
    %c0_i32_176 = arith.constant 0 : i32
    %258 = arith.cmpi eq, %c16_i32_175, %c0_i32_176 : i32
    %c1_i32_177 = arith.constant 1 : i32
    %259 = arith.select %258, %c1_i32_177, %c16_i32_175 : i32
    %260 = vector.broadcast %259 : i32 to vector<256x128xi32>
    %261 = arith.remsi %257, %260 : vector<256x128xi32>
    %c0_i32_178 = arith.constant 0 : i32
    %262 = vector.broadcast %c0_i32_178 : i32 to vector<256x128xi32>
    %263 = arith.cmpi ne, %261, %262 : vector<256x128xi32>
    %c0_i32_179 = arith.constant 0 : i32
    %264 = vector.broadcast %c0_i32_179 : i32 to vector<256x128xi32>
    %265 = arith.cmpi slt, %261, %264 : vector<256x128xi32>
    %c0_i32_180 = arith.constant 0 : i32
    %266 = arith.cmpi slt, %259, %c0_i32_180 : i32
    %267 = vector.broadcast %266 : i1 to vector<256x128xi1>
    %268 = vector.broadcast %267 : vector<256x128xi1> to vector<256x128xi1>
    %269 = arith.xori %265, %268 : vector<256x128xi1>
    %270 = arith.andi %269, %263 : vector<256x128xi1>
    %271 = vector.broadcast %259 : i32 to vector<256x128xi32>
    %272 = arith.addi %261, %271 : vector<256x128xi32>
    %273 = arith.select %270, %272, %261 : vector<256x128xi1>, vector<256x128xi32>
    %c1_i32_181 = arith.constant 1 : i32
    %274 = vector.broadcast %c1_i32_181 : i32 to vector<256x128xi32>
    %275 = arith.cmpi sge, %273, %274 : vector<256x128xi32>
    %c1_i32_182 = arith.constant 1 : i32
    %276 = tpu.dynamic_rotate %256 by %c1_i32_182 dim 0 : vector<256x128xf32>, i32 -> vector<256x128xf32>
    %cst_183 = arith.constant 0.000000e+00 : f32
    %277 = vector.broadcast %cst_183 : f32 to vector<256x128xf32>
    %278 = arith.select %275, %276, %277 : vector<256x128xi1>, vector<256x128xf32>
    %279 = arith.truncf %278 : vector<256x128xf32> to vector<256x128xbf16>
    %c0_184 = arith.constant 0 : index
    %c0_185 = arith.constant 0 : index
    %c0_186 = arith.constant 0 : index
    %280 = vector.load %arg10[%c0_184, %c0_185, %c0_186] : memref<2x256x384xbf16, #tpu.memory_space<vmem>>, vector<1x256x128xbf16>
    %281 = vector.shape_cast %280 : vector<1x256x128xbf16> to vector<256x128xbf16>
    %282 = vector.shape_cast %279 : vector<256x128xbf16> to vector<1x256x128xbf16>
    tpu.vector_store %arg10[%c0_184, %c0_185, %c0_186], %282 {strides = array<i32>} : memref<2x256x384xbf16, #tpu.memory_space<vmem>>, vector<1x256x128xbf16>,
    %283 = arith.truncf %256 : vector<256x128xf32> to vector<256x128xbf16>
    %c0_187 = arith.constant 0 : index
    %c0_188 = arith.constant 0 : index
    %c128_189 = arith.constant 128 : index
    %284 = vector.load %arg10[%c0_187, %c0_188, %c128_189] : memref<2x256x384xbf16, #tpu.memory_space<vmem>>, vector<1x256x128xbf16>
    %285 = vector.shape_cast %284 : vector<1x256x128xbf16> to vector<256x128xbf16>
    %286 = vector.shape_cast %283 : vector<256x128xbf16> to vector<1x256x128xbf16>
    tpu.vector_store %arg10[%c0_187, %c0_188, %c128_189], %286 {strides = array<i32>} : memref<2x256x384xbf16, #tpu.memory_space<vmem>>, vector<1x256x128xbf16>,
    %c14_i32_190 = arith.constant 14 : i32
    %287 = vector.broadcast %c14_i32_190 : i32 to vector<256x128xi32>
    %288 = arith.cmpi sle, %273, %287 : vector<256x128xi32>
    %c255_i32_191 = arith.constant 255 : i32
    %289 = tpu.dynamic_rotate %256 by %c255_i32_191 dim 0 : vector<256x128xf32>, i32 -> vector<256x128xf32>
    %cst_192 = arith.constant 0.000000e+00 : f32
    %290 = vector.broadcast %cst_192 : f32 to vector<256x128xf32>
    %291 = arith.select %288, %289, %290 : vector<256x128xi1>, vector<256x128xf32>
    %292 = arith.truncf %291 : vector<256x128xf32> to vector<256x128xbf16>
    %c0_193 = arith.constant 0 : index
    %c0_194 = arith.constant 0 : index
    %c256_195 = arith.constant 256 : index
    %293 = vector.load %arg10[%c0_193, %c0_194, %c256_195] : memref<2x256x384xbf16, #tpu.memory_space<vmem>>, vector<1x256x128xbf16>
    %294 = vector.shape_cast %293 : vector<1x256x128xbf16> to vector<256x128xbf16>
    %295 = vector.shape_cast %292 : vector<256x128xbf16> to vector<1x256x128xbf16>
    tpu.vector_store %arg10[%c0_193, %c0_194, %c256_195], %295 {strides = array<i32>} : memref<2x256x384xbf16, #tpu.memory_space<vmem>>, vector<1x256x128xbf16>,
    %c0_196 = arith.constant 0 : index
    %c0_197 = arith.constant 0 : index
    %c0_198 = arith.constant 0 : index
    %296 = vector.load %arg10[%c0_196, %c0_197, %c0_198] : memref<2x256x384xbf16, #tpu.memory_space<vmem>>, vector<1x256x384xbf16>
    %297 = vector.shape_cast %296 : vector<1x256x384xbf16> to vector<256x384xbf16>
    %c2_199 = arith.constant 2 : index
    %c0_200 = arith.constant 0 : index
    %c0_201 = arith.constant 0 : index
    %298 = vector.load %arg6[%c2_199, %c0_200, %c0_201] : memref<3x384x128xbf16, #tpu.memory_space<vmem>>, vector<1x384x128xbf16>
    %299 = vector.shape_cast %298 : vector<1x384x128xbf16> to vector<384x128xbf16>
    %cst_202 = arith.constant dense<0.000000e+00> : vector<256x128xf32>
    %300 = tpu.matmul %297, %299, %cst_202 {dimension_numbers = #tpu.dot_dimension_numbers<[1], [0], [0], [1], [0, 0, 1, 1], [], []>} : vector<256x384xbf16>, vector<384x128xbf16>, vector<256x128xf32> -> vector<256x128xf32>
    %c0_203 = arith.constant 0 : index
    %c0_204 = arith.constant 0 : index
    %301 = vector.load %arg11[%c0_203, %c0_204] : memref<256x128xf32, #tpu.memory_space<vmem>>, vector<256x128xf32>
    %302 = arith.addf %301, %300 : vector<256x128xf32>
    %c0_205 = arith.constant 0 : index
    %c0_206 = arith.constant 0 : index
    %303 = vector.load %arg11[%c0_205, %c0_206] : memref<256x128xf32, #tpu.memory_space<vmem>>, vector<256x128xf32>
    tpu.vector_store %arg11[%c0_205, %c0_206], %302 {strides = array<i32>} : memref<256x128xf32, #tpu.memory_space<vmem>>, vector<256x128xf32>,
    %c0_207 = arith.constant 0 : index
    %c0_208 = arith.constant 0 : index
    %304 = vector.load %arg11[%c0_207, %c0_208] : memref<256x128xf32, #tpu.memory_space<vmem>>, vector<256x128xf32>
    %c0_209 = arith.constant 0 : index
    %c0_210 = arith.constant 0 : index
    %305 = vector.load %arg7[%c0_209, %c0_210] : memref<1x128xf32, #tpu.memory_space<vmem>>, vector<1x128xf32>
    %306 = vector.broadcast %305 : vector<1x128xf32> to vector<256x128xf32>
    %307 = arith.addf %304, %306 : vector<256x128xf32>
    %cst_211 = arith.constant 0.000000e+00 : f32
    %308 = vector.broadcast %cst_211 : f32 to vector<256x128xf32>
    %309 = arith.maximumf %307, %308 : vector<256x128xf32>
    %310 = vector.extract_strided_slice %309 {offsets = [0, 0], sizes = [256, 8], strides = [1, 1]} : vector<256x128xf32> to vector<256x8xf32>
    %311 = arith.truncf %310 : vector<256x8xf32> to vector<256x8xbf16>
    %c0_212 = arith.constant 0 : index
    %c0_213 = arith.constant 0 : index
    %c0_214 = arith.constant 0 : index
    %312 = vector.load %arg8[%c0_212, %c0_213, %c0_214] : memref<1x256x8xbf16, #tpu.memory_space<vmem>>, vector<1x256x8xbf16>
    %313 = vector.shape_cast %312 : vector<1x256x8xbf16> to vector<256x8xbf16>
    %314 = vector.shape_cast %311 : vector<256x8xbf16> to vector<1x256x8xbf16>
    tpu.vector_store %arg8[%c0_212, %c0_213, %c0_214], %314 {strides = array<i32>} : memref<1x256x8xbf16, #tpu.memory_space<vmem>>, vector<1x256x8xbf16>,
    return
  }
  func.func @transform_0(%arg0: i32) -> (i32, i32, i32) {
    %c0_i32 = arith.constant 0 : i32
    %c0_i32_0 = arith.constant 0 : i32
    %c0_i32_1 = arith.constant 0 : i32
    return %arg0, %c0_i32, %c0_i32_0 : i32, i32, i32
  }
  func.func @transform_1(%arg0: i32) -> (i32, i32) {
    %c0_i32 = arith.constant 0 : i32
    %c0_i32_0 = arith.constant 0 : i32
    %c0_i32_1 = arith.constant 0 : i32
    return %c0_i32, %c0_i32_0 : i32, i32
  }
  func.func @transform_2(%arg0: i32) -> (i32, i32) {
    %c0_i32 = arith.constant 0 : i32
    %c0_i32_0 = arith.constant 0 : i32
    %c0_i32_1 = arith.constant 0 : i32
    return %c0_i32, %c0_i32_0 : i32, i32
  }
  func.func @transform_3(%arg0: i32) -> (i32, i32, i32) {
    %c0_i32 = arith.constant 0 : i32
    %c0_i32_0 = arith.constant 0 : i32
    %c0_i32_1 = arith.constant 0 : i32
    %c0_i32_2 = arith.constant 0 : i32
    return %c0_i32, %c0_i32_0, %c0_i32_1 : i32, i32, i32
  }
  func.func @transform_4(%arg0: i32) -> (i32, i32) {
    %c0_i32 = arith.constant 0 : i32
    %c0_i32_0 = arith.constant 0 : i32
    %c0_i32_1 = arith.constant 0 : i32
    return %c0_i32, %c0_i32_0 : i32, i32
  }
  func.func @transform_5(%arg0: i32) -> (i32, i32, i32) {
    %c0_i32 = arith.constant 0 : i32
    %c0_i32_0 = arith.constant 0 : i32
    %c0_i32_1 = arith.constant 0 : i32
    %c0_i32_2 = arith.constant 0 : i32
    return %c0_i32, %c0_i32_0, %c0_i32_1 : i32, i32, i32
  }
  func.func @transform_6(%arg0: i32) -> (i32, i32) {
    %c0_i32 = arith.constant 0 : i32
    %c0_i32_0 = arith.constant 0 : i32
    %c0_i32_1 = arith.constant 0 : i32
    return %c0_i32, %c0_i32_0 : i32, i32
  }
  func.func @transform_7(%arg0: i32) -> (i32, i32, i32) {
    %c0_i32 = arith.constant 0 : i32
    %c0_i32_0 = arith.constant 0 : i32
    %c0_i32_1 = arith.constant 0 : i32
    return %arg0, %c0_i32, %c0_i32_0 : i32, i32, i32
  }
}

</mosaic_0001>

<bundles_post_ra>
// kernel: conv_cat_block_pallas.1
= control target key start
LH: loop header
LB: loop body
LE: loop exit
PB: predicated region body
PF: predicated region fallthrough
CT: control target
= control target key end

     0   :  { %s10123_s24 = smov 0   ;;  %s14086_s0 = inlined_call_operand.vmem [shape: bf16[2,256,16], index: 0, kind: input, shape index: {}]   ;;  %s14087_s1 = inlined_call_operand.vmem [shape: bf16[16,128], index: 1, kind: input, shape index: {}]   ;;  %s14088_s2 = inlined_call_operand.vmem [shape: f32[1,128], index: 2, kind: input, shape index: {}]   ;;  %s14089_s3 = inlined_call_operand.vmem [shape: bf16[3,384,128], index: 3, kind: input, shape index: {}]   ;;  %s14090_s4 = inlined_call_operand.vmem [shape: f32[1,128], index: 4, kind: input, shape index: {}]   ;;  %s14091_s5 = inlined_call_operand.vmem [shape: bf16[3,384,128], index: 5, kind: input, shape index: {}]   ;;  %s14092_s6 = inlined_call_operand.vmem [shape: f32[1,128], index: 6, kind: input, shape index: {}]   ;;  %s14093_s7 = inlined_call_operand.vmem [shape: bf16[2,256,8], index: 7, kind: output, shape index: {}]  }
   0x1 LB: > { %s7371_s25 = sadd.s32 4294967295, %s10079_s24   ;;  %p7375_p0 = scmp.ge.s32.totalorder %s10079_s24, 1  ;;  %s10079_s24 = sphi %s10123_s24, %s17_s24  }
   0x2   : > { %p237_p1 = scmp.lt.s32.totalorder %s10079_s24, 3 }
   0x4   : > { %p238_p2 = pnand %p7375_p0, %p237_p1 }
   0x6   : > { %241 = sbr.rel (%p238_p2) target bundleno = 1346 (0x542), region = 48 }
   0xd   : > { %p269_p3 = scmp.lt.s32.totalorder %s7371_s25, 1  ;;  %p7380_p4 = scmp.ne.s32.totalorder %s7371_s25, 0 }
   0xe   : > { %v10081_v0 = vmov (!%p7380_p4), 0.0  }
   0xf   : > { %s270_s26 = scalar_select %p269_p3, %s7371_s25, 1 }
  0x10   : > { %283 = sbr.rel (%p7380_p4) target bundleno = 23 (0x17), region = 52  ;;  %284 = vst [vmem:[#allocation2] sm:$0xff] (!%p7380_p4), %v10081_v0  ;;  %285 = vst [vmem:[#allocation2 + $0x8] sm:$0xff] (!%p7380_p4), %v10081_v0 }
  0x11   : > { %s7787_s27 = sshll.u32 %s270_s26, 7  ;;  %286 = vst [vmem:[#allocation2 + $0x110] sm:$0xff] (!%p7380_p4), %v10081_v0  ;;  %287 = vst [vmem:[#allocation2 + $0x118] sm:$0xff] (!%p7380_p4), %v10081_v0 }
  0x12   : > { %s10134_s30 = scalar_lea.vmem %s14086_s0, %s7787_s27  ;;  %s10139_s10 = scalar_lea.vmem %s14093_s7, %s7787_s27 }
  0x17 PF: > { %v9898_v1 = vld [vmem:[%s14087_s1] sm:$0xff]   ;;  %vm415_vm0 = vcmask 130048   ;;  %v9900_v3 = vld [vmem:[%s10134_s30 + $0x8] sm:$0xff]   ;;  %v9901_v4 = vld [vmem:[%s10134_s30 + $0x10] sm:$0xff]   ;;  %v721_v24 = vlaneseq  ;;  %vm14147_vm7 = vmmov 1  }
  0x18   : > { %v9899_v2 = vld [vmem:[%s10134_s30] sm:$0xff]   ;;  %9230 = vmatprep.subr.bf16.mxu0 %v9898_v1  ;;  %v9902_v5 = vld [vmem:[%s10134_s30 + $0x18] sm:$0xff]   ;;  %v9904_v7 = vld [vmem:[%s10134_s30 + $0x28] sm:$0xff]  }
  0x19   : > { %9231 = vmatpush3.bf16.msra.mxu0 %v9898_v1  ;;  %9232 = vmatprep.mubr.msk.bf16.mxu0 %vm415_vm0, %v9899_v2  ;;  %v9903_v6 = vld [vmem:[%s10134_s30 + $0x20] sm:$0xff]   ;;  %v9905_v8 = vld [vmem:[%s10134_s30 + $0x30] sm:$0xff]   ;;  %v9916_v10 = vld [vmem:[%s14089_s3 + $0x88] sm:$0xff]   ;;  %v10201_v28 = vshrl.u32 %v721_v24, 7 }
  0x1a   : > { %v9915_v9 = vld [vmem:[%s14089_s3 + $0x80] sm:$0xff]   ;;  %v9917_v11 = vld [vmem:[%s14089_s3 + $0x90] sm:$0xff]   ;;  %v9906_v12 = vld [vmem:[%s10134_s30 + $0x38] sm:$0xff]  }
  0x1b   : > { %9264 = vmatprep.subr.bf16.mxu0 %v9915_v9  ;;  %v9907_v13 = vld [vmem:[%s10134_s30 + $0x40] sm:$0xff]   ;;  %v9908_v14 = vld [vmem:[%s10134_s30 + $0x48] sm:$0xff]   ;;  %v9909_v15 = vld [vmem:[%s10134_s30 + $0x50] sm:$0xff]   ;;  %vm14149_vm1 = vcmp.lt.s32.totalorder %v10201_v28, 7  ;;  %vm14146_vm2 = vcmp.lt.s32.totalorder %v10201_v28, 1  ;;  %v723_v54 = vadd.s32 8, %v10201_v28 }
  0x1c   : > { %9233 = vmatmul.mubr.msk.bf16.vlgmr.msra.gmra.mrb[0].mxu0 %vm415_vm0, %v9900_v3  ;;  %v9910_v16 = vld [vmem:[%s10134_s30 + $0x58] sm:$0xff]   ;;  %v9911_v17 = vld [vmem:[%s10134_s30 + $0x60] sm:$0xff]   ;;  %v9912_v18 = vld [vmem:[%s10134_s30 + $0x68] sm:$0xff]   ;;  %v725_v55 = vadd.s32 24, %v10201_v28  ;;  %v727_v56 = vadd.s32 40, %v10201_v28  ;;  %v729_v59 = vadd.s32 56, %v10201_v28 }
  0x1d   : > { %9236 = vmatprep.mubr.msk.bf16.mxu0 %vm415_vm0, %v9901_v4  ;;  %9265 = vmatpush3.bf16.msra.mxu0 %v9915_v9  ;;  %v9913_v19 = vld [vmem:[%s10134_s30 + $0x70] sm:$0xff]   ;;  %v9914_v20 = vld [vmem:[%s10134_s30 + $0x78] sm:$0xff]   ;;  %v9919_v22 = vld [vmem:[%s14089_s3 + $0xa0] sm:$0xff]   ;;  %v765_v58 = vand.u32 15, %v723_v54 }
  0x1e   : > { %9266 = vmatprep.subr.bf16.mxu0 %v9916_v10  ;;  %v9918_v21 = vld [vmem:[%s14089_s3 + $0x98] sm:$0xff]   ;;  %v9920_v23 = vld [vmem:[%s14089_s3 + $0xa8] sm:$0xff]   ;;  %v9921_v25 = vld [vmem:[%s14089_s3 + $0xb0] sm:$0xff]   ;;  %v779_v61 = vand.u32 15, %v725_v55  ;;  %v793_v0 = vand.u32 15, %v727_v56 }
  0x1f   : > { %v10197_v26 = vld [vmem:[#allocation2] sm:$0xff]  ;;  %v10199_v27 = vld [vmem:[#allocation2 + $0x8] sm:$0xff]  ;;  %v9922_v31 = vld [vmem:[%s14089_s3 + $0xb8] sm:$0xff]   ;;  %vm10293_vm3 = vcmp.le.s32.totalorder %v765_v58, 14 }
  0x20   : > { %v14094_v29 = vrot.slane %v10197_v26, 1  ;;  %v1364_v30 = vrot.slane %v10199_v27, 1  ;;  %v9923_v33 = vld [vmem:[%s14089_s3 + $0x40] sm:$0xff]   ;;  %v9925_v35 = vld [vmem:[%s14089_s3 + $0x48] sm:$0xff]   ;;  %v9927_v37 = vld [vmem:[%s14089_s3 + $0x50] sm:$0xff]   ;;  %v14095_v50 = vrot.slane %v10197_v26, 7  ;;  %v1299_v52 = vpack.c.bf16 %v10199_v27, %v10197_v26 }
  0x21   : > { %9267 = vmatpush3.bf16.msra.mxu0 %v9916_v10  ;;  %v9924_v34 = vld [vmem:[%s14089_s3] sm:$0xff]   ;;  %8414 = vmatprep.subr.bf16.mxu1 %v9923_v33  ;;  %v9926_v36 = vld [vmem:[%s14089_s3 + $0x8] sm:$0xff]   ;;  %v9928_v39 = vld [vmem:[%s14089_s3 + $0x10] sm:$0xff]   ;;  %v1171_v51 = vrot.slane %v10199_v27, 7  ;;  %vm10298_vm4 = vcmp.le.s32.totalorder %v779_v61, 14  ;;  %vm10305_vm5 = vcmp.le.s32.totalorder %v793_v0, 14 }
  0x22   : > { %9268 = vmatprep.subr.bf16.mxu0 %v9917_v11  ;;  %v10215_v32 = vsel %vm14149_vm1, %v14094_v29, %v1364_v30  ;;  %8415 = vmatpush3.bf16.msra.mxu1 %v9924_v34  ;;  %v9929_v38 = vld [vmem:[%s14089_s3 + $0x100] sm:$0xff]   ;;  %v9931_v40 = vld [vmem:[%s14089_s3 + $0x58] sm:$0xff]   ;;  %v9939_v44 = vld [vmem:[%s14089_s3 + $0x68] sm:$0xff]   ;;  %v14476_v33 = vmov 0 }
  0x23   : > { %8416 = vmatprep.subr.bf16.mxu1 %v9925_v35  ;;  %v9932_v41 = vld [vmem:[%s14089_s3 + $0x18] sm:$0xff]   ;;  %v9935_v42 = vld [vmem:[%s14089_s3 + $0x60] sm:$0xff]   ;;  %v9940_v45 = vld [vmem:[%s14089_s3 + $0x28] sm:$0xff]   ;;  %v10277_v53 = vsel %vm14146_vm2, %v14095_v50, %v1171_v51  ;;  %1764 = vmatprep.mubr.bf16.mxu1 %v1299_v52 }
  0x24   : > { %9237 = vmatmul.mubr.msk.bf16.gmra.mrb[4].mxu0 %vm415_vm0, %v9902_v5  ;;  %v9936_v43 = vld [vmem:[%s14089_s3 + $0x20] sm:$0xff]   ;;  %v9943_v46 = vld [vmem:[%s14089_s3 + $0x70] sm:$0xff]   ;;  %v9947_v48 = vld [vmem:[%s14089_s3 + $0x78] sm:$0xff]  }
  0x25   : > { %9240 = vmatprep.mubr.msk.bf16.mxu0 %vm415_vm0, %v9903_v6  ;;  %9269 = vmatpush3.bf16.msra.mxu0 %v9917_v11  ;;  %v9944_v47 = vld [vmem:[%s14089_s3 + $0x30] sm:$0xff]   ;;  %v9948_v49 = vld [vmem:[%s14089_s3 + $0x38] sm:$0xff]   ;;  %v10285_v57 = vld [vmem:[%s14088_s2] ss:$0 sm:$0xff] }
  0x26   : > { %9270 = vmatprep.subr.bf16.mxu0 %v9918_v21  ;;  %8417 = vmatpush3.bf16.msra.mxu1 %v9926_v36  ;;  %vm10344_vm8 = vmpackc.low %vm10293_vm3, %vm14147_vm7  ;;  %v10445_v6 = vld [vmem:[%s14089_s3 + $0x110] sm:$0xff]  }
  0x27   : > { %8418 = vmatprep.subr.bf16.mxu1 %v9927_v37  ;;  %v14477_v33 = vsel %vm10344_vm8, 4294967295, %v14476_v33  ;;  %vm10375_vm9 = vmpackc.low %vm10298_vm4, %vm14147_vm7 }
  0x28   : > { %14478 = vst [vmem:[#allocation8_spill] sm:$0xff] %v14477_v33  ;;  %vm10466_vm10 = vmpackc.low %vm10305_vm5, %vm14147_vm7  ;;  %v14525_v33 = vmov 0 }
  0x29   : > { %9271 = vmatpush3.bf16.msra.mxu0 %v9918_v21 }
  0x2a   : > { %9272 = vmatprep.subr.bf16.mxu0 %v9919_v22  ;;  %8419 = vmatpush3.bf16.msra.mxu1 %v9928_v39 }
  0x2b   : > { %8420 = vmatprep.subr.bf16.mxu1 %v9931_v40 }
  0x2c   : > { %9241 = vmatmul.mubr.msk.bf16.gmra.mrb[8].mxu0 %vm415_vm0, %v9904_v7  ;;  %v807_v7 = vand.u32 15, %v729_v59 }
  0x2d   : > { %9244 = vmatprep.mubr.msk.bf16.mxu0 %vm415_vm0, %v9905_v8  ;;  %9273 = vmatpush3.bf16.msra.mxu0 %v9919_v22 }
  0x2e   : > { %9274 = vmatprep.subr.bf16.mxu0 %v9920_v23  ;;  %8421 = vmatpush3.bf16.msra.mxu1 %v9932_v41  ;;  %vm10324_vm6 = vcmp.le.s32.totalorder %v807_v7, 14 }
  0x2f   : > { %8422 = vmatprep.subr.bf16.mxu1 %v9935_v42  ;;  %v14480_v42 = vmov 0  ;;  %vm10496_vm11 = vmpackc.low %vm10324_vm6, %vm14147_vm7 }
  0x30   : > { %v14481_v42 = vsel %vm10375_vm9, 4294967295, %v14480_v42 }
  0x31   : > { %9275 = vmatpush3.bf16.msra.mxu0 %v9920_v23  ;;  %14482 = vst [vmem:[#allocation10_spill] sm:$0xff] %v14481_v42 }
  0x32   : > { %9276 = vmatprep.subr.bf16.mxu0 %v9921_v25  ;;  %8423 = vmatpush3.bf16.msra.mxu1 %v9936_v43  ;;  %v10382_v43 = vld [vmem:[%s14089_s3 + $0xc0] sm:$0xff]  }
  0x33   : > { %8424 = vmatprep.subr.bf16.mxu1 %v9939_v44 }
  0x34   : > { %9245 = vmatmul.mubr.msk.bf16.gmra.mrb[12].mxu0 %vm415_vm0, %v9906_v12 }
  0x35   : > { %9248 = vmatprep.mubr.msk.bf16.mxu0 %vm415_vm0, %v9907_v13  ;;  %9277 = vmatpush3.bf16.msra.mxu0 %v9921_v25  ;;  %v10310_v13 = vadd.s32 72, %v10201_v28 }
  0x36   : > { %9278 = vmatprep.subr.bf16.mxu0 %v9922_v31  ;;  %8425 = vmatpush3.bf16.msra.mxu1 %v9940_v45 }
  0x37   : > { %8426 = vmatprep.subr.bf16.mxu1 %v9943_v46 }
  0x39   : > { %9279 = vmatpush3.bf16.msra.mxu0 %v9922_v31 }
  0x3a   : > { %8550 = vmatprep.subr.bf16.mxu0 %v9929_v38  ;;  %8427 = vmatpush3.bf16.msra.mxu1 %v9944_v47 }
  0x3b   : > { %8428 = vmatprep.subr.bf16.mxu1 %v9947_v48 }
  0x3c   : > { %9249 = vmatmul.mubr.msk.bf16.gmra.mrb[16].mxu0 %vm415_vm0, %v9908_v14  ;;  %v10313_v14 = vadd.s32 88, %v10201_v28 }
  0x3d   : > { %9252 = vmatprep.mubr.msk.bf16.mxu0 %vm415_vm0, %v9909_v15 }
  0x3e   : > { %8429 = vmatpush3.bf16.msra.mxu1 %v9948_v49  ;;  %v10398_v49 = vld [vmem:[%s14089_s3 + $0x108] sm:$0xff]   ;;  %v835_v61 = vand.u32 15, %v10313_v14  ;;  %v14486_v14 = vmov 0 }
  0x3f   : > { %9552 = vmatprep.subr.bf16.mxu1 %v9929_v38  ;;  %v14487_v14 = vsel %vm10466_vm10, 4294967295, %v14486_v14 }
  0x40   : > { %14488 = vst [vmem:[#allocation14_spill] sm:$0xff] %v14487_v14  ;;  %vm10561_vm13 = vcmp.le.s32.totalorder %v835_v61, 14 }
  0x41   : > { %vm10609_vm15 = vmpackc.low %vm10561_vm13, %vm14147_vm7 }
  0x44   : > { %9253 = vmatmul.mubr.msk.bf16.gmra.mrb[20].mxu0 %vm415_vm0, %v9910_v16 }
  0x45   : > { %9256 = vmatprep.mubr.msk.bf16.mxu0 %vm415_vm0, %v9911_v17 }
  0x4c   : > { %9257 = vmatmul.mubr.msk.bf16.gmra.mrb[24].mxu0 %vm415_vm0, %v9912_v18 }
  0x4d   : > { %9260 = vmatprep.mubr.msk.bf16.mxu0 %vm415_vm0, %v9913_v19 }
  0x54   : > { %9261 = vmatmul.mubr.msk.bf16.gmra.mrb[28].mxu0 %vm415_vm0, %v9914_v20 }
  0xef   : > { %v9234_v60 = vpop.f32.mrb[0].mxu0 }
  0xf0   : > { %v507_v62 = vadd.f32 %v9234_v60, %v10285_v57  ;;  %v498_v63 = vpop.f32.mrb[1].mxu0  ;;  %v821_v60 = vand.u32 15, %v10310_v13 }
  0xf1   : > { %v499_v1 = vadd.f32 %v10285_v57, %v498_v63  ;;  %v9235_v2 = vpop.f32.mrb[2].mxu0 }
  0xf2   : > { %v10290_v3 = vmax.f32 %v507_v62, 0.0  ;;  %v510_v4 = vadd.f32 %v9235_v2, %v10285_v57  ;;  %v501_v5 = vpop.f32.mrb[3].mxu0  ;;  %v10435_v2 = vld [vmem:[%s14089_s3 + $0xc8] sm:$0xff]   ;;  %vm10540_vm12 = vcmp.le.s32.totalorder %v821_v60, 14  ;;  %v10557_v60 = vld [vmem:[%s14089_s3 + $0xd8] sm:$0xff]  }
  0xf3   : > { %v625_v8 = vmax.f32 %v499_v1, 0.0  ;;  %v502_v9 = vadd.f32 %v10285_v57, %v501_v5  ;;  %vm10580_vm14 = vmpackc.low %vm10540_vm12, %vm14147_vm7 }
  0xf4   : > { %659 = vst [vmem:[#allocation2 + $0x20] sm:$0xff] %v10290_v3  ;;  %v10303_v11 = vmax.f32 %v510_v4, 0.0  ;;  %v1367_v17 = vrot.slane %v10290_v3, 1  ;;  %v1174_v23 = vrot.slane %v10290_v3, 7 }
  0xf5   : > { %v626_v15 = vmax.f32 %v502_v9, 0.0  ;;  %v10315_v16 = vrot.slane %v625_v8, 1  ;;  %v10318_v18 = vrot.slane %v625_v8, 7 }
  0xf6   : > { %660 = vst [vmem:[#allocation2 + $0x28] sm:$0xff] %v10303_v11  ;;  %v10322_v19 = vrot.slane %v10303_v11, 1  ;;  %v10331_v22 = vrot.slane %v10303_v11, 7 }
  0xf7   : > { %14471 = vst [vmem:[#allocation5_spill] sm:$0xff] %v10315_v16  ;;  %v9238_v24 = vpop.f32.mrb[4].mxu0  ;;  %v10334_v25 = vrot.slane %v626_v15, 1  ;;  %v1425_v31 = vsel %vm14149_vm1, %v1364_v30, %v10315_v16  ;;  %v10348_v34 = vpack.c.bf16 %v626_v15, %v625_v8  ;;  %v2119_v35 = vrot.slane %v626_v15, 7 }
  0xf8   : > { %14472 = vst [vmem:[#allocation6_spill] sm:$0xff] %v10322_v19  ;;  %v523_v36 = vadd.f32 %v9238_v24, %v10285_v57  ;;  %v514_v37 = vpop.f32.mrb[5].mxu0  ;;  %v7870_v38 = vpack.c.bf16 %v1425_v31, %v10215_v32  ;;  %v10355_v27 = vsel %vm14149_vm1, %v1367_v17, %v10322_v19  ;;  %v10360_v30 = vsel %vm14146_vm2, %v1171_v51, %v10318_v18 }
  0xf9   : > { %14475 = vst [vmem:[#allocation7_spill] sm:$0xff] %v10334_v25  ;;  %v515_v39 = vadd.f32 %v10285_v57, %v514_v37  ;;  %v9239_v40 = vpop.f32.mrb[6].mxu0  ;;  %v10367_v41 = vsel %vm14149_vm1, %v10315_v16, %v10334_v25  ;;  %v1423_v32 = vsel %vm14149_vm1, %v10334_v25, %v1367_v17  ;;  %v10387_v44 = vsel %vm14146_vm2, %v10318_v18, %v2119_v35 }
  0xfa   : > { %14479 = vst [vmem:[#allocation9_spill] sm:$0xff] %v10367_v41  ;;  %v10389_v45 = vmax.f32 %v523_v36, 0.0  ;;  %v526_v46 = vadd.f32 %v9239_v40, %v10285_v57  ;;  %v517_v47 = vpop.f32.mrb[7].mxu0  ;;  %9280 = vmatprep.mubr.msk.bf16.mxu0 %vm10344_vm8, %v7870_v38  ;;  %v7873_v48 = vpack.c.bf16 %v1423_v32, %v10367_v41  ;;  %v10410_v56 = vsel %vm14146_vm2, %v1174_v23, %v10331_v22  ;;  %v10504_v32 = vld [vmem:[%s14089_s3 + $0xd0] sm:$0xff]   ;;  %v10572_v36 = vld [vmem:[%s14089_s3 + $0x120] sm:$0xff]  }
  0xfb   : > { %v10402_v52 = vmax.f32 %v515_v39, 0.0  ;;  %v518_v54 = vadd.f32 %v10285_v57, %v517_v47  ;;  %v10405_v55 = vld [vmem:[#allocation2 + $0x20] sm:$0xff]  ;;  %v10414_v58 = vsel %vm14146_vm2, %v2119_v35, %v1174_v23  ;;  %v10474_v17 = vadd.s32 104, %v10201_v28 }
  0xfc   : > { %14483 = vst [vmem:[#allocation11_spill] sm:$0xff] %v10389_v45  ;;  %663 = vst [vmem:[#allocation2 + $0x40] sm:$0xff] %v10389_v45  ;;  %v10417_v59 = vmax.f32 %v526_v46, 0.0  ;;  %9281 = vmatmul.mubr.msk.bf16.vlgmr.msra.gmra.mrb[32].mxu0 %vm10375_vm9, %v7873_v48  ;;  %v10424_v62 = vrot.slane %v10405_v55, 7  ;;  %v1371_v1 = vrot.slane %v10389_v45, 1 }
  0xfd   : > { %661 = vst [vmem:[#allocation2 + $0x30] sm:$0xff] %v10402_v52  ;;  %v10427_v63 = vmax.f32 %v518_v54, 0.0  ;;  %v1369_v0 = vrot.slane %v10402_v52, 1  ;;  %8551 = vmatpush3.bf16.msra.mxu0 %v10382_v43  ;;  %v1176_v9 = vrot.slane %v10402_v52, 7 }
  0xfe   : > { %14484 = vst [vmem:[#allocation12_spill] sm:$0xff] %v10417_v59  ;;  %14485 = vst [vmem:[#allocation13_spill] sm:$0xff] %v10424_v62  ;;  %v1372_v5 = vrot.slane %v10417_v59, 1  ;;  %8552 = vmatprep.subr.bf16.mxu0 %v10398_v49  ;;  %v10451_v7 = vsel %vm14146_vm2, %v10424_v62, %v10331_v22  ;;  %v10456_v8 = vsel %vm14146_vm2, %v2119_v35, %v10424_v62 }
  0xff   : > { %664 = vst [vmem:[#allocation2 + $0x48] sm:$0xff] %v10417_v59  ;;  %662 = vst [vmem:[#allocation2 + $0x38] sm:$0xff] %v10427_v63  ;;  %v9242_v10 = vpop.f32.mrb[8].mxu0  ;;  %v1421_v13 = vsel %vm14149_vm1, %v10322_v19, %v1369_v0  ;;  %v10471_v15 = vrot.slane %v10427_v63, 1  ;;  %v10507_v46 = vrot.slane %v10427_v63, 7 }
 0x100   : > { %v539_v24 = vadd.f32 %v9242_v10, %v10285_v57  ;;  %v530_v31 = vpop.f32.mrb[9].mxu0  ;;  %v7876_v35 = vpack.c.bf16 %v1421_v13, %v10355_v27  ;;  %v10482_v12 = vsel %vm14149_vm1, %v1371_v1, %v1372_v5  ;;  %v14490_v27 = vmov 0 }
 0x101   : > { %14489 = vst [vmem:[#allocation15_spill] sm:$0xff] %v10471_v15  ;;  %v531_v37 = vadd.f32 %v10285_v57, %v530_v31  ;;  %v9243_v38 = vpop.f32.mrb[10].mxu0  ;;  %v1419_v39 = vsel %vm14149_vm1, %v10471_v15, %v1371_v1  ;;  %v1420_v40 = vsel %vm14149_vm1, %v1369_v0, %v10471_v15  ;;  %v14491_v27 = vsel %vm10496_vm11, 4294967295, %v14490_v27  ;;  %8553 = vmatpush3.bf16.msra.mxu0 %v10435_v2  ;;  %v10518_v0 = vld [vmem:[%s14089_s3 + $0x118] sm:$0xff]  }
 0x102   : > { %14492 = vst [vmem:[#allocation16_spill] sm:$0xff] %v14491_v27  ;;  %14493 = vst [vmem:[#allocation17_spill] sm:$0xff] %v10507_v46  ;;  %v10509_v47 = vmax.f32 %v539_v24, 0.0  ;;  %v542_v48 = vadd.f32 %v9243_v38, %v10285_v57  ;;  %v533_v54 = vpop.f32.mrb[11].mxu0  ;;  %9284 = vmatprep.mubr.msk.bf16.mxu0 %vm10466_vm10, %v7876_v35  ;;  %v7879_v20 = vpack.c.bf16 %v1419_v39, %v1420_v40  ;;  %8554 = vmatprep.subr.bf16.mxu0 %v10445_v6 }
 0x103   : > { %v10523_v1 = vsel %vm14146_vm2, %v10331_v22, %v1176_v9  ;;  %v10525_v10 = vmax.f32 %v531_v37, 0.0  ;;  %v534_v13 = vadd.f32 %v10285_v57, %v533_v54  ;;  %v10531_v24 = vsel %vm14146_vm2, %v1176_v9, %v10507_v46 }
 0x104   : > { %14494 = vst [vmem:[#allocation18_spill] sm:$0xff] %v10509_v47  ;;  %14495 = vst [vmem:[#allocation19_spill] sm:$0xff] %v10523_v1  ;;  %v10536_v35 = vmax.f32 %v542_v48, 0.0  ;;  %9285 = vmatmul.mubr.msk.bf16.gmra.mrb[36].mxu0 %vm10496_vm11, %v7879_v20  ;;  %v737_v38 = vadd.s32 120, %v10201_v28  ;;  %v10545_v39 = vld [vmem:[#allocation2 + $0x30] sm:$0xff]  ;;  %v849_v31 = vand.u32 15, %v10474_v17 }
 0x105   : > { %14496 = vst [vmem:[#allocation20_spill] sm:$0xff] %v10525_v10  ;;  %14497 = vst [vmem:[#allocation21_spill] sm:$0xff] %v10531_v24  ;;  %v10550_v40 = vmax.f32 %v534_v13, 0.0  ;;  %v1373_v48 = vrot.slane %v10525_v10, 1  ;;  %8555 = vmatpush3.bf16.msra.mxu0 %v10504_v32  ;;  %v2122_v54 = vrot.slane %v10545_v39, 7  ;;  %v1375_v13 = vrot.slane %v10509_v47, 1 }
 0x106   : > { %667 = vst [vmem:[#allocation2 + $0x60] sm:$0xff] %v10509_v47  ;;  %14498 = vst [vmem:[#allocation22_spill] sm:$0xff] %v10536_v35  ;;  %v1376_v9 = vrot.slane %v10536_v35, 1  ;;  %8556 = vmatprep.subr.bf16.mxu0 %v10518_v0  ;;  %v14504_v17 = vmov 0  ;;  %v863_v62 = vand.u32 15, %v737_v38  ;;  %v10630_v20 = vld [vmem:[%s14089_s3 + $0x128] sm:$0xff]  }
 0x107   : > { %665 = vst [vmem:[#allocation2 + $0x50] sm:$0xff] %v10525_v10  ;;  %14501 = vst [vmem:[#allocation23_spill] sm:$0xff] %v10550_v40  ;;  %v9246_v23 = vpop.f32.mrb[12].mxu0  ;;  %v1417_v61 = vsel %vm14149_vm1, %v1372_v5, %v1373_v48  ;;  %v14505_v17 = vsel %vm10580_vm14, 4294967295, %v14504_v17  ;;  %v1374_v4 = vrot.slane %v10550_v40, 1  ;;  %v10588_v21 = vsel %vm14146_vm2, %v2122_v54, %v10507_v46 }
 0x108   : > { %668 = vst [vmem:[#allocation2 + $0x68] sm:$0xff] %v10536_v35  ;;  %666 = vst [vmem:[#allocation2 + $0x58] sm:$0xff] %v10550_v40  ;;  %v10593_v51 = vsel %vm14146_vm2, %v10331_v22, %v2122_v54  ;;  %v555_v5 = vadd.f32 %v9246_v23, %v10285_v57  ;;  %v546_v29 = vpop.f32.mrb[13].mxu0  ;;  %v7882_v37 = vpack.c.bf16 %v1417_v61, %v10482_v12  ;;  %v14509_v23 = vmov 0 }
 0x109   : > { %14506 = vst [vmem:[#allocation24_spill] sm:$0xff] %v14505_v17  ;;  %14507 = vst [vmem:[#allocation25_spill] sm:$0xff] %v10588_v21  ;;  %v10599_v50 = vsel %vm14149_vm1, %v1375_v13, %v1376_v9  ;;  %v547_v16 = vadd.f32 %v10285_v57, %v546_v29  ;;  %v9247_v27 = vpop.f32.mrb[14].mxu0  ;;  %v1415_v14 = vsel %vm14149_vm1, %v1374_v4, %v1375_v13  ;;  %v14510_v23 = vsel %vm10609_vm15, 4294967295, %v14509_v23  ;;  %v10617_v29 = vld [vmem:[%s14089_s3 + $0xe0] sm:$0xff]  }
 0x10a   : > { %14508 = vst [vmem:[#allocation26_spill] sm:$0xff] %v10593_v51  ;;  %v1416_v22 = vsel %vm14149_vm1, %v1373_v48, %v1374_v4  ;;  %14511 = vst [vmem:[#allocation27_spill] sm:$0xff] %v14510_v23  ;;  %8557 = vmatpush3.bf16.msra.mxu0 %v10557_v60  ;;  %v10621_v38 = vmax.f32 %v555_v5, 0.0  ;;  %v558_v4 = vadd.f32 %v9247_v27, %v10285_v57  ;;  %v549_v48 = vpop.f32.mrb[15].mxu0  ;;  %9288 = vmatprep.mubr.msk.bf16.mxu0 %vm10580_vm14, %v7882_v37  ;;  %v10674_v23 = vld [vmem:[%s14089_s3 + $0x130] sm:$0xff]  }
 0x10b   : > { %14512 = vst [vmem:[#allocation28_spill] sm:$0xff] %v10617_v29  ;;  %v7885_v54 = vpack.c.bf16 %v1415_v14, %v1416_v22  ;;  %8558 = vmatprep.subr.bf16.mxu0 %v10572_v36  ;;  %14514 = vst [vmem:[#allocation30_spill] sm:$0xff] %v10630_v20  ;;  %v10632_v13 = vmax.f32 %v547_v16, 0.0  ;;  %v550_v61 = vadd.f32 %v10285_v57, %v549_v48  ;;  %v739_v5 = vadd.s32 136, %v10201_v28 }
 0x10c   : > { %14513 = vst [vmem:[#allocation29_spill] sm:$0xff] %v10621_v38  ;;  %v1178_v27 = vrot.slane %v10389_v45, 7  ;;  %671 = vst [vmem:[#allocation2 + $0x80] sm:$0xff] %v10621_v38  ;;  %v10638_v12 = vmax.f32 %v558_v4, 0.0  ;;  %vm10642_vm0 = vcmp.le.s32.totalorder %v849_v31, 14  ;;  %v741_v16 = vadd.s32 152, %v10201_v28 }
 0x10d   : > { %14515 = vst [vmem:[#allocation31_spill] sm:$0xff] %v10632_v13  ;;  %9289 = vmatmul.mubr.msk.bf16.gmra.mrb[40].mxu0 %vm10609_vm15, %v7885_v54  ;;  %v1179_v37 = vrot.slane %v10417_v59, 7  ;;  %669 = vst [vmem:[#allocation2 + $0x70] sm:$0xff] %v10632_v13  ;;  %v10649_v22 = vmax.f32 %v550_v61, 0.0  ;;  %v1377_v48 = vrot.slane %v10632_v13, 1  ;;  %vm10652_vm3 = vcmp.le.s32.totalorder %v863_v62, 14 }
 0x10e   : > { %8559 = vmatpush3.bf16.msra.mxu0 %v10617_v29  ;;  %v10660_v31 = vld [vmem:[%s14089_s3 + $0xe8] sm:$0xff]   ;;  %v10665_v54 = vsel %vm14146_vm2, %v10507_v46, %v1178_v27  ;;  %672 = vst [vmem:[#allocation2 + $0x88] sm:$0xff] %v10638_v12  ;;  %v1379_v61 = vrot.slane %v10621_v38, 1  ;;  %v1380_v62 = vrot.slane %v10638_v12, 1  ;;  %14523 = vst [vmem:[#allocation35_spill] sm:$0xff] %v10674_v23  ;;  %v891_v14 = vand.u32 15, %v741_v16 }
 0x10f   : > { %14518 = vst [vmem:[#allocation32_spill] sm:$0xff] %v10649_v22  ;;  %14521 = vst [vmem:[#allocation33_spill] sm:$0xff] %v10660_v31  ;;  %8560 = vmatprep.subr.bf16.mxu0 %v10630_v20  ;;  %v10678_v17 = vsel %vm14146_vm2, %v1178_v27, %v1179_v37  ;;  %v9250_v15 = vpop.f32.mrb[16].mxu0  ;;  %v1413_v19 = vsel %vm14149_vm1, %v1376_v9, %v1377_v48  ;;  %v1378_v41 = vrot.slane %v10649_v22, 1  ;;  %v877_v27 = vand.u32 15, %v739_v5  ;;  %v10729_v4 = vld [vmem:[%s14089_s3 + $0x138] sm:$0xff]  }
 0x110   : > { %14522 = vst [vmem:[#allocation34_spill] sm:$0xff] %v10665_v54  ;;  %14524 = vst [vmem:[#allocation36_spill] sm:$0xff] %v10678_v17  ;;  %v571_v42 = vadd.f32 %v9250_v15, %v10285_v57  ;;  %v562_v46 = vpop.f32.mrb[17].mxu0  ;;  %v7888_v45 = vpack.c.bf16 %v1413_v19, %v10599_v50  ;;  %v10699_v9 = vsel %vm14149_vm1, %v1379_v61, %v1380_v62  ;;  %v14528_v15 = vmov 0  ;;  %v10718_v19 = vld [vmem:[%s14089_s3 + $0xf0] sm:$0xff]  }
 0x111   : > { %670 = vst [vmem:[#allocation2 + $0x78] sm:$0xff] %v10649_v22  ;;  %vm10688_vm4 = vmpackc.low %vm10642_vm0, %vm14147_vm7  ;;  %v563_v59 = vadd.f32 %v10285_v57, %v562_v46  ;;  %v9251_v51 = vpop.f32.mrb[18].mxu0  ;;  %v1411_v21 = vsel %vm14149_vm1, %v1378_v41, %v1379_v61  ;;  %v1412_v5 = vsel %vm14149_vm1, %v1377_v48, %v1378_v41  ;;  %v743_v50 = vadd.s32 168, %v10201_v28 }
 0x112   : > { %v14526_v33 = vsel %vm10688_vm4, 4294967295, %v14525_v33  ;;  %vm10709_vm5 = vmpackc.low %vm10652_vm3, %vm14147_vm7  ;;  %8561 = vmatpush3.bf16.msra.mxu0 %v10660_v31  ;;  %14531 = vst [vmem:[#allocation39_spill] sm:$0xff] %v10718_v19  ;;  %v10720_v46 = vmax.f32 %v571_v42, 0.0  ;;  %v574_v41 = vadd.f32 %v9251_v51, %v10285_v57  ;;  %v565_v16 = vpop.f32.mrb[19].mxu0  ;;  %9292 = vmatprep.mubr.msk.bf16.mxu0 %vm10688_vm4, %v7888_v45  ;;  %v7891_v48 = vpack.c.bf16 %v1411_v21, %v1412_v5 }
 0x113   : > { %14527 = vst [vmem:[#allocation37_spill] sm:$0xff] %v14526_v33  ;;  %v14529_v15 = vsel %vm10709_vm5, 4294967295, %v14528_v15  ;;  %8562 = vmatprep.subr.bf16.mxu0 %v10674_v23  ;;  %14532 = vst [vmem:[#allocation40_spill] sm:$0xff] %v10729_v4  ;;  %v10731_v61 = vmax.f32 %v563_v59, 0.0  ;;  %v566_v25 = vadd.f32 %v10285_v57, %v565_v16  ;;  %v745_v42 = vadd.s32 184, %v10201_v28 }
 0x114   : > { %14530 = vst [vmem:[#allocation38_spill] sm:$0xff] %v14529_v15  ;;  %v1180_v51 = vrot.slane %v10525_v10, 7  ;;  %675 = vst [vmem:[#allocation2 + $0xa0] sm:$0xff] %v10720_v46  ;;  %v10737_v33 = vmax.f32 %v574_v41, 0.0  ;;  %vm10741_vm6 = vcmp.le.s32.totalorder %v877_v27, 14  ;;  %vm10745_vm12 = vcmp.le.s32.totalorder %v891_v14, 14 }
 0x115   : > { %9293 = vmatmul.mubr.msk.bf16.gmra.mrb[44].mxu0 %vm10709_vm5, %v7891_v48  ;;  %v1181_v59 = vrot.slane %v10550_v40, 7  ;;  %673 = vst [vmem:[#allocation2 + $0x90] sm:$0xff] %v10731_v61  ;;  %v10751_v5 = vmax.f32 %v566_v25, 0.0  ;;  %v1381_v41 = vrot.slane %v10731_v61, 1  ;;  %v905_v16 = vand.u32 15, %v743_v50  ;;  %v10758_v27 = vld [vmem:[%s14089_s3 + $0xf8] sm:$0xff]   ;;  %vm10785_vm13 = vmpackc.low %vm10741_vm6, %vm14147_vm7 }
 0x116   : > { %8563 = vmatpush3.bf16.msra.mxu0 %v10718_v19  ;;  %14537 = vst [vmem:[#allocation41_spill] sm:$0xff] %v10758_v27  ;;  %v10762_v14 = vsel %vm14146_vm2, %v1179_v37, %v1180_v51  ;;  %676 = vst [vmem:[#allocation2 + $0xa8] sm:$0xff] %v10737_v33  ;;  %v1383_v48 = vrot.slane %v10720_v46, 1  ;;  %v1384_v25 = vrot.slane %v10737_v33, 1  ;;  %v10771_v50 = vld [vmem:[%s14089_s3 + $0x140] sm:$0xff]   ;;  %v14540_v54 = vmov 0 }
 0x117   : > { %14538 = vst [vmem:[#allocation42_spill] sm:$0xff] %v10762_v14  ;;  %8564 = vmatprep.subr.bf16.mxu0 %v10729_v4  ;;  %v10775_v15 = vsel %vm14146_vm2, %v1180_v51, %v1181_v59  ;;  %674 = vst [vmem:[#allocation2 + $0x98] sm:$0xff] %v10751_v5  ;;  %v9254_v10 = vpop.f32.mrb[20].mxu0  ;;  %v1409_v40 = vsel %vm14149_vm1, %v1380_v62, %v1381_v41  ;;  %v14541_v54 = vsel %vm10785_vm13, 4294967295, %v14540_v54  ;;  %v1382_v17 = vrot.slane %v10751_v5, 1 }
 0x118   : > { %14539 = vst [vmem:[#allocation43_spill] sm:$0xff] %v10775_v15  ;;  %14542 = vst [vmem:[#allocation44_spill] sm:$0xff] %v14541_v54  ;;  %v919_v51 = vand.u32 15, %v745_v42  ;;  %v587_v37 = vadd.f32 %v9254_v10, %v10285_v57  ;;  %v578_v19 = vpop.f32.mrb[21].mxu0  ;;  %v7894_v1 = vpack.c.bf16 %v1409_v40, %v10699_v9  ;;  %v1406_v62 = vsel %vm14149_vm1, %v1383_v48, %v1384_v25 }
 0x119   : > { %v747_v21 = vadd.s32 200, %v10201_v28  ;;  %v579_v24 = vadd.f32 %v10285_v57, %v578_v19  ;;  %v9255_v23 = vpop.f32.mrb[22].mxu0  ;;  %v1407_v31 = vsel %vm14149_vm1, %v1382_v17, %v1383_v48  ;;  %v1408_v42 = vsel %vm14149_vm1, %v1381_v41, %v1382_v17  ;;  %vm10805_vm0 = vmpackc.low %vm10745_vm12, %vm14147_vm7 }
 0x11a   : > { %v14543_v10 = vmov 0  ;;  %v749_v40 = vadd.s32 216, %v10201_v28  ;;  %8565 = vmatpush3.bf16.msra.mxu0 %v10758_v27  ;;  %v10811_v9 = vmax.f32 %v587_v37, 0.0  ;;  %v590_v19 = vadd.f32 %v9255_v23, %v10285_v57  ;;  %v581_v4 = vpop.f32.mrb[23].mxu0  ;;  %9296 = vmatprep.mubr.msk.bf16.mxu0 %vm10785_vm13, %v7894_v1 }
 0x11b   : > { %v14544_v10 = vsel %vm10805_vm0, 4294967295, %v14543_v10  ;;  %v7897_v17 = vpack.c.bf16 %v1407_v31, %v1408_v42  ;;  %9312 = vmatprep.subr.bf16.mxu0 %v10771_v50  ;;  %v10817_v45 = vmax.f32 %v579_v24, 0.0  ;;  %v582_v41 = vadd.f32 %v10285_v57, %v581_v4 }
 0x11c   : > { %14545 = vst [vmem:[#allocation45_spill] sm:$0xff] %v14544_v10  ;;  %vm10820_vm3 = vcmp.le.s32.totalorder %v905_v16, 14  ;;  %679 = vst [vmem:[#allocation2 + $0xc0] sm:$0xff] %v10811_v9  ;;  %v10825_v37 = vmax.f32 %v590_v19, 0.0  ;;  %vm10829_vm6 = vcmp.le.s32.totalorder %v919_v51, 14  ;;  %v933_v23 = vand.u32 15, %v747_v21 }
 0x11d   : > { %9297 = vmatmul.mubr.msk.bf16.gmra.mrb[48].mxu0 %vm10805_vm0, %v7897_v17  ;;  %v1182_v24 = vrot.slane %v10509_v47, 7  ;;  %677 = vst [vmem:[#allocation2 + $0xb0] sm:$0xff] %v10817_v45  ;;  %v10835_v31 = vmax.f32 %v582_v41, 0.0  ;;  %v1385_v4 = vrot.slane %v10817_v45, 1  ;;  %v947_v16 = vand.u32 15, %v749_v40  ;;  %vm10854_vm12 = vmpackc.low %vm10820_vm3, %vm14147_vm7 }
 0x11e   : > { %v1183_v42 = vrot.slane %v10536_v35, 7  ;;  %680 = vst [vmem:[#allocation2 + $0xc8] sm:$0xff] %v10825_v37  ;;  %v1387_v19 = vrot.slane %v10811_v9, 1  ;;  %v1388_v51 = vrot.slane %v10825_v37, 1  ;;  %v14551_v10 = vmov 0  ;;  %vm10879_vm3 = vmpackc.low %vm10829_vm6, %vm14147_vm7 }
 0x11f   : > { %v10844_v21 = vsel %vm14146_vm2, %v1181_v59, %v1182_v24  ;;  %678 = vst [vmem:[#allocation2 + $0xb8] sm:$0xff] %v10835_v31  ;;  %v9258_v41 = vpop.f32.mrb[24].mxu0  ;;  %v1405_v40 = vsel %vm14149_vm1, %v1384_v25, %v1385_v4  ;;  %v14552_v10 = vsel %vm10854_vm12, 4294967295, %v14551_v10  ;;  %v1386_v54 = vrot.slane %v10835_v31, 1 }
 0x120   : > { %14550 = vst [vmem:[#allocation46_spill] sm:$0xff] %v10844_v21  ;;  %14553 = vst [vmem:[#allocation47_spill] sm:$0xff] %v14552_v10  ;;  %v10860_v59 = vadd.s32 232, %v10201_v28  ;;  %v10864_v17 = vsel %vm14146_vm2, %v1182_v24, %v1183_v42  ;;  %v603_v47 = vadd.f32 %v9258_v41, %v10285_v57  ;;  %v594_v35 = vpop.f32.mrb[25].mxu0  ;;  %v7900_v25 = vpack.c.bf16 %v1405_v40, %v1406_v62 }
 0x121   : > { %14554 = vst [vmem:[#allocation48_spill] sm:$0xff] %v10864_v17  ;;  %v1402_v48 = vsel %vm14149_vm1, %v1387_v19, %v1388_v51  ;;  %v595_v15 = vadd.f32 %v10285_v57, %v594_v35  ;;  %v9259_v27 = vpop.f32.mrb[26].mxu0  ;;  %v1403_v20 = vsel %vm14149_vm1, %v1386_v54, %v1387_v19  ;;  %v1404_v24 = vsel %vm14149_vm1, %v1385_v4, %v1386_v54 }
 0x122   : > { %v14555_v62 = vmov 0  ;;  %v10883_v41 = vmax.f32 %v603_v47, 0.0  ;;  %v606_v40 = vadd.f32 %v9259_v27, %v10285_v57  ;;  %v597_v14 = vpop.f32.mrb[27].mxu0  ;;  %9300 = vmatprep.mubr.msk.bf16.mxu0 %vm10854_vm12, %v7900_v25  ;;  %v7903_v35 = vpack.c.bf16 %v1403_v20, %v1404_v24 }
 0x123   : > { %v14556_v62 = vsel %vm10879_vm3, 4294967295, %v14555_v62  ;;  %vm10888_vm2 = vcmp.le.s32.totalorder %v933_v23, 14  ;;  %v10892_v54 = vmax.f32 %v595_v15, 0.0  ;;  %v598_v1 = vadd.f32 %v10285_v57, %v597_v14 }
 0x124   : > { %14557 = vst [vmem:[#allocation49_spill] sm:$0xff] %v14556_v62  ;;  %14558 = vst [vmem:[#allocation50_spill] sm:$0xff] %v10883_v41  ;;  %v753_v4 = vadd.s32 248, %v10201_v28  ;;  %v1184_v47 = vrot.slane %v10632_v13, 7  ;;  %v10898_v27 = vmax.f32 %v606_v40, 0.0  ;;  %vm10902_vm6 = vcmp.le.s32.totalorder %v947_v16, 14 }
 0x125   : > { %683 = vst [vmem:[#allocation2 + $0xe0] sm:$0xff] %v10883_v41  ;;  %9301 = vmatmul.mubr.msk.bf16.gmra.mrb[52].mxu0 %vm10879_vm3, %v7903_v35  ;;  %v961_v15 = vand.u32 15, %v10860_v59  ;;  %v1185_v23 = vrot.slane %v10649_v22, 7  ;;  %681 = vst [vmem:[#allocation2 + $0xd0] sm:$0xff] %v10892_v54  ;;  %v10909_v14 = vmax.f32 %v598_v1, 0.0  ;;  %v1389_v25 = vrot.slane %v10892_v54, 1 }
 0x126   : > { %14561 = vst [vmem:[#allocation51_spill] sm:$0xff] %v10898_v27  ;;  %vm14564_vm7 = vcmp.lt.s32.totalorder %v10201_v28, 1  ;;  %684 = vst [vmem:[#allocation2 + $0xe8] sm:$0xff] %v10898_v27  ;;  %v1391_v40 = vrot.slane %v10883_v41, 1  ;;  %v1392_v59 = vrot.slane %v10898_v27, 1  ;;  %v758_v35 = vand.u32 15, %v10201_v28 }
 0x127   : > { %v10914_v24 = vsel %vm14564_vm7, %v1183_v42, %v1184_v47  ;;  %vm14565_vm1 = vmmov %vm14564_vm7  ;;  %682 = vst [vmem:[#allocation2 + $0xd8] sm:$0xff] %v10909_v14  ;;  %v9262_v62 = vpop.f32.mrb[28].mxu0  ;;  %vm14566_vm7 = vcmp.lt.s32.totalorder %v10201_v28, 7  ;;  %vm14567_vm3 = vmmov 1   ;;  %v14568_v16 = vmov 0 }
 0x128   : > { %v10924_v1 = vsel %vm14565_vm1, %v1184_v47, %v1185_v23  ;;  %v1401_v42 = vsel %vm14566_vm7, %v1388_v51, %v1389_v25  ;;  %vm10932_vm12 = vmpackc.low %vm10888_vm2, %vm14567_vm3  ;;  %v1390_v10 = vrot.slane %v10909_v14, 1  ;;  %v975_v13 = vand.u32 15, %v753_v4  ;;  %v610_v21 = vpop.f32.mrb[29].mxu0 }
 0x129   : > { %v14569_v16 = vsel %vm10932_vm12, 4294967295, %v14568_v16  ;;  %v619_v22 = vadd.f32 %v9262_v62, %v10285_v57  ;;  %v7906_v17 = vpack.c.bf16 %v1401_v42, %v1402_v48  ;;  %vm14571_vm1 = vmmov %vm14566_vm7  ;;  %v1186_v29 = vrot.slane %v10621_v38, 7  ;;  %v9263_v27 = vpop.f32.mrb[30].mxu0 }
 0x12a   : > { %14570 = vst [vmem:[#allocation52_spill] sm:$0xff] %v14569_v16  ;;  %v1398_v51 = vsel %vm14571_vm1, %v1391_v40, %v1392_v59  ;;  %v611_v19 = vadd.f32 %v10285_v57, %v610_v21  ;;  %vm14572_vm2 = vmmov %vm14571_vm1  ;;  %v14574_v62 = vmov 0  ;;  %v1187_v48 = vrot.slane %v10638_v12, 7  ;;  %v613_v21 = vpop.f32.mrb[31].mxu0 }
 0x12b   : > { %v1399_v41 = vsel %vm14572_vm2, %v1390_v10, %v1391_v40  ;;  %vm14573_vm7 = vmmov %vm14571_vm1  ;;  %v655_v42 = vmax.f32 %v619_v22, 0.0  ;;  %v622_v47 = vadd.f32 %v9263_v27, %v10285_v57  ;;  %9304 = vmatprep.mubr.msk.bf16.mxu0 %vm10932_vm12, %v7906_v17  ;;  %vm14577_vm1 = vcmp.lt.s32.totalorder %v10201_v28, 1 }
 0x12c   : > { %v1400_v4 = vsel %vm14573_vm7, %v1389_v25, %v1390_v10  ;;  %vm10951_vm0 = vmpackc.low %vm10902_vm6, %vm14567_vm3  ;;  %v10961_v10 = vsel %vm14577_vm1, %v1185_v23, %v1186_v29  ;;  %v10963_v25 = vmax.f32 %v611_v19, 0.0  ;;  %v614_v20 = vadd.f32 %v10285_v57, %v613_v21  ;;  %v14642_v23 = vld [vmem:[#allocation11_spill] sm:$0xff] }
 0x12d   : > { %v14575_v62 = vsel %vm10951_vm0, 4294967295, %v14574_v62  ;;  %v7909_v40 = vpack.c.bf16 %v1399_v41, %v1400_v4  ;;  %vm10966_vm6 = vcmp.le.s32.totalorder %v961_v15, 14  ;;  %vm14581_vm2 = vmmov %vm14577_vm1  ;;  %687 = vst [vmem:[#allocation2 + $0x100] sm:$0xff] %v655_v42  ;;  %v10974_v27 = vmax.f32 %v622_v47, 0.0 }
 0x12e   : > { %14576 = vst [vmem:[#allocation53_spill] sm:$0xff] %v14575_v62  ;;  %14578 = vst [vmem:[#allocation54_spill] sm:$0xff] %v10963_v25  ;;  %v10972_v22 = vsel %vm14581_vm2, %v1186_v29, %v1187_v48  ;;  %v724_v17 = vadd.s32 16, %v10201_v28  ;;  %v10984_v15 = vmax.f32 %v614_v20, 0.0  ;;  %v1393_v29 = vrot.slane %v10963_v25, 1 }
 0x12f   : > { %14582 = vst [vmem:[#allocation55_spill] sm:$0xff] %v10974_v27  ;;  %9305 = vmatmul.mubr.msk.bf16.gmra.mrb[56].mxu0 %vm10951_vm0, %v7909_v40  ;;  %685 = vst [vmem:[#allocation2 + $0xf0] sm:$0xff] %v10963_v25  ;;  %vm1138_vm7 = vcmp.ge.s32.totalorder %v758_v35, 1  ;;  %vm10988_vm1 = vcmp.le.s32.totalorder %v975_v13, 14  ;;  %v14180_v47 = vrot.slane %v10974_v27, 7  ;;  %v1188_v19 = vrot.slane %v10731_v61, 7 }
 0x130   : > { %14583 = vst [vmem:[#allocation56_spill] sm:$0xff] %v10984_v15  ;;  %688 = vst [vmem:[#allocation2 + $0x108] sm:$0xff] %v10974_v27  ;;  %vm14586_vm2 = vcmp.lt.s32.totalorder %v10201_v28, 7  ;;  %v14587_v35 = vmov 0  ;;  %v14181_v13 = vrot.slane %v10984_v15, 7  ;;  %v1394_v42 = vrot.slane %v10984_v15, 1 }
 0x131   : > { %686 = vst [vmem:[#allocation2 + $0xf8] sm:$0xff] %v10984_v15  ;;  %v1397_v4 = vsel %vm14586_vm2, %v1392_v59, %v1393_v29  ;;  %vm11000_vm0 = vmpackc.low %vm10966_vm6, %vm14567_vm3  ;;  %v14590_v40 = vmov 0  ;;  %vm14593_vm2 = vcmp.lt.s32.totalorder %v10201_v28, 1  ;;  %v772_v59 = vand.u32 15, %v724_v17 }
 0x132   : > { %v14588_v35 = vsel %vm11000_vm0, 4294967295, %v14587_v35  ;;  %v7912_v21 = vpack.c.bf16 %v1397_v4, %v1398_v51  ;;  %vm11007_vm12 = vmpackc.low %vm14567_vm3, %vm1138_vm7  ;;  %v2181_v38 = vsel %vm14593_vm2, %v14180_v47, %v10318_v18  ;;  %v1189_v20 = vrot.slane %v10751_v5, 7  ;;  %v14628_v47 = vld [vmem:[#allocation33_spill] sm:$0xff] }
 0x133   : > { %14589 = vst [vmem:[#allocation57_spill] sm:$0xff] %v14588_v35  ;;  %v14591_v40 = vsel %vm11007_vm12, 4294967295, %v14590_v40  ;;  %v14594_v57 = vrot.slane %v10197_v26, 7  ;;  %vm14595_vm6 = vmmov %vm14593_vm2  ;;  %vm14596_vm7 = vcmp.lt.s32.totalorder %v10201_v28, 7  ;;  %v14597_v41 = vrot.slane %v10197_v26, 1 }
 0x134   : > { %14592 = vst [vmem:[#allocation58_spill] sm:$0xff] %v14591_v40  ;;  %v1396_v4 = vsel %vm14596_vm7, %v1393_v29, %v1394_v42  ;;  %vm14598_vm13 = vmmov %vm14596_vm7  ;;  %v14599_v18 = vmov 0  ;;  %v7918_v17 = vpack.c.bf16 %v10387_v44, %v2181_v38  ;;  %9308 = vmatprep.mubr.msk.bf16.mxu0 %vm11000_vm0, %v7912_v21  ;;  %v11042_v26 = vsel %vm14595_vm6, %v1188_v19, %v1189_v20  ;;  %v14639_v38 = vld [vmem:[#allocation26_spill] sm:$0xff]  ;;  %v9962_v40 = vld [vmem:[%s14089_s3 + $0x178] sm:$0xff]  }
 0x135   : > { %v1234_v51 = vsel %vm14595_vm6, %v14181_v13, %v14594_v57  ;;  %v1427_v27 = vsel %vm14598_vm13, %v1394_v42, %v14597_v41  ;;  %vm11032_vm2 = vmpackc.low %vm10988_vm1, %vm14567_vm3  ;;  %vm1140_vm1 = vcmp.ge.s32.totalorder %v772_v59, 1  ;;  %v1192_v59 = vrot.slane %v10817_v45, 7  ;;  %v14641_v42 = vld [vmem:[#allocation12_spill] sm:$0xff] }
 0x136   : > { %v14600_v18 = vsel %vm11032_vm2, 4294967295, %v14599_v18  ;;  %v7822_v57 = vpack.c.bf16 %v10277_v53, %v1234_v51  ;;  %v7915_v29 = vpack.c.bf16 %v1427_v27, %v1396_v4  ;;  %vm14602_vm13 = vmmov %vm14595_vm6  ;;  %v1190_v53 = vrot.slane %v10720_v46, 7  ;;  %v9956_v4 = vld [vmem:[%s14089_s3 + $0x148] sm:$0xff]  }
 0x137   : > { %14601 = vst [vmem:[#allocation59_spill] sm:$0xff] %v14600_v18  ;;  %v11046_v41 = vsel %vm14602_vm13, %v1187_v48, %v1188_v19  ;;  %v1191_v48 = vrot.slane %v10737_v33, 7  ;;  %v726_v27 = vadd.s32 32, %v10201_v28  ;;  %vm14603_vm7 = vmmov %vm14595_vm6  ;;  %v2248_v51 = vpack.c.bf16 %v10303_v11, %v10405_v55 }
 0x138   : > { %7823 = vmatmul.mubr.msk.bf16.vlgmr.msra.gmra.mrb[0].mxu1 %vm11007_vm12, %v7822_v57  ;;  %9309 = vmatmul.mubr.msk.bf16.gmra.mrb[60].mxu0 %vm11032_vm2, %v7915_v29  ;;  %vm11076_vm13 = vmpackc.low %vm14567_vm3, %vm1140_vm1  ;;  %v14607_v57 = vpack.c.bf16 %v10387_v44, %v10360_v30  ;;  %v14610_v29 = vpack.c.bf16 %v10303_v11, %v10290_v3  ;;  %v728_v44 = vadd.s32 48, %v10201_v28  ;;  %v9957_v3 = vld [vmem:[%s14089_s3 + $0x150] sm:$0xff]   ;;  %v1194_v11 = vrot.slane %v10811_v9, 7  ;;  %v14638_v30 = vld [vmem:[#allocation25_spill] sm:$0xff] }
 0x139   : > { %9560 = vmatpush3.bf16.msra.mxu1 %v10382_v43  ;;  %1772 = vmatprep.mubr.bf16.mxu1 %v10348_v34  ;;  %v11065_v19 = vsel %vm14603_vm7, %v1190_v53, %v1191_v48  ;;  %v11069_v43 = vsel %vm14595_vm6, %v1189_v20, %v1190_v53  ;;  %v1193_v20 = vrot.slane %v10835_v31, 7  ;;  %vm14608_vm1 = vmmov %vm14595_vm6  ;;  %v1195_v53 = vrot.slane %v10825_v37, 7 }
 0x13a   : > { %2680 = vmatprep.mubr.bf16.mxu0 %v10348_v34  ;;  %9553 = vmatprep.subr.bf16.mxu1 %v10398_v49  ;;  %v14604_v34 = vmov 0  ;;  %v786_v49 = vand.u32 15, %v726_v27  ;;  %vm14609_vm7 = vmmov %vm14608_vm1  ;;  %v14640_v21 = vpack.c.bf16 %v14638_v30, %v14639_v38  ;;  %v14643_v13 = vpack.c.bf16 %v14641_v42, %v14642_v23  ;;  %v9961_v42 = vld [vmem:[%s14089_s3 + $0x170] sm:$0xff]  }
 0x13b   : > { %v14605_v34 = vsel %vm11076_vm13, 4294967295, %v14604_v34  ;;  %v1200_v38 = vrot.slane %v10963_v25, 7  ;;  %v732_v30 = vadd.s32 80, %v10201_v28 }
 0x13c   : > { %14606 = vst [vmem:[#allocation60_spill] sm:$0xff] %v14605_v34  ;;  %vm1142_vm6 = vcmp.ge.s32.totalorder %v786_v49, 1  ;;  %v14636_v49 = vld [vmem:[#allocation19_spill] sm:$0xff]  ;;  %v14662_v34 = vld [vmem:[#allocation41_spill] sm:$0xff] }
 0x13d   : > { %9561 = vmatpush3.bf16.msra.mxu1 %v10435_v2  ;;  %v11098_v2 = vsel %vm14608_vm1, %v1192_v59, %v1193_v20  ;;  %vm11123_vm1 = vmpackc.low %vm14567_vm3, %vm1142_vm6 }
 0x13e   : > { %9554 = vmatprep.subr.bf16.mxu1 %v10445_v6  ;;  %v11102_v6 = vsel %vm14609_vm7, %v1191_v48, %v1192_v59  ;;  %v2249_v59 = vpack.c.bf16 %v10427_v63, %v10545_v39  ;;  %vm14621_vm6 = vmmov %vm14609_vm7  ;;  %v14632_v48 = vld [vmem:[#allocation35_spill] sm:$0xff] }
 0x140   : > { %7826 = vmatmul.mubr.msk.bf16.gmra.mrb[4].mxu1 %vm11076_vm13, %v14607_v57  ;;  %7919 = vmatmul.mubr.msk.bf16.vlgmr.msra.gmra.mrb[64].mxu0 %vm11007_vm12, %v7918_v17  ;;  %vm14614_vm12 = vmmov %vm14609_vm7  ;;  %v1197_v57 = vrot.slane %v10909_v14, 7 }
 0x141   : > { %1780 = vmatprep.mubr.bf16.mxu1 %v14610_v29  ;;  %2688 = vmatprep.mubr.bf16.mxu0 %v2248_v51  ;;  %v11133_v27 = vsel %vm14614_vm12, %v1193_v20, %v1194_v11  ;;  %v9958_v51 = vld [vmem:[%s14089_s3 + $0x158] sm:$0xff]   ;;  %v14615_v20 = vpack.c.bf16 %v10410_v56, %v10414_v58  ;;  %v14617_v29 = vpack.c.bf16 %v10427_v63, %v10402_v52  ;;  %v730_v56 = vadd.s32 64, %v10201_v28  ;;  %v14618_v58 = vld [vmem:[#allocation50_spill] sm:$0xff]  ;;  %v9959_v63 = vld [vmem:[%s14089_s3 + $0x160] sm:$0xff]  }
 0x142   : > { %9313 = vmatpush3.bf16.msra.mxu0 %v10771_v50  ;;  %9562 = vmatpush3.bf16.msra.mxu1 %v10504_v32  ;;  %v14611_v32 = vmov 0  ;;  %v11129_v50 = vsel %vm14609_vm7, %v1194_v11, %v1195_v53  ;;  %vm14622_vm7 = vmmov %vm14621_vm6  ;;  %v11171_v52 = vld [vmem:[#allocation2 + $0x48] sm:$0xff] }
 0x143   : > { %9314 = vmatprep.subr.bf16.mxu0 %v9956_v4  ;;  %9555 = vmatprep.subr.bf16.mxu1 %v10518_v0  ;;  %v14612_v32 = vsel %vm11123_vm1, 4294967295, %v14611_v32  ;;  %v800_v0 = vand.u32 15, %v728_v44 }
 0x144   : > { %14613 = vst [vmem:[#allocation61_spill] sm:$0xff] %v14612_v32  ;;  %v11288_v32 = vld [vmem:[#allocation2 + $0x50] sm:$0xff] }
 0x145   : > { %vm1144_vm12 = vcmp.ge.s32.totalorder %v800_v0, 1  ;;  %v2092_v0 = vld [vmem:[#allocation2 + $0x40] sm:$0xff] }
 0x146   : > { %9315 = vmatpush3.bf16.msra.mxu0 %v9956_v4  ;;  %9563 = vmatpush3.bf16.msra.mxu1 %v10557_v60  ;;  %v14616_v60 = vpack.c.bf16 %v10451_v7, %v10456_v8  ;;  %v1196_v4 = vrot.slane %v10892_v54, 7  ;;  %v14620_v7 = vld [vmem:[#allocation28_spill] sm:$0xff] }
 0x147   : > { %9316 = vmatprep.subr.bf16.mxu0 %v9957_v3  ;;  %9556 = vmatprep.subr.bf16.mxu1 %v10572_v36  ;;  %v14619_v36 = vld [vmem:[#allocation51_spill] sm:$0xff] }
 0x148   : > { %7829 = vmatmul.mubr.msk.bf16.gmra.mrb[8].mxu1 %vm11123_vm1, %v14615_v20  ;;  %7922 = vmatmul.mubr.msk.bf16.gmra.mrb[68].mxu0 %vm11076_vm13, %v14616_v60  ;;  %v11165_v8 = vsel %vm14621_vm6, %v1196_v4, %v1197_v57  ;;  %v11169_v11 = vsel %vm14622_vm7, %v1195_v53, %v1196_v4  ;;  %v1198_v20 = vrot.slane %v14618_v58, 7  ;;  %vm11181_vm6 = vmpackc.low %vm14567_vm3, %vm1144_vm12  ;;  %v14624_v60 = vmov 0 }
 0x149   : > { %1788 = vmatprep.mubr.bf16.mxu1 %v14617_v29  ;;  %2696 = vmatprep.mubr.bf16.mxu0 %v2249_v59  ;;  %v14623_v59 = vld [vmem:[#allocation30_spill] sm:$0xff]  ;;  %v14625_v60 = vsel %vm11181_vm6, 4294967295, %v14624_v60  ;;  %v814_v53 = vand.u32 15, %v730_v56  ;;  %v1199_v4 = vrot.slane %v14619_v36, 7  ;;  %v11199_v56 = vpack.c.bf16 %v11171_v52, %v2092_v0  ;;  %vm14633_vm12 = vmmov %vm14622_vm7 }
 0x14a   : > { %9317 = vmatpush3.bf16.msra.mxu0 %v9957_v3  ;;  %9564 = vmatpush3.bf16.msra.mxu1 %v14620_v7  ;;  %14626 = vst [vmem:[#allocation50_spill] sm:$0xff] %v14625_v60  ;;  %v11188_v7 = vld [vmem:[#allocation2 + $0x38] sm:$0xff]  ;;  %v11194_v44 = vsel %vm14622_vm7, %v1197_v57, %v1198_v20  ;;  %v11196_v3 = vrot.slane %v2092_v0, 7  ;;  %v9960_v29 = vld [vmem:[%s14089_s3 + $0x168] sm:$0xff]   ;;  %v14635_v57 = vld [vmem:[#allocation21_spill] sm:$0xff] }
 0x14b   : > { %9318 = vmatprep.subr.bf16.mxu0 %v9958_v51  ;;  %9557 = vmatprep.subr.bf16.mxu1 %v14623_v59  ;;  %14627 = vst [vmem:[#allocation51_spill] sm:$0xff] %v11188_v7  ;;  %v2125_v59 = vrot.slane %v11171_v52, 7  ;;  %14629 = vst [vmem:[#allocation28_spill] sm:$0xff] %v11194_v44  ;;  %v14637_v17 = vpack.c.bf16 %v14635_v57, %v14636_v49  ;;  %vm11231_vm7 = vcmp.ge.s32.totalorder %v814_v53, 1  ;;  %v14647_v49 = vld [vmem:[#allocation39_spill] sm:$0xff]  ;;  %v9968_v44 = vld [vmem:[%s14089_s3 + $0x228] sm:$0xff]  }
 0x14c   : > { %14630 = vst [vmem:[#allocation30_spill] sm:$0xff] %v11196_v3  ;;  %14631 = vst [vmem:[#allocation33_spill] sm:$0xff] %v11199_v56 }
 0x14e   : > { %9319 = vmatpush3.bf16.msra.mxu0 %v9958_v51  ;;  %9565 = vmatpush3.bf16.msra.mxu1 %v14628_v47  ;;  %v11207_v51 = vsel %vm14633_vm12, %v1198_v20, %v1199_v4  ;;  %v11210_v47 = vrot.slane %v10545_v39, 1  ;;  %v3261_v39 = vrot.slane %v11188_v7, 1  ;;  %v11272_v20 = vld [vmem:[#allocation2 + $0x58] sm:$0xff]  ;;  %v14676_v7 = vld [vmem:[#allocation43_spill] sm:$0xff] }
 0x14f   : > { %9320 = vmatprep.subr.bf16.mxu0 %v9959_v63  ;;  %9558 = vmatprep.subr.bf16.mxu1 %v14632_v48  ;;  %14634 = vst [vmem:[#allocation35_spill] sm:$0xff] %v11207_v51  ;;  %v11222_v48 = vrot.slane %v2092_v0, 1  ;;  %v14652_v0 = vld [vmem:[#allocation40_spill] sm:$0xff] }
 0x150   : > { %7832 = vmatmul.mubr.msk.bf16.gmra.mrb[12].mxu1 %vm11181_vm6, %v14637_v17  ;;  %7925 = vmatmul.mubr.msk.bf16.gmra.mrb[72].mxu0 %vm11123_vm1, %v14640_v21  ;;  %v11239_v21 = vsel %vm14633_vm12, %v11196_v3, %v2125_v59  ;;  %vm14648_vm1 = vcmp.lt.s32.totalorder %v10201_v28, 7  ;;  %v2127_v17 = vrot.slane %v11272_v20, 7 }
 0x151   : > { %1796 = vmatprep.mubr.bf16.mxu1 %v14643_v13  ;;  %2704 = vmatprep.mubr.bf16.mxu0 %v11199_v56  ;;  %14646 = vst [vmem:[#allocation21_spill] sm:$0xff] %v11239_v21  ;;  %v11246_v13 = vsel %vm14648_vm1, %v11210_v47, %v3261_v39  ;;  %vm14650_vm13 = vmmov %vm14648_vm1  ;;  %v828_v56 = vand.u32 15, %v732_v30 }
 0x152   : > { %9321 = vmatpush3.bf16.msra.mxu0 %v9959_v63  ;;  %9566 = vmatpush3.bf16.msra.mxu1 %v14647_v49  ;;  %14649 = vst [vmem:[#allocation19_spill] sm:$0xff] %v11246_v13  ;;  %v11251_v23 = vsel %vm14650_vm13, %v3261_v39, %v11222_v48  ;;  %v14653_v63 = vrot.slane %v10984_v15, 7  ;;  %vm14655_vm1 = vmmov %vm14633_vm12  ;;  %v9971_v49 = vld [vmem:[%s14089_s3 + $0x1c0] sm:$0xff]   ;;  %v14677_v13 = vld [vmem:[#allocation42_spill] sm:$0xff] }
 0x153   : > { %14651 = vst [vmem:[#allocation25_spill] sm:$0xff] %v11251_v23  ;;  %9322 = vmatprep.subr.bf16.mxu0 %v9960_v29  ;;  %9559 = vmatprep.subr.bf16.mxu1 %v14652_v0  ;;  %v11265_v57 = vsel %vm14655_vm1, %v1199_v4, %v1200_v38  ;;  %vm11279_vm13 = vmpackc.low %vm14567_vm3, %vm11231_vm7  ;;  %v14660_v4 = vld [vmem:[#allocation17_spill] sm:$0xff]  ;;  %v11294_v0 = vpack.c.bf16 %v11272_v20, %v11288_v32  ;;  %vm1148_vm7 = vcmp.ge.s32.totalorder %v828_v56, 1  ;;  %v11382_v23 = vld [vmem:[#allocation2 + $0x78] sm:$0xff] }
 0x154   : > { %v11261_v53 = vsel %vm14633_vm12, %v1200_v38, %v14653_v63  ;;  %14656 = vst [vmem:[#allocation12_spill] sm:$0xff] %v11265_v57  ;;  %v14657_v63 = vmov 0  ;;  %vm14661_vm12 = vmmov %vm14655_vm1  ;;  %v14692_v57 = vld [vmem:[#allocation48_spill] sm:$0xff] }
 0x155   : > { %14654 = vst [vmem:[#allocation26_spill] sm:$0xff] %v11261_v53  ;;  %v14658_v63 = vsel %vm11279_vm13, 4294967295, %v14657_v63  ;;  %v2175_v38 = vsel %vm14661_vm12, %v14660_v4, %v11196_v3  ;;  %14663 = vst [vmem:[#allocation39_spill] sm:$0xff] %v11294_v0  ;;  %v14664_v4 = vld [vmem:[#allocation36_spill] sm:$0xff]  ;;  %v2126_v3 = vrot.slane %v11288_v32, 7  ;;  %v14693_v53 = vld [vmem:[#allocation46_spill] sm:$0xff] }
 0x156   : > { %14659 = vst [vmem:[#allocation11_spill] sm:$0xff] %v14658_v63  ;;  %v7927_v39 = vpack.c.bf16 %v11239_v21, %v2175_v38  ;;  %9323 = vmatpush3.bf16.msra.mxu0 %v9960_v29  ;;  %9567 = vmatpush3.bf16.msra.mxu1 %v14662_v34  ;;  %v14665_v38 = vld [vmem:[#allocation34_spill] sm:$0xff]  ;;  %v14667_v34 = vld [vmem:[#allocation23_spill] sm:$0xff]  ;;  %v14668_v29 = vld [vmem:[#allocation20_spill] sm:$0xff]  ;;  %v14694_v25 = vpack.c.bf16 %v14692_v57, %v14693_v53 }
 0x157   : > { %9324 = vmatprep.subr.bf16.mxu0 %v9961_v42  ;;  %8686 = vmatprep.subr.bf16.mxu1 %v9971_v49  ;;  %v14666_v21 = vpack.c.bf16 %v14664_v4, %v14665_v38  ;;  %v14669_v30 = vpack.c.bf16 %v14667_v34, %v14668_v29  ;;  %v734_v49 = vadd.s32 96, %v10201_v28  ;;  %v2172_v4 = vsel %vm14655_vm1, %v2126_v3, %v2127_v17  ;;  %vm11322_vm12 = vmpackc.low %vm14567_vm3, %vm1148_vm7  ;;  %v11330_v34 = vld [vmem:[#allocation2 + $0x60] sm:$0xff] }
 0x158   : > { %7928 = vmatmul.mubr.msk.bf16.gmra.mrb[76].mxu0 %vm11181_vm6, %v7927_v39  ;;  %v11319_v39 = vld [vmem:[#allocation2 + $0x68] sm:$0xff]  ;;  %v14670_v38 = vmov 0  ;;  %vm14673_vm6 = vmmov %vm14655_vm1 }
 0x159   : > { %7835 = vmatmul.mubr.msk.bf16.gmra.mrb[16].mxu1 %vm11279_vm13, %v14666_v21  ;;  %2712 = vmatprep.mubr.bf16.mxu0 %v11294_v0  ;;  %v11317_v21 = vld [vmem:[%s14089_s3 + $0x200] sm:$0xff]   ;;  %v14671_v38 = vsel %vm11322_vm12, 4294967295, %v14670_v38  ;;  %v2173_v56 = vsel %vm14673_vm6, %v2125_v59, %v2126_v3  ;;  %v842_v29 = vand.u32 15, %v734_v49  ;;  %v11335_v60 = vpack.c.bf16 %v11319_v39, %v11330_v34  ;;  %v14680_v59 = vld [vmem:[#allocation18_spill] sm:$0xff]  ;;  %vm14682_vm7 = vmmov %vm14655_vm1 }
 0x15a   : > { %1804 = vmatprep.mubr.bf16.mxu1 %v14669_v30  ;;  %9325 = vmatpush3.bf16.msra.mxu0 %v9961_v42  ;;  %14672 = vst [vmem:[#allocation40_spill] sm:$0xff] %v14671_v38  ;;  %v11328_v42 = vpack.c.bf16 %v2172_v4, %v2173_v56  ;;  %v14207_v30 = vrot.slane %v11319_v39, 7  ;;  %v11339_v0 = vrot.slane %v10405_v55, 1  ;;  %v14678_v3 = vpack.c.bf16 %v14676_v7, %v14677_v13  ;;  %v11361_v56 = vld [vmem:[#allocation2 + $0x88] sm:$0xff] }
 0x15b   : > { %9326 = vmatprep.subr.bf16.mxu0 %v9962_v40  ;;  %14675 = vst [vmem:[#allocation41_spill] sm:$0xff] %v11335_v60  ;;  %v2128_v4 = vrot.slane %v11330_v34, 7  ;;  %vm1150_vm6 = vcmp.ge.s32.totalorder %v842_v29, 1  ;;  %v736_v55 = vadd.s32 112, %v10201_v28  ;;  %v14686_v29 = vmov 0 }
 0x15c   : > { %14674 = vst [vmem:[#allocation17_spill] sm:$0xff] %v11328_v42  ;;  %vm11370_vm2 = vmpackc.low %vm14567_vm3, %vm1150_vm6  ;;  %v14701_v57 = vrot.slane %v11361_v56, 7 }
 0x15d   : > { %v2170_v7 = vsel %vm14682_vm7, %v2128_v4, %v14207_v30  ;;  %v2171_v13 = vsel %vm14655_vm1, %v2127_v17, %v2128_v4  ;;  %v14687_v29 = vsel %vm11370_vm2, 4294967295, %v14686_v29  ;;  %v856_v63 = vand.u32 15, %v736_v55  ;;  %v11378_v17 = vld [vmem:[#allocation2 + $0x100] sm:$0xff]  ;;  %vm14702_vm6 = vmmov %vm14655_vm1 }
 0x15e   : > { %9327 = vmatpush3.bf16.msra.mxu0 %v9962_v40  ;;  %v14679_v40 = vld [vmem:[#allocation22_spill] sm:$0xff]  ;;  %14688 = vst [vmem:[#allocation34_spill] sm:$0xff] %v14687_v29  ;;  %v11376_v30 = vpack.c.bf16 %v2170_v7, %v2171_v13  ;;  %14690 = vst [vmem:[#allocation20_spill] sm:$0xff] %v11378_v17  ;;  %v14696_v13 = vld [vmem:[#allocation32_spill] sm:$0xff]  ;;  %v11402_v53 = vrot.slane %v11378_v17, 7  ;;  %vm14704_vm7 = vcmp.lt.s32.totalorder %v10201_v28, 7 }
 0x15f   : > { %9360 = vmatprep.subr.bf16.mxu0 %v11317_v21  ;;  %v14681_v49 = vpack.c.bf16 %v14679_v40, %v14680_v59  ;;  %v11367_v59 = vld [vmem:[#allocation2 + $0xf8] sm:$0xff]  ;;  %v11394_v7 = vld [vmem:[#allocation2 + $0x108] sm:$0xff]  ;;  %v14710_v29 = vrot.slane %v11382_v23, 7 }
 0x160   : > { %7931 = vmatmul.mubr.msk.bf16.gmra.mrb[80].mxu0 %vm11279_vm13, %v11328_v42  ;;  %vm14684_vm13 = vcmp.lt.s32.totalorder %v10201_v28, 7  ;;  %14685 = vst [vmem:[#allocation36_spill] sm:$0xff] %v11367_v59  ;;  %14689 = vst [vmem:[#allocation23_spill] sm:$0xff] %v11376_v30  ;;  %v14716_v18 = vrot.slane %v11394_v7, 7 }
 0x161   : > { %7838 = vmatmul.mubr.msk.bf16.gmra.mrb[20].mxu1 %vm11322_vm12, %v14678_v3  ;;  %2720 = vmatprep.mubr.bf16.mxu0 %v11335_v60  ;;  %v14683_v3 = vld [vmem:[#allocation7_spill] sm:$0xff]  ;;  %v14691_v60 = vld [vmem:[#allocation9_spill] sm:$0xff]  ;;  %14695 = vst [vmem:[#allocation43_spill] sm:$0xff] %v11394_v7  ;;  %14700 = vst [vmem:[#allocation42_spill] sm:$0xff] %v11402_v53  ;;  %v14719_v7 = vpack.c.bf16 %v10924_v1, %v10914_v24  ;;  %v740_v24 = vadd.s32 144, %v10201_v28 }
 0x162   : > { %1812 = vmatprep.mubr.bf16.mxu1 %v14681_v49  ;;  %v2340_v40 = vsel %vm14684_vm13, %v14683_v3, %v11339_v0  ;;  %v11374_v49 = vld [vmem:[#allocation2 + $0x80] sm:$0xff]  ;;  %vm1152_vm13 = vcmp.ge.s32.totalorder %v856_v63, 1 }
 0x163   : > { %v7966_v42 = vpack.c.bf16 %v2340_v40, %v14691_v60  ;;  %v2132_v55 = vrot.slane %v11374_v49, 7  ;;  %v14697_v60 = vld [vmem:[#allocation31_spill] sm:$0xff] }
 0x164   : > { %v14698_v40 = vpack.c.bf16 %v14696_v13, %v14697_v60  ;;  %v14713_v60 = vmov 0 }
 0x165   : > { %v2166_v3 = vsel %vm14702_vm6, %v2132_v55, %v14701_v57  ;;  %vm14708_vm6 = vmmov %vm14704_vm7 }
 0x168   : > { %7934 = vmatmul.mubr.msk.bf16.gmra.mrb[84].mxu0 %vm11322_vm12, %v11376_v30  ;;  %v14703_v30 = vld [vmem:[#allocation6_spill] sm:$0xff]  ;;  %vm14709_vm12 = vmmov %vm14708_vm6 }
 0x169   : > { %7841 = vmatmul.mubr.msk.bf16.gmra.mrb[24].mxu1 %vm11370_vm2, %v14694_v25  ;;  %9328 = vmatprep.mubr.msk.bf16.mxu0 %vm10344_vm8, %v7966_v42  ;;  %v738_v25 = vadd.s32 128, %v10201_v28  ;;  %v2338_v13 = vsel %vm14704_vm7, %v14703_v30, %v11210_v47  ;;  %v14705_v42 = vrot.slane %v11367_v59, 7  ;;  %vm14711_vm7 = vmmov %vm14655_vm1 }
 0x16a   : > { %1820 = vmatprep.mubr.bf16.mxu1 %v14698_v40  ;;  %v14707_v40 = vld [vmem:[#allocation15_spill] sm:$0xff]  ;;  %v3149_v4 = vsel %vm14711_vm7, %v14710_v29, %v2132_v55  ;;  %vm11439_vm2 = vmpackc.low %vm14567_vm3, %vm1152_vm13 }
 0x16b   : > { %v11419_v63 = vsel %vm14655_vm1, %v14705_v42, %v11402_v53  ;;  %v2336_v57 = vsel %vm14708_vm6, %v14707_v40, %v11222_v48  ;;  %v2337_v38 = vsel %vm14709_vm12, %v11210_v47, %v14707_v40  ;;  %vm14712_vm1 = vmmov %vm14708_vm6  ;;  %v14714_v60 = vsel %vm11439_vm2, 4294967295, %v14713_v60 }
 0x16c   : > { %14706 = vst [vmem:[#allocation22_spill] sm:$0xff] %v11419_v63  ;;  %v2339_v42 = vsel %vm14712_vm1, %v11339_v0, %v14703_v30  ;;  %14715 = vst [vmem:[#allocation18_spill] sm:$0xff] %v14714_v60  ;;  %v11443_v15 = vpack.c.bf16 %v2166_v3, %v3149_v4  ;;  %v870_v55 = vand.u32 15, %v738_v25  ;;  %v2287_v30 = vrot.slane %v11288_v32, 1  ;;  %v9964_v4 = vld [vmem:[%s14089_s3 + $0x208] sm:$0xff]   ;;  %v14721_v32 = vld [vmem:[#allocation29_spill] sm:$0xff] }
 0x16d   : > { %vm14717_vm12 = vmmov %vm14711_vm7  ;;  %v7969_v29 = vpack.c.bf16 %v2338_v13, %v2339_v42  ;;  %v7972_v51 = vpack.c.bf16 %v2336_v57, %v2337_v38  ;;  %v2288_v3 = vrot.slane %v11272_v20, 1  ;;  %v2286_v25 = vrot.slane %v11171_v52, 1  ;;  %v14723_v13 = vld [vmem:[#allocation14_spill] sm:$0xff]  ;;  %v9965_v52 = vld [vmem:[%s14089_s3 + $0x210] sm:$0xff]  }
 0x16e   : > { %v11450_v40 = vsel %vm14717_vm12, %v11402_v53, %v14716_v18  ;;  %v14720_v18 = vld [vmem:[#allocation10_spill] sm:$0xff]  ;;  %v14722_v38 = vpack.c.bf16 %v10638_v12, %v14721_v32  ;;  %v2289_v20 = vrot.slane %v11330_v34, 1  ;;  %vm1154_vm13 = vcmp.ge.s32.totalorder %v870_v55, 1  ;;  %vm14724_vm6 = vmmov %vm14712_vm1  ;;  %v11480_v12 = vld [vmem:[#allocation2 + $0x70] sm:$0xff] }
 0x16f   : > { %14718 = vst [vmem:[#allocation7_spill] sm:$0xff] %v11450_v40  ;;  %v2334_v1 = vsel %vm14724_vm6, %v2286_v25, %v2287_v30  ;;  %vm14725_vm7 = vmmov %vm14712_vm1  ;;  %v2333_v34 = vsel %vm14712_vm1, %v2287_v30, %v2288_v3  ;;  %v884_v42 = vand.u32 15, %v740_v24  ;;  %v2291_v55 = vrot.slane %v11480_v12, 1  ;;  %v9966_v30 = vld [vmem:[%s14089_s3 + $0x218] sm:$0xff]   ;;  %v11590_v53 = vld [vmem:[#allocation2 + $0xa8] sm:$0xff] }
 0x170   : > { %9329 = vmatmul.mubr.msk.bf16.vlgmr.msra.gmra.mrb[32].mxu0 %vm10375_vm9, %v7969_v29  ;;  %vm11487_vm12 = vmpackc.low %vm14567_vm3, %vm1154_vm13  ;;  %v14732_v32 = vpack.c.bf16 %v10751_v5, %v10731_v61 }
 0x171   : > { %7844 = vmatmul.mubr.msk.bf16.gmra.mrb[28].mxu1 %vm11439_vm2, %v14719_v7  ;;  %9332 = vmatprep.mubr.msk.bf16.mxu0 %vm10466_vm10, %v7972_v51  ;;  %v2332_v51 = vsel %vm14725_vm7, %v2288_v3, %v2289_v20  ;;  %v14726_v7 = vmov 0  ;;  %vm14729_vm6 = vmmov %vm14712_vm1  ;;  %v14730_v3 = vpack.c.bf16 %v10972_v22, %v10961_v10  ;;  %vm1156_vm13 = vcmp.ge.s32.totalorder %v884_v42, 1 }
 0x172   : > { %1828 = vmatprep.mubr.bf16.mxu1 %v14722_v38  ;;  %9361 = vmatpush3.bf16.msra.mxu0 %v11317_v21  ;;  %v14727_v7 = vsel %vm11487_vm12, 4294967295, %v14726_v7  ;;  %v2335_v21 = vsel %vm14729_vm6, %v11222_v48, %v2286_v25  ;;  %v11496_v29 = vpack.c.bf16 %v2332_v51, %v2333_v34  ;;  %v14731_v48 = vld [vmem:[#allocation16_spill] sm:$0xff]  ;;  %v2290_v25 = vrot.slane %v11319_v39, 1  ;;  %vm14734_vm7 = vmmov %vm14712_vm1  ;;  %v11529_v51 = vld [vmem:[#allocation2 + $0x90] sm:$0xff] }
 0x173   : > { %9362 = vmatprep.subr.bf16.mxu0 %v9964_v4  ;;  %14728 = vst [vmem:[#allocation9_spill] sm:$0xff] %v14727_v7  ;;  %v11494_v57 = vpack.c.bf16 %v2334_v1, %v2335_v21  ;;  %v14733_v38 = vld [vmem:[#allocation24_spill] sm:$0xff]  ;;  %v2293_v10 = vrot.slane %v11374_v49, 1  ;;  %v742_v22 = vadd.s32 160, %v10201_v28  ;;  %v9967_v1 = vld [vmem:[%s14089_s3 + $0x220] sm:$0xff]   ;;  %vm14735_vm6 = vmmov %vm14712_vm1  ;;  %v14736_v34 = vmov 0 }
 0x174   : > { %v2330_v24 = vsel %vm14734_vm7, %v2290_v25, %v2291_v55  ;;  %vm14739_vm7 = vmmov %vm14712_vm1  ;;  %v11538_v21 = vld [vmem:[#allocation2 + $0x98] sm:$0xff] }
 0x175   : > { %v9970_v7 = vld [vmem:[%s14089_s3 + $0x238] sm:$0xff]  }
 0x176   : > { %9363 = vmatpush3.bf16.msra.mxu0 %v9964_v4  ;;  %v2292_v4 = vrot.slane %v11382_v23, 1 }
 0x177   : > { %9364 = vmatprep.subr.bf16.mxu0 %v9965_v52 }
 0x178   : > { %9333 = vmatmul.mubr.msk.bf16.gmra.mrb[36].mxu0 %vm10496_vm11, %v11494_v57  ;;  %v2328_v61 = vsel %vm14712_vm1, %v2292_v4, %v2293_v10  ;;  %v2329_v5 = vsel %vm14735_vm6, %v2291_v55, %v2292_v4  ;;  %v2295_v55 = vrot.slane %v11529_v51, 1  ;;  %v11545_v4 = vld [vmem:[#allocation2 + $0xa0] sm:$0xff]  ;;  %vm14744_vm6 = vmmov %vm14712_vm1 }
 0x179   : > { %7847 = vmatmul.mubr.msk.bf16.gmra.mrb[32].mxu1 %vm11487_vm12, %v14730_v3  ;;  %9336 = vmatprep.mubr.msk.bf16.mxu0 %vm10580_vm14, %v11496_v29  ;;  %vm11532_vm12 = vmpackc.low %vm14567_vm3, %vm1156_vm13  ;;  %v898_v3 = vand.u32 15, %v742_v22  ;;  %v14742_v22 = vpack.c.bf16 %v10737_v33, %v10720_v46  ;;  %v9969_v33 = vld [vmem:[%s14089_s3 + $0x230] sm:$0xff]  }
 0x17a   : > { %1836 = vmatprep.mubr.bf16.mxu1 %v14732_v32  ;;  %9365 = vmatpush3.bf16.msra.mxu0 %v9965_v52  ;;  %v14737_v34 = vsel %vm11532_vm12, 4294967295, %v14736_v34  ;;  %v2331_v52 = vsel %vm14739_vm7, %v2289_v20, %v2290_v25  ;;  %v11542_v32 = vpack.c.bf16 %v2328_v61, %v2329_v5  ;;  %v14740_v20 = vpack.c.bf16 %v11042_v26, %v11046_v41  ;;  %vm14745_vm7 = vmmov %vm14712_vm1 }
 0x17b   : > { %9366 = vmatprep.subr.bf16.mxu0 %v9966_v30  ;;  %14738 = vst [vmem:[#allocation48_spill] sm:$0xff] %v14737_v34  ;;  %v11540_v42 = vpack.c.bf16 %v2330_v24, %v2331_v52  ;;  %v2294_v61 = vrot.slane %v11361_v56, 1  ;;  %vm1158_vm13 = vcmp.ge.s32.totalorder %v898_v3, 1  ;;  %v2297_v26 = vrot.slane %v11545_v4, 1  ;;  %v11577_v3 = vld [vmem:[#allocation2 + $0xb0] sm:$0xff] }
 0x17c   : > { %v744_v41 = vadd.s32 176, %v10201_v28  ;;  %14746 = vst [vmem:[#allocation46_spill] sm:$0xff] %v11577_v3 }
 0x17d   : > { %v2326_v5 = vsel %vm14712_vm1, %v2294_v61, %v2295_v55 }
 0x17e   : > { %9367 = vmatpush3.bf16.msra.mxu0 %v9966_v30  ;;  %v2296_v30 = vrot.slane %v11538_v21, 1  ;;  %v912_v63 = vand.u32 15, %v744_v41  ;;  %v14754_v41 = vpack.c.bf16 %v10835_v31, %v10817_v45 }
 0x17f   : > { %9368 = vmatprep.subr.bf16.mxu0 %v9967_v1 }
 0x180   : > { %9337 = vmatmul.mubr.msk.bf16.gmra.mrb[40].mxu0 %vm10609_vm15, %v11540_v42  ;;  %v2324_v46 = vsel %vm14744_vm6, %v2296_v30, %v2297_v26  ;;  %v2325_v52 = vsel %vm14745_vm7, %v2295_v55, %v2296_v30  ;;  %v2299_v55 = vrot.slane %v11577_v3, 1  ;;  %v11595_v30 = vld [vmem:[#allocation2 + $0xc0] sm:$0xff]  ;;  %vm1160_vm6 = vcmp.ge.s32.totalorder %v912_v63, 1  ;;  %vm14757_vm7 = vmmov %vm14712_vm1 }
 0x181   : > { %7850 = vmatmul.mubr.msk.bf16.gmra.mrb[36].mxu1 %vm11532_vm12, %v14740_v20  ;;  %9340 = vmatprep.mubr.msk.bf16.mxu0 %vm10688_vm4, %v11542_v32  ;;  %vm11580_vm12 = vmpackc.low %vm14567_vm3, %vm1158_vm13  ;;  %v14747_v20 = vmov 0  ;;  %v11592_v34 = vpack.c.bf16 %v2324_v46, %v2325_v52  ;;  %14751 = vst [vmem:[#allocation6_spill] sm:$0xff] %v11595_v30  ;;  %v2298_v46 = vrot.slane %v11590_v53, 1  ;;  %v14759_v63 = vmov 0 }
 0x182   : > { %1844 = vmatprep.mubr.bf16.mxu1 %v14742_v22  ;;  %9369 = vmatpush3.bf16.msra.mxu0 %v9967_v1  ;;  %v14748_v20 = vsel %vm11580_vm12, 4294967295, %v14747_v20  ;;  %v2327_v1 = vsel %vm14712_vm1, %v2293_v10, %v2294_v61  ;;  %v11586_v22 = vld [vmem:[#allocation2 + $0xb8] sm:$0xff]  ;;  %v14752_v10 = vpack.c.bf16 %v11065_v19, %v11069_v43  ;;  %v14753_v61 = vld [vmem:[#allocation38_spill] sm:$0xff]  ;;  %v2301_v19 = vrot.slane %v11595_v30, 1 }
 0x183   : > { %9370 = vmatprep.subr.bf16.mxu0 %v9968_v44  ;;  %14749 = vst [vmem:[#allocation32_spill] sm:$0xff] %v14748_v20  ;;  %14750 = vst [vmem:[#allocation31_spill] sm:$0xff] %v11586_v22  ;;  %v11588_v40 = vpack.c.bf16 %v2326_v5, %v2327_v1  ;;  %v14755_v5 = vld [vmem:[#allocation44_spill] sm:$0xff]  ;;  %v746_v43 = vadd.s32 192, %v10201_v28  ;;  %v2322_v52 = vsel %vm14757_vm7, %v2298_v46, %v2299_v55  ;;  %v11624_v1 = vld [vmem:[#allocation2 + $0xd0] sm:$0xff] }
 0x184   : > { %vm14756_vm13 = vnez %v14755_v5  ;;  %v11637_v30 = vld [vmem:[#allocation2 + $0xc8] sm:$0xff]  ;;  %v14765_v3 = vpack.c.bf16 %v11098_v2, %v11102_v6  ;;  %v748_v6 = vadd.s32 208, %v10201_v28  ;;  %vm14771_vm7 = vmmov %vm14712_vm1 }
 0x185   : > { %v926_v20 = vand.u32 15, %v746_v43  ;;  %v14769_v43 = vld [vmem:[#allocation47_spill] sm:$0xff] }
 0x186   : > { %9371 = vmatpush3.bf16.msra.mxu0 %v9968_v44  ;;  %v2300_v44 = vrot.slane %v11586_v22, 1 }
 0x187   : > { %9372 = vmatprep.subr.bf16.mxu0 %v9969_v33 }
 0x188   : > { %9341 = vmatmul.mubr.msk.bf16.gmra.mrb[44].mxu0 %vm10709_vm5, %v11588_v40  ;;  %v2320_v45 = vsel %vm14712_vm1, %v2300_v44, %v2301_v19  ;;  %vm14762_vm5 = vmmov %vm14712_vm1 }
 0x189   : > { %7853 = vmatmul.mubr.msk.bf16.gmra.mrb[40].mxu1 %vm11580_vm12, %v14752_v10  ;;  %9344 = vmatprep.mubr.msk.bf16.mxu0 %vm14756_vm13, %v11592_v34  ;;  %vm14758_vm12 = vmmov %vm14712_vm1  ;;  %v11633_v10 = vld [vmem:[#allocation2 + $0xd8] sm:$0xff] }
 0x18a   : > { %1852 = vmatprep.mubr.bf16.mxu1 %v14754_v41  ;;  %9373 = vmatpush3.bf16.msra.mxu0 %v9969_v33  ;;  %v2321_v31 = vsel %vm14758_vm12, %v2299_v55, %v2300_v44  ;;  %vm11627_vm13 = vmpackc.low %vm14567_vm3, %vm1160_vm6  ;;  %v2323_v33 = vsel %vm14762_vm5, %v2297_v26, %v2298_v46  ;;  %14763 = vst [vmem:[#allocation29_spill] sm:$0xff] %v11633_v10  ;;  %v2303_v55 = vrot.slane %v11624_v1, 1  ;;  %v11642_v44 = vld [vmem:[#allocation2 + $0xe0] sm:$0xff]  ;;  %v2304_v46 = vrot.slane %v11633_v10, 1 }
 0x18b   : > { %9374 = vmatprep.subr.bf16.mxu0 %v9970_v7  ;;  %v14760_v63 = vsel %vm11627_vm13, 4294967295, %v14759_v63  ;;  %v11635_v41 = vpack.c.bf16 %v2322_v52, %v2323_v33  ;;  %v11639_v22 = vpack.c.bf16 %v2320_v45, %v2321_v31  ;;  %14764 = vst [vmem:[#allocation14_spill] sm:$0xff] %v11642_v44  ;;  %v14766_v26 = vld [vmem:[#allocation45_spill] sm:$0xff]  ;;  %vm14770_vm12 = vnez %v14769_v43 }
 0x18c   : > { %14761 = vst [vmem:[#allocation15_spill] sm:$0xff] %v14760_v63  ;;  %vm14767_vm5 = vnez %v14766_v26  ;;  %v2302_v52 = vrot.slane %v11637_v30, 1  ;;  %vm1162_vm6 = vcmp.ge.s32.totalorder %v926_v20, 1  ;;  %v2305_v2 = vrot.slane %v11642_v44, 1  ;;  %v11679_v44 = vld [vmem:[#allocation2 + $0xe8] sm:$0xff] }
 0x18d   : > { %v14773_v31 = vmov 0 }
 0x18e   : > { %9375 = vmatpush3.bf16.msra.mxu0 %v9970_v7  ;;  %v14768_v7 = vpack.c.bf16 %v10825_v37, %v10811_v9  ;;  %v2316_v45 = vsel %vm14712_vm1, %v2304_v46, %v2305_v2  ;;  %v11668_v37 = vld [vmem:[#allocation2 + $0xf0] sm:$0xff] }
 0x18f   : > { %v2307_v10 = vrot.slane %v11668_v37, 1 }
 0x190   : > { %9345 = vmatmul.mubr.msk.bf16.gmra.mrb[48].mxu0 %vm14767_vm5, %v11635_v41  ;;  %vm14776_vm5 = vmmov %vm14712_vm1 }
 0x191   : > { %7856 = vmatmul.mubr.msk.bf16.gmra.mrb[44].mxu1 %vm11627_vm13, %v14765_v3  ;;  %9348 = vmatprep.mubr.msk.bf16.mxu0 %vm14770_vm12, %v11639_v22  ;;  %v2318_v3 = vsel %vm14771_vm7, %v2302_v52, %v2303_v55  ;;  %vm14772_vm13 = vmmov %vm14712_vm1  ;;  %v2319_v20 = vsel %vm14776_vm5, %v2301_v19, %v2302_v52  ;;  %v2308_v19 = vrot.slane %v11367_v59, 1  ;;  %v14780_v52 = vpack.c.bf16 %v10909_v14, %v10892_v54 }
 0x192   : > { %1860 = vmatprep.mubr.bf16.mxu1 %v14768_v7  ;;  %v2317_v9 = vsel %vm14772_vm13, %v2303_v55, %v2304_v46  ;;  %vm11671_vm12 = vmpackc.low %vm14567_vm3, %vm1162_vm6  ;;  %v11677_v33 = vpack.c.bf16 %v2318_v3, %v2319_v20  ;;  %v940_v7 = vand.u32 15, %v748_v6  ;;  %v14777_v55 = vpack.c.bf16 %v11129_v50, %v11133_v27  ;;  %v14778_v46 = vld [vmem:[#allocation49_spill] sm:$0xff] }
 0x193   : > { %v14774_v31 = vsel %vm11671_vm12, 4294967295, %v14773_v31  ;;  %v11681_v63 = vpack.c.bf16 %v2316_v45, %v2317_v9  ;;  %vm14779_vm13 = vnez %v14778_v46  ;;  %vm14781_vm5 = vnez %v14569_v16  ;;  %vm14782_vm7 = vmmov %vm14712_vm1 }
 0x194   : > { %14775 = vst [vmem:[#allocation16_spill] sm:$0xff] %v14774_v31  ;;  %v2306_v6 = vrot.slane %v11679_v44, 1  ;;  %vm1164_vm6 = vcmp.ge.s32.totalorder %v940_v7, 1  ;;  %v11701_v50 = vrot.slane %v11378_v17, 1  ;;  %v750_v27 = vadd.s32 224, %v10201_v28 }
 0x195   : > { %v14784_v45 = vmov 0  ;;  %v14789_v17 = vpack.c.bf16 %v11165_v8, %v11169_v11  ;;  %v752_v11 = vadd.s32 240, %v10201_v28 }
 0x196   : > { %v2314_v3 = vsel %vm14782_vm7, %v2306_v6, %v2307_v10  ;;  %v2312_v54 = vsel %vm14712_vm1, %v2308_v19, %v11701_v50  ;;  %v954_v7 = vand.u32 15, %v750_v27  ;;  %vm14794_vm7 = vmmov %vm14712_vm1 }
 0x198   : > { %9349 = vmatmul.mubr.msk.bf16.gmra.mrb[52].mxu0 %vm14779_vm13, %v11677_v33  ;;  %vm14787_vm13 = vmmov %vm14712_vm1 }
 0x199   : > { %7859 = vmatmul.mubr.msk.bf16.gmra.mrb[48].mxu1 %vm11671_vm12, %v14777_v55  ;;  %9352 = vmatprep.mubr.msk.bf16.mxu0 %vm14781_vm5, %v11681_v63  ;;  %vm14783_vm12 = vmmov %vm14712_vm1  ;;  %v2315_v9 = vsel %vm14787_vm13, %v2305_v2, %v2306_v6  ;;  %v14792_v2 = vld [vmem:[#allocation55_spill] sm:$0xff]  ;;  %vm1166_vm13 = vcmp.ge.s32.totalorder %v954_v7, 1  ;;  %v14798_v6 = vld [vmem:[#allocation5_spill] sm:$0xff] }
 0x19a   : > { %1868 = vmatprep.mubr.bf16.mxu1 %v14780_v52  ;;  %v2313_v14 = vsel %vm14783_vm12, %v2307_v10, %v2308_v19  ;;  %vm11712_vm5 = vmpackc.low %vm14567_vm3, %vm1164_vm6  ;;  %v11718_v20 = vpack.c.bf16 %v2314_v3, %v2315_v9  ;;  %v11722_v52 = vld [vmem:[#allocation2 + $0x28] sm:$0xff]  ;;  %vm14790_vm12 = vnez %v14575_v62  ;;  %v14791_v10 = vpack.c.bf16 %v14619_v36, %v14618_v58  ;;  %v14801_v7 = vld [vmem:[#allocation35_spill] sm:$0xff] }
 0x19b   : > { %v14785_v45 = vsel %vm11712_vm5, 4294967295, %v14784_v45  ;;  %v11720_v55 = vpack.c.bf16 %v2312_v54, %v2313_v14  ;;  %14788 = vst [vmem:[#allocation63_spill] sm:$0xff] %v11722_v52  ;;  %v2310_v19 = vrot.slane %v14792_v2, 1  ;;  %v3259_v8 = vrot.slane %v11722_v52, 1  ;;  %vm14793_vm6 = vmmov %vm14712_vm1  ;;  %v14806_v2 = vld [vmem:[#allocation56_spill] sm:$0xff] }
 0x19c   : > { %14786 = vst [vmem:[#allocation62_spill] sm:$0xff] %v14785_v45  ;;  %vm11748_vm1 = vmpackc.low %vm14567_vm3, %vm1166_vm13  ;;  %v14795_v36 = vmov 0  ;;  %v968_v14 = vand.u32 15, %v752_v11  ;;  %v14807_v45 = vld [vmem:[#allocation54_spill] sm:$0xff]  ;;  %v11777_v11 = vpack.c.bf16 %v11382_v23, %v11480_v12  ;;  %v14878_v62 = vld [vmem:[#allocation60_spill] sm:$0xff] }
 0x19d   : > { %v3319_v58 = vsel %vm14794_vm7, %v3259_v8, %v11210_v47  ;;  %v14796_v36 = vsel %vm11748_vm1, 4294967295, %v14795_v36  ;;  %v14804_v47 = vld [vmem:[#allocation59_spill] sm:$0xff]  ;;  %v14808_v59 = vpack.c.bf16 %v14806_v2, %v14807_v45 }
 0x19e   : > { %14797 = vst [vmem:[#allocation64_spill] sm:$0xff] %v14796_v36  ;;  %vm14805_vm13 = vnez %v14804_v47  ;;  %v14817_v45 = vld [vmem:[#allocation19_spill] sm:$0xff] }
 0x1a0   : > { %9353 = vmatmul.mubr.msk.bf16.gmra.mrb[56].mxu0 %vm14790_vm12, %v11718_v20 }
 0x1a1   : > { %7862 = vmatmul.mubr.msk.bf16.gmra.mrb[52].mxu1 %vm11712_vm5, %v14789_v17  ;;  %9356 = vmatprep.mubr.msk.bf16.mxu0 %vm11000_vm0, %v11720_v55  ;;  %v2311_v17 = vsel %vm14793_vm6, %v11701_v50, %v2310_v19  ;;  %vm14799_vm5 = vmmov %vm14793_vm6 }
 0x1a2   : > { %1876 = vmatprep.mubr.bf16.mxu1 %v14791_v10  ;;  %v2342_v27 = vsel %vm14799_vm5, %v2310_v19, %v14798_v6  ;;  %vm14800_vm0 = vmmov %vm14799_vm5  ;;  %v14802_v10 = vld [vmem:[#allocation28_spill] sm:$0xff]  ;;  %vm1168_vm5 = vcmp.ge.s32.totalorder %v968_v14, 1  ;;  %v2130_v6 = vrot.slane %v11480_v12, 7  ;;  %v9972_v12 = vld [vmem:[%s14089_s3 + $0x180] sm:$0xff]  }
 0x1a3   : > { %v8011_v3 = vpack.c.bf16 %v2342_v27, %v2311_v17  ;;  %v3320_v54 = vsel %vm14800_vm0, %v11339_v0, %v3259_v8  ;;  %v14803_v52 = vpack.c.bf16 %v14801_v7, %v14802_v10  ;;  %vm11771_vm0 = vmpackc.low %vm14567_vm3, %vm1168_vm5  ;;  %v14810_v8 = vmov 0  ;;  %v14814_v17 = vld [vmem:[#allocation12_spill] sm:$0xff]  ;;  %v14823_v7 = vld [vmem:[#allocation34_spill] sm:$0xff] }
 0x1a4   : > { %v8062_v9 = vpack.c.bf16 %v3319_v58, %v3320_v54  ;;  %v14811_v8 = vsel %vm11771_vm0, 4294967295, %v14810_v8  ;;  %v14819_v27 = vrot.slane %v11382_v23, 7  ;;  %vm14820_vm3 = vcmp.lt.s32.totalorder %v10201_v28, 1 }
 0x1a5   : > { %14812 = vst [vmem:[#allocation5_spill] sm:$0xff] %v14811_v8  ;;  %v14821_v54 = vrot.slane %v11319_v39, 7  ;;  %vm14822_vm6 = vmmov %vm14820_vm3  ;;  %v11812_v23 = vpack.c.bf16 %v11361_v56, %v11374_v49  ;;  %vm14824_vm7 = vnez %v14823_v7  ;;  %v9974_v39 = vld [vmem:[%s14089_s3 + $0x188] sm:$0xff]   ;;  %v9975_v49 = vld [vmem:[%s14089_s3 + $0x1d0] sm:$0xff]   ;;  %v11835_v10 = vpack.c.bf16 %v11538_v21, %v11529_v51 }
 0x1a6   : > { %vm14825_vm5 = vmmov %vm14820_vm3 }
 0x1a7   : > { %v2169_v14 = vsel %vm14822_vm6, %v14821_v54, %v2130_v6 }
 0x1a8   : > { %9357 = vmatmul.mubr.msk.bf16.gmra.mrb[60].mxu0 %vm14805_vm13, %v8011_v3  ;;  %v2168_v3 = vsel %vm14820_vm3, %v2130_v6, %v14819_v27  ;;  %v2137_v6 = vrot.slane %v11590_v53, 7  ;;  %v14827_v27 = vld [vmem:[#allocation9_spill] sm:$0xff] }
 0x1a9   : > { %7865 = vmatmul.mubr.msk.bf16.gmra.mrb[56].mxu1 %vm11748_vm1, %v14803_v52  ;;  %9376 = vmatprep.mubr.msk.bf16.mxu0 %vm10344_vm8, %v8062_v9  ;;  %v14813_v52 = vld [vmem:[#allocation26_spill] sm:$0xff]  ;;  %v11805_v9 = vpack.c.bf16 %v2168_v3, %v2169_v14  ;;  %vm14828_vm6 = vnez %v14827_v27 }
 0x1aa   : > { %1884 = vmatprep.mubr.bf16.mxu1 %v14808_v59  ;;  %v14815_v58 = vpack.c.bf16 %v14813_v52, %v14814_v17  ;;  %v14816_v59 = vld [vmem:[#allocation25_spill] sm:$0xff]  ;;  %v2135_v52 = vrot.slane %v11538_v21, 7  ;;  %v2134_v21 = vrot.slane %v11529_v51, 7  ;;  %v9978_v17 = vld [vmem:[%s14089_s3 + $0x198] sm:$0xff]   ;;  %v9982_v3 = vld [vmem:[%s14089_s3 + $0x1a8] sm:$0xff]  }
 0x1ab   : > { %v14818_v2 = vpack.c.bf16 %v14816_v59, %v14817_v45  ;;  %v14826_v59 = vrot.slane %v11361_v56, 7  ;;  %v9980_v51 = vld [vmem:[%s14089_s3 + $0x1a0] sm:$0xff]   ;;  %v9981_v56 = vld [vmem:[%s14089_s3 + $0x1e8] sm:$0xff]  }
 0x1b0   : > { %9377 = vmatmul.mubr.msk.bf16.vlgmr.msra.gmra.mrb[32].mxu0 %vm10375_vm9, %v14818_v2  ;;  %v11871_v2 = vpack.c.bf16 %v11590_v53, %v11545_v4  ;;  %v2136_v53 = vrot.slane %v11545_v4, 7  ;;  %v9984_v4 = vld [vmem:[%s14089_s3 + $0x1b0] sm:$0xff]  }
 0x1b1   : > { %7868 = vmatmul.mubr.msk.bf16.gmra.mrb[60].mxu1 %vm11771_vm0, %v14815_v58  ;;  %9380 = vmatprep.mubr.msk.bf16.mxu0 %vm10466_vm10, %v11494_v57  ;;  %v9973_v57 = vld [vmem:[%s14089_s3 + $0x1c8] sm:$0xff]   ;;  %v2164_v58 = vsel %vm14825_vm5, %v2134_v21, %v2135_v52  ;;  %vm14829_vm5 = vnez %v14753_v61 }
 0x1b2   : > { %2728 = vmatprep.mubr.bf16.mxu1 %v11777_v11 }
 0x1b8   : > { %9381 = vmatmul.mubr.msk.bf16.gmra.mrb[36].mxu0 %vm10496_vm11, %v11496_v29  ;;  %v9976_v29 = vld [vmem:[%s14089_s3 + $0x190] sm:$0xff]  }
 0x1b9   : > { %7937 = vmatmul.mubr.msk.bf16.vlgmr.msra.gmra.mrb[64].mxu1 %vm14824_vm7, %v11805_v9  ;;  %9384 = vmatprep.mubr.msk.bf16.mxu0 %vm10580_vm14, %v11540_v42  ;;  %v9977_v42 = vld [vmem:[%s14089_s3 + $0x1d8] sm:$0xff]  }
 0x1ba   : > { %8687 = vmatpush3.bf16.msra.mxu1 %v9972_v12  ;;  %2736 = vmatprep.mubr.bf16.mxu1 %v11812_v23 }
 0x1bb   : > { %8688 = vmatprep.subr.bf16.mxu1 %v9973_v57  ;;  %v14834_v57 = vld [vmem:[#allocation31_spill] sm:$0xff] }
 0x1be   : > { %8689 = vmatpush3.bf16.msra.mxu1 %v9974_v39 }
 0x1bf   : > { %8690 = vmatprep.subr.bf16.mxu1 %v9975_v49  ;;  %v2139_v49 = vrot.slane %v14834_v57, 7 }
 0x1c0   : > { %9385 = vmatmul.mubr.msk.bf16.gmra.mrb[40].mxu0 %vm10609_vm15, %v11542_v32  ;;  %v9979_v32 = vld [vmem:[%s14089_s3 + $0x1e0] sm:$0xff]  }
 0x1c1   : > { %7940 = vmatmul.mubr.msk.bf16.gmra.mrb[68].mxu1 %vm11439_vm2, %v11443_v15  ;;  %9388 = vmatprep.mubr.msk.bf16.mxu0 %vm10688_vm4, %v11588_v40  ;;  %v2165_v40 = vsel %vm14820_vm3, %v14826_v59, %v2134_v21  ;;  %vm14830_vm3 = vnez %v14755_v5  ;;  %vm14831_vm4 = vcmp.lt.s32.totalorder %v10201_v28, 1  ;;  %v9986_v21 = vld [vmem:[%s14089_s3 + $0x1b8] sm:$0xff]   ;;  %v2141_v59 = vrot.slane %v11637_v30, 7 }
 0x1c2   : > { %2744 = vmatprep.mubr.bf16.mxu1 %v11835_v10  ;;  %8691 = vmatpush3.bf16.msra.mxu1 %v9976_v29  ;;  %v11864_v45 = vpack.c.bf16 %v2164_v58, %v2165_v40  ;;  %v2162_v54 = vsel %vm14831_vm4, %v2136_v53, %v2137_v6  ;;  %vm14832_vm15 = vmmov %vm14831_vm4  ;;  %v9985_v29 = vld [vmem:[%s14089_s3 + $0x1f8] sm:$0xff]   ;;  %vm14837_vm4 = vnez %v14766_v26  ;;  %v11936_v40 = vld [vmem:[#allocation2 + $0x110] sm:$0xff] }
 0x1c3   : > { %8692 = vmatprep.subr.bf16.mxu1 %v9977_v42  ;;  %v2163_v14 = vsel %vm14832_vm15, %v2135_v52, %v2136_v53  ;;  %v14835_v52 = vld [vmem:[#allocation48_spill] sm:$0xff]  ;;  %v3288_v53 = vrot.slane %v11936_v40, 1 }
 0x1c4   : > { %v11898_v12 = vpack.c.bf16 %v2162_v54, %v2163_v14  ;;  %vm14836_vm15 = vnez %v14835_v52 }
 0x1c6   : > { %8693 = vmatpush3.bf16.msra.mxu1 %v9978_v17 }
 0x1c7   : > { %8694 = vmatprep.subr.bf16.mxu1 %v9979_v32  ;;  %v14841_v32 = vld [vmem:[#allocation6_spill] sm:$0xff] }
 0x1c8   : > { %9389 = vmatmul.mubr.msk.bf16.gmra.mrb[44].mxu0 %vm14829_vm5, %v11592_v34  ;;  %v9983_v34 = vld [vmem:[%s14089_s3 + $0x1f0] sm:$0xff]   ;;  %vm14839_vm5 = vcmp.lt.s32.totalorder %v10201_v28, 1 }
 0x1c9   : > { %7943 = vmatmul.mubr.msk.bf16.gmra.mrb[72].mxu1 %vm14828_vm6, %v11864_v45  ;;  %9392 = vmatprep.mubr.msk.bf16.mxu0 %vm14830_vm3, %v11635_v41  ;;  %v14833_v41 = vld [vmem:[#allocation46_spill] sm:$0xff]  ;;  %vm14838_vm3 = vnez %v14769_v43  ;;  %vm14840_vm14 = vmmov %vm14839_vm5 }
 0x1ca   : > { %2752 = vmatprep.mubr.bf16.mxu1 %v11871_v2  ;;  %8695 = vmatpush3.bf16.msra.mxu1 %v9980_v51  ;;  %v11905_v39 = vpack.c.bf16 %v14834_v57, %v14833_v41  ;;  %v2138_v42 = vrot.slane %v14833_v41, 7  ;;  %v14842_v51 = vld [vmem:[#allocation32_spill] sm:$0xff] }
 0x1cb   : > { %8696 = vmatprep.subr.bf16.mxu1 %v9981_v56 }
 0x1cc   : > { %v2160_v17 = vsel %vm14839_vm5, %v2138_v42, %v2139_v49  ;;  %vm14844_vm5 = vnez %v14778_v46 }
 0x1ce   : > { %8697 = vmatpush3.bf16.msra.mxu1 %v9982_v3 }
 0x1cf   : > { %8698 = vmatprep.subr.bf16.mxu1 %v9983_v34  ;;  %v11960_v34 = vld [vmem:[#allocation2 + $0x118] sm:$0xff] }
 0x1d0   : > { %9393 = vmatmul.mubr.msk.bf16.gmra.mrb[48].mxu0 %vm14837_vm4, %v11639_v22  ;;  %v2161_v22 = vsel %vm14840_vm14, %v2137_v6, %v2138_v42  ;;  %v14845_v6 = vld [vmem:[#allocation43_spill] sm:$0xff]  ;;  %vm14846_vm14 = vnez %v14569_v16  ;;  %vm14847_vm4 = vcmp.lt.s32.totalorder %v10201_v28, 1 }
 0x1d1   : > { %7946 = vmatmul.mubr.msk.bf16.gmra.mrb[76].mxu1 %vm14836_vm15, %v11898_v12  ;;  %9396 = vmatprep.mubr.msk.bf16.mxu0 %vm14838_vm3, %v11677_v33  ;;  %v11929_v58 = vpack.c.bf16 %v2160_v17, %v2161_v22  ;;  %v11933_v33 = vpack.c.bf16 %v11637_v30, %v14841_v32  ;;  %vm14843_vm3 = vnez %v14842_v51  ;;  %v3287_v56 = vrot.slane %v14845_v6, 1  ;;  %vm14848_vm11 = vmmov %vm14847_vm4  ;;  %v14852_v42 = vld [vmem:[#allocation15_spill] sm:$0xff] }
 0x1d2   : > { %2760 = vmatprep.mubr.bf16.mxu1 %v11905_v39  ;;  %8699 = vmatpush3.bf16.msra.mxu1 %v9984_v4  ;;  %v2140_v30 = vrot.slane %v14841_v32, 7  ;;  %v14851_v4 = vld [vmem:[#allocation29_spill] sm:$0xff]  ;;  %vm14856_vm9 = vmmov %vm14847_vm4 }
 0x1d3   : > { %8700 = vmatprep.subr.bf16.mxu1 %v9985_v29  ;;  %v11966_v41 = vpack.c.bf16 %v14851_v4, %v11624_v1  ;;  %v2143_v29 = vrot.slane %v14851_v4, 7  ;;  %v2146_v4 = vrot.slane %v11668_v37, 7 }
 0x1d4   : > { %v2158_v3 = vsel %vm14847_vm4, %v2140_v30, %v2141_v59  ;;  %v2159_v54 = vsel %vm14848_vm11, %v2139_v49, %v2140_v30  ;;  %v3289_v49 = vrot.slane %v11960_v34, 1  ;;  %vm14853_vm11 = vnez %v14852_v42  ;;  %v14857_v30 = vld [vmem:[#allocation14_spill] sm:$0xff] }
 0x1d6   : > { %8701 = vmatpush3.bf16.msra.mxu1 %v9986_v21 }
 0x1d8   : > { %9397 = vmatmul.mubr.msk.bf16.gmra.mrb[52].mxu0 %vm14844_vm5, %v11681_v63  ;;  %vm14849_vm5 = vcmp.lt.s32.totalorder %v10201_v28, 7 }
 0x1d9   : > { %7949 = vmatmul.mubr.msk.bf16.gmra.mrb[80].mxu1 %vm14843_vm3, %v11929_v58  ;;  %9400 = vmatprep.mubr.msk.bf16.mxu0 %vm14846_vm14, %v11718_v20  ;;  %v3291_v63 = vsel %vm14849_vm5, %v3287_v56, %v3288_v53  ;;  %vm14850_vm10 = vmmov %vm14849_vm5  ;;  %v11962_v20 = vpack.c.bf16 %v2158_v3, %v2159_v54  ;;  %v3290_v17 = vsel %vm14849_vm5, %v3288_v53, %v3289_v49 }
 0x1da   : > { %2768 = vmatprep.mubr.bf16.mxu1 %v11933_v33  ;;  %v3292_v14 = vsel %vm14850_vm10, %v11701_v50, %v3287_v56  ;;  %vm14854_vm10 = vnez %v14588_v35  ;;  %v2142_v50 = vrot.slane %v11624_v1, 7  ;;  %vm14855_vm14 = vmmov %vm14849_vm5  ;;  %v11993_v3 = vpack.c.bf16 %v11679_v44, %v14857_v30 }
 0x1db   : > { %v8104_v57 = vpack.c.bf16 %v3291_v63, %v3292_v14  ;;  %v3321_v22 = vsel %vm14855_vm14, %v3289_v49, %v11339_v0  ;;  %v2145_v1 = vrot.slane %v11679_v44, 7  ;;  %v2144_v0 = vrot.slane %v14857_v30, 7  ;;  %vm14859_vm14 = vmmov %vm14856_vm9  ;;  %v14860_v44 = vld [vmem:[#allocation36_spill] sm:$0xff]  ;;  %v14861_v14 = vld [vmem:[#allocation62_spill] sm:$0xff] }
 0x1dc   : > { %v2156_v21 = vsel %vm14847_vm4, %v2142_v50, %v2143_v29  ;;  %v8107_v56 = vpack.c.bf16 %v3321_v22, %v3290_v17  ;;  %vm14858_vm4 = vnez %v14774_v31  ;;  %v12011_v63 = vpack.c.bf16 %v14860_v44, %v11668_v37  ;;  %v14866_v17 = vld [vmem:[#allocation55_spill] sm:$0xff]  ;;  %v14870_v30 = vld [vmem:[#allocation22_spill] sm:$0xff] }
 0x1dd   : > { %v2155_v53 = vsel %vm14859_vm14, %v2143_v29, %v2144_v0  ;;  %vm14862_vm5 = vnez %v14861_v14  ;;  %vm14864_vm14 = vmmov %vm14856_vm9  ;;  %v14867_v37 = vrot.slane %v14866_v17, 7 }
 0x1de   : > { %v2153_v29 = vsel %vm14864_vm14, %v2145_v1, %v2146_v4 }
 0x1e0   : > { %9401 = vmatmul.mubr.msk.bf16.gmra.mrb[56].mxu0 %vm14790_vm12, %v11720_v55  ;;  %v2157_v55 = vsel %vm14856_vm9, %v2141_v59, %v2142_v50  ;;  %v2154_v59 = vsel %vm14856_vm9, %v2144_v0, %v2145_v1 }
 0x1e1   : > { %7952 = vmatmul.mubr.msk.bf16.gmra.mrb[84].mxu1 %vm14853_vm11, %v11962_v20  ;;  %9404 = vmatprep.mubr.msk.bf16.mxu0 %vm14854_vm10, %v8104_v57  ;;  %v11989_v32 = vpack.c.bf16 %v2156_v21, %v2157_v55  ;;  %v12007_v54 = vpack.c.bf16 %v2154_v59, %v2155_v53  ;;  %v14863_v57 = vrot.slane %v14860_v44, 7  ;;  %v14865_v21 = vld [vmem:[#allocation20_spill] sm:$0xff]  ;;  %v14868_v55 = vld [vmem:[#allocation42_spill] sm:$0xff]  ;;  %v14871_v59 = vld [vmem:[#allocation63_spill] sm:$0xff]  ;;  %vm14879_vm10 = vnez %v14878_v62 }
 0x1e2   : > { %2776 = vmatprep.mubr.bf16.mxu1 %v11966_v41  ;;  %v2262_v22 = vpack.c.bf16 %v14866_v17, %v14865_v21  ;;  %v3099_v1 = vrot.slane %v14871_v59, 7  ;;  %v10059_v53 = vld [vmem:[#allocation2 + $0x20] sm:$0xff]  ;;  %v10060_v17 = vld [vmem:[#allocation2 + $0x30] sm:$0xff] }
 0x1e3   : > { %v2152_v49 = vsel %vm14856_vm9, %v2146_v4, %v14863_v57  ;;  %v3226_v44 = vpack.c.bf16 %v14871_v59, %v10059_v53  ;;  %v14293_v4 = vrot.slane %v11960_v34, 7  ;;  %v14872_v57 = vld [vmem:[#allocation13_spill] sm:$0xff] }
 0x1e4   : > { %v12024_v50 = vpack.c.bf16 %v2152_v49, %v2153_v29  ;;  %v3160_v49 = vsel %vm14856_vm9, %v14872_v57, %v3099_v1  ;;  %v14884_v62 = vld [vmem:[#allocation61_spill] sm:$0xff] }
 0x1e8   : > { %9405 = vmatmul.mubr.msk.bf16.gmra.mrb[60].mxu0 %vm14805_vm13, %v8107_v56  ;;  %vm14869_vm13 = vmmov %vm14856_vm9 }
 0x1e9   : > { %7955 = vmatmul.mubr.msk.bf16.gmra.mrb[88].mxu1 %vm14858_vm4, %v11989_v32  ;;  %v2150_v56 = vsel %vm14869_vm13, %v14868_v55, %v14867_v37  ;;  %vm14873_vm13 = vmmov %vm14856_vm9 }
 0x1ea   : > { %2784 = vmatprep.mubr.bf16.mxu1 %v11993_v3  ;;  %v7963_v0 = vpack.c.bf16 %v2150_v56, %v14870_v30  ;;  %v3161_v29 = vsel %vm14873_vm13, %v14293_v4, %v14872_v57  ;;  %v14875_v56 = vld [vmem:[#allocation58_spill] sm:$0xff]  ;;  %vm14877_vm13 = vmmov %vm14856_vm9 }
 0x1eb   : > { %v8014_v21 = vpack.c.bf16 %v3160_v49, %v3161_v29  ;;  %vm14876_vm14 = vnez %v14875_v56 }
 0x1f1   : > { %7958 = vmatmul.mubr.msk.bf16.gmra.mrb[92].mxu1 %vm14862_vm5, %v12007_v54 }
 0x1f2   : > { %2792 = vmatprep.mubr.bf16.mxu1 %v12011_v63 }
 0x1f9   : > { %7961 = vmatmul.mubr.msk.bf16.gmra.mrb[96].mxu1 %vm11748_vm1, %v12024_v50 }
 0x1fa   : > { %2800 = vmatprep.mubr.bf16.mxu1 %v2262_v22  ;;  %v14874_v22 = vld [vmem:[#allocation51_spill] sm:$0xff] }
 0x1fb   : > { %v3227_v37 = vpack.c.bf16 %v14874_v22, %v10060_v17  ;;  %v3101_v55 = vrot.slane %v14874_v22, 7  ;;  %v14880_v22 = vld [vmem:[#allocation33_spill] sm:$0xff] }
 0x201   : > { %7964 = vmatmul.mubr.msk.bf16.gmra.mrb[100].mxu1 %vm11771_vm0, %v7963_v0  ;;  %v3100_v0 = vrot.slane %v10060_v17, 7 }
 0x202   : > { %3659 = vmatprep.mubr.bf16.mxu1 %v3226_v44 }
 0x203   : > { %v3158_v53 = vsel %vm14856_vm9, %v3100_v0, %v3101_v55  ;;  %v3159_v57 = vsel %vm14877_vm13, %v3099_v1, %v3100_v0 }
 0x204   : > { %v8017_v29 = vpack.c.bf16 %v3158_v53, %v3159_v57 }
 0x209   : > { %8015 = vmatmul.mubr.msk.bf16.vlgmr.msra.gmra.mrb[104].mxu1 %vm14876_vm14, %v8014_v21  ;;  %vm14882_vm14 = vmmov %vm14856_vm9  ;;  %vm14885_vm9 = vnez %v14884_v62 }
 0x20a   : > { %3667 = vmatprep.mubr.bf16.mxu1 %v3227_v37  ;;  %v14881_v37 = vld [vmem:[#allocation30_spill] sm:$0xff] }
 0x20b   : > { %v8430_v59 = vpop.f32.mrb[0].mxu1  ;;  %v3157_v56 = vsel %vm14882_vm14, %v3101_v55, %v14881_v37  ;;  %v14886_v55 = vld [vmem:[#allocation39_spill] sm:$0xff] }
 0x20c   : > { %v8431_v44 = vpop.f32.mrb[1].mxu1 }
 0x20d   : > { %v8432_v47 = vadd.f32 %v8431_v44, %v8430_v59  ;;  %v8433_v35 = vpop.f32.mrb[2].mxu1 }
 0x20e   : > { %v8434_v49 = vpop.f32.mrb[3].mxu1 }
 0x20f   : > { %v8435_v4 = vadd.f32 %v8434_v49, %v8433_v35  ;;  %v14883_v35 = vld [vmem:[#allocation21_spill] sm:$0xff] }
 0x210   : > { %v8020_v57 = vpack.c.bf16 %v14883_v35, %v3157_v56  ;;  %v14890_v35 = vld [vmem:[#allocation41_spill] sm:$0xff] }
 0x211   : > { %8018 = vmatmul.mubr.msk.bf16.gmra.mrb[108].mxu1 %vm14879_vm10, %v8017_v29 }
 0x212   : > { %3675 = vmatprep.mubr.bf16.mxu1 %v14880_v22 }
 0x213   : > { %v8436_v21 = vpop.f32.mrb[4].mxu1  ;;  %v8566_v17 = vpop.f32.mrb[64].mxu0 }
 0x214   : > { %v8437_v16 = vpop.f32.mrb[5].mxu1  ;;  %v8567_v59 = vpop.f32.mrb[65].mxu0 }
 0x215   : > { %v8438_v44 = vadd.f32 %v8437_v16, %v8436_v21  ;;  %v8568_v46 = vadd.f32 %v8567_v59, %v8566_v17  ;;  %v8439_v43 = vpop.f32.mrb[6].mxu1  ;;  %v8569_v1 = vpop.f32.mrb[66].mxu0 }
 0x216   : > { %v8440_v0 = vpop.f32.mrb[7].mxu1  ;;  %v8570_v53 = vpop.f32.mrb[67].mxu0 }
 0x217   : > { %v12065_v49 = vadd.f32 %v8568_v46, %v8432_v47  ;;  %v8441_v29 = vadd.f32 %v8440_v0, %v8439_v43  ;;  %v8571_v22 = vadd.f32 %v8570_v53, %v8569_v1  ;;  %v14887_v0 = vld [vmem:[#allocation17_spill] sm:$0xff]  ;;  %v14888_v53 = vld [vmem:[#allocation50_spill] sm:$0xff] }
 0x218   : > { %vm14889_vm14 = vnez %v14888_v53 }
 0x219   : > { %8021 = vmatmul.mubr.msk.bf16.gmra.mrb[112].mxu1 %vm14885_vm9, %v8020_v57  ;;  %v12069_v26 = vadd.f32 %v8571_v22, %v8435_v4 }
 0x21a   : > { %3683 = vmatprep.mubr.bf16.mxu1 %v14886_v55 }
 0x21b   : > { %v8442_v37 = vpop.f32.mrb[8].mxu1  ;;  %v8572_v16 = vpop.f32.mrb[68].mxu0 }
 0x21c   : > { %v8443_v21 = vpop.f32.mrb[9].mxu1  ;;  %v8573_v17 = vpop.f32.mrb[69].mxu0 }
 0x21d   : > { %v8444_v59 = vadd.f32 %v8443_v21, %v8442_v37  ;;  %v8574_v5 = vadd.f32 %v8573_v17, %v8572_v16  ;;  %v8445_v61 = vpop.f32.mrb[10].mxu1  ;;  %v8575_v24 = vpop.f32.mrb[70].mxu0 }
 0x21e   : > { %v8446_v56 = vpop.f32.mrb[11].mxu1  ;;  %v8576_v46 = vpop.f32.mrb[71].mxu0 }
 0x21f   : > { %v12072_v47 = vadd.f32 %v8574_v5, %v8438_v44  ;;  %v8447_v43 = vadd.f32 %v8446_v56, %v8445_v61  ;;  %v8577_v1 = vadd.f32 %v8576_v46, %v8575_v24  ;;  %v14891_v46 = vld [vmem:[#allocation23_spill] sm:$0xff] }
 0x221   : > { %8024 = vmatmul.mubr.msk.bf16.gmra.mrb[116].mxu1 %vm14889_vm14, %v14887_v0  ;;  %v12077_v4 = vadd.f32 %v8577_v1, %v8441_v29  ;;  %v14892_v0 = vld [vmem:[#allocation11_spill] sm:$0xff] }
 0x222   : > { %3691 = vmatprep.mubr.bf16.mxu1 %v14890_v35  ;;  %vm14893_vm13 = vnez %v14892_v0 }
 0x223   : > { %v8448_v57 = vpop.f32.mrb[12].mxu1  ;;  %v8578_v22 = vpop.f32.mrb[72].mxu0 }
 0x224   : > { %v8449_v55 = vpop.f32.mrb[13].mxu1  ;;  %v8579_v37 = vpop.f32.mrb[73].mxu0 }
 0x225   : > { %v8450_v16 = vadd.f32 %v8449_v55, %v8448_v57  ;;  %v8580_v21 = vadd.f32 %v8579_v37, %v8578_v22  ;;  %v8451_v17 = vpop.f32.mrb[14].mxu1  ;;  %v8581_v62 = vpop.f32.mrb[74].mxu0 }
 0x226   : > { %v8452_v5 = vpop.f32.mrb[15].mxu1  ;;  %v8582_v44 = vpop.f32.mrb[75].mxu0 }
 0x227   : > { %v12080_v61 = vadd.f32 %v8580_v21, %v8444_v59  ;;  %v8453_v24 = vadd.f32 %v8452_v5, %v8451_v17  ;;  %v8583_v56 = vadd.f32 %v8582_v44, %v8581_v62  ;;  %v14894_v44 = vld [vmem:[#allocation40_spill] sm:$0xff] }
 0x229   : > { %8027 = vmatmul.mubr.msk.bf16.gmra.mrb[120].mxu1 %vm14893_vm13, %v14891_v46  ;;  %v12085_v29 = vadd.f32 %v8583_v56, %v8447_v43  ;;  %vm14895_vm13 = vnez %v14894_v44 }
 0x22a   : > { %3699 = vmatprep.mubr.bf16.mxu1 %v11777_v11 }
 0x22b   : > { %v8584_v35 = vpop.f32.mrb[76].mxu0 }
 0x22c   : > { %v8454_v1 = vpop.f32.mrb[16].mxu1  ;;  %v8585_v22 = vpop.f32.mrb[77].mxu0 }
 0x22d   : > { %v8455_v57 = vpop.f32.mrb[17].mxu1  ;;  %v8586_v37 = vadd.f32 %v8585_v22, %v8584_v35  ;;  %v8587_v25 = vpop.f32.mrb[78].mxu0 }
 0x22e   : > { %v8456_v55 = vadd.f32 %v8455_v57, %v8454_v1  ;;  %v8457_v53 = vpop.f32.mrb[18].mxu1  ;;  %v8588_v21 = vpop.f32.mrb[79].mxu0 }
 0x22f   : > { %v8458_v59 = vpop.f32.mrb[19].mxu1  ;;  %v12088_v17 = vadd.f32 %v8586_v37, %v8450_v16  ;;  %v8589_v5 = vadd.f32 %v8588_v21, %v8587_v25 }
 0x230   : > { %v8459_v62 = vadd.f32 %v8458_v59, %v8457_v53 }
 0x231   : > { %8030 = vmatmul.mubr.msk.bf16.gmra.mrb[124].mxu1 %vm14895_vm13, %v11805_v9  ;;  %v12093_v43 = vadd.f32 %v8589_v5, %v8453_v24 }
 0x232   : > { %3707 = vmatprep.mubr.bf16.mxu1 %v11812_v23 }
 0x233   : > { %v8590_v56 = vpop.f32.mrb[80].mxu0 }
 0x234   : > { %v8460_v11 = vpop.f32.mrb[20].mxu1  ;;  %v8591_v1 = vpop.f32.mrb[81].mxu0 }
 0x235   : > { %v8461_v46 = vpop.f32.mrb[21].mxu1  ;;  %v8592_v57 = vadd.f32 %v8591_v1, %v8590_v56  ;;  %v8593_v0 = vpop.f32.mrb[82].mxu0 }
 0x236   : > { %v8462_v35 = vadd.f32 %v8461_v46, %v8460_v11  ;;  %v8463_v22 = vpop.f32.mrb[22].mxu1  ;;  %v8594_v37 = vpop.f32.mrb[83].mxu0 }
 0x237   : > { %v8464_v16 = vpop.f32.mrb[23].mxu1  ;;  %v12096_v53 = vadd.f32 %v8592_v57, %v8456_v55  ;;  %v8595_v59 = vadd.f32 %v8594_v37, %v8593_v0 }
 0x238   : > { %v8465_v25 = vadd.f32 %v8464_v16, %v8463_v22 }
 0x239   : > { %8033 = vmatmul.mubr.msk.bf16.gmra.mrb[128].mxu1 %vm14824_vm7, %v11443_v15  ;;  %v12101_v9 = vadd.f32 %v8595_v59, %v8459_v62 }
 0x23a   : > { %3715 = vmatprep.mubr.bf16.mxu1 %v11835_v10 }
 0x23b   : > { %v8596_v24 = vpop.f32.mrb[84].mxu0 }
 0x23c   : > { %v8466_v23 = vpop.f32.mrb[24].mxu1  ;;  %v8597_v5 = vpop.f32.mrb[85].mxu0 }
 0x23d   : > { %v8467_v21 = vpop.f32.mrb[25].mxu1  ;;  %v8598_v56 = vadd.f32 %v8597_v5, %v8596_v24  ;;  %v8599_v55 = vpop.f32.mrb[86].mxu0 }
 0x23e   : > { %v12104_v11 = vadd.f32 %v8467_v21, %v8466_v23  ;;  %v8469_v46 = vpop.f32.mrb[26].mxu1  ;;  %v8600_v57 = vpop.f32.mrb[87].mxu0 }
 0x23f   : > { %v8470_v1 = vpop.f32.mrb[27].mxu1  ;;  %v12106_v0 = vadd.f32 %v8598_v56, %v8462_v35  ;;  %v8601_v15 = vadd.f32 %v8600_v57, %v8599_v55 }
 0x240   : > { %v12108_v22 = vadd.f32 %v8470_v1, %v8469_v46 }
 0x241   : > { %8036 = vmatmul.mubr.msk.bf16.gmra.mrb[132].mxu1 %vm11439_vm2, %v11864_v45  ;;  %v12113_v10 = vadd.f32 %v8601_v15, %v8465_v25 }
 0x242   : > { %3723 = vmatprep.mubr.bf16.mxu1 %v11871_v2 }
 0x244   : > { %v8472_v62 = vpop.f32.mrb[28].mxu1 }
 0x245   : > { %v8473_v16 = vpop.f32.mrb[29].mxu1 }
 0x246   : > { %v12116_v37 = vadd.f32 %v8473_v16, %v8472_v62  ;;  %v8475_v59 = vpop.f32.mrb[30].mxu1 }
 0x247   : > { %v8476_v23 = vpop.f32.mrb[31].mxu1 }
 0x248   : > { %v12118_v24 = vadd.f32 %v8476_v23, %v8475_v59 }
 0x249   : > { %8039 = vmatmul.mubr.msk.bf16.gmra.mrb[136].mxu1 %vm14828_vm6, %v11898_v12 }
 0x24a   : > { %3731 = vmatprep.mubr.bf16.mxu1 %v11905_v39 }
 0x24c   : > { %v8478_v35 = vpop.f32.mrb[32].mxu1 }
 0x24d   : > { %v8479_v45 = vpop.f32.mrb[33].mxu1 }
 0x24e   : > { %v12124_v25 = vadd.f32 %v8479_v45, %v8478_v35  ;;  %v8481_v21 = vpop.f32.mrb[34].mxu1 }
 0x24f   : > { %v8482_v2 = vpop.f32.mrb[35].mxu1 }
 0x250   : > { %v12126_v5 = vadd.f32 %v8482_v2, %v8481_v21  ;;  %v9987_v21 = vld [vmem:[%s14091_s5 + $0x80] sm:$0xff]  }
 0x251   : > { %8042 = vmatmul.mubr.msk.bf16.gmra.mrb[140].mxu1 %vm14836_vm15, %v11929_v58  ;;  %9408 = vmatprep.subr.bf16.mxu0 %v9987_v21 }
 0x252   : > { %3739 = vmatprep.mubr.bf16.mxu1 %v11933_v33  ;;  %9409 = vmatpush3.bf16.msra.mxu0 %v9987_v21  ;;  %v3241_v21 = vpack.c.bf16 %v11960_v34, %v11936_v40 }
 0x254   : > { %v8484_v56 = vpop.f32.mrb[36].mxu1 }
 0x255   : > { %v8485_v46 = vpop.f32.mrb[37].mxu1 }
 0x256   : > { %v12132_v55 = vadd.f32 %v8485_v46, %v8484_v56  ;;  %v8487_v12 = vpop.f32.mrb[38].mxu1 }
 0x257   : > { %v8488_v39 = vpop.f32.mrb[39].mxu1 }
 0x258   : > { %v12134_v1 = vadd.f32 %v8488_v39, %v8487_v12 }
 0x259   : > { %8045 = vmatmul.mubr.msk.bf16.gmra.mrb[144].mxu1 %vm14843_vm3, %v11962_v20 }
 0x25a   : > { %3747 = vmatprep.mubr.bf16.mxu1 %v11966_v41 }
 0x25c   : > { %v8490_v57 = vpop.f32.mrb[40].mxu1 }
 0x25d   : > { %v8491_v15 = vpop.f32.mrb[41].mxu1 }
 0x25e   : > { %v12140_v62 = vadd.f32 %v8491_v15, %v8490_v57  ;;  %v8493_v58 = vpop.f32.mrb[42].mxu1  ;;  %v10061_v57 = vld [vmem:[#allocation2 + $0x100] sm:$0xff] }
 0x25f   : > { %v8494_v33 = vpop.f32.mrb[43].mxu1 }
 0x260   : > { %v12142_v16 = vadd.f32 %v8494_v33, %v8493_v58  ;;  %v9990_v58 = vld [vmem:[%s14091_s5 + $0x40] sm:$0xff]  }
 0x261   : > { %8048 = vmatmul.mubr.msk.bf16.gmra.mrb[148].mxu1 %vm14853_vm11, %v11989_v32  ;;  %v9988_v32 = vld [vmem:[%s14091_s5 + $0x88] sm:$0xff]   ;;  %v9991_v33 = vld [vmem:[%s14091_s5] sm:$0xff]   ;;  %8822 = vmatprep.subr.bf16.mxu1 %v9990_v58  ;;  %v14900_v58 = vrot.slane %v14845_v6, 7 }
 0x262   : > { %3755 = vmatprep.mubr.bf16.mxu1 %v11993_v3  ;;  %9410 = vmatprep.subr.bf16.mxu0 %v9988_v32  ;;  %v9996_v6 = vld [vmem:[%s14091_s5 + $0x48] sm:$0xff]  }
 0x263   : > { %9411 = vmatpush3.bf16.msra.mxu0 %v9988_v32  ;;  %8823 = vmatpush3.bf16.msra.mxu1 %v9991_v33 }
 0x264   : > { %v8496_v59 = vpop.f32.mrb[44].mxu1  ;;  %8824 = vmatprep.subr.bf16.mxu1 %v9996_v6 }
 0x265   : > { %v8497_v23 = vpop.f32.mrb[45].mxu1 }
 0x266   : > { %v12148_v35 = vadd.f32 %v8497_v23, %v8496_v59  ;;  %v8499_v20 = vpop.f32.mrb[46].mxu1  ;;  %v9992_v59 = vld [vmem:[%s14091_s5 + $0x98] sm:$0xff]  }
 0x267   : > { %v8500_v41 = vpop.f32.mrb[47].mxu1 }
 0x268   : > { %v12150_v45 = vadd.f32 %v8500_v41, %v8499_v20 }
 0x269   : > { %8051 = vmatmul.mubr.msk.bf16.gmra.mrb[152].mxu1 %vm14858_vm4, %v12007_v54  ;;  %v10062_v54 = vld [vmem:[#allocation2 + $0x108] sm:$0xff] }
 0x26a   : > { %3763 = vmatprep.mubr.bf16.mxu1 %v12011_v63  ;;  %v3240_v15 = vpack.c.bf16 %v10062_v54, %v10061_v57  ;;  %v9989_v63 = vld [vmem:[%s14091_s5 + $0x90] sm:$0xff]   ;;  %v9994_v54 = vld [vmem:[%s14091_s5 + $0xa8] sm:$0xff]  }
 0x26b   : > { %9412 = vmatprep.subr.bf16.mxu0 %v9989_v63 }
 0x26c   : > { %v8502_v3 = vpop.f32.mrb[48].mxu1  ;;  %9413 = vmatpush3.bf16.msra.mxu0 %v9989_v63 }
 0x26d   : > { %v8503_v2 = vpop.f32.mrb[49].mxu1  ;;  %9414 = vmatprep.subr.bf16.mxu0 %v9992_v59 }
 0x26e   : > { %v12162_v56 = vadd.f32 %v8503_v2, %v8502_v3  ;;  %v8505_v46 = vpop.f32.mrb[50].mxu1  ;;  %v3128_v2 = vrot.slane %v11936_v40, 7  ;;  %v14898_v40 = vrot.slane %v11960_v34, 7  ;;  %v9995_v34 = vld [vmem:[%s14091_s5 + $0xb0] sm:$0xff]  }
 0x26f   : > { %v8506_v12 = vpop.f32.mrb[51].mxu1 }
 0x270   : > { %v12164_v39 = vadd.f32 %v8506_v12, %v8505_v46  ;;  %9415 = vmatpush3.bf16.msra.mxu0 %v9992_v59  ;;  %v9993_v46 = vld [vmem:[%s14091_s5 + $0xa0] sm:$0xff]   ;;  %v14896_v12 = vld [vmem:[#allocation7_spill] sm:$0xff] }
 0x271   : > { %8054 = vmatmul.mubr.msk.bf16.gmra.mrb[156].mxu1 %vm14862_vm5, %v12024_v50  ;;  %v14897_v57 = vpack.c.bf16 %v14896_v12, %v14870_v30  ;;  %9416 = vmatprep.subr.bf16.mxu0 %v9993_v46  ;;  %vm14899_vm5 = vcmp.lt.s32.totalorder %v10201_v28, 1 }
 0x272   : > { %3771 = vmatprep.mubr.bf16.mxu1 %v3240_v15  ;;  %v3130_v63 = vsel %vm14899_vm5, %v3128_v2, %v14898_v40  ;;  %vm14901_vm4 = vmmov %vm14899_vm5 }
 0x273   : > { %v3131_v30 = vsel %vm14901_vm4, %v14900_v58, %v3128_v2  ;;  %v9998_v2 = vld [vmem:[%s14091_s5 + $0xb8] sm:$0xff]   ;;  %vm14927_vm4 = vcmp.lt.s32.totalorder %v10201_v28, 7 }
 0x274   : > { %v8508_v23 = vpop.f32.mrb[52].mxu1  ;;  %9417 = vmatpush3.bf16.msra.mxu0 %v9993_v46  ;;  %vm14928_vm5 = vmmov %vm14927_vm4 }
 0x275   : > { %v8509_v20 = vpop.f32.mrb[53].mxu1  ;;  %9418 = vmatprep.subr.bf16.mxu0 %v9994_v54 }
 0x276   : > { %v12181_v50 = vadd.f32 %v8509_v20, %v8508_v23  ;;  %v8511_v41 = vpop.f32.mrb[54].mxu1 }
 0x277   : > { %v8512_v32 = vpop.f32.mrb[55].mxu1 }
 0x278   : > { %v12185_v3 = vadd.f32 %v8512_v32, %v8511_v41  ;;  %v8059_v41 = vpack.c.bf16 %v3130_v63, %v3131_v30  ;;  %9419 = vmatpush3.bf16.msra.mxu0 %v9994_v54  ;;  %v9997_v32 = vld [vmem:[%s14091_s5 + $0x8] sm:$0xff]  }
 0x279   : > { %8057 = vmatmul.mubr.msk.bf16.gmra.mrb[160].mxu1 %vm11748_vm1, %v14897_v57  ;;  %9420 = vmatprep.subr.bf16.mxu0 %v9995_v34 }
 0x27a   : > { %3779 = vmatprep.mubr.bf16.mxu1 %v3241_v21  ;;  %8825 = vmatpush3.bf16.msra.mxu1 %v9997_v32 }
 0x27c   : > { %v8514_v15 = vpop.f32.mrb[56].mxu1  ;;  %9421 = vmatpush3.bf16.msra.mxu0 %v9995_v34 }
 0x27d   : > { %v8515_v33 = vpop.f32.mrb[57].mxu1  ;;  %9422 = vmatprep.subr.bf16.mxu0 %v9998_v2 }
 0x27e   : > { %v12207_v59 = vadd.f32 %v8515_v33, %v8514_v15  ;;  %v8517_v23 = vpop.f32.mrb[58].mxu1 }
 0x27f   : > { %v8518_v20 = vpop.f32.mrb[59].mxu1 }
 0x280   : > { %v12209_v21 = vadd.f32 %v8518_v20, %v8517_v23  ;;  %9423 = vmatpush3.bf16.msra.mxu0 %v9998_v2 }
 0x281   : > { %8060 = vmatmul.mubr.msk.bf16.gmra.mrb[164].mxu1 %vm11771_vm0, %v8059_v41 }
 0x283   : > { %v12225_v12 = vpop.f32.mrb[32].mxu0 }
 0x284   : > { %v8520_v46 = vpop.f32.mrb[60].mxu1  ;;  %v12227_v54 = vpop.f32.mrb[33].mxu0 }
 0x285   : > { %v8521_v57 = vpop.f32.mrb[61].mxu1  ;;  %v12231_v63 = vpop.f32.mrb[34].mxu0 }
 0x286   : > { %v12229_v15 = vadd.f32 %v8521_v57, %v8520_v46  ;;  %v8523_v40 = vpop.f32.mrb[62].mxu1  ;;  %v12233_v30 = vpop.f32.mrb[35].mxu0 }
 0x287   : > { %v8524_v58 = vpop.f32.mrb[63].mxu1 }
 0x288   : > { %v12235_v33 = vadd.f32 %v8524_v58, %v8523_v40  ;;  %v9999_v40 = vld [vmem:[%s14091_s5 + $0x50] sm:$0xff]  }
 0x289   : > { %v10000_v58 = vld [vmem:[%s14091_s5 + $0x10] sm:$0xff]   ;;  %8826 = vmatprep.subr.bf16.mxu1 %v9999_v40 }
 0x28a   : > { %8827 = vmatpush3.bf16.msra.mxu1 %v10000_v58 }
 0x28b   : > { %v12237_v20 = vpop.f32.mrb[36].mxu0 }
 0x28c   : > { %v8602_v23 = vpop.f32.mrb[64].mxu1  ;;  %v12239_v34 = vpop.f32.mrb[37].mxu0 }
 0x28d   : > { %v8603_v41 = vpop.f32.mrb[65].mxu1  ;;  %v12241_v32 = vpop.f32.mrb[38].mxu0 }
 0x28e   : > { %v8604_v6 = vadd.f32 %v8603_v41, %v8602_v23  ;;  %v8605_v8 = vpop.f32.mrb[66].mxu1  ;;  %v12243_v57 = vpop.f32.mrb[39].mxu0 }
 0x28f   : > { %v8606_v46 = vpop.f32.mrb[67].mxu1 }
 0x290   : > { %v12246_v36 = vadd.f32 %v8604_v6, %v12104_v11  ;;  %v8607_v14 = vadd.f32 %v8606_v46, %v8605_v8 }
 0x292   : > { %v12249_v2 = vadd.f32 %v8607_v14, %v12108_v22 }
 0x293   : > { %v12257_v41 = vpop.f32.mrb[40].mxu0 }
 0x294   : > { %14902 = vst [vmem:[#allocation35_spill] sm:$0xff] %v12249_v2  ;;  %v8608_v23 = vpop.f32.mrb[68].mxu1  ;;  %v12259_v42 = vpop.f32.mrb[41].mxu0 }
 0x295   : > { %v8609_v31 = vpop.f32.mrb[69].mxu1  ;;  %v12261_v14 = vpop.f32.mrb[42].mxu0 }
 0x296   : > { %v8610_v8 = vadd.f32 %v8609_v31, %v8608_v23  ;;  %v8611_v11 = vpop.f32.mrb[70].mxu1  ;;  %v12263_v6 = vpop.f32.mrb[43].mxu0 }
 0x297   : > { %v8612_v22 = vpop.f32.mrb[71].mxu1 }
 0x298   : > { %v12266_v46 = vadd.f32 %v8610_v8, %v12116_v37  ;;  %v8613_v51 = vadd.f32 %v8612_v22, %v8611_v11 }
 0x29a   : > { %v12269_v52 = vadd.f32 %v8613_v51, %v12118_v24  ;;  %v10001_v24 = vld [vmem:[%s14091_s5 + $0x58] sm:$0xff]  }
 0x29b   : > { %v12271_v40 = vpop.f32.mrb[44].mxu0  ;;  %8828 = vmatprep.subr.bf16.mxu1 %v10001_v24 }
 0x29c   : > { %14903 = vst [vmem:[#allocation28_spill] sm:$0xff] %v12269_v52  ;;  %v8614_v27 = vpop.f32.mrb[72].mxu1  ;;  %14904 = vst [vmem:[#allocation56_spill] sm:$0xff] %v12271_v40  ;;  %v12273_v7 = vpop.f32.mrb[45].mxu0 }
 0x29d   : > { %v8615_v60 = vpop.f32.mrb[73].mxu1  ;;  %v12275_v23 = vpop.f32.mrb[46].mxu0 }
 0x29e   : > { %v8616_v31 = vadd.f32 %v8615_v60, %v8614_v27  ;;  %v8617_v58 = vpop.f32.mrb[74].mxu1  ;;  %14905 = vst [vmem:[#allocation54_spill] sm:$0xff] %v12275_v23  ;;  %v12277_v2 = vpop.f32.mrb[47].mxu0  ;;  %v10002_v60 = vld [vmem:[%s14091_s5 + $0x18] sm:$0xff]  }
 0x29f   : > { %v8618_v44 = vpop.f32.mrb[75].mxu1  ;;  %8829 = vmatpush3.bf16.msra.mxu1 %v10002_v60 }
 0x2a0   : > { %v12280_v37 = vadd.f32 %v8616_v31, %v12124_v25  ;;  %v8619_v8 = vadd.f32 %v8618_v44, %v8617_v58 }
 0x2a2   : > { %14906 = vst [vmem:[#allocation26_spill] sm:$0xff] %v12280_v37  ;;  %v12283_v51 = vadd.f32 %v8619_v8, %v12126_v5 }
 0x2a3   : > { %v12291_v11 = vpop.f32.mrb[48].mxu0 }
 0x2a4   : > { %14907 = vst [vmem:[#allocation12_spill] sm:$0xff] %v12283_v51  ;;  %v8620_v27 = vpop.f32.mrb[76].mxu1  ;;  %14908 = vst [vmem:[#allocation25_spill] sm:$0xff] %v12291_v11  ;;  %v12293_v23 = vpop.f32.mrb[49].mxu0 }
 0x2a5   : > { %v8621_v22 = vpop.f32.mrb[77].mxu1  ;;  %14909 = vst [vmem:[#allocation19_spill] sm:$0xff] %v12293_v23  ;;  %v12295_v5 = vpop.f32.mrb[50].mxu0 }
 0x2a6   : > { %v8622_v44 = vadd.f32 %v8621_v22, %v8620_v27  ;;  %v8623_v25 = vpop.f32.mrb[78].mxu1  ;;  %14910 = vst [vmem:[#allocation46_spill] sm:$0xff] %v12295_v5  ;;  %v12297_v58 = vpop.f32.mrb[51].mxu0 }
 0x2a7   : > { %v8624_v31 = vpop.f32.mrb[79].mxu1 }
 0x2a8   : > { %v12300_v8 = vadd.f32 %v8622_v44, %v12132_v55  ;;  %v8625_v51 = vadd.f32 %v8624_v31, %v8623_v25 }
 0x2aa   : > { %v12303_v37 = vadd.f32 %v8625_v51, %v12134_v1  ;;  %v10003_v51 = vld [vmem:[%s14091_s5 + $0x60] sm:$0xff]  }
 0x2ab   : > { %v12305_v24 = vpop.f32.mrb[52].mxu0  ;;  %8830 = vmatprep.subr.bf16.mxu1 %v10003_v51 }
 0x2ac   : > { %v8626_v11 = vpop.f32.mrb[80].mxu1  ;;  %14911 = vst [vmem:[#allocation31_spill] sm:$0xff] %v12305_v24  ;;  %v12307_v23 = vpop.f32.mrb[53].mxu0 }
 0x2ad   : > { %v8627_v52 = vpop.f32.mrb[81].mxu1  ;;  %v12309_v22 = vpop.f32.mrb[54].mxu0 }
 0x2ae   : > { %v8628_v60 = vadd.f32 %v8627_v52, %v8626_v11  ;;  %v8629_v27 = vpop.f32.mrb[82].mxu1  ;;  %14912 = vst [vmem:[#allocation6_spill] sm:$0xff] %v12309_v22  ;;  %v12311_v40 = vpop.f32.mrb[55].mxu0  ;;  %v10004_v52 = vld [vmem:[%s14091_s5 + $0x20] sm:$0xff]  }
 0x2af   : > { %v8630_v5 = vpop.f32.mrb[83].mxu1  ;;  %8831 = vmatpush3.bf16.msra.mxu1 %v10004_v52 }
 0x2b0   : > { %v12314_v55 = vadd.f32 %v8628_v60, %v12140_v62  ;;  %v8631_v44 = vadd.f32 %v8630_v5, %v8629_v27 }
 0x2b2   : > { %v12317_v1 = vadd.f32 %v8631_v44, %v12142_v16 }
 0x2b3   : > { %v12325_v25 = vpop.f32.mrb[56].mxu0 }
 0x2b4   : > { %v8632_v11 = vpop.f32.mrb[84].mxu1  ;;  %14913 = vst [vmem:[#allocation43_spill] sm:$0xff] %v12325_v25  ;;  %v12327_v22 = vpop.f32.mrb[57].mxu0  ;;  %v12339_v25 = vld [vmem:[%s14091_s5 + $0x140] sm:$0xff]  }
 0x2b5   : > { %v8633_v31 = vpop.f32.mrb[85].mxu1  ;;  %14914 = vst [vmem:[#allocation29_spill] sm:$0xff] %v12327_v22  ;;  %v12329_v16 = vpop.f32.mrb[58].mxu0  ;;  %9456 = vmatprep.subr.bf16.mxu0 %v12339_v25 }
 0x2b6   : > { %v8634_v62 = vadd.f32 %v8633_v31, %v8632_v11  ;;  %v8635_v5 = vpop.f32.mrb[86].mxu1  ;;  %14915 = vst [vmem:[#allocation14_spill] sm:$0xff] %v12329_v16  ;;  %v12331_v27 = vpop.f32.mrb[59].mxu0 }
 0x2b7   : > { %v8636_v60 = vpop.f32.mrb[87].mxu1  ;;  %14916 = vst [vmem:[#allocation36_spill] sm:$0xff] %v12331_v27 }
 0x2b8   : > { %v12334_v44 = vadd.f32 %v8634_v62, %v12148_v35  ;;  %v8637_v24 = vadd.f32 %v8636_v60, %v8635_v5 }
 0x2ba   : > { %14917 = vst [vmem:[#allocation20_spill] sm:$0xff] %v12334_v44  ;;  %v12342_v51 = vadd.f32 %v8637_v24, %v12150_v45 }
 0x2bb   : > { %v12345_v11 = vpop.f32.mrb[60].mxu0 }
 0x2bc   : > { %14918 = vst [vmem:[#allocation55_spill] sm:$0xff] %v12342_v51  ;;  %v8638_v52 = vpop.f32.mrb[88].mxu1  ;;  %14919 = vst [vmem:[#allocation42_spill] sm:$0xff] %v12345_v11  ;;  %v12347_v16 = vpop.f32.mrb[61].mxu0  ;;  %v10007_v11 = vld [vmem:[%s14091_s5 + $0x68] sm:$0xff]  }
 0x2bd   : > { %v8639_v31 = vpop.f32.mrb[89].mxu1  ;;  %14920 = vst [vmem:[#allocation22_spill] sm:$0xff] %v12347_v16  ;;  %v12349_v62 = vpop.f32.mrb[62].mxu0  ;;  %8832 = vmatprep.subr.bf16.mxu1 %v10007_v11 }
 0x2be   : > { %v8640_v27 = vadd.f32 %v8639_v31, %v8638_v52  ;;  %v8641_v35 = vpop.f32.mrb[90].mxu1  ;;  %14921 = vst [vmem:[#allocation63_spill] sm:$0xff] %v12349_v62  ;;  %v12351_v60 = vpop.f32.mrb[63].mxu0  ;;  %v10008_v52 = vld [vmem:[%s14091_s5 + $0x28] sm:$0xff]  }
 0x2bf   : > { %v8642_v5 = vpop.f32.mrb[91].mxu1  ;;  %14922 = vst [vmem:[#allocation13_spill] sm:$0xff] %v12351_v60  ;;  %8833 = vmatpush3.bf16.msra.mxu1 %v10008_v52 }
 0x2c0   : > { %v12354_v22 = vadd.f32 %v8640_v27, %v12162_v56  ;;  %v8643_v45 = vadd.f32 %v8642_v5, %v8641_v35 }
 0x2c2   : > { %14923 = vst [vmem:[#allocation51_spill] sm:$0xff] %v12354_v22  ;;  %v12357_v24 = vadd.f32 %v8643_v45, %v12164_v39 }
 0x2c4   : > { %14924 = vst [vmem:[#allocation33_spill] sm:$0xff] %v12357_v24  ;;  %v8644_v31 = vpop.f32.mrb[92].mxu1 }
 0x2c5   : > { %v8645_v62 = vpop.f32.mrb[93].mxu1 }
 0x2c6   : > { %v8646_v60 = vadd.f32 %v8645_v62, %v8644_v31  ;;  %v8647_v16 = vpop.f32.mrb[94].mxu1 }
 0x2c7   : > { %v8648_v56 = vpop.f32.mrb[95].mxu1 }
 0x2c8   : > { %v12366_v27 = vadd.f32 %v8646_v60, %v12181_v50  ;;  %v8649_v39 = vadd.f32 %v8648_v56, %v8647_v16  ;;  %v10011_v50 = vld [vmem:[%s14091_s5 + $0x70] sm:$0xff]  }
 0x2c9   : > { %8834 = vmatprep.subr.bf16.mxu1 %v10011_v50 }
 0x2ca   : > { %v12369_v35 = vadd.f32 %v8649_v39, %v12185_v3  ;;  %v10012_v3 = vld [vmem:[%s14091_s5 + $0x30] sm:$0xff]  }
 0x2cb   : > { %8835 = vmatpush3.bf16.msra.mxu1 %v10012_v3  ;;  %v12392_v3 = vld [vmem:[#allocation2 + $0x8] sm:$0xff] }
 0x2cc   : > { %v8650_v5 = vpop.f32.mrb[96].mxu1 }
 0x2cd   : > { %v8651_v45 = vpop.f32.mrb[97].mxu1 }
 0x2ce   : > { %v8652_v24 = vadd.f32 %v8651_v45, %v8650_v5  ;;  %v8653_v22 = vpop.f32.mrb[98].mxu1 }
 0x2cf   : > { %v8654_v51 = vpop.f32.mrb[99].mxu1 }
 0x2d0   : > { %v12372_v44 = vadd.f32 %v8652_v24, %v12207_v59  ;;  %v8655_v11 = vadd.f32 %v8654_v51, %v8653_v22 }
 0x2d2   : > { %v12375_v62 = vadd.f32 %v8655_v11, %v12209_v21 }
 0x2d4   : > { %14925 = vst [vmem:[#allocation30_spill] sm:$0xff] %v12375_v62  ;;  %v8656_v16 = vpop.f32.mrb[100].mxu1  ;;  %v12390_v62 = vld [vmem:[#allocation2] sm:$0xff] }
 0x2d5   : > { %v8657_v60 = vpop.f32.mrb[101].mxu1 }
 0x2d6   : > { %v8658_v52 = vadd.f32 %v8657_v60, %v8656_v16  ;;  %v8659_v31 = vpop.f32.mrb[102].mxu1  ;;  %v10015_v60 = vld [vmem:[%s14091_s5 + $0x78] sm:$0xff]  }
 0x2d7   : > { %v8660_v59 = vpop.f32.mrb[103].mxu1  ;;  %8836 = vmatprep.subr.bf16.mxu1 %v10015_v60 }
 0x2d8   : > { %v12384_v22 = vadd.f32 %v8658_v52, %v12229_v15  ;;  %v8661_v21 = vadd.f32 %v8660_v59, %v8659_v31  ;;  %v12397_v15 = vld [vmem:[%s14090_s4] ss:$0 sm:$0xff]  ;;  %v4340_v52 = vpack.c.bf16 %v12392_v3, %v12390_v62  ;;  %v14321_v31 = vrot.slane %v12390_v62, 1 }
 0x2d9   : > { %v4373_v59 = vrot.slane %v12392_v3, 1 }
 0x2da   : > { %v12387_v51 = vadd.f32 %v8661_v21, %v12235_v33  ;;  %4772 = vmatprep.mubr.bf16.mxu1 %v4340_v52  ;;  %v14326_v52 = vrot.slane %v12392_v3, 7 }
 0x2dc   : > { %v8702_v24 = vpop.f32.mrb[104].mxu1 }
 0x2dd   : > { %v8703_v56 = vpop.f32.mrb[105].mxu1 }
 0x2de   : > { %v8704_v39 = vadd.f32 %v8703_v56, %v8702_v24  ;;  %v8705_v5 = vpop.f32.mrb[106].mxu1 }
 0x2df   : > { %v8706_v45 = vpop.f32.mrb[107].mxu1 }
 0x2e0   : > { %v9572_v11 = vadd.f32 %v12065_v49, %v8704_v39  ;;  %v8707_v50 = vadd.f32 %v8706_v45, %v8705_v5  ;;  %v10016_v49 = vld [vmem:[%s14091_s5 + $0x38] sm:$0xff]  }
 0x2e1   : > { %8837 = vmatpush3.bf16.msra.mxu1 %v10016_v49 }
 0x2e2   : > { %v9573_v33 = vadd.f32 %v9572_v11, %v12227_v54  ;;  %v9578_v16 = vadd.f32 %v12069_v26, %v8707_v50  ;;  %v10019_v54 = vld [vmem:[%s14091_s5 + $0x100] sm:$0xff]  }
 0x2e3   : > { %8958 = vmatprep.subr.bf16.mxu1 %v10019_v54 }
 0x2e4   : > { %v4084_v26 = vadd.f32 %v9573_v33, %v12397_v15  ;;  %v9579_v21 = vadd.f32 %v9578_v16, %v12233_v30  ;;  %v8708_v24 = vpop.f32.mrb[108].mxu1  ;;  %v4434_v33 = vsel %vm14927_vm4, %v14321_v31, %v4373_v59 }
 0x2e5   : > { %v8709_v56 = vpop.f32.mrb[109].mxu1 }
 0x2e6   : > { %v12416_v39 = vmax.f32 %v4084_v26, 0.0  ;;  %v4085_v5 = vadd.f32 %v9579_v21, %v12397_v15  ;;  %v8710_v45 = vadd.f32 %v8709_v56, %v8708_v24  ;;  %v8711_v11 = vpop.f32.mrb[110].mxu1 }
 0x2e7   : > { %v8712_v50 = vpop.f32.mrb[111].mxu1 }
 0x2e8   : > { %14926 = vst [vmem:[#allocation21_spill] sm:$0xff] %v12416_v39  ;;  %4148 = vst [vmem:[#allocation2 + $0x10] sm:$0xff] %v12416_v39  ;;  %v12424_v30 = vmax.f32 %v4085_v5, 0.0  ;;  %v9569_v16 = vadd.f32 %v12072_v47, %v8710_v45  ;;  %v8713_v60 = vadd.f32 %v8712_v50, %v8711_v11  ;;  %v4374_v49 = vrot.slane %v12416_v39, 1 }
 0x2e9   : > { %v4214_v26 = vrot.slane %v12416_v39, 7 }
 0x2ea   : > { %4149 = vst [vmem:[#allocation2 + $0x18] sm:$0xff] %v12424_v30  ;;  %v9570_v54 = vadd.f32 %v9569_v16, %v12225_v12  ;;  %v9575_v21 = vadd.f32 %v12077_v4, %v8713_v60  ;;  %v4375_v24 = vrot.slane %v12424_v30, 1  ;;  %v4433_v56 = vsel %vm14928_vm5, %v4373_v59, %v4374_v49 }
 0x2eb   : > { %v8158_v5 = vpack.c.bf16 %v4433_v56, %v4434_v33  ;;  %v4215_v45 = vrot.slane %v12424_v30, 7  ;;  %vm14929_vm5 = vcmp.lt.s32.totalorder %v10201_v28, 1 }
 0x2ec   : > { %v4086_v11 = vadd.f32 %v9570_v54, %v12397_v15  ;;  %v9576_v50 = vadd.f32 %v9575_v21, %v12231_v63  ;;  %v8714_v31 = vpop.f32.mrb[112].mxu1  ;;  %v4432_v12 = vsel %vm14927_vm4, %v4374_v49, %v4375_v24  ;;  %vm14931_vm0 = vmmov %vm14929_vm5 }
 0x2ed   : > { %v8715_v4 = vpop.f32.mrb[113].mxu1  ;;  %9424 = vmatprep.mubr.msk.bf16.mxu0 %vm10344_vm8, %v8158_v5  ;;  %v12447_v59 = vsel %vm14929_vm5, %v4214_v26, %v4215_v45  ;;  %v12453_v33 = vsel %vm14931_vm0, %v14326_v52, %v4214_v26  ;;  %vm14934_vm0 = vmmov %vm14927_vm4  ;;  %vm14937_vm5 = vnez %v14720_v18 }
 0x2ee   : > { %14930 = vst [vmem:[#allocation39_spill] sm:$0xff] %v12447_v59  ;;  %14932 = vst [vmem:[#allocation17_spill] sm:$0xff] %v12453_v33  ;;  %v4118_v16 = vmax.f32 %v4086_v11, 0.0  ;;  %v4087_v63 = vadd.f32 %v9576_v50, %v12397_v15  ;;  %v8716_v60 = vadd.f32 %v8715_v4, %v8714_v31  ;;  %v8717_v54 = vpop.f32.mrb[114].mxu1 }
 0x2ef   : > { %v8718_v21 = vpop.f32.mrb[115].mxu1  ;;  %v12468_v49 = vld [vmem:[#allocation2 + $0x10] sm:$0xff]  ;;  %vm14936_vm4 = vmmov %vm14934_vm0 }
 0x2f0   : > { %4150 = vst [vmem:[#allocation2 + $0x20] sm:$0xff] %v4118_v16  ;;  %v4119_v56 = vmax.f32 %v4087_v63, 0.0  ;;  %v9584_v5 = vadd.f32 %v12080_v61, %v8716_v60  ;;  %v8719_v47 = vadd.f32 %v8718_v21, %v8717_v54  ;;  %v12459_v19 = vrot.slane %v4118_v16, 1  ;;  %v10006_v61 = vld [vmem:[%s14091_s5 + $0x148] sm:$0xff]  }
 0x2f1   : > { %v12461_v39 = vld [vmem:[#allocation2 + $0x18] sm:$0xff]  ;;  %v4216_v26 = vrot.slane %v4118_v16, 7 }
 0x2f2   : > { %14933 = vst [vmem:[#allocation41_spill] sm:$0xff] %v12461_v39  ;;  %4151 = vst [vmem:[#allocation2 + $0x28] sm:$0xff] %v4119_v56  ;;  %v9585_v11 = vadd.f32 %v9584_v5, %v12239_v34  ;;  %v9590_v31 = vadd.f32 %v12085_v29, %v8719_v47  ;;  %v4431_v50 = vsel %vm14934_vm0, %v4375_v24, %v12459_v19  ;;  %v4377_v4 = vrot.slane %v4119_v56, 1 }
 0x2f3   : > { %v8161_v63 = vpack.c.bf16 %v4431_v50, %v4432_v12  ;;  %v5127_v60 = vrot.slane %v12461_v39, 7  ;;  %v12474_v54 = vpack.c.bf16 %v4119_v56, %v4118_v16  ;;  %v4217_v21 = vrot.slane %v4119_v56, 7 }
 0x2f4   : > { %v4088_v34 = vadd.f32 %v9585_v11, %v12397_v15  ;;  %v9591_v29 = vadd.f32 %v9590_v31, %v12243_v57  ;;  %v8720_v47 = vpop.f32.mrb[116].mxu1  ;;  %v4430_v24 = vsel %vm14936_vm4, %v12459_v19, %v4377_v4  ;;  %v14332_v12 = vrot.slane %v12468_v49, 7 }
 0x2f5   : > { %14935 = vst [vmem:[#allocation23_spill] sm:$0xff] %v12474_v54  ;;  %v8721_v5 = vpop.f32.mrb[117].mxu1  ;;  %9425 = vmatmul.mubr.msk.bf16.vlgmr.msra.gmra.mrb[88].mxu0 %vm14937_vm5, %v8161_v63  ;;  %vm14938_vm0 = vcmp.lt.s32.totalorder %v10201_v28, 1  ;;  %v10009_v63 = vld [vmem:[%s14091_s5 + $0x150] sm:$0xff]   ;;  %v10013_v54 = vld [vmem:[%s14091_s5 + $0x160] sm:$0xff]  }
 0x2f6   : > { %v12486_v16 = vsel %vm14938_vm0, %v4215_v45, %v4216_v26  ;;  %v4120_v57 = vmax.f32 %v4088_v34, 0.0  ;;  %v4089_v31 = vadd.f32 %v9591_v29, %v12397_v15  ;;  %v8722_v50 = vadd.f32 %v8721_v5, %v8720_v47  ;;  %v8723_v52 = vpop.f32.mrb[118].mxu1  ;;  %9457 = vmatpush3.bf16.msra.mxu0 %v12339_v25  ;;  %vm14939_vm4 = vmmov %vm14938_vm0 }
 0x2f7   : > { %v8724_v56 = vpop.f32.mrb[119].mxu1  ;;  %9458 = vmatprep.subr.bf16.mxu0 %v10006_v61  ;;  %v12497_v45 = vsel %vm14939_vm4, %v4216_v26, %v4217_v21  ;;  %v12503_v34 = vsel %vm14938_vm0, %v14332_v12, %v5127_v60  ;;  %vm14940_vm1 = vmmov %vm14938_vm0  ;;  %vm14942_vm4 = vcmp.lt.s32.totalorder %v10201_v28, 7 }
 0x2f8   : > { %v12507_v29 = vsel %vm14940_vm1, %v5127_v60, %v4216_v26  ;;  %4152 = vst [vmem:[#allocation2 + $0x30] sm:$0xff] %v4120_v57  ;;  %v4121_v25 = vmax.f32 %v4089_v31, 0.0  ;;  %v9581_v47 = vadd.f32 %v12088_v17, %v8722_v50  ;;  %v8725_v5 = vadd.f32 %v8724_v56, %v8723_v52  ;;  %v12516_v60 = vld [vmem:[#allocation2 + $0x20] sm:$0xff]  ;;  %v10010_v52 = vld [vmem:[%s14091_s5 + $0x158] sm:$0xff]   ;;  %vm14945_vm1 = vmmov %vm14938_vm0 }
 0x2f9   : > { %14941 = vst [vmem:[#allocation7_spill] sm:$0xff] %v12507_v29  ;;  %v4378_v11 = vrot.slane %v4120_v57, 1  ;;  %v4218_v18 = vrot.slane %v4120_v57, 7  ;;  %14943 = vst [vmem:[#allocation65_spill] sm:$0xff] %v12516_v60  ;;  %v12518_v31 = vld [vmem:[#allocation2 + $0x28] sm:$0xff] }
 0x2fa   : > { %4153 = vst [vmem:[#allocation2 + $0x38] sm:$0xff] %v4121_v25  ;;  %v9582_v33 = vadd.f32 %v9581_v47, %v12237_v20  ;;  %v9587_v12 = vadd.f32 %v12093_v43, %v8725_v5  ;;  %v4379_v26 = vrot.slane %v4121_v25, 1  ;;  %9459 = vmatpush3.bf16.msra.mxu0 %v10006_v61  ;;  %v12525_v50 = vpack.c.bf16 %v4121_v25, %v4120_v57  ;;  %vm14946_vm0 = vmmov %vm14942_vm4 }
 0x2fb   : > { %v4429_v59 = vsel %vm14942_vm4, %v4377_v4, %v4378_v11  ;;  %9460 = vmatprep.subr.bf16.mxu0 %v10009_v63  ;;  %v4219_v20 = vrot.slane %v4121_v25, 7  ;;  %v4269_v43 = vsel %vm14945_vm1, %v4217_v21, %v4218_v18  ;;  %vm14947_vm4 = vnez %v14723_v13  ;;  %vm14948_vm11 = vmmov %vm14945_vm1 }
 0x2fc   : > { %v12520_v17 = vpack.c.bf16 %v4429_v59, %v4430_v24  ;;  %14944 = vst [vmem:[#allocation66_spill] sm:$0xff] %v12525_v50  ;;  %v4090_v4 = vadd.f32 %v9582_v33, %v12397_v15  ;;  %v9588_v61 = vadd.f32 %v9587_v12, %v12241_v32  ;;  %v8726_v56 = vpop.f32.mrb[120].mxu1  ;;  %v4428_v59 = vsel %vm14946_vm0, %v4378_v11, %v4379_v26  ;;  %vm14952_vm1 = vmmov %vm14946_vm0 }
 0x2fd   : > { %v8727_v24 = vpop.f32.mrb[121].mxu1  ;;  %v4268_v57 = vsel %vm14948_vm11, %v4218_v18, %v4219_v20  ;;  %v14338_v25 = vrot.slane %v12516_v60, 1  ;;  %v6266_v21 = vrot.slane %v12518_v31, 1  ;;  %vm14950_vm11 = vmmov %vm14946_vm0  ;;  %vm14953_vm0 = vcmp.lt.s32.totalorder %v10201_v28, 1 }
 0x2fe   : > { %9428 = vmatprep.mubr.msk.bf16.mxu0 %vm14947_vm4, %v12520_v17  ;;  %v4122_v47 = vmax.f32 %v4090_v4, 0.0  ;;  %v4091_v33 = vadd.f32 %v9588_v61, %v12397_v15  ;;  %v8728_v32 = vadd.f32 %v8727_v24, %v8726_v56  ;;  %v8729_v12 = vpop.f32.mrb[122].mxu1  ;;  %9461 = vmatpush3.bf16.msra.mxu0 %v10009_v63  ;;  %v12541_v5 = vpack.c.bf16 %v4268_v57, %v4269_v43  ;;  %vm14956_vm3 = vmmov %vm14953_vm0 }
 0x2ff   : > { %v8730_v11 = vpop.f32.mrb[123].mxu1  ;;  %9462 = vmatprep.subr.bf16.mxu0 %v10010_v52  ;;  %v6075_v50 = vld [vmem:[#allocation2 + $0x30] sm:$0xff]  ;;  %v12552_v31 = vsel %vm14950_vm11, %v14338_v25, %v6266_v21  ;;  %vm14954_vm11 = vmmov %vm14952_vm1 }
 0x300   : > { %14949 = vst [vmem:[#allocation67_spill] sm:$0xff] %v12541_v5  ;;  %14951 = vst [vmem:[#allocation68_spill] sm:$0xff] %v12552_v31  ;;  %v4123_v63 = vmax.f32 %v4091_v33, 0.0  ;;  %v9596_v43 = vadd.f32 %v12096_v53, %v8728_v32  ;;  %v8731_v4 = vadd.f32 %v8730_v11, %v8729_v12  ;;  %v4380_v61 = vrot.slane %v4122_v47, 1  ;;  %v10014_v53 = vld [vmem:[%s14091_s5 + $0x168] sm:$0xff]  }
 0x301   : > { %4154 = vst [vmem:[#allocation2 + $0x40] sm:$0xff] %v4122_v47  ;;  %v4220_v56 = vrot.slane %v4122_v47, 7  ;;  %v6267_v24 = vrot.slane %v6075_v50, 1  ;;  %v6076_v25 = vld [vmem:[#allocation2 + $0x38] sm:$0xff] }
 0x302   : > { %4155 = vst [vmem:[#allocation2 + $0x48] sm:$0xff] %v4123_v63  ;;  %v9597_v57 = vadd.f32 %v9596_v43, %v12259_v42  ;;  %v9602_v5 = vadd.f32 %v12101_v9, %v8731_v4  ;;  %v4427_v18 = vsel %vm14952_vm1, %v4379_v26, %v4380_v61  ;;  %v4381_v60 = vrot.slane %v4123_v63, 1  ;;  %9463 = vmatpush3.bf16.msra.mxu0 %v10010_v52  ;;  %v10017_v43 = vld [vmem:[%s14091_s5 + $0x170] sm:$0xff]  }
 0x303   : > { %v12559_v29 = vpack.c.bf16 %v4427_v18, %v4428_v59  ;;  %9464 = vmatprep.subr.bf16.mxu0 %v10013_v54  ;;  %v12564_v33 = vpack.c.bf16 %v4123_v63, %v4122_v47  ;;  %v4221_v50 = vrot.slane %v4123_v63, 7  ;;  %v4267_v42 = vsel %vm14953_vm0, %v4219_v20, %v4220_v56  ;;  %vm14958_vm0 = vmmov %vm14954_vm11 }
 0x304   : > { %v4092_v9 = vadd.f32 %v9597_v57, %v12397_v15  ;;  %v9603_v26 = vadd.f32 %v9602_v5, %v12263_v6  ;;  %v8732_v32 = vpop.f32.mrb[124].mxu1  ;;  %v4426_v52 = vsel %vm14954_vm11, %v4380_v61, %v4381_v60  ;;  %vm14955_vm1 = vnez %v14731_v48  ;;  %vm14962_vm11 = vmmov %vm14958_vm0 }
 0x305   : > { %v8733_v59 = vpop.f32.mrb[125].mxu1  ;;  %9429 = vmatmul.mubr.msk.bf16.gmra.mrb[92].mxu0 %vm14955_vm1, %v12559_v29  ;;  %v4266_v47 = vsel %vm14956_vm3, %v4220_v56, %v4221_v50  ;;  %v6268_v12 = vrot.slane %v6076_v25, 1  ;;  %vm14960_vm3 = vmmov %vm14958_vm0 }
 0x306   : > { %v4124_v11 = vmax.f32 %v4092_v9, 0.0  ;;  %v4093_v20 = vadd.f32 %v9603_v26, %v12397_v15  ;;  %v8734_v18 = vadd.f32 %v8733_v59, %v8732_v32  ;;  %v8735_v63 = vpop.f32.mrb[126].mxu1  ;;  %9465 = vmatpush3.bf16.msra.mxu0 %v10013_v54  ;;  %v12578_v6 = vpack.c.bf16 %v4266_v47, %v4267_v42 }
 0x307   : > { %v8736_v5 = vpop.f32.mrb[127].mxu1  ;;  %9466 = vmatprep.subr.bf16.mxu0 %v10014_v53  ;;  %v12585_v4 = vsel %vm14958_vm0, %v6267_v24, %v6268_v12  ;;  %v12591_v25 = vsel %vm14960_vm3, %v6266_v21, %v6267_v24  ;;  %vm14963_vm0 = vcmp.lt.s32.totalorder %v10201_v28, 1 }
 0x308   : > { %14957 = vst [vmem:[#allocation69_spill] sm:$0xff] %v12578_v6  ;;  %14959 = vst [vmem:[#allocation70_spill] sm:$0xff] %v12585_v4  ;;  %v12587_v61 = vld [vmem:[#allocation2 + $0x40] sm:$0xff]  ;;  %v4125_v54 = vmax.f32 %v4093_v20, 0.0  ;;  %v9593_v56 = vadd.f32 %v12106_v0, %v8734_v18  ;;  %v8737_v57 = vadd.f32 %v8736_v5, %v8735_v63  ;;  %v4382_v42 = vrot.slane %v4124_v11, 1  ;;  %v10018_v0 = vld [vmem:[%s14091_s5 + $0x178] sm:$0xff]  }
 0x309   : > { %14961 = vst [vmem:[#allocation71_spill] sm:$0xff] %v12591_v25  ;;  %4156 = vst [vmem:[#allocation2 + $0x50] sm:$0xff] %v4124_v11  ;;  %v4222_v9 = vrot.slane %v4124_v11, 7  ;;  %v14343_v26 = vrot.slane %v12587_v61, 1  ;;  %v14999_v25 = vld [vmem:[#allocation19_spill] sm:$0xff] }
 0x30a   : > { %4157 = vst [vmem:[#allocation2 + $0x58] sm:$0xff] %v4125_v54  ;;  %v9594_v32 = vadd.f32 %v9593_v56, %v12257_v41  ;;  %v9599_v59 = vadd.f32 %v12113_v10, %v8737_v57  ;;  %v4425_v47 = vsel %vm14962_vm11, %v4381_v60, %v4382_v42  ;;  %v4383_v6 = vrot.slane %v4125_v54, 1  ;;  %9467 = vmatpush3.bf16.msra.mxu0 %v10014_v53  ;;  %vm14965_vm15 = vmmov %vm14963_vm0  ;;  %v6078_v57 = vld [vmem:[#allocation2 + $0x48] sm:$0xff] }
 0x30b   : > { %v12599_v21 = vpack.c.bf16 %v4425_v47, %v4426_v52  ;;  %9468 = vmatprep.subr.bf16.mxu0 %v10017_v43  ;;  %v12604_v24 = vpack.c.bf16 %v4125_v54, %v4124_v11  ;;  %v4223_v20 = vrot.slane %v4125_v54, 7  ;;  %v4265_v41 = vsel %vm14963_vm0, %v4221_v50, %v4222_v9  ;;  %vm14966_vm0 = vmmov %vm14960_vm3 }
 0x30c   : > { %v4094_v10 = vadd.f32 %v9594_v32, %v12397_v15  ;;  %v9600_v18 = vadd.f32 %v9599_v59, %v12261_v14  ;;  %v8738_v60 = vpop.f32.mrb[128].mxu1  ;;  %v4424_v53 = vsel %vm14960_vm3, %v4382_v42, %v4383_v6  ;;  %vm14964_vm11 = vnez %v14733_v38 }
 0x30d   : > { %v8739_v52 = vpop.f32.mrb[129].mxu1  ;;  %9432 = vmatprep.mubr.msk.bf16.mxu0 %vm14964_vm11, %v12599_v21  ;;  %v4264_v11 = vsel %vm14965_vm15, %v4222_v9, %v4223_v20  ;;  %v12621_v50 = vsel %vm14966_vm0, %v6268_v12, %v14343_v26  ;;  %v10021_v9 = vld [vmem:[%s14091_s5 + $0x1c0] sm:$0xff]   ;;  %v14969_v26 = vld [vmem:[#allocation35_spill] sm:$0xff]  ;;  %vm14970_vm15 = vmmov %vm14966_vm0  ;;  %vm14972_vm3 = vcmp.lt.s32.totalorder %v10201_v28, 1 }
 0x30e   : > { %14967 = vst [vmem:[#allocation72_spill] sm:$0xff] %v12621_v50  ;;  %v4126_v63 = vmax.f32 %v4094_v10, 0.0  ;;  %v4095_v14 = vadd.f32 %v9600_v18, %v12397_v15  ;;  %v8740_v5 = vadd.f32 %v8739_v52, %v8738_v60  ;;  %v8741_v54 = vpop.f32.mrb[130].mxu1  ;;  %9469 = vmatpush3.bf16.msra.mxu0 %v10017_v43  ;;  %v12624_v56 = vpack.c.bf16 %v4264_v11, %v4265_v41  ;;  %vm14975_vm6 = vmmov %vm14972_vm3 }
 0x30f   : > { %v8742_v42 = vpop.f32.mrb[131].mxu1  ;;  %9470 = vmatprep.subr.bf16.mxu0 %v10018_v0  ;;  %v6270_v60 = vrot.slane %v6078_v57, 1 }
 0x310   : > { %14968 = vst [vmem:[#allocation73_spill] sm:$0xff] %v12624_v56  ;;  %v6079_v12 = vld [vmem:[#allocation2 + $0x50] sm:$0xff]  ;;  %4158 = vst [vmem:[#allocation2 + $0x60] sm:$0xff] %v4126_v63  ;;  %v4127_v47 = vmax.f32 %v4095_v14, 0.0  ;;  %v9608_v43 = vadd.f32 %v12246_v36, %v8740_v5  ;;  %v8743_v41 = vadd.f32 %v8742_v42, %v8741_v54  ;;  %v4384_v10 = vrot.slane %v4126_v63, 1 }
 0x311   : > { %v4224_v18 = vrot.slane %v4126_v63, 7  ;;  %v6271_v52 = vrot.slane %v6079_v12, 1  ;;  %v6080_v59 = vld [vmem:[#allocation2 + $0x58] sm:$0xff] }
 0x312   : > { %4159 = vst [vmem:[#allocation2 + $0x68] sm:$0xff] %v4127_v47  ;;  %v9609_v11 = vadd.f32 %v9608_v43, %v12273_v7  ;;  %v9614_v56 = vadd.f32 %v14969_v26, %v8743_v41  ;;  %v4423_v32 = vsel %vm14970_vm15, %v4383_v6, %v4384_v10  ;;  %v4385_v4 = vrot.slane %v4127_v47, 1  ;;  %9471 = vmatpush3.bf16.msra.mxu0 %v10018_v0  ;;  %v14973_v0 = vld [vmem:[#allocation27_spill] sm:$0xff] }
 0x313   : > { %v12638_v50 = vpack.c.bf16 %v4423_v32, %v4424_v53  ;;  %9094 = vmatprep.subr.bf16.mxu0 %v10021_v9  ;;  %v12640_v36 = vpack.c.bf16 %v4127_v47, %v4126_v63  ;;  %v4225_v14 = vrot.slane %v4127_v47, 7  ;;  %v4263_v5 = vsel %vm14972_vm3, %v4223_v20, %v4224_v18  ;;  %vm14977_vm3 = vmmov %vm14966_vm0 }
 0x314   : > { %v4096_v54 = vadd.f32 %v9609_v11, %v12397_v15  ;;  %v9615_v7 = vadd.f32 %v9614_v56, %v12277_v2  ;;  %v8744_v26 = vpop.f32.mrb[132].mxu1  ;;  %v4422_v6 = vsel %vm14966_vm0, %v4384_v10, %v4385_v4  ;;  %vm14974_vm15 = vnez %v14973_v0 }
 0x315   : > { %14971 = vst [vmem:[#allocation35_spill] sm:$0xff] %v12640_v36  ;;  %v8745_v57 = vpop.f32.mrb[133].mxu1  ;;  %9433 = vmatmul.mubr.msk.bf16.gmra.mrb[96].mxu0 %vm14974_vm15, %v12638_v50  ;;  %v4262_v53 = vsel %vm14975_vm6, %v4224_v18, %v4225_v14  ;;  %v6272_v63 = vrot.slane %v6080_v59, 1  ;;  %v12660_v47 = vsel %vm14977_vm3, %v6270_v60, %v6271_v52  ;;  %v14979_v43 = vrot.slane %v12587_v61, 1  ;;  %vm14981_vm6 = vmmov %vm14966_vm0 }
 0x316   : > { %v4128_v42 = vmax.f32 %v4096_v54, 0.0  ;;  %v4097_v20 = vadd.f32 %v9615_v7, %v12397_v15  ;;  %v8746_v9 = vadd.f32 %v8745_v57, %v8744_v26  ;;  %v8747_v32 = vpop.f32.mrb[134].mxu1  ;;  %v12654_v12 = vpack.c.bf16 %v4262_v53, %v4263_v5  ;;  %14978 = vst [vmem:[#allocation75_spill] sm:$0xff] %v12660_v47  ;;  %v14983_v26 = vld [vmem:[#allocation56_spill] sm:$0xff]  ;;  %vm14985_vm3 = vmmov %vm14966_vm0 }
 0x317   : > { %v8748_v2 = vpop.f32.mrb[135].mxu1  ;;  %v12656_v56 = vld [vmem:[#allocation2 + $0x60] sm:$0xff]  ;;  %v12666_v41 = vsel %vm14966_vm0, %v14979_v43, %v6270_v60  ;;  %v12670_v59 = vsel %vm14981_vm6, %v6271_v52, %v6272_v63  ;;  %v14984_v57 = vld [vmem:[#allocation28_spill] sm:$0xff]  ;;  %vm14987_vm0 = vcmp.lt.s32.totalorder %v10201_v28, 1  ;;  %vm14989_vm6 = vmmov %vm14985_vm3 }
 0x318   : > { %14976 = vst [vmem:[#allocation74_spill] sm:$0xff] %v12654_v12  ;;  %14980 = vst [vmem:[#allocation76_spill] sm:$0xff] %v12666_v41  ;;  %v4129_v10 = vmax.f32 %v4097_v20, 0.0  ;;  %v9605_v18 = vadd.f32 %v12266_v46, %v8746_v9  ;;  %v8749_v11 = vadd.f32 %v8748_v2, %v8747_v32  ;;  %v4386_v5 = vrot.slane %v4128_v42, 1  ;;  %v14988_v32 = vld [vmem:[#allocation54_spill] sm:$0xff] }
 0x319   : > { %14982 = vst [vmem:[#allocation77_spill] sm:$0xff] %v12670_v59  ;;  %4160 = vst [vmem:[#allocation2 + $0x70] sm:$0xff] %v4128_v42  ;;  %v5138_v54 = vrot.slane %v4128_v42, 7 }
 0x31a   : > { %4161 = vst [vmem:[#allocation2 + $0x78] sm:$0xff] %v4129_v10  ;;  %v9606_v61 = vadd.f32 %v9605_v18, %v14983_v26  ;;  %v9611_v53 = vadd.f32 %v14984_v57, %v8749_v11  ;;  %v4421_v60 = vsel %vm14985_vm3, %v4385_v4, %v4386_v5  ;;  %v4387_v43 = vrot.slane %v4129_v10, 1  ;;  %v14990_v4 = vld [vmem:[#allocation37_spill] sm:$0xff]  ;;  %vm14992_vm2 = vmmov %vm14987_vm0 }
 0x31b   : > { %v12678_v52 = vpack.c.bf16 %v4421_v60, %v4422_v6  ;;  %v5139_v31 = vrot.slane %v4129_v10, 7  ;;  %v12680_v20 = vpack.c.bf16 %v4129_v10, %v4128_v42  ;;  %v4261_v46 = vsel %vm14987_vm0, %v4225_v14, %v5138_v54  ;;  %vm14996_vm0 = vmmov %vm14989_vm6 }
 0x31c   : > { %v4098_v9 = vadd.f32 %v9606_v61, %v12397_v15  ;;  %v9612_v2 = vadd.f32 %v9611_v53, %v14988_v32  ;;  %v8750_v7 = vpop.f32.mrb[136].mxu1  ;;  %v4420_v18 = vsel %vm14989_vm6, %v4386_v5, %v4387_v43  ;;  %vm14991_vm3 = vnez %v14990_v4 }
 0x31d   : > { %14986 = vst [vmem:[#allocation56_spill] sm:$0xff] %v12680_v20  ;;  %v8751_v11 = vpop.f32.mrb[137].mxu1  ;;  %9436 = vmatprep.mubr.msk.bf16.mxu0 %vm14991_vm3, %v12678_v52  ;;  %v4260_v6 = vsel %vm14992_vm2, %v5138_v54, %v5139_v31  ;;  %v14995_v60 = vrot.slane %v12656_v56, 1  ;;  %v15000_v20 = vld [vmem:[#allocation12_spill] sm:$0xff]  ;;  %vm15001_vm2 = vmmov %vm14996_vm0  ;;  %vm15003_vm6 = vcmp.lt.s32.totalorder %v10201_v28, 1 }
 0x31e   : > { %v4130_v42 = vmax.f32 %v4098_v9, 0.0  ;;  %v4099_v10 = vadd.f32 %v9612_v2, %v12397_v15  ;;  %v8752_v14 = vadd.f32 %v8751_v11, %v8750_v7  ;;  %v8753_v26 = vpop.f32.mrb[138].mxu1  ;;  %v12694_v61 = vpack.c.bf16 %v4260_v6, %v4261_v46  ;;  %v14998_v9 = vld [vmem:[#allocation26_spill] sm:$0xff]  ;;  %vm15007_vm7 = vmmov %vm15003_vm6 }
 0x31f   : > { %v8754_v57 = vpop.f32.mrb[139].mxu1  ;;  %v12704_v32 = vsel %vm14996_vm0, %v6272_v63, %v14995_v60  ;;  %v12712_v63 = vld [vmem:[#allocation2 + $0x68] sm:$0xff] }
 0x320   : > { %14993 = vst [vmem:[#allocation28_spill] sm:$0xff] %v12694_v61  ;;  %v12696_v53 = vld [vmem:[#allocation2 + $0x70] sm:$0xff]  ;;  %14997 = vst [vmem:[#allocation78_spill] sm:$0xff] %v12704_v32  ;;  %v4131_v54 = vmax.f32 %v4099_v10, 0.0  ;;  %v9620_v2 = vadd.f32 %v14998_v9, %v8752_v14  ;;  %v8755_v7 = vadd.f32 %v8754_v57, %v8753_v26  ;;  %v4388_v11 = vrot.slane %v4130_v42, 1 }
 0x321   : > { %14994 = vst [vmem:[#allocation54_spill] sm:$0xff] %v12696_v53  ;;  %4162 = vst [vmem:[#allocation2 + $0x80] sm:$0xff] %v4130_v42  ;;  %v5140_v46 = vrot.slane %v4130_v42, 7 }
 0x322   : > { %4163 = vst [vmem:[#allocation2 + $0x88] sm:$0xff] %v4131_v54  ;;  %v9621_v61 = vadd.f32 %v9620_v2, %v14999_v25  ;;  %v9626_v5 = vadd.f32 %v15000_v20, %v8755_v7  ;;  %v4419_v41 = vsel %vm15001_vm2, %v4387_v43, %v4388_v11  ;;  %v4389_v47 = vrot.slane %v4131_v54, 1  ;;  %15002 = vst [vmem:[#allocation26_spill] sm:$0xff] %v12712_v63  ;;  %v15005_v2 = vld [vmem:[#allocation38_spill] sm:$0xff] }
 0x323   : > { %v12714_v60 = vpack.c.bf16 %v4419_v41, %v4420_v18  ;;  %v5175_v10 = vsel %vm15003_vm6, %v5139_v31, %v5140_v46  ;;  %v5141_v14 = vrot.slane %v4131_v54, 7  ;;  %v12718_v26 = vpack.c.bf16 %v4131_v54, %v4130_v42  ;;  %vm15015_vm6 = vmmov %vm14996_vm0 }
 0x324   : > { %v4100_v57 = vadd.f32 %v9621_v61, %v12397_v15  ;;  %v9627_v25 = vadd.f32 %v9626_v5, %v12297_v58  ;;  %v8756_v9 = vpop.f32.mrb[140].mxu1  ;;  %v4418_v20 = vsel %vm14996_vm0, %v4388_v11, %v4389_v47  ;;  %vm15006_vm2 = vnez %v15005_v2  ;;  %v12733_v5 = vld [vmem:[#allocation2 + $0x78] sm:$0xff]  ;;  %v10072_v2 = vld [vmem:[#allocation2 + $0x60] sm:$0xff] }
 0x325   : > { %15004 = vst [vmem:[#allocation19_spill] sm:$0xff] %v12718_v26  ;;  %v8757_v43 = vpop.f32.mrb[141].mxu1  ;;  %9437 = vmatmul.mubr.msk.bf16.gmra.mrb[100].mxu0 %vm15006_vm2, %v12714_v60  ;;  %v5174_v41 = vsel %vm15007_vm7, %v5140_v46, %v5141_v14  ;;  %v6274_v31 = vrot.slane %v12712_v63, 1  ;;  %15009 = vst [vmem:[#allocation79_spill] sm:$0xff] %v12733_v5  ;;  %v15011_v26 = vrot.slane %v12696_v53, 1 }
 0x326   : > { %v4132_v18 = vmax.f32 %v4100_v57, 0.0  ;;  %v4101_v42 = vadd.f32 %v9627_v25, %v12397_v15  ;;  %v8758_v61 = vadd.f32 %v8757_v43, %v8756_v9  ;;  %v8759_v54 = vpop.f32.mrb[142].mxu1  ;;  %v12731_v58 = vpack.c.bf16 %v5174_v41, %v5175_v10  ;;  %vm15012_vm7 = vmmov %vm14996_vm0 }
 0x327   : > { %v8760_v7 = vpop.f32.mrb[143].mxu1  ;;  %v12743_v46 = vsel %vm15012_vm7, %v6274_v31, %v15011_v26  ;;  %v6276_v41 = vrot.slane %v12733_v5, 1  ;;  %vm15016_vm0 = vcmp.lt.s32.totalorder %v10201_v28, 1  ;;  %vm15019_vm7 = vmmov %vm15015_vm6 }
 0x328   : > { %15008 = vst [vmem:[#allocation12_spill] sm:$0xff] %v12731_v58  ;;  %v12735_v11 = vld [vmem:[#allocation2 + $0x80] sm:$0xff]  ;;  %15013 = vst [vmem:[#allocation81_spill] sm:$0xff] %v12743_v46  ;;  %v4133_v57 = vmax.f32 %v4101_v42, 0.0  ;;  %v9617_v25 = vadd.f32 %v12300_v8, %v8758_v61  ;;  %v8761_v10 = vadd.f32 %v8760_v7, %v8759_v54  ;;  %v4390_v9 = vrot.slane %v4132_v18, 1  ;;  %v15018_v7 = vld [vmem:[#allocation46_spill] sm:$0xff] }
 0x329   : > { %15010 = vst [vmem:[#allocation80_spill] sm:$0xff] %v12735_v11  ;;  %4164 = vst [vmem:[#allocation2 + $0x90] sm:$0xff] %v4132_v18  ;;  %v5142_v43 = vrot.slane %v4132_v18, 7  ;;  %v15014_v58 = vld [vmem:[#allocation25_spill] sm:$0xff]  ;;  %v15244_v38 = vld [vmem:[#allocation54_spill] sm:$0xff] }
 0x32a   : > { %4165 = vst [vmem:[#allocation2 + $0x98] sm:$0xff] %v4133_v57  ;;  %v9618_v6 = vadd.f32 %v9617_v25, %v15014_v58  ;;  %v9623_v59 = vadd.f32 %v12303_v37, %v8761_v10  ;;  %v4417_v26 = vsel %vm15015_vm6, %v4389_v47, %v4390_v9  ;;  %v4391_v32 = vrot.slane %v4133_v57, 1  ;;  %v15020_v47 = vld [vmem:[#allocation44_spill] sm:$0xff]  ;;  %vm15022_vm13 = vmmov %vm15016_vm0 }
 0x32b   : > { %v12752_v12 = vpack.c.bf16 %v4417_v26, %v4418_v20  ;;  %v5173_v8 = vsel %vm15016_vm0, %v5141_v14, %v5142_v43  ;;  %v5143_v42 = vrot.slane %v4133_v57, 7  ;;  %v12756_v61 = vpack.c.bf16 %v4133_v57, %v4132_v18  ;;  %vm15026_vm0 = vmmov %vm15019_vm7 }
 0x32c   : > { %v4102_v54 = vadd.f32 %v9618_v6, %v12397_v15  ;;  %v9624_v63 = vadd.f32 %v9623_v59, %v15018_v7  ;;  %v8762_v5 = vpop.f32.mrb[144].mxu1  ;;  %v4416_v37 = vsel %vm15019_vm7, %v4390_v9, %v4391_v32  ;;  %vm15021_vm6 = vnez %v15020_v47  ;;  %vm15032_vm7 = vmmov %vm15026_vm0 }
 0x32d   : > { %15017 = vst [vmem:[#allocation25_spill] sm:$0xff] %v12756_v61  ;;  %v8763_v58 = vpop.f32.mrb[145].mxu1  ;;  %9440 = vmatprep.mubr.msk.bf16.mxu0 %vm15021_vm6, %v12752_v12  ;;  %v5172_v20 = vsel %vm15022_vm13, %v5142_v43, %v5143_v42  ;;  %v15025_v9 = vrot.slane %v12656_v56, 1  ;;  %v15028_v7 = vrot.slane %v12735_v11, 1  ;;  %vm15029_vm13 = vmmov %vm15026_vm0 }
 0x32e   : > { %v4134_v14 = vmax.f32 %v4102_v54, 0.0  ;;  %v4103_v18 = vadd.f32 %v9624_v63, %v12397_v15  ;;  %v8764_v57 = vadd.f32 %v8763_v58, %v8762_v5  ;;  %v8765_v25 = vpop.f32.mrb[146].mxu1  ;;  %v12768_v6 = vpack.c.bf16 %v5172_v20, %v5173_v8 }
 0x32f   : > { %v8766_v59 = vpop.f32.mrb[147].mxu1  ;;  %v12776_v26 = vsel %vm15026_vm0, %v15025_v9, %v6274_v31  ;;  %v12782_v43 = vsel %vm15029_vm13, %v6276_v41, %v15028_v7  ;;  %v15031_v63 = vrot.slane %v12696_v53, 1  ;;  %vm15035_vm13 = vcmp.lt.s32.totalorder %v10201_v28, 1 }
 0x330   : > { %15023 = vst [vmem:[#allocation46_spill] sm:$0xff] %v12768_v6  ;;  %v12770_v10 = vld [vmem:[#allocation2 + $0x90] sm:$0xff]  ;;  %15027 = vst [vmem:[#allocation83_spill] sm:$0xff] %v12776_v26  ;;  %v4135_v8 = vmax.f32 %v4103_v18, 0.0  ;;  %v9632_v56 = vadd.f32 %v12314_v55, %v8764_v57  ;;  %v8767_v54 = vadd.f32 %v8766_v59, %v8765_v25  ;;  %v4392_v58 = vrot.slane %v4134_v14, 1 }
 0x331   : > { %15024 = vst [vmem:[#allocation82_spill] sm:$0xff] %v12770_v10  ;;  %15030 = vst [vmem:[#allocation84_spill] sm:$0xff] %v12782_v43  ;;  %v12788_v5 = vsel %vm15032_vm7, %v15031_v63, %v6276_v41  ;;  %v5144_v31 = vrot.slane %v4134_v14, 7  ;;  %v12796_v41 = vld [vmem:[#allocation2 + $0x88] sm:$0xff]  ;;  %v15048_v26 = vld [vmem:[#allocation31_spill] sm:$0xff] }
 0x332   : > { %15033 = vst [vmem:[#allocation85_spill] sm:$0xff] %v12788_v5  ;;  %4166 = vst [vmem:[#allocation2 + $0xa0] sm:$0xff] %v4134_v14  ;;  %v9633_v9 = vadd.f32 %v9632_v56, %v12307_v23  ;;  %v9638_v7 = vadd.f32 %v12317_v1, %v8767_v54  ;;  %v4415_v53 = vsel %vm15026_vm0, %v4391_v32, %v4392_v58  ;;  %v4393_v6 = vrot.slane %v4135_v8, 1  ;;  %v15038_v56 = vld [vmem:[#allocation45_spill] sm:$0xff]  ;;  %v15049_v5 = vld [vmem:[#allocation55_spill] sm:$0xff] }
 0x333   : > { %4167 = vst [vmem:[#allocation2 + $0xa8] sm:$0xff] %v4135_v8  ;;  %15034 = vst [vmem:[#allocation86_spill] sm:$0xff] %v12796_v41  ;;  %v12798_v63 = vpack.c.bf16 %v4415_v53, %v4416_v37  ;;  %v5171_v55 = vsel %vm15035_vm13, %v5143_v42, %v5144_v31  ;;  %v5145_v18 = vrot.slane %v4135_v8, 7  ;;  %v12802_v57 = vpack.c.bf16 %v4135_v8, %v4134_v14 }
 0x334   : > { %v4104_v25 = vadd.f32 %v9633_v9, %v12397_v15  ;;  %v9639_v23 = vadd.f32 %v9638_v7, %v12311_v40  ;;  %v8768_v59 = vpop.f32.mrb[148].mxu1  ;;  %vm15037_vm7 = vmmov %vm15026_vm0  ;;  %vm15039_vm0 = vnez %v15038_v56  ;;  %v6278_v42 = vrot.slane %v12796_v41, 1  ;;  %v12817_v9 = vld [vmem:[#allocation2 + $0x98] sm:$0xff] }
 0x335   : > { %15036 = vst [vmem:[#allocation87_spill] sm:$0xff] %v12802_v57  ;;  %v4414_v1 = vsel %vm15037_vm7, %v4392_v58, %v4393_v6  ;;  %v8769_v32 = vpop.f32.mrb[149].mxu1  ;;  %9441 = vmatmul.mubr.msk.bf16.gmra.mrb[104].mxu0 %vm15039_vm0, %v12798_v63  ;;  %vm15040_vm6 = vmmov %vm15035_vm13  ;;  %v15044_v41 = vrot.slane %v12770_v10, 1  ;;  %v6280_v57 = vrot.slane %v12817_v9, 1 }
 0x336   : > { %v5170_v53 = vsel %vm15040_vm6, %v5144_v31, %v5145_v18  ;;  %v4136_v37 = vmax.f32 %v4104_v25, 0.0  ;;  %v4105_v14 = vadd.f32 %v9639_v23, %v12397_v15  ;;  %v8770_v8 = vadd.f32 %v8769_v32, %v8768_v59  ;;  %v8771_v54 = vpop.f32.mrb[150].mxu1  ;;  %15042 = vst [vmem:[#allocation89_spill] sm:$0xff] %v12817_v9  ;;  %vm15045_vm6 = vmmov %vm15037_vm7  ;;  %v15047_v23 = vld [vmem:[#allocation20_spill] sm:$0xff] }
 0x337   : > { %v12815_v40 = vpack.c.bf16 %v5170_v53, %v5171_v55  ;;  %v8772_v58 = vpop.f32.mrb[151].mxu1  ;;  %v12829_v25 = vsel %vm15045_vm6, %v6278_v42, %v15044_v41  ;;  %vm15050_vm13 = vmmov %vm15045_vm6  ;;  %vm15051_vm7 = vcmp.lt.s32.totalorder %v10201_v28, 1 }
 0x338   : > { %15046 = vst [vmem:[#allocation91_spill] sm:$0xff] %v12829_v25  ;;  %4168 = vst [vmem:[#allocation2 + $0xb0] sm:$0xff] %v4136_v37  ;;  %v4137_v55 = vmax.f32 %v4105_v14, 0.0  ;;  %v9629_v59 = vadd.f32 %v15047_v23, %v8770_v8  ;;  %v8773_v32 = vadd.f32 %v8772_v58, %v8771_v54  ;;  %v4394_v53 = vrot.slane %v4136_v37, 1  ;;  %v15053_v23 = vld [vmem:[#allocation6_spill] sm:$0xff] }
 0x339   : > { %15041 = vst [vmem:[#allocation88_spill] sm:$0xff] %v12815_v40  ;;  %v12819_v7 = vld [vmem:[#allocation2 + $0xa0] sm:$0xff]  ;;  %v5146_v40 = vrot.slane %v4136_v37, 7  ;;  %vm15056_vm0 = vmmov %vm15051_vm7 }
 0x33a   : > { %15043 = vst [vmem:[#allocation90_spill] sm:$0xff] %v12819_v7  ;;  %4169 = vst [vmem:[#allocation2 + $0xb8] sm:$0xff] %v4137_v55  ;;  %v9630_v31 = vadd.f32 %v9629_v59, %v15048_v26  ;;  %v9635_v43 = vadd.f32 %v15049_v5, %v8773_v32  ;;  %v4413_v41 = vsel %vm15050_vm13, %v4393_v6, %v4394_v53  ;;  %v4395_v46 = vrot.slane %v4137_v55, 1  ;;  %v15054_v6 = vld [vmem:[#allocation47_spill] sm:$0xff] }
 0x33b   : > { %v12838_v61 = vpack.c.bf16 %v4413_v41, %v4414_v1  ;;  %v5169_v14 = vsel %vm15051_vm7, %v5145_v18, %v5146_v40  ;;  %v5147_v8 = vrot.slane %v4137_v55, 7  ;;  %v12842_v54 = vpack.c.bf16 %v4137_v55, %v4136_v37  ;;  %vm15060_vm7 = vmmov %vm15045_vm6 }
 0x33c   : > { %v4106_v58 = vadd.f32 %v9630_v31, %v12397_v15  ;;  %v9636_v20 = vadd.f32 %v9635_v43, %v15053_v23  ;;  %v8774_v9 = vpop.f32.mrb[152].mxu1  ;;  %v4412_v26 = vsel %vm15045_vm6, %v4394_v53, %v4395_v46  ;;  %vm15055_vm13 = vnez %v15054_v6 }
 0x33d   : > { %15052 = vst [vmem:[#allocation20_spill] sm:$0xff] %v12842_v54  ;;  %v8775_v5 = vpop.f32.mrb[153].mxu1  ;;  %9444 = vmatprep.mubr.msk.bf16.mxu0 %vm15055_vm13, %v12838_v61  ;;  %v5168_v1 = vsel %vm15056_vm0, %v5146_v40, %v5147_v8  ;;  %v15059_v53 = vrot.slane %v12735_v11, 1  ;;  %v15062_v23 = vrot.slane %v12819_v7, 1  ;;  %vm15063_vm0 = vmmov %vm15045_vm6 }
 0x33e   : > { %v4138_v18 = vmax.f32 %v4106_v58, 0.0  ;;  %v4107_v37 = vadd.f32 %v9636_v20, %v12397_v15  ;;  %v8776_v55 = vadd.f32 %v8775_v5, %v8774_v9  ;;  %v8777_v59 = vpop.f32.mrb[154].mxu1  ;;  %v12854_v31 = vpack.c.bf16 %v5168_v1, %v5169_v14  ;;  %vm15066_vm6 = vmmov %vm15063_vm0  ;;  %v15068_v58 = vld [vmem:[#allocation51_spill] sm:$0xff] }
 0x33f   : > { %v8778_v43 = vpop.f32.mrb[155].mxu1  ;;  %v12856_v32 = vld [vmem:[#allocation2 + $0xb0] sm:$0xff]  ;;  %v12862_v41 = vsel %vm15060_vm7, %v15059_v53, %v6278_v42  ;;  %v12868_v40 = vsel %vm15063_vm0, %v6280_v57, %v15062_v23  ;;  %v15065_v20 = vrot.slane %v12770_v10, 1  ;;  %v15070_v23 = vld [vmem:[#allocation33_spill] sm:$0xff]  ;;  %vm15071_vm7 = vmmov %vm15063_vm0  ;;  %vm15073_vm0 = vcmp.lt.s32.totalorder %v10201_v28, 1 }
 0x340   : > { %15057 = vst [vmem:[#allocation31_spill] sm:$0xff] %v12854_v31  ;;  %15058 = vst [vmem:[#allocation55_spill] sm:$0xff] %v12856_v32  ;;  %v4139_v14 = vmax.f32 %v4107_v37, 0.0  ;;  %v9644_v5 = vadd.f32 %v15068_v58, %v8776_v55  ;;  %v8779_v1 = vadd.f32 %v8778_v43, %v8777_v59  ;;  %v4396_v11 = vrot.slane %v4138_v18, 1  ;;  %v15069_v31 = vld [vmem:[#allocation29_spill] sm:$0xff]  ;;  %v15075_v58 = vld [vmem:[#allocation36_spill] sm:$0xff] }
 0x341   : > { %15061 = vst [vmem:[#allocation6_spill] sm:$0xff] %v12862_v41  ;;  %15064 = vst [vmem:[#allocation92_spill] sm:$0xff] %v12868_v40  ;;  %v12874_v9 = vsel %vm15066_vm6, %v15065_v20, %v6280_v57  ;;  %v5148_v42 = vrot.slane %v4138_v18, 7  ;;  %v12882_v57 = vld [vmem:[#allocation2 + $0xa8] sm:$0xff] }
 0x342   : > { %15067 = vst [vmem:[#allocation93_spill] sm:$0xff] %v12874_v9  ;;  %4170 = vst [vmem:[#allocation2 + $0xc0] sm:$0xff] %v4138_v18  ;;  %v9645_v54 = vadd.f32 %v9644_v5, %v15069_v31  ;;  %v9650_v6 = vadd.f32 %v15070_v23, %v8779_v1  ;;  %v4411_v10 = vsel %vm15071_vm7, %v4395_v46, %v4396_v11  ;;  %v4397_v36 = vrot.slane %v4139_v14, 1  ;;  %v15076_v23 = vld [vmem:[#allocation49_spill] sm:$0xff] }
 0x343   : > { %4171 = vst [vmem:[#allocation2 + $0xc8] sm:$0xff] %v4139_v14  ;;  %15072 = vst [vmem:[#allocation51_spill] sm:$0xff] %v12882_v57  ;;  %v12884_v20 = vpack.c.bf16 %v4411_v10, %v4412_v26  ;;  %v5167_v37 = vsel %vm15073_vm0, %v5147_v8, %v5148_v42  ;;  %v5149_v55 = vrot.slane %v4139_v14, 7  ;;  %v12888_v59 = vpack.c.bf16 %v4139_v14, %v4138_v18 }
 0x344   : > { %v4108_v43 = vadd.f32 %v9645_v54, %v12397_v15  ;;  %v9651_v31 = vadd.f32 %v9650_v6, %v15075_v58  ;;  %v8780_v5 = vpop.f32.mrb[156].mxu1  ;;  %v4410_v1 = vsel %vm15066_vm6, %v4396_v11, %v4397_v36  ;;  %vm15077_vm7 = vnez %v15076_v23  ;;  %vm15078_vm13 = vmmov %vm15073_vm0  ;;  %v15084_v11 = vld [vmem:[#allocation43_spill] sm:$0xff] }
 0x345   : > { %15074 = vst [vmem:[#allocation29_spill] sm:$0xff] %v12888_v59  ;;  %v8781_v46 = vpop.f32.mrb[157].mxu1  ;;  %9445 = vmatmul.mubr.msk.bf16.gmra.mrb[108].mxu0 %vm15077_vm7, %v12884_v20  ;;  %v5166_v10 = vsel %vm15078_vm13, %v5148_v42, %v5149_v55  ;;  %v6282_v8 = vrot.slane %v12882_v57, 1  ;;  %v15081_v42 = vrot.slane %v12856_v32, 1  ;;  %vm15082_vm13 = vmmov %vm15066_vm6 }
 0x346   : > { %v4140_v26 = vmax.f32 %v4108_v43, 0.0  ;;  %v4109_v18 = vadd.f32 %v9651_v31, %v12397_v15  ;;  %v8782_v54 = vadd.f32 %v8781_v46, %v8780_v5  ;;  %v8783_v14 = vpop.f32.mrb[158].mxu1  ;;  %v12901_v6 = vpack.c.bf16 %v5166_v10, %v5167_v37  ;;  %vm15085_vm0 = vmmov %vm15066_vm6 }
 0x347   : > { %v8784_v58 = vpop.f32.mrb[159].mxu1  ;;  %v12913_v43 = vsel %vm15082_vm13, %v6282_v8, %v15081_v42  ;;  %v12921_v42 = vld [vmem:[#allocation2 + $0xb8] sm:$0xff]  ;;  %vm15087_vm6 = vcmp.lt.s32.totalorder %v10201_v28, 1  ;;  %vm15090_vm13 = vmmov %vm15085_vm0 }
 0x348   : > { %15079 = vst [vmem:[#allocation33_spill] sm:$0xff] %v12901_v6  ;;  %15083 = vst [vmem:[#allocation94_spill] sm:$0xff] %v12913_v43  ;;  %v4141_v31 = vmax.f32 %v4109_v18, 0.0  ;;  %v9641_v37 = vadd.f32 %v12366_v27, %v8782_v54  ;;  %v8785_v5 = vadd.f32 %v8784_v58, %v8783_v14  ;;  %v4398_v46 = vrot.slane %v4140_v26, 1  ;;  %v15089_v58 = vld [vmem:[#allocation14_spill] sm:$0xff] }
 0x349   : > { %v12903_v53 = vld [vmem:[#allocation2 + $0xc0] sm:$0xff]  ;;  %4172 = vst [vmem:[#allocation2 + $0xd0] sm:$0xff] %v4140_v26  ;;  %v5150_v10 = vrot.slane %v4140_v26, 7  ;;  %15086 = vst [vmem:[#allocation43_spill] sm:$0xff] %v12921_v42 }
 0x34a   : > { %15080 = vst [vmem:[#allocation36_spill] sm:$0xff] %v12903_v53  ;;  %4173 = vst [vmem:[#allocation2 + $0xd8] sm:$0xff] %v4141_v31  ;;  %v9642_v41 = vadd.f32 %v9641_v37, %v15084_v11  ;;  %v9647_v59 = vadd.f32 %v12369_v35, %v8785_v5  ;;  %v4409_v9 = vsel %vm15085_vm0, %v4397_v36, %v4398_v46  ;;  %v4399_v40 = vrot.slane %v4141_v31, 1  ;;  %v15091_v5 = vld [vmem:[#allocation52_spill] sm:$0xff] }
 0x34b   : > { %v12923_v25 = vpack.c.bf16 %v4409_v9, %v4410_v1  ;;  %v5165_v27 = vsel %vm15087_vm6, %v5149_v55, %v5150_v10  ;;  %v5151_v18 = vrot.slane %v4141_v31, 7  ;;  %v12927_v54 = vpack.c.bf16 %v4141_v31, %v4140_v26  ;;  %vm15093_vm7 = vmmov %vm15087_vm6 }
 0x34c   : > { %v4110_v14 = vadd.f32 %v9642_v41, %v12397_v15  ;;  %v9648_v11 = vadd.f32 %v9647_v59, %v15089_v58  ;;  %v8786_v37 = vpop.f32.mrb[160].mxu1  ;;  %v4408_v35 = vsel %vm15090_vm13, %v4398_v46, %v4399_v40  ;;  %vm15092_vm0 = vnez %v15091_v5  ;;  %vm15096_vm6 = vmmov %vm15090_vm13 }
 0x34d   : > { %15088 = vst [vmem:[#allocation95_spill] sm:$0xff] %v12927_v54  ;;  %v8787_v36 = vpop.f32.mrb[161].mxu1  ;;  %9448 = vmatprep.mubr.msk.bf16.mxu0 %vm15092_vm0, %v12923_v25  ;;  %v5164_v9 = vsel %vm15093_vm7, %v5150_v10, %v5151_v18  ;;  %v6284_v55 = vrot.slane %v12921_v42, 1  ;;  %v15095_v46 = vrot.slane %v12819_v7, 1  ;;  %v15098_v54 = vrot.slane %v12903_v53, 1  ;;  %vm15099_vm7 = vmmov %vm15096_vm6  ;;  %v15101_v42 = vld [vmem:[#allocation22_spill] sm:$0xff] }
 0x34e   : > { %v4142_v1 = vmax.f32 %v4110_v14, 0.0  ;;  %v4111_v26 = vadd.f32 %v9648_v11, %v12397_v15  ;;  %v8788_v41 = vadd.f32 %v8787_v36, %v8786_v37  ;;  %v8789_v31 = vpop.f32.mrb[162].mxu1  ;;  %v12940_v59 = vpack.c.bf16 %v5164_v9, %v5165_v27  ;;  %vm15103_vm13 = vmmov %vm15096_vm6 }
 0x34f   : > { %v8790_v58 = vpop.f32.mrb[163].mxu1  ;;  %v12946_v57 = vsel %vm15096_vm6, %v15095_v46, %v6282_v8  ;;  %v12952_v10 = vsel %vm15099_vm7, %v6284_v55, %v15098_v54  ;;  %v4212_v36 = vrot.slane %v12390_v62, 7  ;;  %v15102_v8 = vld [vmem:[#allocation30_spill] sm:$0xff]  ;;  %vm15104_vm6 = vcmp.lt.s32.totalorder %v10201_v28, 1 }
 0x350   : > { %15094 = vst [vmem:[#allocation14_spill] sm:$0xff] %v12940_v59  ;;  %15097 = vst [vmem:[#allocation96_spill] sm:$0xff] %v12946_v57  ;;  %v4143_v14 = vmax.f32 %v4111_v26, 0.0  ;;  %v9656_v11 = vadd.f32 %v12372_v44, %v8788_v41  ;;  %v8791_v37 = vadd.f32 %v8790_v58, %v8789_v31  ;;  %v4400_v27 = vrot.slane %v4142_v1, 1  ;;  %v15105_v58 = vld [vmem:[#allocation13_spill] sm:$0xff] }
 0x351   : > { %15100 = vst [vmem:[#allocation97_spill] sm:$0xff] %v12952_v10  ;;  %4174 = vst [vmem:[#allocation2 + $0xe0] sm:$0xff] %v4142_v1  ;;  %v5152_v9 = vrot.slane %v4142_v1, 7 }
 0x352   : > { %4175 = vst [vmem:[#allocation2 + $0xe8] sm:$0xff] %v4143_v14  ;;  %v9657_v7 = vadd.f32 %v9656_v11, %v15101_v42  ;;  %v9662_v46 = vadd.f32 %v15102_v8, %v8791_v37  ;;  %v4407_v59 = vsel %vm15103_vm13, %v4399_v40, %v4400_v27  ;;  %v4401_v6 = vrot.slane %v4143_v14, 1  ;;  %v15106_v40 = vld [vmem:[#allocation53_spill] sm:$0xff]  ;;  %vm15107_vm13 = vmmov %vm15104_vm6 }
 0x353   : > { %v12960_v54 = vpack.c.bf16 %v4407_v59, %v4408_v35  ;;  %v5163_v26 = vsel %vm15104_vm6, %v5151_v18, %v5152_v9  ;;  %v5153_v44 = vrot.slane %v4143_v14, 7  ;;  %v12964_v41 = vpack.c.bf16 %v4143_v14, %v4142_v1 }
 0x354   : > { %v4112_v31 = vadd.f32 %v9657_v7, %v12397_v15  ;;  %v9663_v5 = vadd.f32 %v9662_v46, %v15105_v58  ;;  %v8792_v23 = vpop.f32.mrb[164].mxu1  ;;  %v4406_v42 = vsel %vm15099_vm7, %v4400_v27, %v4401_v6  ;;  %v5287_v35 = vrot.slane %v12461_v39, 1  ;;  %v10063_v15 = vld [vmem:[%s14090_s4] ss:$0 sm:$0xff]  ;;  %v12981_v27 = vld [vmem:[#allocation2 + $0xd0] sm:$0xff] }
 0x355   : > { %v8793_v11 = vpop.f32.mrb[165].mxu1  ;;  %9449 = vmatmul.mubr.msk.bf16.gmra.mrb[112].mxu0 %vm14790_vm12, %v12960_v54  ;;  %v5162_v18 = vsel %vm15107_vm13, %v5152_v9, %v5153_v44  ;;  %15109 = vst [vmem:[#allocation30_spill] sm:$0xff] %v12981_v27  ;;  %v15110_v46 = vrot.slane %v12392_v3, 7  ;;  %v14404_v9 = vrot.slane %v12468_v49, 1  ;;  %v15111_v39 = vrot.slane %v12856_v32, 1  ;;  %vm15113_vm13 = vmmov %vm15099_vm7 }
 0x356   : > { %v4144_v1 = vmax.f32 %v4112_v31, 0.0  ;;  %v4113_v7 = vadd.f32 %v10063_v15, %v9663_v5  ;;  %v8794_v59 = vadd.f32 %v8793_v11, %v8792_v23  ;;  %v8795_v14 = vpop.f32.mrb[166].mxu1  ;;  %v12979_v37 = vpack.c.bf16 %v5162_v18, %v5163_v26 }
 0x357   : > { %v8796_v8 = vpop.f32.mrb[167].mxu1  ;;  %v4274_v58 = vsel %vm15104_vm6, %v4212_v36, %v15110_v46  ;;  %v12994_v23 = vsel %vm15099_vm7, %v15111_v39, %v6284_v55  ;;  %v5347_v18 = vsel %vm15113_vm13, %v5287_v35, %v12459_v19  ;;  %vm15114_vm6 = vmmov %vm15099_vm7  ;;  %v15115_v39 = vld [vmem:[#allocation42_spill] sm:$0xff]  ;;  %vm15117_vm13 = vcmp.lt.s32.totalorder %v10201_v28, 1 }
 0x358   : > { %15108 = vst [vmem:[#allocation22_spill] sm:$0xff] %v12979_v37  ;;  %15112 = vst [vmem:[#allocation13_spill] sm:$0xff] %v12994_v23  ;;  %v4145_v5 = vmax.f32 %v4113_v7, 0.0  ;;  %v9653_v26 = vadd.f32 %v12384_v22, %v8794_v59  ;;  %v8797_v11 = vadd.f32 %v8796_v8, %v8795_v14  ;;  %v4402_v3 = vrot.slane %v4144_v1, 1  ;;  %v15240_v0 = vld [vmem:[#allocation14_spill] sm:$0xff] }
 0x359   : > { %4176 = vst [vmem:[#allocation2 + $0xf0] sm:$0xff] %v4144_v1  ;;  %v5348_v46 = vsel %vm15114_vm6, %v14404_v9, %v5287_v35  ;;  %v5154_v31 = vrot.slane %v4144_v1, 7  ;;  %vm15116_vm7 = vmmov %vm15114_vm6  ;;  %v15119_v9 = vld [vmem:[#allocation63_spill] sm:$0xff] }
 0x35a   : > { %4177 = vst [vmem:[#allocation2 + $0xf8] sm:$0xff] %v4145_v5  ;;  %v9654_v55 = vadd.f32 %v9653_v26, %v15115_v39  ;;  %v9659_v7 = vadd.f32 %v12387_v51, %v8797_v11  ;;  %v4405_v22 = vsel %vm15116_vm7, %v4401_v6, %v4402_v3  ;;  %v4243_v59 = vrot.slane %v4145_v5, 7  ;;  %vm15120_vm6 = vmmov %vm15117_vm13  ;;  %v13020_v11 = vld [vmem:[#allocation2 + $0xc8] sm:$0xff]  ;;  %v15123_v6 = vld [vmem:[#allocation57_spill] sm:$0xff] }
 0x35b   : > { %v13009_v14 = vpack.c.bf16 %v4405_v22, %v4406_v42  ;;  %v4403_v19 = vrot.slane %v4145_v5, 1  ;;  %v5161_v8 = vsel %vm15117_vm13, %v5153_v44, %v5154_v31  ;;  %v13013_v43 = vpack.c.bf16 %v4145_v5, %v4144_v1  ;;  %vm15121_vm12 = vmmov %vm15120_vm6  ;;  %15122 = vst [vmem:[#allocation63_spill] sm:$0xff] %v13020_v11 }
 0x35c   : > { %v4114_v35 = vadd.f32 %v10063_v15, %v9654_v55  ;;  %v9660_v57 = vadd.f32 %v9659_v7, %v15119_v9  ;;  %v4275_v26 = vsel %vm15120_vm6, %v4243_v59, %v4212_v36  ;;  %v5160_v51 = vsel %vm15121_vm12, %v5154_v31, %v4243_v59  ;;  %v10020_v36 = vld [vmem:[%s14091_s5 + $0xc0] sm:$0xff]   ;;  %v13044_v55 = vld [vmem:[#allocation2 + $0xd8] sm:$0xff]  ;;  %v15132_v7 = vld [vmem:[#allocation58_spill] sm:$0xff] }
 0x35d   : > { %15118 = vst [vmem:[#allocation42_spill] sm:$0xff] %v13013_v43  ;;  %vm15124_vm7 = vnez %v15123_v6  ;;  %v8110_v42 = vpack.c.bf16 %v4274_v58, %v4275_v26  ;;  %vm15125_vm13 = vcmp.lt.s32.totalorder %v10201_v28, 7  ;;  %v15126_v1 = vrot.slane %v12390_v62, 1  ;;  %15130 = vst [vmem:[#allocation100_spill] sm:$0xff] %v13044_v55  ;;  %v13046_v62 = vld [vmem:[#allocation2 + $0xe0] sm:$0xff] }
 0x35e   : > { %9452 = vmatprep.mubr.msk.bf16.mxu0 %vm15124_vm7, %v13009_v14  ;;  %v13027_v44 = vsel %vm15125_vm13, %v4402_v3, %v4403_v19  ;;  %vm15127_vm0 = vmmov %vm15125_vm13  ;;  %v13036_v31 = vpack.c.bf16 %v5160_v51, %v5161_v8  ;;  %v13038_v5 = vmax.f32 %v4114_v35, 0.0  ;;  %v4115_v39 = vadd.f32 %v10063_v15, %v9660_v57  ;;  %v10025_v3 = vld [vmem:[%s14091_s5 + $0x108] sm:$0xff]   ;;  %15131 = vst [vmem:[#allocation101_spill] sm:$0xff] %v13046_v62  ;;  %v15135_v15 = vld [vmem:[#allocation59_spill] sm:$0xff] }
 0x35f   : > { %v4435_v9 = vsel %vm15127_vm0, %v4403_v19, %v15126_v1  ;;  %vm15133_vm12 = vnez %v15132_v7  ;;  %v8254_v22 = vpack.c.bf16 %v5347_v18, %v5348_v46  ;;  %v6286_v8 = vrot.slane %v13020_v11, 1  ;;  %v15137_v26 = vld [vmem:[#allocation21_spill] sm:$0xff]  ;;  %v13063_v46 = vld [vmem:[#allocation2 + $0xe8] sm:$0xff]  ;;  %vm15143_vm6 = vmmov %vm15125_vm13 }
 0x360   : > { %15128 = vst [vmem:[#allocation98_spill] sm:$0xff] %v13036_v31  ;;  %15129 = vst [vmem:[#allocation99_spill] sm:$0xff] %v13038_v5  ;;  %v8203_v58 = vpack.c.bf16 %v4435_v9, %v13027_v44  ;;  %8111 = vmatmul.mubr.msk.bf16.vlgmr.msra.gmra.mrb[168].mxu1 %vm15133_vm12, %v8110_v42  ;;  %v13054_v57 = vmax.f32 %v4115_v39, 0.0  ;;  %vm15136_vm0 = vnez %v15135_v15  ;;  %v15138_v51 = vpack.c.bf16 %v12424_v30, %v15137_v26  ;;  %v13065_v42 = vld [vmem:[#allocation2 + $0xf0] sm:$0xff]  ;;  %v10026_v39 = vld [vmem:[%s14091_s5 + $0xc8] sm:$0xff]  }
 0x361   : > { %4178 = vst [vmem:[#allocation2 + $0x100] sm:$0xff] %v13038_v5  ;;  %v5156_v1 = vrot.slane %v13038_v5, 7  ;;  %v5316_v18 = vrot.slane %v13038_v5, 1  ;;  %15139 = vst [vmem:[#allocation21_spill] sm:$0xff] %v13063_v46  ;;  %8959 = vmatpush3.bf16.msra.mxu1 %v10020_v36  ;;  %v6289_v30 = vrot.slane %v13046_v62, 1  ;;  %v15142_v26 = vrot.slane %v12981_v27, 1 }
 0x362   : > { %15134 = vst [vmem:[#allocation58_spill] sm:$0xff] %v13054_v57  ;;  %9453 = vmatmul.mubr.msk.bf16.gmra.mrb[116].mxu0 %vm15136_vm0, %v8203_v58  ;;  %4780 = vmatprep.mubr.bf16.mxu1 %v15138_v51  ;;  %15140 = vst [vmem:[#allocation102_spill] sm:$0xff] %v13065_v42  ;;  %v6288_v58 = vrot.slane %v13044_v55, 1  ;;  %v10031_v36 = vld [vmem:[%s14091_s5 + $0x110] sm:$0xff]   ;;  %vm15145_vm13 = vcmp.lt.s32.totalorder %v10201_v28, 1  ;;  %v5157_v23 = vrot.slane %v13054_v57, 7 }
 0x363   : > { %9472 = vmatprep.mubr.msk.bf16.mxu0 %vm10344_vm8, %v8254_v22  ;;  %v13078_v51 = vsel %vm15143_vm6, %v6286_v8, %v15142_v26  ;;  %4179 = vst [vmem:[#allocation2 + $0x108] sm:$0xff] %v13054_v57  ;;  %8960 = vmatprep.subr.bf16.mxu1 %v10025_v3  ;;  %v13086_v22 = vsel %vm15145_vm13, %v4243_v59, %v5156_v1  ;;  %vm15147_vm8 = vmmov %vm15143_vm6  ;;  %v5317_v26 = vrot.slane %v13054_v57, 1  ;;  %v13094_v10 = vld [vmem:[#allocation2 + $0xf8] sm:$0xff]  ;;  %v6290_v9 = vrot.slane %v13063_v46, 1 }
 0x364   : > { %15144 = vst [vmem:[#allocation103_spill] sm:$0xff] %v13078_v51  ;;  %15146 = vst [vmem:[#allocation104_spill] sm:$0xff] %v13086_v22  ;;  %v13090_v35 = vsel %vm15147_vm8, %v4403_v19, %v5316_v18  ;;  %v6291_v62 = vrot.slane %v13065_v42, 1  ;;  %v15151_v55 = vrot.slane %v12468_v49, 1  ;;  %v15153_v3 = vrot.slane %v12468_v49, 7  ;;  %v10071_v51 = vld [vmem:[#allocation2 + $0x50] sm:$0xff] }
 0x365   : > { %15148 = vst [vmem:[#allocation105_spill] sm:$0xff] %v13094_v10  ;;  %vm15149_vm6 = vmmov %vm15145_vm13  ;;  %v13106_v19 = vsel %vm15147_vm8, %v5316_v18, %v5317_v26  ;;  %8961 = vmatpush3.bf16.msra.mxu1 %v10026_v39  ;;  %v10032_v39 = vld [vmem:[%s14091_s5 + $0xd0] sm:$0xff]   ;;  %v15161_v42 = vrot.slane %v12981_v27, 1 }
 0x366   : > { %v13102_v59 = vsel %vm15149_vm6, %v5156_v1, %v5157_v23  ;;  %vm15152_vm13 = vmmov %vm15147_vm8  ;;  %v10022_v1 = vld [vmem:[%s14091_s5 + $0x180] sm:$0xff]   ;;  %8962 = vmatprep.subr.bf16.mxu1 %v10031_v36  ;;  %v15164_v36 = vld [vmem:[#allocation39_spill] sm:$0xff] }
 0x367   : > { %15150 = vst [vmem:[#allocation106_spill] sm:$0xff] %v13102_v59  ;;  %v13112_v11 = vsel %vm15152_vm13, %v5317_v26, %v15151_v55  ;;  %vm15154_vm12 = vmmov %vm15149_vm6  ;;  %v6292_v26 = vrot.slane %v13094_v10, 1  ;;  %v15165_v59 = vld [vmem:[#allocation17_spill] sm:$0xff] }
 0x368   : > { %v13118_v46 = vsel %vm15154_vm12, %v5157_v23, %v15153_v3  ;;  %v10023_v23 = vld [vmem:[%s14091_s5 + $0x1c8] sm:$0xff]   ;;  %v15156_v3 = vrot.slane %v12903_v53, 1  ;;  %vm15157_vm12 = vmmov %vm15147_vm8  ;;  %v15166_v10 = vpack.c.bf16 %v15164_v36, %v15165_v59  ;;  %v13162_v53 = vld [vmem:[#allocation2 + $0x110] sm:$0xff] }
 0x369   : > { %15155 = vst [vmem:[#allocation107_spill] sm:$0xff] %v13118_v46  ;;  %vm15159_vm6 = vmmov %vm15147_vm8  ;;  %v15168_v59 = vld [vmem:[#allocation10_spill] sm:$0xff]  ;;  %8963 = vmatpush3.bf16.msra.mxu1 %v10032_v39  ;;  %v15181_v39 = vpack.c.bf16 %v12497_v45, %v12486_v16  ;;  %v10030_v16 = vld [vmem:[%s14091_s5 + $0x198] sm:$0xff]  }
 0x36a   : > { %v13140_v18 = vsel %vm15157_vm12, %v15156_v3, %v6286_v8  ;;  %v13144_v55 = vsel %vm15159_vm6, %v6288_v58, %v6289_v30  ;;  %vm15162_vm8 = vmmov %vm15159_vm6  ;;  %8114 = vmatmul.mubr.msk.bf16.gmra.mrb[172].mxu1 %vm14879_vm10, %v15166_v10  ;;  %v10037_v8 = vld [vmem:[%s14091_s5 + $0x118] sm:$0xff]   ;;  %v13160_v3 = vld [vmem:[#allocation2 + $0x100] sm:$0xff]  ;;  %9473 = vmatmul.mubr.msk.bf16.vlgmr.msra.gmra.mrb[88].mxu0 %vm14937_vm5, %v12520_v17  ;;  %v13195_v5 = vsel %vm15159_vm6, %v6291_v62, %v6292_v26 }
 0x36b   : > { %15158 = vst [vmem:[#allocation108_spill] sm:$0xff] %v13140_v18  ;;  %15160 = vst [vmem:[#allocation109_spill] sm:$0xff] %v13144_v55  ;;  %v13150_v22 = vsel %vm15162_vm8, %v15161_v42, %v6288_v58  ;;  %v15169_v10 = vld [vmem:[#allocation23_spill] sm:$0xff]  ;;  %v6293_v36 = vrot.slane %v13160_v3, 1  ;;  %9095 = vmatpush3.bf16.msra.mxu0 %v10022_v1  ;;  %9476 = vmatprep.mubr.msk.bf16.mxu0 %vm14947_vm4, %v12559_v29  ;;  %v10024_v17 = vld [vmem:[%s14091_s5 + $0x188] sm:$0xff]   ;;  %v14432_v1 = vrot.slane %v13162_v53, 1 }
 0x36c   : > { %15163 = vst [vmem:[#allocation110_spill] sm:$0xff] %v13150_v22  ;;  %4788 = vmatprep.mubr.bf16.mxu1 %v15169_v10  ;;  %vm15170_vm13 = vmmov %vm15159_vm6  ;;  %v13189_v58 = vld [vmem:[#allocation2 + $0x108] sm:$0xff]  ;;  %9096 = vmatprep.subr.bf16.mxu0 %v10023_v23  ;;  %v10038_v29 = vld [vmem:[%s14091_s5 + $0xd8] sm:$0xff]  }
 0x36d   : > { %v13177_v46 = vsel %vm15170_vm13, %v6290_v9, %v6291_v62  ;;  %vm15172_vm12 = vmmov %vm15159_vm6  ;;  %15174 = vst [vmem:[#allocation60_spill] sm:$0xff] %v13195_v5  ;;  %8964 = vmatprep.subr.bf16.mxu1 %v10037_v8  ;;  %v10043_v62 = vld [vmem:[%s14091_s5 + $0x120] sm:$0xff]   ;;  %v10028_v8 = vld [vmem:[%s14091_s5 + $0x190] sm:$0xff]  }
 0x36e   : > { %15171 = vst [vmem:[#allocation39_spill] sm:$0xff] %v13177_v46  ;;  %v13181_v27 = vsel %vm15172_vm12, %v6289_v30, %v6290_v9  ;;  %v10027_v9 = vld [vmem:[%s14091_s5 + $0x1d0] sm:$0xff]   ;;  %v6294_v30 = vrot.slane %v13189_v58, 1  ;;  %vm15175_vm8 = vmmov %vm15159_vm6  ;;  %8965 = vmatpush3.bf16.msra.mxu1 %v10038_v29  ;;  %v10033_v29 = vld [vmem:[%s14091_s5 + $0x1e0] sm:$0xff]  }
 0x36f   : > { %15173 = vst [vmem:[#allocation17_spill] sm:$0xff] %v13181_v27  ;;  %v13210_v23 = vsel %vm15175_vm8, %v6292_v26, %v6293_v36  ;;  %vm15177_vm13 = vmmov %vm15159_vm6  ;;  %9097 = vmatpush3.bf16.msra.mxu0 %v10024_v17  ;;  %v10029_v26 = vld [vmem:[%s14091_s5 + $0x1d8] sm:$0xff]   ;;  %8966 = vmatprep.subr.bf16.mxu1 %v10043_v62  ;;  %v10035_v62 = vld [vmem:[%s14091_s5 + $0x1e8] sm:$0xff]   ;;  %vm15189_vm8 = vnez %v15020_v47  ;;  %v15210_v17 = vpack.c.bf16 %v13090_v35, %v13027_v44 }
 0x370   : > { %15176 = vst [vmem:[#allocation10_spill] sm:$0xff] %v13210_v23  ;;  %v13218_v42 = vsel %vm15177_vm13, %v6294_v30, %v14432_v1  ;;  %vm15179_vm12 = vmmov %vm15159_vm6  ;;  %9098 = vmatprep.subr.bf16.mxu0 %v10027_v9  ;;  %v10044_v1 = vld [vmem:[%s14091_s5 + $0xe0] sm:$0xff]   ;;  %v15183_v9 = vld [vmem:[#allocation66_spill] sm:$0xff] }
 0x371   : > { %15178 = vst [vmem:[#allocation23_spill] sm:$0xff] %v13218_v42  ;;  %v13225_v27 = vsel %vm15179_vm12, %v6293_v36, %v6294_v30  ;;  %v10046_v36 = vld [vmem:[%s14091_s5 + $0x128] sm:$0xff]   ;;  %v10034_v30 = vld [vmem:[%s14091_s5 + $0x1a0] sm:$0xff]   ;;  %vm15193_vm12 = vnez %v15038_v56  ;;  %v15227_v18 = vld [vmem:[#allocation20_spill] sm:$0xff] }
 0x372   : > { %15180 = vst [vmem:[#allocation111_spill] sm:$0xff] %v13225_v27  ;;  %8117 = vmatmul.mubr.msk.bf16.gmra.mrb[176].mxu1 %vm14885_vm9, %v15181_v39  ;;  %9477 = vmatmul.mubr.msk.bf16.gmra.mrb[92].mxu0 %vm14955_vm1, %v12599_v21  ;;  %v10047_v21 = vld [vmem:[%s14091_s5 + $0xe8] sm:$0xff]   ;;  %v15184_v39 = vld [vmem:[#allocation67_spill] sm:$0xff]  ;;  %v15211_v27 = vld [vmem:[#allocation12_spill] sm:$0xff] }
 0x373   : > { %4796 = vmatprep.mubr.bf16.mxu1 %v15183_v9  ;;  %9480 = vmatprep.mubr.msk.bf16.mxu0 %vm14964_vm11, %v12638_v50  ;;  %v10049_v50 = vld [vmem:[%s14091_s5 + $0x130] sm:$0xff]   ;;  %v10064_v42 = vld [vmem:[#allocation2 + $0x28] sm:$0xff]  ;;  %v15215_v44 = vld [vmem:[#allocation25_spill] sm:$0xff] }
 0x374   : > { %9099 = vmatpush3.bf16.msra.mxu0 %v10028_v8  ;;  %8967 = vmatpush3.bf16.msra.mxu1 %v10044_v1  ;;  %v10050_v1 = vld [vmem:[%s14091_s5 + $0xf0] sm:$0xff]   ;;  %v6106_v23 = vrot.slane %v10064_v42, 7  ;;  %v10069_v55 = vld [vmem:[#allocation2 + $0x40] sm:$0xff] }
 0x375   : > { %9100 = vmatprep.subr.bf16.mxu0 %v10029_v26  ;;  %8968 = vmatprep.subr.bf16.mxu1 %v10046_v36  ;;  %v10052_v26 = vld [vmem:[%s14091_s5 + $0x138] sm:$0xff]   ;;  %v10036_v36 = vld [vmem:[%s14091_s5 + $0x1a8] sm:$0xff]   ;;  %v15232_v47 = vld [vmem:[#allocation29_spill] sm:$0xff] }
 0x378   : > { %9101 = vmatpush3.bf16.msra.mxu0 %v10030_v16  ;;  %8969 = vmatpush3.bf16.msra.mxu1 %v10047_v21  ;;  %v10039_v16 = vld [vmem:[%s14091_s5 + $0x1f0] sm:$0xff]   ;;  %v15186_v21 = vld [vmem:[#allocation69_spill] sm:$0xff] }
 0x379   : > { %9102 = vmatprep.subr.bf16.mxu0 %v10033_v29  ;;  %8970 = vmatprep.subr.bf16.mxu1 %v10049_v50  ;;  %v10041_v29 = vld [vmem:[%s14091_s5 + $0x1f8] sm:$0xff]   ;;  %v15187_v50 = vld [vmem:[#allocation11_spill] sm:$0xff] }
 0x37a   : > { %8120 = vmatmul.mubr.msk.bf16.gmra.mrb[180].mxu1 %vm14889_vm14, %v15184_v39  ;;  %9481 = vmatmul.mubr.msk.bf16.gmra.mrb[96].mxu0 %vm14974_vm15, %v12678_v52  ;;  %v10053_v52 = vld [vmem:[%s14091_s5 + $0xf8] sm:$0xff]   ;;  %vm15188_vm6 = vnez %v15187_v50 }
 0x37b   : > { %4804 = vmatprep.mubr.bf16.mxu1 %v12564_v33  ;;  %9484 = vmatprep.mubr.msk.bf16.mxu0 %vm14991_vm3, %v12714_v60  ;;  %v10040_v60 = vld [vmem:[%s14091_s5 + $0x1b0] sm:$0xff]  }
 0x37c   : > { %9103 = vmatpush3.bf16.msra.mxu0 %v10034_v30  ;;  %8971 = vmatpush3.bf16.msra.mxu1 %v10050_v1  ;;  %v10042_v30 = vld [vmem:[%s14091_s5 + $0x1b8] sm:$0xff]   ;;  %v15190_v1 = vld [vmem:[#allocation73_spill] sm:$0xff] }
 0x37d   : > { %9104 = vmatprep.subr.bf16.mxu0 %v10035_v62  ;;  %8972 = vmatprep.subr.bf16.mxu1 %v10052_v26  ;;  %v10045_v62 = vld [vmem:[%s14091_s5 + $0x200] sm:$0xff]   ;;  %v15195_v26 = vld [vmem:[#allocation47_spill] sm:$0xff] }
 0x380   : > { %9105 = vmatpush3.bf16.msra.mxu0 %v10036_v36  ;;  %8973 = vmatpush3.bf16.msra.mxu1 %v10053_v52  ;;  %v15197_v36 = vld [vmem:[#allocation74_spill] sm:$0xff]  ;;  %v15200_v52 = vld [vmem:[#allocation49_spill] sm:$0xff] }
 0x381   : > { %9106 = vmatprep.subr.bf16.mxu0 %v10039_v16  ;;  %v15198_v16 = vld [vmem:[#allocation34_spill] sm:$0xff]  ;;  %vm15201_vm3 = vnez %v15200_v52  ;;  %v15222_v52 = vld [vmem:[#allocation87_spill] sm:$0xff] }
 0x382   : > { %8123 = vmatmul.mubr.msk.bf16.gmra.mrb[184].mxu1 %vm15188_vm6, %v15186_v21  ;;  %9485 = vmatmul.mubr.msk.bf16.gmra.mrb[100].mxu0 %vm15006_vm2, %v12752_v12  ;;  %v15191_v12 = vld [vmem:[#allocation40_spill] sm:$0xff]  ;;  %vm15199_vm2 = vnez %v15198_v16 }
 0x383   : > { %4812 = vmatprep.mubr.bf16.mxu1 %v12604_v24  ;;  %9488 = vmatprep.mubr.msk.bf16.mxu0 %vm15189_vm8, %v12798_v63  ;;  %vm15192_vm13 = vnez %v15191_v12  ;;  %v15194_v63 = vld [vmem:[#allocation35_spill] sm:$0xff]  ;;  %vm15196_vm8 = vnez %v15195_v26 }
 0x384   : > { %9107 = vmatpush3.bf16.msra.mxu0 %v10040_v60  ;;  %v15202_v60 = vld [vmem:[#allocation56_spill] sm:$0xff] }
 0x385   : > { %9108 = vmatprep.subr.bf16.mxu0 %v10041_v29  ;;  %v15203_v29 = vld [vmem:[#allocation52_spill] sm:$0xff] }
 0x386   : > { %vm15204_vm15 = vnez %v15203_v29  ;;  %v10065_v29 = vld [vmem:[#allocation2 + $0x20] sm:$0xff] }
 0x387   : > { %v6233_v46 = vpack.c.bf16 %v10064_v42, %v10065_v29  ;;  %v6105_v35 = vrot.slane %v10065_v29, 7  ;;  %v10066_v29 = vld [vmem:[#allocation2 + $0x38] sm:$0xff] }
 0x388   : > { %9109 = vmatpush3.bf16.msra.mxu0 %v10042_v30  ;;  %v15206_v30 = vld [vmem:[#allocation18_spill] sm:$0xff]  ;;  %v6108_v15 = vrot.slane %v10066_v29, 7 }
 0x389   : > { %9504 = vmatprep.subr.bf16.mxu0 %v10045_v62 }
 0x38a   : > { %8126 = vmatmul.mubr.msk.bf16.gmra.mrb[188].mxu1 %vm15192_vm13, %v15190_v1  ;;  %9489 = vmatmul.mubr.msk.bf16.gmra.mrb[104].mxu0 %vm15193_vm12, %v12838_v61  ;;  %v15205_v61 = vld [vmem:[#allocation28_spill] sm:$0xff]  ;;  %vm15207_vm12 = vnez %v15206_v30 }
 0x38b   : > { %4820 = vmatprep.mubr.bf16.mxu1 %v15194_v63  ;;  %9492 = vmatprep.mubr.msk.bf16.mxu0 %vm15196_vm8, %v12884_v20  ;;  %vm15208_vm8 = vnez %v15106_v40  ;;  %v15209_v20 = vld [vmem:[#allocation19_spill] sm:$0xff]  ;;  %v15291_v30 = vld [vmem:[#allocation68_spill] sm:$0xff] }
 0x392   : > { %8129 = vmatmul.mubr.msk.bf16.gmra.mrb[192].mxu1 %vm15199_vm2, %v15197_v36  ;;  %9493 = vmatmul.mubr.msk.bf16.gmra.mrb[108].mxu0 %vm15201_vm3, %v12923_v25  ;;  %v13347_v25 = vld [vmem:[#allocation2 + $0x118] sm:$0xff] }
 0x393   : > { %4828 = vmatprep.mubr.bf16.mxu1 %v15202_v60  ;;  %9496 = vmatprep.mubr.msk.bf16.mxu0 %vm15204_vm15, %v12960_v54  ;;  %v15212_v54 = vld [vmem:[#allocation9_spill] sm:$0xff] }
 0x394   : > { %vm15213_vm15 = vnez %v15212_v54  ;;  %v15299_v54 = vld [vmem:[#allocation75_spill] sm:$0xff] }
 0x39a   : > { %8132 = vmatmul.mubr.msk.bf16.gmra.mrb[196].mxu1 %vm15207_vm12, %v15205_v61  ;;  %9497 = vmatmul.mubr.msk.bf16.gmra.mrb[112].mxu0 %vm15208_vm8, %v13009_v14  ;;  %v15214_v14 = vpack.c.bf16 %v13112_v11, %v13106_v19  ;;  %v10048_v11 = vld [vmem:[%s14091_s5 + $0x208] sm:$0xff]  }
 0x39b   : > { %4836 = vmatprep.mubr.bf16.mxu1 %v15209_v20  ;;  %9500 = vmatprep.mubr.msk.bf16.mxu0 %vm15124_vm7, %v15210_v17  ;;  %v14447_v17 = vrot.slane %v13347_v25, 7  ;;  %vm15216_vm7 = vcmp.lt.s32.totalorder %v10201_v28, 1  ;;  %v15218_v19 = vld [vmem:[#allocation46_spill] sm:$0xff] }
 0x39c   : > { %v6167_v6 = vsel %vm15216_vm7, %v6105_v35, %v6106_v23  ;;  %vm15217_vm8 = vmmov %vm15216_vm7  ;;  %vm15221_vm7 = vnez %v15132_v7 }
 0x39d   : > { %v6168_v42 = vsel %vm15217_vm8, %v14447_v17, %v6105_v35  ;;  %vm15223_vm3 = vmmov %vm15217_vm8 }
 0x39e   : > { %v8302_v40 = vpack.c.bf16 %v6167_v6, %v6168_v42  ;;  %v10051_v6 = vld [vmem:[%s14091_s5 + $0x210] sm:$0xff]  }
 0x3a2   : > { %8135 = vmatmul.mubr.msk.bf16.gmra.mrb[200].mxu1 %vm15213_vm15, %v15211_v27  ;;  %9501 = vmatmul.mubr.msk.bf16.gmra.mrb[116].mxu0 %vm15136_vm0, %v15214_v14  ;;  %v15219_v14 = vld [vmem:[#allocation48_spill] sm:$0xff] }
 0x3a3   : > { %4844 = vmatprep.mubr.bf16.mxu1 %v15215_v44  ;;  %6666 = vmatprep.mubr.bf16.mxu0 %v6233_v46  ;;  %vm15220_vm0 = vnez %v15219_v14  ;;  %v10067_v46 = vld [vmem:[#allocation2 + $0x30] sm:$0xff]  ;;  %v15303_v14 = vld [vmem:[#allocation78_spill] sm:$0xff] }
 0x3a4   : > { %v6234_v57 = vpack.c.bf16 %v10066_v29, %v10067_v46  ;;  %v6107_v35 = vrot.slane %v10067_v46, 7  ;;  %v10068_v46 = vld [vmem:[#allocation2 + $0x48] sm:$0xff] }
 0x3a5   : > { %v6110_v22 = vrot.slane %v10068_v46, 7  ;;  %v6235_v26 = vpack.c.bf16 %v10068_v46, %v10069_v55 }
 0x3a6   : > { %v6165_v42 = vsel %vm15217_vm8, %v6107_v35, %v6108_v15  ;;  %v6166_v17 = vsel %vm15223_vm3, %v6106_v23, %v6107_v35  ;;  %v6109_v23 = vrot.slane %v10069_v55, 7  ;;  %vm15228_vm8 = vmmov %vm15223_vm3  ;;  %v10056_v55 = vld [vmem:[%s14091_s5 + $0x228] sm:$0xff]  }
 0x3a7   : > { %v8305_v29 = vpack.c.bf16 %v6165_v42, %v6166_v17  ;;  %v10055_v17 = vld [vmem:[%s14091_s5 + $0x220] sm:$0xff]  }
 0x3a8   : > { %v6164_v35 = vsel %vm15228_vm8, %v6108_v15, %v6109_v23  ;;  %v6111_v15 = vrot.slane %v10071_v51, 7  ;;  %vm15233_vm8 = vmmov %vm15223_vm3 }
 0x3aa   : > { %8138 = vmatmul.mubr.msk.bf16.gmra.mrb[204].mxu1 %vm15220_vm0, %v15218_v19  ;;  %8303 = vmatmul.mubr.msk.bf16.vlgmr.msra.gmra.mrb[120].mxu0 %vm15221_vm7, %v8302_v40  ;;  %v10054_v40 = vld [vmem:[%s14091_s5 + $0x218] sm:$0xff]  }
 0x3ab   : > { %4852 = vmatprep.mubr.bf16.mxu1 %v15222_v52  ;;  %9505 = vmatpush3.bf16.msra.mxu0 %v10045_v62  ;;  %v15224_v62 = vld [vmem:[#allocation88_spill] sm:$0xff] }
 0x3ac   : > { %6674 = vmatprep.mubr.bf16.mxu0 %v6234_v57  ;;  %9506 = vmatprep.subr.bf16.mxu0 %v10048_v11  ;;  %v15225_v57 = vld [vmem:[#allocation32_spill] sm:$0xff] }
 0x3ad   : > { %vm15226_vm11 = vnez %v15225_v57 }
 0x3af   : > { %9507 = vmatpush3.bf16.msra.mxu0 %v10048_v11  ;;  %v6163_v11 = vsel %vm15223_vm3, %v6109_v23, %v6110_v22 }
 0x3b0   : > { %9508 = vmatprep.subr.bf16.mxu0 %v10051_v6  ;;  %v8308_v42 = vpack.c.bf16 %v6163_v11, %v6164_v35  ;;  %v6162_v11 = vsel %vm15233_vm8, %v6110_v22, %v6111_v15  ;;  %v15238_v22 = vld [vmem:[#allocation95_spill] sm:$0xff]  ;;  %vm15239_vm8 = vmmov %vm15223_vm3 }
 0x3b2   : > { %8141 = vmatmul.mubr.msk.bf16.gmra.mrb[208].mxu1 %vm15226_vm11, %v15224_v62  ;;  %8306 = vmatmul.mubr.msk.bf16.gmra.mrb[124].mxu0 %vm14879_vm10, %v8305_v29  ;;  %v10070_v29 = vld [vmem:[#allocation2 + $0x58] sm:$0xff] }
 0x3b3   : > { %4860 = vmatprep.mubr.bf16.mxu1 %v15227_v18  ;;  %6682 = vmatprep.mubr.bf16.mxu0 %v6235_v26  ;;  %v15229_v26 = vld [vmem:[#allocation31_spill] sm:$0xff]  ;;  %v6112_v46 = vrot.slane %v10070_v29, 7  ;;  %v6236_v56 = vpack.c.bf16 %v10070_v29, %v10071_v51  ;;  %v10058_v51 = vld [vmem:[%s14091_s5 + $0x238] sm:$0xff]  }
 0x3b4   : > { %9509 = vmatpush3.bf16.msra.mxu0 %v10051_v6  ;;  %v15230_v6 = vld [vmem:[#allocation15_spill] sm:$0xff] }
 0x3b5   : > { %9510 = vmatprep.subr.bf16.mxu0 %v10054_v40  ;;  %vm15231_vm1 = vnez %v15230_v6  ;;  %v6161_v23 = vsel %vm15223_vm3, %v6111_v15, %v6112_v46 }
 0x3b6   : > { %v8311_v35 = vpack.c.bf16 %v6161_v23, %v6162_v11 }
 0x3b8   : > { %9511 = vmatpush3.bf16.msra.mxu0 %v10054_v40  ;;  %v10057_v40 = vld [vmem:[%s14091_s5 + $0x230] sm:$0xff]  }
 0x3b9   : > { %9512 = vmatprep.subr.bf16.mxu0 %v10055_v17 }
 0x3ba   : > { %8144 = vmatmul.mubr.msk.bf16.gmra.mrb[212].mxu1 %vm15231_vm1, %v15229_v26  ;;  %8309 = vmatmul.mubr.msk.bf16.gmra.mrb[128].mxu0 %vm14885_vm9, %v8308_v42  ;;  %v15237_v42 = vld [vmem:[#allocation26_spill] sm:$0xff] }
 0x3bb   : > { %4868 = vmatprep.mubr.bf16.mxu1 %v15232_v47  ;;  %6690 = vmatprep.mubr.bf16.mxu0 %v6236_v56  ;;  %v15234_v56 = vld [vmem:[#allocation33_spill] sm:$0xff]  ;;  %v6114_v29 = vrot.slane %v15237_v42, 7  ;;  %v6237_v4 = vpack.c.bf16 %v15237_v42, %v10072_v2  ;;  %v15243_v42 = vld [vmem:[#allocation79_spill] sm:$0xff] }
 0x3bc   : > { %9513 = vmatpush3.bf16.msra.mxu0 %v10055_v17  ;;  %v15235_v17 = vld [vmem:[#allocation16_spill] sm:$0xff] }
 0x3bd   : > { %9514 = vmatprep.subr.bf16.mxu0 %v10056_v55  ;;  %vm15236_vm4 = vnez %v15235_v17 }
 0x3c0   : > { %9515 = vmatpush3.bf16.msra.mxu0 %v10056_v55  ;;  %v6113_v55 = vrot.slane %v10072_v2, 7  ;;  %v6238_v2 = vpack.c.bf16 %v15243_v42, %v15244_v38 }
 0x3c1   : > { %9516 = vmatprep.subr.bf16.mxu0 %v10057_v40 }
 0x3c2   : > { %8147 = vmatmul.mubr.msk.bf16.gmra.mrb[216].mxu1 %vm15236_vm4, %v15234_v56  ;;  %8312 = vmatmul.mubr.msk.bf16.gmra.mrb[132].mxu0 %vm14889_vm14, %v8311_v35  ;;  %v6159_v15 = vsel %vm15223_vm3, %v6113_v55, %v6114_v29  ;;  %v6160_v23 = vsel %vm15239_vm8, %v6112_v46, %v6113_v55  ;;  %v15241_v56 = vld [vmem:[#allocation62_spill] sm:$0xff]  ;;  %v6116_v35 = vrot.slane %v15243_v42, 7  ;;  %vm15245_vm8 = vmmov %vm15223_vm3  ;;  %v15246_v55 = vld [vmem:[#allocation64_spill] sm:$0xff] }
 0x3c3   : > { %4876 = vmatprep.mubr.bf16.mxu1 %v15238_v22  ;;  %6698 = vmatprep.mubr.bf16.mxu0 %v6237_v4  ;;  %v8314_v11 = vpack.c.bf16 %v6159_v15, %v6160_v23  ;;  %vm15242_vm5 = vnez %v15241_v56  ;;  %v6115_v4 = vrot.slane %v15244_v38, 7  ;;  %v15248_v15 = vld [vmem:[#allocation86_spill] sm:$0xff]  ;;  %v15249_v42 = vld [vmem:[#allocation80_spill] sm:$0xff] }
 0x3c4   : > { %9517 = vmatpush3.bf16.msra.mxu0 %v10057_v40  ;;  %v6118_v23 = vrot.slane %v15248_v15, 7  ;;  %v6117_v38 = vrot.slane %v15249_v42, 7 }
 0x3c5   : > { %9518 = vmatprep.subr.bf16.mxu0 %v10058_v51  ;;  %v6157_v46 = vsel %vm15223_vm3, %v6115_v4, %v6116_v35  ;;  %v6158_v40 = vsel %vm15245_vm8, %v6114_v29, %v6115_v4  ;;  %vm15250_vm8 = vmmov %vm15223_vm3 }
 0x3c6   : > { %v6155_v29 = vsel %vm15223_vm3, %v6117_v38, %v6118_v23 }
 0x3c8   : > { %9519 = vmatpush3.bf16.msra.mxu0 %v10058_v51  ;;  %v8317_v51 = vpack.c.bf16 %v6157_v46, %v6158_v40  ;;  %v15251_v46 = vld [vmem:[#allocation5_spill] sm:$0xff] }
 0x3c9   : > { %v15253_v40 = vld [vmem:[#allocation89_spill] sm:$0xff] }
 0x3ca   : > { %8150 = vmatmul.mubr.msk.bf16.gmra.mrb[220].mxu1 %vm15242_vm5, %v15240_v0  ;;  %8315 = vmatmul.mubr.msk.bf16.gmra.mrb[136].mxu0 %vm15188_vm6, %v8314_v11  ;;  %vm15247_vm5 = vnez %v15246_v55  ;;  %v6239_v11 = vpack.c.bf16 %v15248_v15, %v15249_v42  ;;  %v6120_v15 = vrot.slane %v15253_v40, 7  ;;  %v15255_v42 = vld [vmem:[#allocation41_spill] sm:$0xff] }
 0x3cb   : > { %4884 = vmatprep.mubr.bf16.mxu1 %v12964_v41  ;;  %6706 = vmatprep.mubr.bf16.mxu0 %v6238_v2  ;;  %v6156_v2 = vsel %vm15250_vm8, %v6116_v35, %v6117_v38  ;;  %vm15257_vm8 = vmmov %vm15223_vm3 }
 0x3cc   : > { %v8320_v4 = vpack.c.bf16 %v6155_v29, %v6156_v2  ;;  %v15258_v2 = vld [vmem:[#allocation107_spill] sm:$0xff] }
 0x3d2   : > { %8153 = vmatmul.mubr.msk.bf16.gmra.mrb[224].mxu1 %vm15247_vm5, %v12979_v37  ;;  %8318 = vmatmul.mubr.msk.bf16.gmra.mrb[140].mxu0 %vm15192_vm13, %v8317_v51  ;;  %vm15252_vm5 = vnez %v15251_v46  ;;  %v15254_v37 = vld [vmem:[#allocation82_spill] sm:$0xff] }
 0x3d3   : > { %4892 = vmatprep.mubr.bf16.mxu1 %v13013_v43  ;;  %6714 = vmatprep.mubr.bf16.mxu0 %v6239_v11  ;;  %v6240_v51 = vpack.c.bf16 %v15253_v40, %v15254_v37  ;;  %v15256_v11 = vpack.c.bf16 %v15255_v42, %v12468_v49  ;;  %v6119_v43 = vrot.slane %v15254_v37, 7  ;;  %v15259_v40 = vpack.c.bf16 %v12503_v34, %v15258_v2  ;;  %v15261_v49 = vld [vmem:[#allocation90_spill] sm:$0xff]  ;;  %v15268_v2 = vld [vmem:[#allocation63_spill] sm:$0xff] }
 0x3d4   : > { %v6121_v37 = vrot.slane %v15261_v49, 7 }
 0x3d5   : > { %v6153_v35 = vsel %vm15223_vm3, %v6119_v43, %v6120_v15  ;;  %v6154_v38 = vsel %vm15257_vm8, %v6118_v23, %v6119_v43  ;;  %vm15262_vm8 = vmmov %vm15223_vm3  ;;  %v15263_v23 = vld [vmem:[#allocation7_spill] sm:$0xff] }
 0x3d6   : > { %v8323_v29 = vpack.c.bf16 %v6153_v35, %v6154_v38  ;;  %v6152_v34 = vsel %vm15262_vm8, %v6120_v15, %v6121_v37  ;;  %v15266_v38 = vld [vmem:[#allocation55_spill] sm:$0xff]  ;;  %vm15271_vm8 = vmmov %vm15223_vm3 }
 0x3da   : > { %8156 = vmatmul.mubr.msk.bf16.gmra.mrb[228].mxu1 %vm15252_vm5, %v13036_v31  ;;  %8321 = vmatmul.mubr.msk.bf16.gmra.mrb[144].mxu0 %vm15199_vm2, %v8320_v4  ;;  %v15260_v4 = vld [vmem:[#allocation51_spill] sm:$0xff] }
 0x3db   : > { %5687 = vmatprep.mubr.bf16.mxu1 %v15256_v11  ;;  %6722 = vmatprep.mubr.bf16.mxu0 %v6240_v51  ;;  %v6122_v31 = vrot.slane %v15260_v4, 7  ;;  %v6241_v42 = vpack.c.bf16 %v15260_v4, %v15261_v49  ;;  %v15264_v51 = vpack.c.bf16 %v12497_v45, %v15263_v23  ;;  %v15265_v11 = vld [vmem:[#allocation43_spill] sm:$0xff]  ;;  %v15269_v4 = vld [vmem:[#allocation36_spill] sm:$0xff]  ;;  %v15276_v23 = vld [vmem:[#allocation21_spill] sm:$0xff] }
 0x3dc   : > { %v6124_v35 = vrot.slane %v15265_v11, 7  ;;  %v6243_v49 = vpack.c.bf16 %v15268_v2, %v15269_v4 }
 0x3dd   : > { %v6151_v43 = vsel %vm15223_vm3, %v6121_v37, %v6122_v31 }
 0x3de   : > { %v8326_v7 = vpack.c.bf16 %v6151_v43, %v6152_v34  ;;  %v15273_v43 = vld [vmem:[#allocation30_spill] sm:$0xff] }
 0x3e2   : > { %8207 = vmatmul.mubr.msk.bf16.vlgmr.msra.gmra.mrb[232].mxu1 %vm15221_vm7, %v15259_v40  ;;  %8324 = vmatmul.mubr.msk.bf16.gmra.mrb[148].mxu0 %vm15207_vm12, %v8323_v29  ;;  %v6123_v29 = vrot.slane %v15266_v38, 7  ;;  %vm15267_vm7 = vmmov %vm15223_vm3  ;;  %v6126_v40 = vrot.slane %v15268_v2, 7  ;;  %v6134_v2 = vrot.slane %v13189_v58, 7 }
 0x3e3   : > { %5695 = vmatprep.mubr.bf16.mxu1 %v15169_v10  ;;  %6730 = vmatprep.mubr.bf16.mxu0 %v6241_v42  ;;  %v6242_v10 = vpack.c.bf16 %v15265_v11, %v15266_v38  ;;  %v15272_v42 = vld [vmem:[#allocation100_spill] sm:$0xff]  ;;  %v15277_v11 = vld [vmem:[#allocation101_spill] sm:$0xff] }
 0x3e4   : > { %v6149_v15 = vsel %vm15267_vm7, %v6123_v29, %v6124_v35  ;;  %v6150_v45 = vsel %vm15223_vm3, %v6122_v31, %v6123_v29  ;;  %v6128_v37 = vrot.slane %v15272_v42, 7  ;;  %v6244_v34 = vpack.c.bf16 %v15272_v42, %v15273_v43  ;;  %vm15275_vm7 = vmmov %vm15223_vm3  ;;  %v15296_v42 = vld [vmem:[#allocation70_spill] sm:$0xff] }
 0x3e5   : > { %v8329_v32 = vpack.c.bf16 %v6149_v15, %v6150_v45  ;;  %v15280_v15 = vld [vmem:[#allocation102_spill] sm:$0xff] }
 0x3ea   : > { %8210 = vmatmul.mubr.msk.bf16.gmra.mrb[236].mxu1 %vm14879_vm10, %v15264_v51  ;;  %8327 = vmatmul.mubr.msk.bf16.gmra.mrb[152].mxu0 %vm15213_vm15, %v8326_v7  ;;  %vm15270_vm10 = vmmov %vm15223_vm3  ;;  %v6130_v51 = vrot.slane %v15276_v23, 7 }
 0x3eb   : > { %5703 = vmatprep.mubr.bf16.mxu1 %v15183_v9  ;;  %6738 = vmatprep.mubr.bf16.mxu0 %v6242_v10  ;;  %v6125_v9 = vrot.slane %v15269_v4, 7  ;;  %v15279_v10 = vld [vmem:[#allocation105_spill] sm:$0xff] }
 0x3ec   : > { %v6132_v29 = vrot.slane %v15279_v10, 7  ;;  %v6246_v45 = vpack.c.bf16 %v15279_v10, %v15280_v15 }
 0x3ed   : > { %v6147_v31 = vsel %vm15270_vm10, %v6125_v9, %v6126_v40  ;;  %v6148_v5 = vsel %vm15271_vm8, %v6124_v35, %v6125_v9  ;;  %v6245_v35 = vpack.c.bf16 %v15276_v23, %v15277_v11  ;;  %vm15282_vm10 = vmmov %vm15223_vm3  ;;  %v15312_v23 = vld [vmem:[#allocation33_spill] sm:$0xff] }
 0x3ee   : > { %vm15284_vm8 = vmmov %vm15223_vm3 }
 0x3f2   : > { %8213 = vmatmul.mubr.msk.bf16.gmra.mrb[240].mxu1 %vm14885_vm9, %v15184_v39  ;;  %8330 = vmatmul.mubr.msk.bf16.gmra.mrb[156].mxu0 %vm15220_vm0, %v8329_v32  ;;  %v8332_v39 = vpack.c.bf16 %v6147_v31, %v6148_v5  ;;  %vm15274_vm9 = vmmov %vm15223_vm3  ;;  %v15293_v5 = vld [vmem:[#allocation8_spill] sm:$0xff] }
 0x3f3   : > { %5711 = vmatprep.mubr.bf16.mxu1 %v12564_v33  ;;  %6746 = vmatprep.mubr.bf16.mxu0 %v6243_v49  ;;  %v6127_v33 = vrot.slane %v15273_v43, 7 }
 0x3f5   : > { %v6145_v7 = vsel %vm15274_vm9, %v6127_v33, %v6128_v37  ;;  %v6146_v8 = vsel %vm15275_vm7, %v6126_v40, %v6127_v33  ;;  %v6247_v40 = vpack.c.bf16 %v13189_v58, %v13160_v3  ;;  %vm15285_vm9 = vmmov %vm15223_vm3  ;;  %v6135_v58 = vrot.slane %v13162_v53, 7  ;;  %v15310_v33 = vld [vmem:[#allocation24_spill] sm:$0xff] }
 0x3f6   : > { %vm15288_vm7 = vmmov %vm15223_vm3 }
 0x3fa   : > { %8216 = vmatmul.mubr.msk.bf16.gmra.mrb[244].mxu1 %vm14889_vm14, %v15186_v21  ;;  %8333 = vmatmul.mubr.msk.bf16.gmra.mrb[160].mxu0 %vm15226_vm11, %v8332_v39  ;;  %v8335_v21 = vpack.c.bf16 %v6145_v7, %v6146_v8  ;;  %vm15278_vm14 = vmmov %vm15223_vm3  ;;  %v15295_v39 = vld [vmem:[#allocation72_spill] sm:$0xff] }
 0x3fb   : > { %5719 = vmatprep.mubr.bf16.mxu1 %v12604_v24  ;;  %6754 = vmatprep.mubr.bf16.mxu0 %v6244_v34  ;;  %v6129_v24 = vrot.slane %v15277_v11, 7  ;;  %v15316_v11 = vld [vmem:[#allocation27_spill] sm:$0xff] }
 0x3fd   : > { %v6143_v38 = vsel %vm15278_vm14, %v6129_v24, %v6130_v51  ;;  %v6144_v50 = vsel %vm15223_vm3, %v6128_v37, %v6129_v24  ;;  %vm15289_vm14 = vmmov %vm15223_vm3  ;;  %v15297_v37 = vpack.c.bf16 %v15295_v39, %v15296_v42  ;;  %v15319_v24 = vld [vmem:[#allocation6_spill] sm:$0xff] }
 0x3fe   : > { %v6138_v9 = vsel %vm15289_vm14, %v6134_v2, %v6135_v58 }
 0x402   : > { %8219 = vmatmul.mubr.msk.bf16.gmra.mrb[248].mxu1 %vm15188_vm6, %v15190_v1  ;;  %8336 = vmatmul.mubr.msk.bf16.gmra.mrb[164].mxu0 %vm15231_vm1, %v8335_v21  ;;  %v8338_v1 = vpack.c.bf16 %v6143_v38, %v6144_v50  ;;  %vm15281_vm6 = vmmov %vm15223_vm3  ;;  %vm15302_vm3 = vnez %v14723_v13  ;;  %v15321_v50 = vld [vmem:[#allocation37_spill] sm:$0xff] }
 0x403   : > { %5727 = vmatprep.mubr.bf16.mxu1 %v15194_v63  ;;  %6762 = vmatprep.mubr.bf16.mxu0 %v6245_v35  ;;  %v6131_v63 = vrot.slane %v15280_v15, 7  ;;  %v15318_v35 = vld [vmem:[#allocation91_spill] sm:$0xff] }
 0x404   : > { %v15320_v38 = vpack.c.bf16 %v15318_v35, %v15319_v24  ;;  %v15359_v35 = vld [vmem:[#allocation106_spill] sm:$0xff]  ;;  %v15360_v24 = vld [vmem:[#allocation104_spill] sm:$0xff] }
 0x405   : > { %v6141_v32 = vsel %vm15281_vm6, %v6131_v63, %v6132_v29  ;;  %v6142_v12 = vsel %vm15282_vm10, %v6130_v51, %v6131_v63  ;;  %vm15311_vm6 = vnez %v15310_v33  ;;  %vm15322_vm10 = vnez %v15321_v50  ;;  %v15323_v63 = vld [vmem:[#allocation92_spill] sm:$0xff] }
 0x406   : > { %v6296_v50 = vrot.slane %v13347_v25, 1 }
 0x40a   : > { %8222 = vmatmul.mubr.msk.bf16.gmra.mrb[252].mxu1 %vm15192_vm13, %v15197_v36  ;;  %8339 = vmatmul.mubr.msk.bf16.gmra.mrb[168].mxu0 %vm15236_vm4, %v8338_v1  ;;  %v8341_v36 = vpack.c.bf16 %v6141_v32, %v6142_v12  ;;  %vm15283_vm13 = vnez %v15241_v56  ;;  %v15326_v12 = vld [vmem:[#allocation38_spill] sm:$0xff] }
 0x40b   : > { %5735 = vmatprep.mubr.bf16.mxu1 %v15202_v60  ;;  %6770 = vmatprep.mubr.bf16.mxu0 %v6246_v45  ;;  %v6133_v60 = vrot.slane %v13160_v3, 7  ;;  %v15287_v3 = vrot.slane %v13347_v25, 7 }
 0x40d   : > { %v6139_v4 = vsel %vm15284_vm8, %v6133_v60, %v6134_v2  ;;  %v6140_v16 = vsel %vm15285_vm9, %v6132_v29, %v6133_v60  ;;  %v15329_v2 = vld [vmem:[#allocation96_spill] sm:$0xff] }
 0x40e   : > { %v8344_v49 = vpack.c.bf16 %v6139_v4, %v6140_v16  ;;  %v15331_v60 = vld [vmem:[#allocation44_spill] sm:$0xff] }
 0x40f   : > { %vm15332_vm8 = vnez %v15331_v60 }
 0x412   : > { %8225 = vmatmul.mubr.msk.bf16.gmra.mrb[0].mxu1 %vm15199_vm2, %v15205_v61  ;;  %8342 = vmatmul.mubr.msk.bf16.gmra.mrb[172].mxu0 %vm15283_vm13, %v8341_v36  ;;  %v6248_v61 = vpack.c.bf16 %v13347_v25, %v13162_v53  ;;  %vm15286_vm2 = vnez %v15246_v55  ;;  %v15328_v36 = vld [vmem:[#allocation94_spill] sm:$0xff]  ;;  %v15374_v25 = vld [vmem:[#allocation65_spill] sm:$0xff] }
 0x413   : > { %5743 = vmatprep.mubr.bf16.mxu1 %v15209_v20  ;;  %6778 = vmatprep.mubr.bf16.mxu0 %v6247_v40  ;;  %v6137_v20 = vsel %vm15288_vm7, %v6135_v58, %v15287_v3  ;;  %v15330_v40 = vpack.c.bf16 %v15328_v36, %v15329_v2  ;;  %v15333_v58 = vld [vmem:[#allocation22_spill] sm:$0xff]  ;;  %v15334_v3 = vld [vmem:[#allocation97_spill] sm:$0xff]  ;;  %v15375_v60 = vrot.slane %v15374_v25, 1 }
 0x414   : > { %v8347_v31 = vpack.c.bf16 %v6137_v20, %v6138_v9  ;;  %v15337_v9 = vld [vmem:[#allocation45_spill] sm:$0xff] }
 0x41a   : > { %8228 = vmatmul.mubr.msk.bf16.gmra.mrb[4].mxu1 %vm15207_vm12, %v15211_v27  ;;  %8345 = vmatmul.mubr.msk.bf16.gmra.mrb[176].mxu0 %vm15286_vm2, %v8344_v49  ;;  %v15290_v27 = vld [vmem:[#allocation71_spill] sm:$0xff]  ;;  %vm15294_vm12 = vnez %v15293_v5 }
 0x41b   : > { %5751 = vmatprep.mubr.bf16.mxu1 %v15215_v44  ;;  %6786 = vmatprep.mubr.bf16.mxu0 %v6248_v61  ;;  %v15292_v44 = vpack.c.bf16 %v15290_v27, %v15291_v30  ;;  %v15340_v27 = vld [vmem:[#allocation103_spill] sm:$0xff]  ;;  %v15341_v30 = vld [vmem:[#allocation108_spill] sm:$0xff] }
 0x41c   : > { %v15343_v5 = vld [vmem:[#allocation47_spill] sm:$0xff] }
 0x41d   : > { %vm15344_vm9 = vnez %v15343_v5 }
 0x422   : > { %8231 = vmatmul.mubr.msk.bf16.gmra.mrb[8].mxu1 %vm15213_vm15, %v15218_v19  ;;  %8348 = vmatmul.mubr.msk.bf16.gmra.mrb[180].mxu0 %vm15252_vm5, %v8347_v31  ;;  %vm15298_vm15 = vnez %v15168_v59  ;;  %v15307_v59 = vld [vmem:[#allocation81_spill] sm:$0xff]  ;;  %v15339_v31 = vld [vmem:[#allocation42_spill] sm:$0xff] }
 0x423   : > { %5759 = vmatprep.mubr.bf16.mxu1 %v15222_v52  ;;  %9520 = vmatprep.mubr.msk.bf16.mxu0 %vm15294_vm12, %v15292_v44  ;;  %v15300_v52 = vld [vmem:[#allocation76_spill] sm:$0xff]  ;;  %v15342_v44 = vpack.c.bf16 %v15340_v27, %v15341_v30 }
 0x424   : > { %v15301_v19 = vpack.c.bf16 %v15299_v54, %v15300_v52 }
 0x42a   : > { %8234 = vmatmul.mubr.msk.bf16.gmra.mrb[12].mxu1 %vm15220_vm0, %v15224_v62  ;;  %9521 = vmatmul.mubr.msk.bf16.vlgmr.msra.gmra.mrb[88].mxu0 %vm15298_vm15, %v15297_v37  ;;  %v15304_v62 = vld [vmem:[#allocation77_spill] sm:$0xff]  ;;  %vm15306_vm0 = vnez %v14731_v48  ;;  %v15313_v48 = vld [vmem:[#allocation84_spill] sm:$0xff] }
 0x42b   : > { %5767 = vmatprep.mubr.bf16.mxu1 %v15227_v18  ;;  %9524 = vmatprep.mubr.msk.bf16.mxu0 %vm15302_vm3, %v15301_v19  ;;  %v15305_v43 = vpack.c.bf16 %v15303_v14, %v15304_v62  ;;  %v15308_v18 = vld [vmem:[#allocation83_spill] sm:$0xff]  ;;  %v15345_v19 = vld [vmem:[#allocation98_spill] sm:$0xff]  ;;  %v15346_v14 = vld [vmem:[#allocation109_spill] sm:$0xff]  ;;  %vm7283_vm3 = vcmask 60416  }
 0x42c   : > { %v15309_v34 = vpack.c.bf16 %v15307_v59, %v15308_v18  ;;  %v15347_v62 = vld [vmem:[#allocation110_spill] sm:$0xff]  ;;  %v15349_v59 = vld [vmem:[#allocation49_spill] sm:$0xff] }
 0x42d   : > { %v15351_v18 = vld [vmem:[#allocation58_spill] sm:$0xff] }
 0x432   : > { %8237 = vmatmul.mubr.msk.bf16.gmra.mrb[16].mxu1 %vm15226_vm11, %v15229_v26  ;;  %9525 = vmatmul.mubr.msk.bf16.gmra.mrb[92].mxu0 %vm15306_vm0, %v15305_v43  ;;  %vm15317_vm11 = vnez %v15316_v11  ;;  %v15348_v43 = vpack.c.bf16 %v15346_v14, %v15347_v62 }
 0x433   : > { %5775 = vmatprep.mubr.bf16.mxu1 %v15232_v47  ;;  %9528 = vmatprep.mubr.msk.bf16.mxu0 %vm15311_vm6, %v15309_v34  ;;  %v8838_v13 = vpop.f32.mrb[168].mxu1  ;;  %v15314_v47 = vld [vmem:[#allocation85_spill] sm:$0xff]  ;;  %v15352_v34 = vld [vmem:[#allocation99_spill] sm:$0xff] }
 0x434   : > { %v8839_v7 = vpop.f32.mrb[169].mxu1  ;;  %v15315_v51 = vpack.c.bf16 %v15313_v48, %v15314_v47  ;;  %v15353_v33 = vpack.c.bf16 %v15351_v18, %v15352_v34 }
 0x435   : > { %v13628_v8 = vadd.f32 %v8839_v7, %v8838_v13  ;;  %v8841_v57 = vpop.f32.mrb[170].mxu1  ;;  %v15354_v13 = vld [vmem:[#allocation39_spill] sm:$0xff]  ;;  %v15355_v7 = vld [vmem:[#allocation17_spill] sm:$0xff] }
 0x436   : > { %v8842_v26 = vpop.f32.mrb[171].mxu1 }
 0x437   : > { %v13630_v21 = vadd.f32 %v8842_v26, %v8841_v57  ;;  %v15356_v57 = vpack.c.bf16 %v15354_v13, %v15355_v7  ;;  %v15357_v26 = vld [vmem:[#allocation52_spill] sm:$0xff] }
 0x438   : > { %vm15358_vm7 = vnez %v15357_v26 }
 0x43a   : > { %8240 = vmatmul.mubr.msk.bf16.gmra.mrb[20].mxu1 %vm15231_vm1, %v15312_v23  ;;  %9529 = vmatmul.mubr.msk.bf16.gmra.mrb[96].mxu0 %vm15317_vm11, %v15315_v51  ;;  %vm15327_vm1 = vnez %v15326_v12  ;;  %v15370_v12 = vld [vmem:[#allocation57_spill] sm:$0xff] }
 0x43b   : > { %5783 = vmatprep.mubr.bf16.mxu1 %v15238_v22  ;;  %9532 = vmatprep.mubr.msk.bf16.mxu0 %vm15322_vm10, %v15320_v38  ;;  %v15324_v22 = vld [vmem:[#allocation93_spill] sm:$0xff]  ;;  %v15361_v38 = vpack.c.bf16 %v15359_v35, %v15360_v24  ;;  %vm15371_vm14 = vnez %v15370_v12 }
 0x43c   : > { %v15325_v32 = vpack.c.bf16 %v15323_v63, %v15324_v22  ;;  %v15367_v63 = vld [vmem:[#allocation23_spill] sm:$0xff] }
 0x43d   : > { %v8844_v1 = vpop.f32.mrb[172].mxu1  ;;  %v15368_v22 = vld [vmem:[#allocation111_spill] sm:$0xff] }
 0x43e   : > { %v8845_v10 = vpop.f32.mrb[173].mxu1 }
 0x43f   : > { %v13646_v29 = vadd.f32 %v8845_v10, %v8844_v1  ;;  %v8847_v6 = vpop.f32.mrb[174].mxu1  ;;  %v15362_v1 = vld [vmem:[#allocation10_spill] sm:$0xff]  ;;  %v15363_v10 = vld [vmem:[#allocation60_spill] sm:$0xff] }
 0x440   : > { %v8848_v15 = vpop.f32.mrb[175].mxu1 }
 0x441   : > { %v13648_v45 = vadd.f32 %v8848_v15, %v8847_v6  ;;  %v15364_v6 = vpack.c.bf16 %v15362_v1, %v15363_v10  ;;  %v15365_v15 = vld [vmem:[#allocation53_spill] sm:$0xff] }
 0x442   : > { %8243 = vmatmul.mubr.msk.bf16.gmra.mrb[24].mxu1 %vm15236_vm4, %v15240_v0  ;;  %9533 = vmatmul.mubr.msk.bf16.gmra.mrb[100].mxu0 %vm15327_vm1, %v15325_v32  ;;  %vm15338_vm4 = vnez %v15337_v9  ;;  %v15369_v32 = vpack.c.bf16 %v15367_v63, %v15368_v22 }
 0x443   : > { %5791 = vmatprep.mubr.bf16.mxu1 %v12964_v41  ;;  %9536 = vmatprep.mubr.msk.bf16.mxu0 %vm15332_vm8, %v15330_v40  ;;  %v15335_v41 = vld [vmem:[#allocation13_spill] sm:$0xff]  ;;  %v15372_v40 = vrot.slane %v13162_v53, 1 }
 0x444   : > { %v15336_v20 = vpack.c.bf16 %v15334_v3, %v15335_v41  ;;  %v15377_v41 = vld [vmem:[#allocation59_spill] sm:$0xff] }
 0x445   : > { %v8850_v4 = vpop.f32.mrb[176].mxu1  ;;  %vm15378_vm15 = vnez %v15377_v41 }
 0x446   : > { %v8851_v16 = vpop.f32.mrb[177].mxu1 }
 0x447   : > { %v13664_v61 = vadd.f32 %v8851_v16, %v8850_v4  ;;  %v8853_v17 = vpop.f32.mrb[178].mxu1 }
 0x448   : > { %v8854_v0 = vpop.f32.mrb[179].mxu1 }
 0x449   : > { %v13666_v49 = vadd.f32 %v8854_v0, %v8853_v17 }
 0x44a   : > { %8246 = vmatmul.mubr.msk.bf16.gmra.mrb[28].mxu1 %vm15283_vm13, %v15333_v58  ;;  %9537 = vmatmul.mubr.msk.bf16.gmra.mrb[104].mxu0 %vm15338_vm4, %v15336_v20  ;;  %vm15350_vm13 = vnez %v15349_v59 }
 0x44b   : > { %5799 = vmatprep.mubr.bf16.mxu1 %v15339_v31  ;;  %9540 = vmatprep.mubr.msk.bf16.mxu0 %vm15344_vm9, %v15342_v44 }
 0x44d   : > { %v8856_v39 = vpop.f32.mrb[180].mxu1 }
 0x44e   : > { %v8857_v42 = vpop.f32.mrb[181].mxu1 }
 0x44f   : > { %v13682_v37 = vadd.f32 %v8857_v42, %v8856_v39  ;;  %v8859_v56 = vpop.f32.mrb[182].mxu1 }
 0x450   : > { %v8860_v54 = vpop.f32.mrb[183].mxu1 }
 0x451   : > { %v13684_v52 = vadd.f32 %v8860_v54, %v8859_v56 }
 0x452   : > { %8249 = vmatmul.mubr.msk.bf16.gmra.mrb[32].mxu1 %vm15286_vm2, %v15345_v19  ;;  %9541 = vmatmul.mubr.msk.bf16.gmra.mrb[108].mxu0 %vm15350_vm13, %v15348_v43  ;;  %vm15366_vm2 = vnez %v15365_v15 }
 0x453   : > { %5807 = vmatprep.mubr.bf16.mxu1 %v15353_v33  ;;  %9544 = vmatprep.mubr.msk.bf16.mxu0 %vm15358_vm7, %v15356_v57 }
 0x455   : > { %v8862_v23 = vpop.f32.mrb[184].mxu1 }
 0x456   : > { %v8863_v48 = vpop.f32.mrb[185].mxu1 }
 0x457   : > { %v13702_v55 = vadd.f32 %v8863_v48, %v8862_v23  ;;  %v8865_v47 = vpop.f32.mrb[186].mxu1 }
 0x458   : > { %v8866_v51 = vpop.f32.mrb[187].mxu1 }
 0x459   : > { %v13704_v11 = vadd.f32 %v8866_v51, %v8865_v47 }
 0x45a   : > { %8252 = vmatmul.mubr.msk.bf16.gmra.mrb[36].mxu1 %vm15252_vm5, %v15361_v38  ;;  %9545 = vmatmul.mubr.msk.bf16.gmra.mrb[112].mxu0 %vm15366_vm2, %v15364_v6  ;;  %vm15373_vm5 = vcmp.lt.s32.totalorder %v10201_v28, 7 }
 0x45b   : > { %9548 = vmatprep.mubr.msk.bf16.mxu0 %vm15371_vm14, %v15369_v32  ;;  %v6297_v46 = vsel %vm15373_vm5, %v15372_v40, %v6296_v50  ;;  %vm15376_vm12 = vmmov %vm15373_vm5 }
 0x45c   : > { %v6328_v4 = vsel %vm15376_vm12, %v6296_v50, %v15375_v60 }
 0x45d   : > { %v8868_v36 = vpop.f32.mrb[188].mxu1  ;;  %v8395_v3 = vpack.c.bf16 %v6328_v4, %v6297_v46 }
 0x45e   : > { %v8869_v2 = vpop.f32.mrb[189].mxu1 }
 0x45f   : > { %v13730_v16 = vadd.f32 %v8869_v2, %v8868_v36  ;;  %v8871_v17 = vpop.f32.mrb[190].mxu1 }
 0x460   : > { %v8872_v0 = vpop.f32.mrb[191].mxu1 }
 0x461   : > { %v13732_v58 = vadd.f32 %v8872_v0, %v8871_v17 }
 0x462   : > { %9549 = vmatmul.mubr.msk.bf16.gmra.mrb[116].mxu0 %vm15378_vm15, %v8395_v3 }
 0x465   : > { %v8874_v20 = vpop.f32.mrb[192].mxu1 }
 0x466   : > { %v8875_v53 = vpop.f32.mrb[193].mxu1 }
 0x467   : > { %v13736_v9 = vadd.f32 %v8875_v53, %v8874_v20  ;;  %v8877_v31 = vpop.f32.mrb[194].mxu1 }
 0x468   : > { %v8878_v27 = vpop.f32.mrb[195].mxu1 }
 0x469   : > { %v13738_v30 = vadd.f32 %v8878_v27, %v8877_v31 }
 0x46d   : > { %v8880_v28 = vpop.f32.mrb[196].mxu1 }
 0x46e   : > { %v8881_v44 = vpop.f32.mrb[197].mxu1 }
 0x46f   : > { %v13740_v5 = vadd.f32 %v8881_v44, %v8880_v28  ;;  %v8883_v39 = vpop.f32.mrb[198].mxu1 }
 0x470   : > { %v8884_v42 = vpop.f32.mrb[199].mxu1 }
 0x471   : > { %v13742_v56 = vadd.f32 %v8884_v42, %v8883_v39 }
 0x475   : > { %v8886_v54 = vpop.f32.mrb[200].mxu1 }
 0x476   : > { %v8887_v19 = vpop.f32.mrb[201].mxu1 }
 0x477   : > { %v13744_v14 = vadd.f32 %v8887_v19, %v8886_v54  ;;  %v8889_v62 = vpop.f32.mrb[202].mxu1 }
 0x478   : > { %v8890_v43 = vpop.f32.mrb[203].mxu1 }
 0x479   : > { %v13746_v59 = vadd.f32 %v8890_v43, %v8889_v62 }
 0x47d   : > { %v8892_v18 = vpop.f32.mrb[204].mxu1  ;;  %v9110_v34 = vpop.f32.mrb[120].mxu0 }
 0x47e   : > { %v8893_v33 = vpop.f32.mrb[205].mxu1  ;;  %v9111_v7 = vpop.f32.mrb[121].mxu0 }
 0x47f   : > { %v13748_v13 = vadd.f32 %v8893_v33, %v8892_v18  ;;  %v8895_v57 = vpop.f32.mrb[206].mxu1  ;;  %v13750_v26 = vadd.f32 %v9111_v7, %v9110_v34  ;;  %v9113_v23 = vpop.f32.mrb[122].mxu0 }
 0x480   : > { %v8896_v48 = vpop.f32.mrb[207].mxu1  ;;  %v9114_v51 = vpop.f32.mrb[123].mxu0 }
 0x481   : > { %v13752_v47 = vadd.f32 %v8896_v48, %v8895_v57  ;;  %v13754_v35 = vadd.f32 %v9114_v51, %v9113_v23 }
 0x485   : > { %v8898_v24 = vpop.f32.mrb[208].mxu1  ;;  %v9116_v38 = vpop.f32.mrb[124].mxu0 }
 0x486   : > { %v8899_v50 = vpop.f32.mrb[209].mxu1  ;;  %v9117_v10 = vpop.f32.mrb[125].mxu0 }
 0x487   : > { %v13756_v1 = vadd.f32 %v8899_v50, %v8898_v24  ;;  %v8901_v6 = vpop.f32.mrb[210].mxu1  ;;  %v13758_v15 = vadd.f32 %v9117_v10, %v9116_v38  ;;  %v9119_v63 = vpop.f32.mrb[126].mxu0 }
 0x488   : > { %v8902_v22 = vpop.f32.mrb[211].mxu1  ;;  %v9120_v12 = vpop.f32.mrb[127].mxu0 }
 0x489   : > { %v13760_v32 = vadd.f32 %v8902_v22, %v8901_v6  ;;  %v13762_v36 = vadd.f32 %v9120_v12, %v9119_v63 }
 0x48d   : > { %v8904_v2 = vpop.f32.mrb[212].mxu1  ;;  %v9122_v40 = vpop.f32.mrb[128].mxu0 }
 0x48e   : > { %v8905_v46 = vpop.f32.mrb[213].mxu1  ;;  %v9123_v60 = vpop.f32.mrb[129].mxu0 }
 0x48f   : > { %v13764_v25 = vadd.f32 %v8905_v46, %v8904_v2  ;;  %v8907_v4 = vpop.f32.mrb[214].mxu1  ;;  %v13766_v17 = vadd.f32 %v9123_v60, %v9122_v40  ;;  %v9125_v0 = vpop.f32.mrb[130].mxu0 }
 0x490   : > { %v8908_v3 = vpop.f32.mrb[215].mxu1  ;;  %v9126_v20 = vpop.f32.mrb[131].mxu0 }
 0x491   : > { %v13768_v41 = vadd.f32 %v8908_v3, %v8907_v4  ;;  %v13770_v53 = vadd.f32 %v9126_v20, %v9125_v0 }
 0x495   : > { %v8910_v31 = vpop.f32.mrb[216].mxu1  ;;  %v9128_v27 = vpop.f32.mrb[132].mxu0 }
 0x496   : > { %v8911_v28 = vpop.f32.mrb[217].mxu1  ;;  %v9129_v39 = vpop.f32.mrb[133].mxu0 }
 0x497   : > { %v13772_v44 = vadd.f32 %v8911_v28, %v8910_v31  ;;  %v8913_v42 = vpop.f32.mrb[218].mxu1  ;;  %v13774_v54 = vadd.f32 %v9129_v39, %v9128_v27  ;;  %v9131_v19 = vpop.f32.mrb[134].mxu0 }
 0x498   : > { %v8914_v62 = vpop.f32.mrb[219].mxu1  ;;  %v9132_v18 = vpop.f32.mrb[135].mxu0 }
 0x499   : > { %v13776_v43 = vadd.f32 %v8914_v62, %v8913_v42  ;;  %v13778_v34 = vadd.f32 %v9132_v18, %v9131_v19 }
 0x49d   : > { %v8916_v33 = vpop.f32.mrb[220].mxu1  ;;  %v9134_v7 = vpop.f32.mrb[136].mxu0 }
 0x49e   : > { %v8917_v57 = vpop.f32.mrb[221].mxu1  ;;  %v9135_v48 = vpop.f32.mrb[137].mxu0 }
 0x49f   : > { %v13780_v23 = vadd.f32 %v8917_v57, %v8916_v33  ;;  %v8919_v51 = vpop.f32.mrb[222].mxu1  ;;  %v13782_v24 = vadd.f32 %v9135_v48, %v9134_v7  ;;  %v9137_v38 = vpop.f32.mrb[138].mxu0 }
 0x4a0   : > { %v8920_v50 = vpop.f32.mrb[223].mxu1  ;;  %v9138_v6 = vpop.f32.mrb[139].mxu0 }
 0x4a1   : > { %v13784_v10 = vadd.f32 %v8920_v50, %v8919_v51  ;;  %v13786_v63 = vadd.f32 %v9138_v6, %v9137_v38 }
 0x4a5   : > { %v8922_v22 = vpop.f32.mrb[224].mxu1  ;;  %v9140_v12 = vpop.f32.mrb[140].mxu0 }
 0x4a6   : > { %v8923_v2 = vpop.f32.mrb[225].mxu1  ;;  %v9141_v46 = vpop.f32.mrb[141].mxu0 }
 0x4a7   : > { %v13788_v40 = vadd.f32 %v8923_v2, %v8922_v22  ;;  %v8925_v60 = vpop.f32.mrb[226].mxu1  ;;  %v13790_v4 = vadd.f32 %v9141_v46, %v9140_v12  ;;  %v9143_v0 = vpop.f32.mrb[142].mxu0 }
 0x4a8   : > { %v8926_v3 = vpop.f32.mrb[227].mxu1  ;;  %v9144_v31 = vpop.f32.mrb[143].mxu0 }
 0x4a9   : > { %v13792_v20 = vadd.f32 %v8926_v3, %v8925_v60  ;;  %v13794_v27 = vadd.f32 %v9144_v31, %v9143_v0 }
 0x4ad   : > { %v8928_v28 = vpop.f32.mrb[228].mxu1  ;;  %v9146_v39 = vpop.f32.mrb[144].mxu0 }
 0x4ae   : > { %v8929_v42 = vpop.f32.mrb[229].mxu1  ;;  %v9147_v62 = vpop.f32.mrb[145].mxu0 }
 0x4af   : > { %v13796_v19 = vadd.f32 %v8929_v42, %v8928_v28  ;;  %v8931_v18 = vpop.f32.mrb[230].mxu1  ;;  %v13798_v33 = vadd.f32 %v9147_v62, %v9146_v39  ;;  %v9149_v7 = vpop.f32.mrb[146].mxu0 }
 0x4b0   : > { %v8932_v57 = vpop.f32.mrb[231].mxu1  ;;  %v9150_v51 = vpop.f32.mrb[147].mxu0 }
 0x4b1   : > { %v13800_v48 = vadd.f32 %v8932_v57, %v8931_v18  ;;  %v13802_v38 = vadd.f32 %v9150_v51, %v9149_v7 }
 0x4b3   : > { %15379 = vst [vmem:[#allocation61_spill] sm:$0xff] %v13800_v48 }
 0x4b5   : > { %v8974_v50 = vpop.f32.mrb[232].mxu1  ;;  %v9152_v6 = vpop.f32.mrb[148].mxu0 }
 0x4b6   : > { %v8975_v22 = vpop.f32.mrb[233].mxu1  ;;  %v9153_v2 = vpop.f32.mrb[149].mxu0 }
 0x4b7   : > { %v8976_v12 = vadd.f32 %v8975_v22, %v8974_v50  ;;  %v8977_v46 = vpop.f32.mrb[234].mxu1  ;;  %v13804_v60 = vadd.f32 %v9153_v2, %v9152_v6  ;;  %v9155_v0 = vpop.f32.mrb[150].mxu0 }
 0x4b8   : > { %v8978_v3 = vpop.f32.mrb[235].mxu1  ;;  %v9156_v39 = vpop.f32.mrb[151].mxu0 }
 0x4b9   : > { %v9667_v31 = vadd.f32 %v8976_v12, %v13628_v8  ;;  %v8979_v28 = vadd.f32 %v8978_v3, %v8977_v46  ;;  %v13807_v42 = vadd.f32 %v9156_v39, %v9155_v0 }
 0x4bb   : > { %v9673_v62 = vadd.f32 %v8979_v28, %v13630_v21  ;;  %v13811_v18 = vadd.f32 %v9667_v31, %v13750_v26 }
 0x4bd   : > { %v8980_v7 = vpop.f32.mrb[236].mxu1  ;;  %v13814_v57 = vadd.f32 %v9673_v62, %v13754_v35  ;;  %v9158_v51 = vpop.f32.mrb[152].mxu0 }
 0x4be   : > { %v8981_v50 = vpop.f32.mrb[237].mxu1  ;;  %v9159_v22 = vpop.f32.mrb[153].mxu0 }
 0x4bf   : > { %v8982_v6 = vadd.f32 %v8981_v50, %v8980_v7  ;;  %v8983_v2 = vpop.f32.mrb[238].mxu1  ;;  %v13816_v48 = vadd.f32 %v9159_v22, %v9158_v51  ;;  %v9161_v8 = vpop.f32.mrb[154].mxu0 }
 0x4c0   : > { %v8984_v12 = vpop.f32.mrb[239].mxu1  ;;  %v9162_v21 = vpop.f32.mrb[155].mxu0 }
 0x4c1   : > { %v9664_v46 = vadd.f32 %v8982_v6, %v13646_v29  ;;  %v8985_v0 = vadd.f32 %v8984_v12, %v8983_v2  ;;  %v13819_v3 = vadd.f32 %v9162_v21, %v9161_v8 }
 0x4c3   : > { %v9670_v26 = vadd.f32 %v8985_v0, %v13648_v45  ;;  %v13823_v35 = vadd.f32 %v9664_v46, %v13758_v15 }
 0x4c5   : > { %v8986_v31 = vpop.f32.mrb[240].mxu1  ;;  %v13826_v28 = vadd.f32 %v9670_v26, %v13762_v36  ;;  %v9164_v39 = vpop.f32.mrb[156].mxu0 }
 0x4c6   : > { %v8987_v62 = vpop.f32.mrb[241].mxu1  ;;  %v9165_v51 = vpop.f32.mrb[157].mxu0 }
 0x4c7   : > { %v8988_v7 = vadd.f32 %v8987_v62, %v8986_v31  ;;  %v8989_v50 = vpop.f32.mrb[242].mxu1  ;;  %v13828_v22 = vadd.f32 %v9165_v51, %v9164_v39  ;;  %v9167_v29 = vpop.f32.mrb[158].mxu0 }
 0x4c8   : > { %v8990_v6 = vpop.f32.mrb[243].mxu1  ;;  %v9168_v45 = vpop.f32.mrb[159].mxu0 }
 0x4c9   : > { %v9679_v2 = vadd.f32 %v8988_v7, %v13664_v61  ;;  %v8991_v8 = vadd.f32 %v8990_v6, %v8989_v50  ;;  %v13831_v12 = vadd.f32 %v9168_v45, %v9167_v29 }
 0x4cb   : > { %v9685_v15 = vadd.f32 %v8991_v8, %v13666_v49  ;;  %v13835_v36 = vadd.f32 %v9679_v2, %v13766_v17 }
 0x4cd   : > { %v8992_v46 = vpop.f32.mrb[244].mxu1  ;;  %v13838_v0 = vadd.f32 %v9685_v15, %v13770_v53  ;;  %v9170_v21 = vpop.f32.mrb[160].mxu0 }
 0x4ce   : > { %v8993_v26 = vpop.f32.mrb[245].mxu1  ;;  %v9171_v39 = vpop.f32.mrb[161].mxu0 }
 0x4cf   : > { %v8994_v31 = vadd.f32 %v8993_v26, %v8992_v46  ;;  %v8995_v62 = vpop.f32.mrb[246].mxu1  ;;  %v13840_v51 = vadd.f32 %v9171_v39, %v9170_v21  ;;  %v9173_v61 = vpop.f32.mrb[162].mxu0 }
 0x4d0   : > { %v8996_v7 = vpop.f32.mrb[247].mxu1  ;;  %v9174_v49 = vpop.f32.mrb[163].mxu0 }
 0x4d1   : > { %v9676_v50 = vadd.f32 %v8994_v31, %v13682_v37  ;;  %v8997_v29 = vadd.f32 %v8996_v7, %v8995_v62  ;;  %v13843_v6 = vadd.f32 %v9174_v49, %v9173_v61 }
 0x4d3   : > { %v9682_v17 = vadd.f32 %v8997_v29, %v13684_v52  ;;  %v13847_v53 = vadd.f32 %v9676_v50, %v13774_v54 }
 0x4d5   : > { %v8998_v2 = vpop.f32.mrb[248].mxu1  ;;  %v13850_v8 = vadd.f32 %v9682_v17, %v13778_v34  ;;  %v9176_v45 = vpop.f32.mrb[164].mxu0 }
 0x4d6   : > { %v8999_v15 = vpop.f32.mrb[249].mxu1  ;;  %v9177_v21 = vpop.f32.mrb[165].mxu0 }
 0x4d7   : > { %v9000_v46 = vadd.f32 %v8999_v15, %v8998_v2  ;;  %v9001_v26 = vpop.f32.mrb[250].mxu1  ;;  %v13852_v39 = vadd.f32 %v9177_v21, %v9176_v45  ;;  %v9179_v37 = vpop.f32.mrb[166].mxu0 }
 0x4d8   : > { %v9002_v31 = vpop.f32.mrb[251].mxu1  ;;  %v9180_v52 = vpop.f32.mrb[167].mxu0 }
 0x4d9   : > { %v9691_v62 = vadd.f32 %v9000_v46, %v13702_v55  ;;  %v9003_v61 = vadd.f32 %v9002_v31, %v9001_v26  ;;  %v13855_v7 = vadd.f32 %v9180_v52, %v9179_v37 }
 0x4db   : > { %v9697_v54 = vadd.f32 %v9003_v61, %v13704_v11  ;;  %v13859_v34 = vadd.f32 %v9691_v62, %v13782_v24 }
 0x4dd   : > { %v9004_v50 = vpop.f32.mrb[252].mxu1  ;;  %v13862_v29 = vadd.f32 %v9697_v54, %v13786_v63  ;;  %v9182_v49 = vpop.f32.mrb[168].mxu0 }
 0x4de   : > { %v9005_v17 = vpop.f32.mrb[253].mxu1  ;;  %v9183_v45 = vpop.f32.mrb[169].mxu0 }
 0x4df   : > { %v9006_v2 = vadd.f32 %v9005_v17, %v9004_v50  ;;  %v9007_v15 = vpop.f32.mrb[254].mxu1  ;;  %v13864_v21 = vadd.f32 %v9183_v45, %v9182_v49  ;;  %v9185_v55 = vpop.f32.mrb[170].mxu0 }
 0x4e0   : > { %v9008_v46 = vpop.f32.mrb[255].mxu1  ;;  %v9186_v11 = vpop.f32.mrb[171].mxu0 }
 0x4e1   : > { %v9688_v26 = vadd.f32 %v9006_v2, %v13730_v16  ;;  %v9009_v37 = vadd.f32 %v9008_v46, %v9007_v15  ;;  %v13867_v31 = vadd.f32 %v9186_v11, %v9185_v55 }
 0x4e3   : > { %v9694_v24 = vadd.f32 %v9009_v37, %v13732_v58  ;;  %v13871_v63 = vadd.f32 %v9688_v26, %v13790_v4 }
 0x4e5   : > { %v9010_v62 = vpop.f32.mrb[0].mxu1  ;;  %v13874_v61 = vadd.f32 %v9694_v24, %v13794_v27  ;;  %v9188_v52 = vpop.f32.mrb[172].mxu0 }
 0x4e6   : > { %v9011_v54 = vpop.f32.mrb[1].mxu1  ;;  %v9189_v49 = vpop.f32.mrb[173].mxu0 }
 0x4e7   : > { %v9012_v50 = vadd.f32 %v9011_v54, %v9010_v62  ;;  %v9013_v17 = vpop.f32.mrb[2].mxu1  ;;  %v13876_v45 = vadd.f32 %v9189_v49, %v9188_v52  ;;  %v9191_v16 = vpop.f32.mrb[174].mxu0 }
 0x4e8   : > { %v9014_v2 = vpop.f32.mrb[3].mxu1  ;;  %v9192_v58 = vpop.f32.mrb[175].mxu0 }
 0x4e9   : > { %v9703_v15 = vadd.f32 %v9012_v50, %v13736_v9  ;;  %v9015_v55 = vadd.f32 %v9014_v2, %v9013_v17  ;;  %v13879_v46 = vadd.f32 %v9192_v58, %v9191_v16 }
 0x4eb   : > { %v9709_v4 = vadd.f32 %v9015_v55, %v13738_v30  ;;  %v13883_v27 = vadd.f32 %v9703_v15, %v13798_v33 }
 0x4ed   : > { %v9016_v26 = vpop.f32.mrb[4].mxu1  ;;  %v13886_v37 = vadd.f32 %v9709_v4, %v13802_v38  ;;  %v9194_v11 = vpop.f32.mrb[176].mxu0 }
 0x4ee   : > { %v9017_v24 = vpop.f32.mrb[5].mxu1  ;;  %v9195_v52 = vpop.f32.mrb[177].mxu0 }
 0x4ef   : > { %v9018_v62 = vadd.f32 %v9017_v24, %v9016_v26  ;;  %v9019_v54 = vpop.f32.mrb[6].mxu1  ;;  %v13888_v49 = vadd.f32 %v9195_v52, %v9194_v11  ;;  %v9197_v9 = vpop.f32.mrb[178].mxu0 }
 0x4f0   : > { %v9020_v50 = vpop.f32.mrb[7].mxu1  ;;  %v9198_v30 = vpop.f32.mrb[179].mxu0 }
 0x4f1   : > { %v9700_v17 = vadd.f32 %v9018_v62, %v13740_v5  ;;  %v9021_v16 = vadd.f32 %v9020_v50, %v9019_v54  ;;  %v13891_v2 = vadd.f32 %v9198_v30, %v9197_v9 }
 0x4f3   : > { %v9706_v33 = vadd.f32 %v9021_v16, %v13742_v56  ;;  %v13895_v38 = vadd.f32 %v9700_v17, %v13804_v60 }
 0x4f5   : > { %v9022_v15 = vpop.f32.mrb[8].mxu1  ;;  %v13898_v55 = vadd.f32 %v9706_v33, %v13807_v42  ;;  %v9200_v58 = vpop.f32.mrb[180].mxu0  ;;  %v13915_v33 = vld [vmem:[%s14092_s6] ss:$0 sm:$0xff] }
 0x4f6   : > { %v9023_v4 = vpop.f32.mrb[9].mxu1  ;;  %v9201_v11 = vpop.f32.mrb[181].mxu0 }
 0x4f7   : > { %v9024_v26 = vadd.f32 %v9023_v4, %v9022_v15  ;;  %v9025_v24 = vpop.f32.mrb[10].mxu1  ;;  %v13900_v52 = vadd.f32 %v9201_v11, %v9200_v58  ;;  %v9203_v5 = vpop.f32.mrb[182].mxu0 }
 0x4f8   : > { %v9026_v62 = vpop.f32.mrb[11].mxu1  ;;  %v9204_v56 = vpop.f32.mrb[183].mxu0 }
 0x4f9   : > { %v9715_v54 = vadd.f32 %v9024_v26, %v13744_v14  ;;  %v9027_v9 = vadd.f32 %v9026_v62, %v9025_v24  ;;  %v13903_v50 = vadd.f32 %v9204_v56, %v9203_v5 }
 0x4fb   : > { %v9721_v60 = vadd.f32 %v9027_v9, %v13746_v59  ;;  %v13907_v42 = vadd.f32 %v9715_v54, %v13816_v48 }
 0x4fd   : > { %v9028_v17 = vpop.f32.mrb[12].mxu1  ;;  %v13910_v16 = vadd.f32 %v9721_v60, %v13819_v3  ;;  %v9522_v30 = vpop.f32.mrb[88].mxu0 }
 0x4fe   : > { %v9029_v14 = vpop.f32.mrb[13].mxu1  ;;  %v9666_v15 = vadd.f32 %v13823_v35, %v9522_v30  ;;  %v6829_v4 = vpop.f32.mrb[89].mxu0 }
 0x4ff   : > { %v9030_v58 = vadd.f32 %v9029_v14, %v9028_v17  ;;  %v9031_v26 = vpop.f32.mrb[14].mxu1  ;;  %v9669_v59 = vadd.f32 %v13811_v18, %v6829_v4  ;;  %v9523_v48 = vpop.f32.mrb[90].mxu0 }
 0x500   : > { %v9032_v11 = vpop.f32.mrb[15].mxu1  ;;  %v7093_v24 = vadd.f32 %v9666_v15, %v13915_v33  ;;  %v9672_v5 = vadd.f32 %v13826_v28, %v9523_v48  ;;  %v6832_v54 = vpop.f32.mrb[91].mxu0 }
 0x501   : > { %v9712_v3 = vadd.f32 %v9030_v58, %v13748_v13  ;;  %v9033_v62 = vadd.f32 %v9032_v11, %v9031_v26  ;;  %v7091_v9 = vadd.f32 %v9669_v59, %v13915_v33  ;;  %v9675_v56 = vadd.f32 %v13814_v57, %v6832_v54 }
 0x502   : > { %v7125_v35 = vmax.f32 %v7093_v24, 0.0  ;;  %v7094_v60 = vadd.f32 %v9672_v5, %v13915_v33 }
 0x503   : > { %v9718_v18 = vadd.f32 %v9033_v62, %v13752_v47  ;;  %v13927_v17 = vadd.f32 %v9712_v3, %v13828_v22  ;;  %v7123_v30 = vmax.f32 %v7091_v9, 0.0  ;;  %v7092_v13 = vadd.f32 %v9675_v56, %v13915_v33 }
 0x504   : > { %v7791_v28 = vpack.c.bf16 %v7125_v35, %v7125_v35  ;;  %v7126_v14 = vmax.f32 %v7094_v60, 0.0 }
 0x505   : > { %v9034_v15 = vpop.f32.mrb[16].mxu1  ;;  %v13931_v58 = vadd.f32 %v9718_v18, %v13831_v12  ;;  %v7789_v57 = vpack.c.bf16 %v7123_v30, %v7123_v30  ;;  %v7124_v4 = vmax.f32 %v7092_v13, 0.0  ;;  %v9526_v26 = vpop.f32.mrb[92].mxu0 }
 0x506   : > { %v9035_v59 = vpop.f32.mrb[17].mxu1  ;;  %7286 = vst.msk [vmem:[%s10139_s10 + $0x8] sm:$0xf] %vm7283_vm3, %v7791_v28  ;;  %v7792_v47 = vpack.c.bf16 %v7126_v14, %v7126_v14  ;;  %v9678_v22 = vadd.f32 %v13847_v53, %v9526_v26  ;;  %v6845_v11 = vpop.f32.mrb[93].mxu0 }
 0x507   : > { %v9036_v48 = vadd.f32 %v9035_v59, %v9034_v15  ;;  %v9037_v24 = vpop.f32.mrb[18].mxu1  ;;  %7284 = vst.msk [vmem:[%s10139_s10] sm:$0xf] %vm7283_vm3, %v7789_v57  ;;  %v7790_v3 = vpack.c.bf16 %v7124_v4, %v7124_v4  ;;  %v9681_v12 = vadd.f32 %v13835_v36, %v6845_v11  ;;  %v9527_v5 = vpop.f32.mrb[94].mxu0 }
 0x508   : > { %v9038_v62 = vpop.f32.mrb[19].mxu1  ;;  %7287 = vst.msk [vmem:[%s10139_s10 + $0xc] sm:$0xf] %vm7283_vm3, %v7792_v47  ;;  %v7097_v54 = vadd.f32 %v9678_v22, %v13915_v33  ;;  %v9684_v56 = vadd.f32 %v13850_v8, %v9527_v5  ;;  %v6848_v53 = vpop.f32.mrb[95].mxu0 }
 0x509   : > { %v9727_v9 = vadd.f32 %v9036_v48, %v13756_v1  ;;  %v9039_v35 = vadd.f32 %v9038_v62, %v9037_v24  ;;  %7285 = vst.msk [vmem:[%s10139_s10 + $0x4] sm:$0xf] %vm7283_vm3, %v7790_v3  ;;  %v7095_v60 = vadd.f32 %v9681_v12, %v13915_v33  ;;  %v9687_v18 = vadd.f32 %v13838_v0, %v6848_v53 }
 0x50a   : > { %v7129_v36 = vmax.f32 %v7097_v54, 0.0  ;;  %v7098_v30 = vadd.f32 %v9684_v56, %v13915_v33 }
 0x50b   : > { %v9733_v13 = vadd.f32 %v9039_v35, %v13760_v32  ;;  %v13951_v28 = vadd.f32 %v9727_v9, %v13840_v51  ;;  %v7127_v1 = vmax.f32 %v7095_v60, 0.0  ;;  %v7096_v8 = vadd.f32 %v9687_v18, %v13915_v33 }
 0x50c   : > { %v7795_v14 = vpack.c.bf16 %v7129_v36, %v7129_v36  ;;  %v7130_v15 = vmax.f32 %v7098_v30, 0.0 }
 0x50d   : > { %v9040_v57 = vpop.f32.mrb[20].mxu1  ;;  %v13955_v4 = vadd.f32 %v9733_v13, %v13843_v6  ;;  %v7793_v0 = vpack.c.bf16 %v7127_v1, %v7127_v1  ;;  %v7128_v26 = vmax.f32 %v7096_v8, 0.0  ;;  %v9530_v59 = vpop.f32.mrb[96].mxu0 }
 0x50e   : > { %v9041_v47 = vpop.f32.mrb[21].mxu1  ;;  %7290 = vst.msk [vmem:[%s10139_s10 + $0x18] sm:$0xf] %vm7283_vm3, %v7795_v14  ;;  %v7796_v32 = vpack.c.bf16 %v7130_v15, %v7130_v15  ;;  %v9690_v51 = vadd.f32 %v13871_v63, %v9530_v59  ;;  %v6861_v48 = vpop.f32.mrb[97].mxu0 }
 0x50f   : > { %v9042_v22 = vadd.f32 %v9041_v47, %v9040_v57  ;;  %v9043_v11 = vpop.f32.mrb[22].mxu1  ;;  %7288 = vst.msk [vmem:[%s10139_s10 + $0x10] sm:$0xf] %vm7283_vm3, %v7793_v0  ;;  %v7794_v24 = vpack.c.bf16 %v7128_v26, %v7128_v26  ;;  %v9693_v6 = vadd.f32 %v13859_v34, %v6861_v48  ;;  %v9531_v3 = vpop.f32.mrb[98].mxu0 }
 0x510   : > { %v9044_v12 = vpop.f32.mrb[23].mxu1  ;;  %7291 = vst.msk [vmem:[%s10139_s10 + $0x1c] sm:$0xf] %vm7283_vm3, %v7796_v32  ;;  %v7101_v5 = vadd.f32 %v9690_v51, %v13915_v33  ;;  %v9696_v54 = vadd.f32 %v13874_v61, %v9531_v3  ;;  %v6864_v63 = vpop.f32.mrb[99].mxu0 }
 0x511   : > { %v9724_v62 = vadd.f32 %v9042_v22, %v13764_v25  ;;  %v9045_v9 = vadd.f32 %v9044_v12, %v9043_v11  ;;  %7289 = vst.msk [vmem:[%s10139_s10 + $0x14] sm:$0xf] %vm7283_vm3, %v7794_v24  ;;  %v7099_v56 = vadd.f32 %v9693_v6, %v13915_v33  ;;  %v9699_v35 = vadd.f32 %v13862_v29, %v6864_v63 }
 0x512   : > { %v7133_v34 = vmax.f32 %v7101_v5, 0.0  ;;  %v7102_v53 = vadd.f32 %v9696_v54, %v13915_v33 }
 0x513   : > { %v9730_v60 = vadd.f32 %v9045_v9, %v13768_v41  ;;  %v13975_v18 = vadd.f32 %v9724_v62, %v13852_v39  ;;  %v7131_v25 = vmax.f32 %v7099_v56, 0.0  ;;  %v7100_v61 = vadd.f32 %v9699_v35, %v13915_v33 }
 0x514   : > { %v7799_v36 = vpack.c.bf16 %v7133_v34, %v7133_v34  ;;  %v7134_v30 = vmax.f32 %v7102_v53, 0.0 }
 0x515   : > { %v9046_v13 = vpop.f32.mrb[24].mxu1  ;;  %v13979_v1 = vadd.f32 %v9730_v60, %v13855_v7  ;;  %v7797_v29 = vpack.c.bf16 %v7131_v25, %v7131_v25  ;;  %v7132_v8 = vmax.f32 %v7100_v61, 0.0  ;;  %v9534_v14 = vpop.f32.mrb[100].mxu0 }
 0x516   : > { %v9047_v15 = vpop.f32.mrb[25].mxu1  ;;  %7294 = vst.msk [vmem:[%s10139_s10 + $0x28] sm:$0xf] %vm7283_vm3, %v7799_v36  ;;  %v7800_v41 = vpack.c.bf16 %v7134_v30, %v7134_v30  ;;  %v9702_v39 = vadd.f32 %v13895_v38, %v9534_v14  ;;  %v6877_v0 = vpop.f32.mrb[101].mxu0 }
 0x517   : > { %v9048_v57 = vadd.f32 %v9047_v15, %v9046_v13  ;;  %v9049_v26 = vpop.f32.mrb[26].mxu1  ;;  %7292 = vst.msk [vmem:[%s10139_s10 + $0x20] sm:$0xf] %vm7283_vm3, %v7797_v29  ;;  %v7798_v59 = vpack.c.bf16 %v7132_v8, %v7132_v8  ;;  %v9705_v7 = vadd.f32 %v13883_v27, %v6877_v0  ;;  %v9535_v47 = vpop.f32.mrb[102].mxu0 }
 0x518   : > { %v9050_v32 = vpop.f32.mrb[27].mxu1  ;;  %7295 = vst.msk [vmem:[%s10139_s10 + $0x2c] sm:$0xf] %vm7283_vm3, %v7800_v41  ;;  %v7105_v51 = vadd.f32 %v9702_v39, %v13915_v33  ;;  %v9708_v48 = vadd.f32 %v13898_v55, %v9535_v47  ;;  %v6880_v38 = vpop.f32.mrb[103].mxu0 }
 0x519   : > { %v9739_v22 = vadd.f32 %v9048_v57, %v13772_v44  ;;  %v9051_v11 = vadd.f32 %v9050_v32, %v9049_v26  ;;  %7293 = vst.msk [vmem:[%s10139_s10 + $0x24] sm:$0xf] %vm7283_vm3, %v7798_v59  ;;  %v7103_v24 = vadd.f32 %v9705_v7, %v13915_v33  ;;  %v9711_v6 = vadd.f32 %v13886_v37, %v6880_v38 }
 0x51a   : > { %v7137_v27 = vmax.f32 %v7105_v51, 0.0  ;;  %v7106_v3 = vadd.f32 %v9708_v48, %v13915_v33 }
 0x51b   : > { %v9745_v12 = vadd.f32 %v9051_v11, %v13776_v43  ;;  %v13999_v5 = vadd.f32 %v9739_v22, %v13864_v21  ;;  %v7135_v44 = vmax.f32 %v7103_v24, 0.0  ;;  %v7104_v55 = vadd.f32 %v9711_v6, %v13915_v33 }
 0x51c   : > { %v7803_v62 = vpack.c.bf16 %v7137_v27, %v7137_v27  ;;  %v7138_v54 = vmax.f32 %v7106_v3, 0.0 }
 0x51d   : > { %v9052_v9 = vpop.f32.mrb[28].mxu1  ;;  %v14003_v63 = vadd.f32 %v9745_v12, %v13867_v31  ;;  %v7801_v37 = vpack.c.bf16 %v7135_v44, %v7135_v44  ;;  %v7136_v56 = vmax.f32 %v7104_v55, 0.0  ;;  %v9538_v35 = vpop.f32.mrb[104].mxu0 }
 0x51e   : > { %v9053_v34 = vpop.f32.mrb[29].mxu1  ;;  %7298 = vst.msk [vmem:[%s10139_s10 + $0x38] sm:$0xf] %vm7283_vm3, %v7803_v62  ;;  %v7804_v43 = vpack.c.bf16 %v7138_v54, %v7138_v54  ;;  %v9714_v21 = vadd.f32 %v13927_v17, %v9538_v35  ;;  %v6893_v60 = vpop.f32.mrb[105].mxu0 }
 0x51f   : > { %v9054_v53 = vadd.f32 %v9053_v34, %v9052_v9  ;;  %v9055_v25 = vpop.f32.mrb[30].mxu1  ;;  %7296 = vst.msk [vmem:[%s10139_s10 + $0x30] sm:$0xf] %vm7283_vm3, %v7801_v37  ;;  %v7802_v61 = vpack.c.bf16 %v7136_v56, %v7136_v56  ;;  %v9717_v31 = vadd.f32 %v13907_v42, %v6893_v60  ;;  %v9539_v36 = vpop.f32.mrb[106].mxu0 }
 0x520   : > { %v9056_v30 = vpop.f32.mrb[31].mxu1  ;;  %7299 = vst.msk [vmem:[%s10139_s10 + $0x3c] sm:$0xf] %vm7283_vm3, %v7804_v43  ;;  %v7109_v13 = vadd.f32 %v9714_v21, %v13915_v33  ;;  %v9720_v8 = vadd.f32 %v13931_v58, %v9539_v36  ;;  %v6896_v17 = vpop.f32.mrb[107].mxu0 }
 0x521   : > { %v9736_v29 = vadd.f32 %v9054_v53, %v13780_v23  ;;  %v9057_v14 = vadd.f32 %v9056_v30, %v9055_v25  ;;  %7297 = vst.msk [vmem:[%s10139_s10 + $0x34] sm:$0xf] %vm7283_vm3, %v7802_v61  ;;  %v7107_v15 = vadd.f32 %v9717_v31, %v13915_v33  ;;  %v9723_v41 = vadd.f32 %v13910_v16, %v6896_v17 }
 0x522   : > { %v7141_v42 = vmax.f32 %v7109_v13, 0.0  ;;  %v7110_v39 = vadd.f32 %v9720_v8, %v13915_v33 }
 0x523   : > { %v9742_v57 = vadd.f32 %v9057_v14, %v13784_v10  ;;  %v9737_v0 = vadd.f32 %v9736_v29, %v13876_v45  ;;  %v7139_v26 = vmax.f32 %v7107_v15, 0.0  ;;  %v7108_v23 = vadd.f32 %v9723_v41, %v13915_v33 }
 0x524   : > { %v7807_v58 = vpack.c.bf16 %v7141_v42, %v7141_v42  ;;  %v7142_v59 = vmax.f32 %v7110_v39, 0.0 }
 0x525   : > { %v9058_v7 = vpop.f32.mrb[32].mxu1  ;;  %v9743_v47 = vadd.f32 %v9742_v57, %v13879_v46  ;;  %v7805_v32 = vpack.c.bf16 %v7139_v26, %v7139_v26  ;;  %v7140_v51 = vmax.f32 %v7108_v23, 0.0  ;;  %v9542_v16 = vpop.f32.mrb[108].mxu0 }
 0x526   : > { %v9059_v22 = vpop.f32.mrb[33].mxu1  ;;  %7302 = vst.msk [vmem:[%s10139_s10 + $0x48] sm:$0xf] %vm7283_vm3, %v7807_v58  ;;  %v7808_v48 = vpack.c.bf16 %v7142_v59, %v7142_v59  ;;  %v9726_v10 = vadd.f32 %v13975_v18, %v9542_v16  ;;  %v6909_v11 = vpop.f32.mrb[109].mxu0 }
 0x527   : > { %v9060_v45 = vadd.f32 %v9059_v22, %v9058_v7  ;;  %v9061_v38 = vpop.f32.mrb[34].mxu1  ;;  %7300 = vst.msk [vmem:[%s10139_s10 + $0x40] sm:$0xf] %vm7283_vm3, %v7805_v32  ;;  %v7806_v24 = vpack.c.bf16 %v7140_v51, %v7140_v51  ;;  %v9729_v6 = vadd.f32 %v13951_v28, %v6909_v11  ;;  %v9543_v46 = vpop.f32.mrb[110].mxu0 }
 0x528   : > { %v9062_v27 = vpop.f32.mrb[35].mxu1  ;;  %7303 = vst.msk [vmem:[%s10139_s10 + $0x4c] sm:$0xf] %vm7283_vm3, %v7808_v48  ;;  %v7113_v3 = vadd.f32 %v9726_v10, %v13915_v33  ;;  %v9732_v44 = vadd.f32 %v13979_v1, %v9543_v46  ;;  %v6912_v18 = vpop.f32.mrb[111].mxu0 }
 0x529   : > { %v9751_v12 = vadd.f32 %v9060_v45, %v13788_v40  ;;  %v9063_v55 = vadd.f32 %v9062_v27, %v9061_v38  ;;  %7301 = vst.msk [vmem:[%s10139_s10 + $0x44] sm:$0xf] %vm7283_vm3, %v7806_v24  ;;  %v7111_v62 = vadd.f32 %v9729_v6, %v13915_v33  ;;  %v9735_v54 = vadd.f32 %v13955_v4, %v6912_v18 }
 0x52a   : > { %v7145_v28 = vmax.f32 %v7113_v3, 0.0  ;;  %v7114_v9 = vadd.f32 %v9732_v44, %v13915_v33 }
 0x52b   : > { %v9757_v37 = vadd.f32 %v9063_v55, %v13792_v20  ;;  %v9752_v56 = vadd.f32 %v9751_v12, %v13888_v49  ;;  %v7143_v35 = vmax.f32 %v7111_v62, 0.0  ;;  %v7112_v40 = vadd.f32 %v9735_v54, %v13915_v33 }
 0x52c   : > { %v7811_v1 = vpack.c.bf16 %v7145_v28, %v7145_v28  ;;  %v7146_v34 = vmax.f32 %v7114_v9, 0.0 }
 0x52d   : > { %v9064_v43 = vpop.f32.mrb[36].mxu1  ;;  %v9758_v21 = vadd.f32 %v9757_v37, %v13891_v2  ;;  %v7809_v53 = vpack.c.bf16 %v7143_v35, %v7143_v35  ;;  %v7144_v60 = vmax.f32 %v7112_v40, 0.0  ;;  %v9546_v4 = vpop.f32.mrb[112].mxu0 }
 0x52e   : > { %v9065_v25 = vpop.f32.mrb[37].mxu1  ;;  %7306 = vst.msk [vmem:[%s10139_s10 + $0x58] sm:$0xf] %vm7283_vm3, %v7811_v1  ;;  %v7812_v61 = vpack.c.bf16 %v7146_v34, %v7146_v34  ;;  %v9738_v20 = vadd.f32 %v9737_v0, %v9546_v4  ;;  %v6925_v31 = vpop.f32.mrb[113].mxu0  ;;  %v15380_v0 = vld [vmem:[#allocation61_spill] sm:$0xff] }
 0x52f   : > { %v9066_v49 = vadd.f32 %v9065_v25, %v9064_v43  ;;  %v9067_v36 = vpop.f32.mrb[38].mxu1  ;;  %7304 = vst.msk [vmem:[%s10139_s10 + $0x50] sm:$0xf] %vm7283_vm3, %v7809_v53  ;;  %v7810_v30 = vpack.c.bf16 %v7144_v60, %v7144_v60  ;;  %v9741_v13 = vadd.f32 %v13999_v5, %v6925_v31  ;;  %v9547_v29 = vpop.f32.mrb[114].mxu0 }
 0x530   : > { %v9068_v2 = vpop.f32.mrb[39].mxu1  ;;  %7307 = vst.msk [vmem:[%s10139_s10 + $0x5c] sm:$0xf] %vm7283_vm3, %v7812_v61  ;;  %v7117_v8 = vadd.f32 %v9738_v20, %v13915_v33  ;;  %v9744_v17 = vadd.f32 %v9743_v47, %v9547_v29  ;;  %v6928_v41 = vpop.f32.mrb[115].mxu0 }
 0x531   : > { %v9748_v14 = vadd.f32 %v9066_v49, %v13796_v19  ;;  %v9069_v15 = vadd.f32 %v9068_v2, %v9067_v36  ;;  %7305 = vst.msk [vmem:[%s10139_s10 + $0x54] sm:$0xf] %vm7283_vm3, %v7810_v30  ;;  %v7115_v42 = vadd.f32 %v9741_v13, %v13915_v33  ;;  %v9747_v39 = vadd.f32 %v14003_v63, %v6928_v41 }
 0x532   : > { %v7149_v57 = vmax.f32 %v7117_v8, 0.0  ;;  %v7118_v5 = vadd.f32 %v9744_v17, %v13915_v33 }
 0x533   : > { %v9754_v26 = vadd.f32 %v9069_v15, %v15380_v0  ;;  %v9749_v23 = vadd.f32 %v9748_v14, %v13900_v52  ;;  %v7147_v58 = vmax.f32 %v7115_v42, 0.0  ;;  %v7116_v19 = vadd.f32 %v9747_v39, %v13915_v33 }
 0x534   : > { %v7815_v59 = vpack.c.bf16 %v7149_v57, %v7149_v57  ;;  %v7150_v7 = vmax.f32 %v7118_v5, 0.0 }
 0x535   : > { %v9755_v47 = vadd.f32 %v9754_v26, %v13903_v50  ;;  %v7813_v32 = vpack.c.bf16 %v7147_v58, %v7147_v58  ;;  %v7148_v51 = vmax.f32 %v7116_v19, 0.0  ;;  %v9550_v63 = vpop.f32.mrb[116].mxu0 }
 0x536   : > { %7310 = vst.msk [vmem:[%s10139_s10 + $0x68] sm:$0xf] %vm7283_vm3, %v7815_v59  ;;  %v7816_v16 = vpack.c.bf16 %v7150_v7, %v7150_v7  ;;  %v9750_v22 = vadd.f32 %v9749_v23, %v9550_v63  ;;  %v6941_v48 = vpop.f32.mrb[117].mxu0 }
 0x537   : > { %7308 = vst.msk [vmem:[%s10139_s10 + $0x60] sm:$0xf] %vm7283_vm3, %v7813_v32  ;;  %v7814_v52 = vpack.c.bf16 %v7148_v51, %v7148_v51  ;;  %v9753_v10 = vadd.f32 %v9752_v56, %v6941_v48  ;;  %v9551_v45 = vpop.f32.mrb[118].mxu0 }
 0x538   : > { %7311 = vst.msk [vmem:[%s10139_s10 + $0x6c] sm:$0xf] %vm7283_vm3, %v7816_v16  ;;  %v7121_v11 = vadd.f32 %v9750_v22, %v13915_v33  ;;  %v9756_v50 = vadd.f32 %v9755_v47, %v9551_v45  ;;  %v6944_v38 = vpop.f32.mrb[119].mxu0 }
 0x539   : > { %7309 = vst.msk [vmem:[%s10139_s10 + $0x64] sm:$0xf] %vm7283_vm3, %v7814_v52  ;;  %v7119_v24 = vadd.f32 %v9753_v10, %v13915_v33  ;;  %v9759_v6 = vadd.f32 %v9758_v21, %v6944_v38 }
 0x53a   : > { %v7153_v46 = vmax.f32 %v7121_v11, 0.0  ;;  %v7122_v27 = vadd.f32 %v9756_v50, %v13915_v33 }
 0x53b   : > { %v7151_v3 = vmax.f32 %v7119_v24, 0.0  ;;  %v7120_v12 = vadd.f32 %v9759_v6, %v13915_v33 }
 0x53c   : > { %v7819_v44 = vpack.c.bf16 %v7153_v46, %v7153_v46  ;;  %v7154_v55 = vmax.f32 %v7122_v27, 0.0 }
 0x53d   : > { %v7817_v18 = vpack.c.bf16 %v7151_v3, %v7151_v3  ;;  %v7152_v62 = vmax.f32 %v7120_v12, 0.0 }
 0x53e   : > { %7314 = vst.msk [vmem:[%s10139_s10 + $0x78] sm:$0xf] %vm7283_vm3, %v7819_v44  ;;  %v7820_v54 = vpack.c.bf16 %v7154_v55, %v7154_v55 }
 0x53f   : > { %7312 = vst.msk [vmem:[%s10139_s10 + $0x70] sm:$0xf] %vm7283_vm3, %v7817_v18  ;;  %v7818_v28 = vpack.c.bf16 %v7152_v62, %v7152_v62 }
 0x540   : > { %7315 = vst.msk [vmem:[%s10139_s10 + $0x7c] sm:$0xf] %vm7283_vm3, %v7820_v54 }
 0x541   : > { %7313 = vst.msk [vmem:[%s10139_s10 + $0x74] sm:$0xf] %vm7283_vm3, %v7818_v28 }
 0x542 PF: > { %s17_s24 = sadd.s32 1, %s10079_s24  }
 0x543   : > { %p14_p5 = scmp.ge.s32.totalorder %s17_s24, 4  }
 0x545   :  { %16 = sbr.rel (!%p14_p5) target bundleno = 1 (0x1), region = 87 }

</bundles_post_ra>
